<compile_context>
chip_gen: v7x
topology: tpu7x:2x2x1
jax: 0.10.0
libtpu: 0.0.40
codegen_flags: <defaults>
</compile_context>

<pallas_src>
import functools

import jax
import jax.numpy as jnp
from jax import lax
from jax.experimental import pallas as pl
from jax.experimental.pallas import tpu as pltpu


def _fused_block_kernel(x_ref, w1_ref, w2_ref, s1_ref, b1_ref, s2_ref, b2_ref, mask_ref,
                        o_ref, col_ref, *, shift_groups):
    """One batch sample per grid step.

    x_ref   : (CP, LP) f32   zero-halo-padded, spatially-flattened, channel-padded input
    w*_ref  : (3, CP, 9*CP) bf16  conv weights, one (CP, 9*CP) slab per kd tap-group
    s1_ref  : (CP, 1) f32    dropout3d keep/(1-p) folded into BN1 scale (per sample)
    b1/s2/b2: (CP, 1) f32    folded BatchNorm bias / scale / bias
    mask_ref: (1, LP) f32    1.0 at interior (valid) voxels, 0.0 at halo / lane tail
    o_ref   : (CP, LP) f32   output in the same padded-flat layout (cropped by the wrapper)
    col_ref : (2, 9*CP, LP) bf16  double-buffered tap-group im2col scratch
    """
    CP, LP = x_ref.shape

    def conv(v, w_ref):
        # v: (CP, LP) f32.  For each kd tap-group: roll the 9 taps (XLU) into one half of the
        # bf16 col scratch (tile-aligned 16-row stores), then one MXU contraction accumulates
        # into the f32 acc.  Chunking shrinks the scratch and lets rolls/stores of group g+1
        # overlap the matmul of group g (different scratch slot).
        # TODO(synk): roll directly in bf16 (pre-cast v once per conv) to also halve XLU bytes.
        acc = jnp.zeros((CP, LP), jnp.float32)
        for g, group in enumerate(shift_groups):
            slot = g % 2
            for j, shift in enumerate(group):
                rolled = v if shift == 0 else pltpu.roll(v, shift, axis=1)
                col_ref[slot, pl.ds(j * CP, CP), :] = rolled.astype(col_ref.dtype)
            acc = acc + jnp.dot(w_ref[g], col_ref[slot],
                                preferred_element_type=jnp.float32)
        return acc

    # ---- conv1 (+ dropout3d folded into s1) + BN1 + ReLU; halo re-zeroed for conv2 ----
    keep = mask_ref[...] != 0.0                       # (1, LP) interior-voxel mask
    y = conv(x_ref[...], w1_ref)
    y = y * s1_ref[...] + b1_ref[...]
    y = jnp.where(keep, jnp.maximum(y, 0.0), 0.0)     # ReLU + zero halo (NaN-safe)

    # ---- conv2 + BN2 + residual add + ReLU ----
    z = conv(y, w2_ref)
    z = z * s2_ref[...] + b2_ref[...]
    o_ref[...] = jnp.maximum(z + x_ref[...], 0.0).astype(o_ref.dtype)


def res_basic_block(x, w1_pt, w2_pt, bn1_s, bn1_b, bn2_s, bn2_b, drop_scale):
    """Fused ResBasicBlock forward (stride=1).

    x            : (N, C, D, H, W) float32, NCDHW as in PyTorch.
    w1_pt, w2_pt : (C, C, 3, 3, 3) float32, PyTorch OIDHW conv weights (bias=False).
    bn*_s, bn*_b : (C,) folded BatchNorm3d scale / bias.
    drop_scale   : (N, C) dropout3d keep-mask / (1 - p).
    """
    N, C, D, H, W = x.shape
    assert w1_pt.shape == (C, C, 3, 3, 3) and w2_pt.shape == (C, C, 3, 3, 3)
    CP = ((C + 15) // 16) * 16          # channel pad -> bf16 (16,128) tile alignment
    Dp, Hp, Wp = D + 2, H + 2, W + 2    # 1-voxel zero halo ("SAME" padding for 3x3x3, stride 1)
    L = Dp * Hp * Wp
    LP = ((L + 127) // 128) * 128       # lane-dense flattened-spatial length

    # ---- host-side packing (layout plumbing only) --------------------------------
    # TODO(synk): for large activations, move the halo/lane pad and final crop into the
    # kernel's own DMA to save the extra HBM passes; at these shapes it is a tiny fused copy.
    xp = jnp.pad(x, ((0, 0), (0, CP - C), (1, 1), (1, 1), (1, 1)))
    xf = jnp.pad(xp.reshape(N, CP, L), ((0, 0), (0, 0), (0, LP - L)))

    # Conv weights -> (kd, co, (kh,kw,ci)) bf16, channel-padded: one (CP, 9*CP) slab per group.
    def pack_w(w_pt):
        w = jnp.transpose(w_pt, (2, 0, 3, 4, 1))                       # (kd, co, kh, kw, ci)
        w = jnp.pad(w, ((0, 0), (0, CP - C), (0, 0), (0, 0), (0, CP - C)))
        return w.reshape(3, CP, 9 * CP).astype(jnp.bfloat16)
    w1 = pack_w(w1_pt)
    w2 = pack_w(w2_pt)

    # dropout3d folded into the BN1 scale (bias unchanged).  Padded channels get 0 everywhere.
    pad_c = lambda v: jnp.pad(v, ((0, CP - C),))
    s1d = jnp.pad(drop_scale * bn1_s[None, :], ((0, 0), (0, CP - C)))[..., None]  # (N, CP, 1)
    b1 = pad_c(bn1_b).reshape(CP, 1)
    s2 = pad_c(bn2_s).reshape(CP, 1)
    b2 = pad_c(bn2_b).reshape(CP, 1)

    # Interior (valid-voxel) mask over padded-flat coordinates; also zeroes the lane tail.
    q = jnp.arange(LP)
    dd, hh, ww = q // (Hp * Wp), (q // Wp) % Hp, q % Wp
    interior = ((q < L) & (dd >= 1) & (dd <= D) & (hh >= 1) & (hh <= H)
                & (ww >= 1) & (ww <= W))
    mask = interior.astype(jnp.float32).reshape(1, LP)

    # Lane shift of each tap, grouped by kd (3 groups x 9 taps) for chunked accumulation.
    shift_groups = tuple(
        tuple((-((kd - 1) * Hp * Wp + (kh - 1) * Wp + (kw - 1))) % LP
              for kh in range(3) for kw in range(3))
        for kd in range(3))

    kernel = functools.partial(_fused_block_kernel, shift_groups=shift_groups)
    out_flat = pl.pallas_call(
        kernel,
        out_shape=jax.ShapeDtypeStruct((N, CP, LP), x.dtype),
        # One sample per step; N>=2 keeps both v7x TensorCores busy.
        # TODO(synk): add a spatial split as a second parallel axis when N == 1, and/or batch
        # several samples per step along lanes to amortize the ~0.35 us per-step overhead.
        grid=(N,),
        in_specs=[
            pl.BlockSpec((None, CP, LP), lambda n: (n, 0, 0)),     # x (padded-flat)
            pl.BlockSpec((3, CP, 9 * CP), lambda n: (0, 0, 0)),    # w1 (resident)
            pl.BlockSpec((3, CP, 9 * CP), lambda n: (0, 0, 0)),    # w2 (resident)
            pl.BlockSpec((None, CP, 1), lambda n: (n, 0, 0)),      # drop*bn1 scale (per sample)
            pl.BlockSpec((CP, 1), lambda n: (0, 0)),               # bn1 bias
            pl.BlockSpec((CP, 1), lambda n: (0, 0)),               # bn2 scale
            pl.BlockSpec((CP, 1), lambda n: (0, 0)),               # bn2 bias
            pl.BlockSpec((1, LP), lambda n: (0, 0)),               # interior mask
        ],
        out_specs=pl.BlockSpec((None, CP, LP), lambda n: (n, 0, 0)),
        scratch_shapes=[pltpu.VMEM((2, 9 * CP, LP), jnp.bfloat16)],  # double-buffered im2col
        compiler_params=pltpu.CompilerParams(
            dimension_semantics=("parallel",),
            vmem_limit_bytes=48 * 1024 * 1024),
    )(xf, w1, w2, s1d, b1, s2, b2, mask)

    # Crop lane tail + halo + channel pad back to NCDHW (layout plumbing only).
    out = out_flat[:, :C, :L].reshape(N, C, Dp, Hp, Wp)[:, :, 1:-1, 1:-1, 1:-1]
    return out


def _reference(x, w1_pt, w2_pt, bn1_s, bn1_b, bn2_s, bn2_b, drop_scale):
    """Pure-JAX reference.  Conv operands are rounded to bf16 exactly like the kernel's MXU
    path; accumulation and all elementwise math in f32, so only summation order differs."""
    dn = ("NCDHW", "OIDHW", "NCDHW")
    bc = lambda v: v[None, :, None, None, None]
    q = lambda a: a.astype(jnp.bfloat16).astype(jnp.float32)
    conv = functools.partial(lax.conv_general_dilated, window_strides=(1, 1, 1),
                             padding="SAME", dimension_numbers=dn,
                             precision=lax.Precision.HIGHEST)
    y = conv(q(x), q(w1_pt))
    y = y * drop_scale[:, :, None, None, None]
    y = jnp.maximum(y * bc(bn1_s) + bc(bn1_b), 0.0)
    y = conv(q(y), q(w2_pt))
    y = y * bc(bn2_s) + bc(bn2_b)
    return jnp.maximum(x + y, 0.0)


if __name__ == "__main__":
    key = jax.random.PRNGKey(0)
    N, C, D, H, W = 2, 8, 8, 8, 8        # in_planes == planes == 8, stride = 1
    p_drop = 0.2
    eps = 1e-5

    ks = jax.random.split(key, 12)
    x = jax.random.normal(ks[0], (N, C, D, H, W), jnp.float32)   # NCDHW like PyTorch

    w1_pt = jax.random.normal(ks[1], (C, C, 3, 3, 3), jnp.float32) * 0.1
    w2_pt = jax.random.normal(ks[2], (C, C, 3, 3, 3), jnp.float32) * 0.1

    # BatchNorm3d params (eval-mode), folded into per-channel scale/bias.
    def bn_fold(kg, kb, km, kv):
        gamma = 1.0 + 0.1 * jax.random.normal(kg, (C,), jnp.float32)
        beta = 0.1 * jax.random.normal(kb, (C,), jnp.float32)
        mean = 0.1 * jax.random.normal(km, (C,), jnp.float32)
        var = jax.random.uniform(kv, (C,), jnp.float32, 0.5, 1.5)
        s = gamma * lax.rsqrt(var + eps)
        return s, beta - mean * s

    bn1_s, bn1_b = bn_fold(ks[3], ks[4], ks[5], ks[6])
    bn2_s, bn2_b = bn_fold(ks[7], ks[8], ks[9], ks[10])

    # dropout3d: per-(sample, channel) keep mask, scaled by 1/(1-p), supplied by the caller.
    keep = jax.random.bernoulli(ks[11], 1.0 - p_drop, (N, C)).astype(jnp.float32)
    drop_scale = keep / (1.0 - p_drop)

    out = res_basic_block(x, w1_pt, w2_pt, bn1_s, bn1_b, bn2_s, bn2_b, drop_scale)
    out = jax.block_until_ready(out)

    ref = _reference(x, w1_pt, w2_pt, bn1_s, bn1_b, bn2_s, bn2_b, drop_scale)
    ref = jax.block_until_ready(ref)

    assert out.shape == (N, C, D, H, W)
    err = float(jnp.max(jnp.abs(out - ref)))
    assert err < 2e-2, err
    print("KERNEL_OK")
</pallas_src>

<mosaic_0001>
module attributes {stable_mosaic.version = 11 : i64} {
  func.func @_fused_block_kernel(%arg0: i32, %arg1: memref<1x16x1024xf32, #tpu.memory_space<vmem>>, %arg2: memref<3x16x144xbf16, #tpu.memory_space<vmem>>, %arg3: memref<3x16x144xbf16, #tpu.memory_space<vmem>>, %arg4: memref<1x16x1xf32, #tpu.memory_space<vmem>>, %arg5: memref<16x1xf32, #tpu.memory_space<vmem>>, %arg6: memref<16x1xf32, #tpu.memory_space<vmem>>, %arg7: memref<16x1xf32, #tpu.memory_space<vmem>>, %arg8: memref<1x1024xf32, #tpu.memory_space<vmem>>, %arg9: memref<1x16x1024xf32, #tpu.memory_space<vmem>>, %arg10: memref<2x144x1024xbf16, #tpu.memory_space<vmem>>) attributes {dimension_semantics = [#tpu.dimension_semantics<parallel>], iteration_bounds = array<i64: 2>, scalar_prefetch = 0 : i64, scratch_operands = 1 : i64, tpu.core_type = #tpu.core_type<tc>, window_params = [{transform_indices = @transform_0, window_bounds = array<i64: 1, 16, 1024>}, {pipeline_mode = #tpu.pipeline_mode<synchronous>, transform_indices = @transform_1, window_bounds = array<i64: 3, 16, 144>}, {pipeline_mode = #tpu.pipeline_mode<synchronous>, transform_indices = @transform_2, window_bounds = array<i64: 3, 16, 144>}, {transform_indices = @transform_3, window_bounds = array<i64: 1, 16, 1>}, {pipeline_mode = #tpu.pipeline_mode<synchronous>, transform_indices = @transform_4, window_bounds = array<i64: 16, 1>}, {pipeline_mode = #tpu.pipeline_mode<synchronous>, transform_indices = @transform_5, window_bounds = array<i64: 16, 1>}, {pipeline_mode = #tpu.pipeline_mode<synchronous>, transform_indices = @transform_6, window_bounds = array<i64: 16, 1>}, {pipeline_mode = #tpu.pipeline_mode<synchronous>, transform_indices = @transform_7, window_bounds = array<i64: 1, 1024>}, {transform_indices = @transform_8, window_bounds = array<i64: 1, 16, 1024>}]} {
    %c0 = arith.constant 0 : index
    %c0_0 = arith.constant 0 : index
    %0 = vector.load %arg8[%c0, %c0_0] : memref<1x1024xf32, #tpu.memory_space<vmem>>, vector<1x1024xf32>
    %cst = arith.constant 0.000000e+00 : f32
    %1 = vector.broadcast %cst : f32 to vector<1x1024xf32>
    %2 = arith.cmpf one, %0, %1 : vector<1x1024xf32>
    %c0_1 = arith.constant 0 : index
    %c0_2 = arith.constant 0 : index
    %c0_3 = arith.constant 0 : index
    %3 = vector.load %arg1[%c0_1, %c0_2, %c0_3] : memref<1x16x1024xf32, #tpu.memory_space<vmem>>, vector<1x16x1024xf32>
    %4 = vector.shape_cast %3 : vector<1x16x1024xf32> to vector<16x1024xf32>
    %cst_4 = arith.constant 0.000000e+00 : f32
    %5 = vector.broadcast %cst_4 : f32 to vector<16x1024xf32>
    %c111_i32 = arith.constant 111 : i32
    %6 = tpu.dynamic_rotate %4 by %c111_i32 dim 1 : vector<16x1024xf32>, i32 -> vector<16x1024xf32>
    %7 = arith.truncf %6 : vector<16x1024xf32> to vector<16x1024xbf16>
    %c0_5 = arith.constant 0 : index
    %c0_6 = arith.constant 0 : index
    %c0_7 = arith.constant 0 : index
    %8 = vector.load %arg10[%c0_5, %c0_6, %c0_7] : memref<2x144x1024xbf16, #tpu.memory_space<vmem>>, vector<1x16x1024xbf16>
    %9 = vector.shape_cast %8 : vector<1x16x1024xbf16> to vector<16x1024xbf16>
    %10 = vector.shape_cast %7 : vector<16x1024xbf16> to vector<1x16x1024xbf16>
    tpu.vector_store %arg10[%c0_5, %c0_6, %c0_7], %10 {strides = array<i32>} : memref<2x144x1024xbf16, #tpu.memory_space<vmem>>, vector<1x16x1024xbf16>,
    %c110_i32 = arith.constant 110 : i32
    %11 = tpu.dynamic_rotate %4 by %c110_i32 dim 1 : vector<16x1024xf32>, i32 -> vector<16x1024xf32>
    %12 = arith.truncf %11 : vector<16x1024xf32> to vector<16x1024xbf16>
    %c0_8 = arith.constant 0 : index
    %c16 = arith.constant 16 : index
    %c0_9 = arith.constant 0 : index
    %13 = vector.load %arg10[%c0_8, %c16, %c0_9] : memref<2x144x1024xbf16, #tpu.memory_space<vmem>>, vector<1x16x1024xbf16>
    %14 = vector.shape_cast %13 : vector<1x16x1024xbf16> to vector<16x1024xbf16>
    %15 = vector.shape_cast %12 : vector<16x1024xbf16> to vector<1x16x1024xbf16>
    tpu.vector_store %arg10[%c0_8, %c16, %c0_9], %15 {strides = array<i32>} : memref<2x144x1024xbf16, #tpu.memory_space<vmem>>, vector<1x16x1024xbf16>,
    %c109_i32 = arith.constant 109 : i32
    %16 = tpu.dynamic_rotate %4 by %c109_i32 dim 1 : vector<16x1024xf32>, i32 -> vector<16x1024xf32>
    %17 = arith.truncf %16 : vector<16x1024xf32> to vector<16x1024xbf16>
    %c0_10 = arith.constant 0 : index
    %c32 = arith.constant 32 : index
    %c0_11 = arith.constant 0 : index
    %18 = vector.load %arg10[%c0_10, %c32, %c0_11] : memref<2x144x1024xbf16, #tpu.memory_space<vmem>>, vector<1x16x1024xbf16>
    %19 = vector.shape_cast %18 : vector<1x16x1024xbf16> to vector<16x1024xbf16>
    %20 = vector.shape_cast %17 : vector<16x1024xbf16> to vector<1x16x1024xbf16>
    tpu.vector_store %arg10[%c0_10, %c32, %c0_11], %20 {strides = array<i32>} : memref<2x144x1024xbf16, #tpu.memory_space<vmem>>, vector<1x16x1024xbf16>,
    %c101_i32 = arith.constant 101 : i32
    %21 = tpu.dynamic_rotate %4 by %c101_i32 dim 1 : vector<16x1024xf32>, i32 -> vector<16x1024xf32>
    %22 = arith.truncf %21 : vector<16x1024xf32> to vector<16x1024xbf16>
    %c0_12 = arith.constant 0 : index
    %c48 = arith.constant 48 : index
    %c0_13 = arith.constant 0 : index
    %23 = vector.load %arg10[%c0_12, %c48, %c0_13] : memref<2x144x1024xbf16, #tpu.memory_space<vmem>>, vector<1x16x1024xbf16>
    %24 = vector.shape_cast %23 : vector<1x16x1024xbf16> to vector<16x1024xbf16>
    %25 = vector.shape_cast %22 : vector<16x1024xbf16> to vector<1x16x1024xbf16>
    tpu.vector_store %arg10[%c0_12, %c48, %c0_13], %25 {strides = array<i32>} : memref<2x144x1024xbf16, #tpu.memory_space<vmem>>, vector<1x16x1024xbf16>,
    %c100_i32 = arith.constant 100 : i32
    %26 = tpu.dynamic_rotate %4 by %c100_i32 dim 1 : vector<16x1024xf32>, i32 -> vector<16x1024xf32>
    %27 = arith.truncf %26 : vector<16x1024xf32> to vector<16x1024xbf16>
    %c0_14 = arith.constant 0 : index
    %c64 = arith.constant 64 : index
    %c0_15 = arith.constant 0 : index
    %28 = vector.load %arg10[%c0_14, %c64, %c0_15] : memref<2x144x1024xbf16, #tpu.memory_space<vmem>>, vector<1x16x1024xbf16>
    %29 = vector.shape_cast %28 : vector<1x16x1024xbf16> to vector<16x1024xbf16>
    %30 = vector.shape_cast %27 : vector<16x1024xbf16> to vector<1x16x1024xbf16>
    tpu.vector_store %arg10[%c0_14, %c64, %c0_15], %30 {strides = array<i32>} : memref<2x144x1024xbf16, #tpu.memory_space<vmem>>, vector<1x16x1024xbf16>,
    %c99_i32 = arith.constant 99 : i32
    %31 = tpu.dynamic_rotate %4 by %c99_i32 dim 1 : vector<16x1024xf32>, i32 -> vector<16x1024xf32>
    %32 = arith.truncf %31 : vector<16x1024xf32> to vector<16x1024xbf16>
    %c0_16 = arith.constant 0 : index
    %c80 = arith.constant 80 : index
    %c0_17 = arith.constant 0 : index
    %33 = vector.load %arg10[%c0_16, %c80, %c0_17] : memref<2x144x1024xbf16, #tpu.memory_space<vmem>>, vector<1x16x1024xbf16>
    %34 = vector.shape_cast %33 : vector<1x16x1024xbf16> to vector<16x1024xbf16>
    %35 = vector.shape_cast %32 : vector<16x1024xbf16> to vector<1x16x1024xbf16>
    tpu.vector_store %arg10[%c0_16, %c80, %c0_17], %35 {strides = array<i32>} : memref<2x144x1024xbf16, #tpu.memory_space<vmem>>, vector<1x16x1024xbf16>,
    %c91_i32 = arith.constant 91 : i32
    %36 = tpu.dynamic_rotate %4 by %c91_i32 dim 1 : vector<16x1024xf32>, i32 -> vector<16x1024xf32>
    %37 = arith.truncf %36 : vector<16x1024xf32> to vector<16x1024xbf16>
    %c0_18 = arith.constant 0 : index
    %c96 = arith.constant 96 : index
    %c0_19 = arith.constant 0 : index
    %38 = vector.load %arg10[%c0_18, %c96, %c0_19] : memref<2x144x1024xbf16, #tpu.memory_space<vmem>>, vector<1x16x1024xbf16>
    %39 = vector.shape_cast %38 : vector<1x16x1024xbf16> to vector<16x1024xbf16>
    %40 = vector.shape_cast %37 : vector<16x1024xbf16> to vector<1x16x1024xbf16>
    tpu.vector_store %arg10[%c0_18, %c96, %c0_19], %40 {strides = array<i32>} : memref<2x144x1024xbf16, #tpu.memory_space<vmem>>, vector<1x16x1024xbf16>,
    %c90_i32 = arith.constant 90 : i32
    %41 = tpu.dynamic_rotate %4 by %c90_i32 dim 1 : vector<16x1024xf32>, i32 -> vector<16x1024xf32>
    %42 = arith.truncf %41 : vector<16x1024xf32> to vector<16x1024xbf16>
    %c0_20 = arith.constant 0 : index
    %c112 = arith.constant 112 : index
    %c0_21 = arith.constant 0 : index
    %43 = vector.load %arg10[%c0_20, %c112, %c0_21] : memref<2x144x1024xbf16, #tpu.memory_space<vmem>>, vector<1x16x1024xbf16>
    %44 = vector.shape_cast %43 : vector<1x16x1024xbf16> to vector<16x1024xbf16>
    %45 = vector.shape_cast %42 : vector<16x1024xbf16> to vector<1x16x1024xbf16>
    tpu.vector_store %arg10[%c0_20, %c112, %c0_21], %45 {strides = array<i32>} : memref<2x144x1024xbf16, #tpu.memory_space<vmem>>, vector<1x16x1024xbf16>,
    %c89_i32 = arith.constant 89 : i32
    %46 = tpu.dynamic_rotate %4 by %c89_i32 dim 1 : vector<16x1024xf32>, i32 -> vector<16x1024xf32>
    %47 = arith.truncf %46 : vector<16x1024xf32> to vector<16x1024xbf16>
    %c0_22 = arith.constant 0 : index
    %c128 = arith.constant 128 : index
    %c0_23 = arith.constant 0 : index
    %48 = vector.load %arg10[%c0_22, %c128, %c0_23] : memref<2x144x1024xbf16, #tpu.memory_space<vmem>>, vector<1x16x1024xbf16>
    %49 = vector.shape_cast %48 : vector<1x16x1024xbf16> to vector<16x1024xbf16>
    %50 = vector.shape_cast %47 : vector<16x1024xbf16> to vector<1x16x1024xbf16>
    tpu.vector_store %arg10[%c0_22, %c128, %c0_23], %50 {strides = array<i32>} : memref<2x144x1024xbf16, #tpu.memory_space<vmem>>, vector<1x16x1024xbf16>,
    %c0_24 = arith.constant 0 : index
    %c0_25 = arith.constant 0 : index
    %c0_26 = arith.constant 0 : index
    %51 = vector.load %arg2[%c0_24, %c0_25, %c0_26] : memref<3x16x144xbf16, #tpu.memory_space<vmem>>, vector<1x16x144xbf16>
    %52 = vector.shape_cast %51 : vector<1x16x144xbf16> to vector<16x144xbf16>
    %c0_27 = arith.constant 0 : index
    %c0_28 = arith.constant 0 : index
    %c0_29 = arith.constant 0 : index
    %53 = vector.load %arg10[%c0_27, %c0_28, %c0_29] : memref<2x144x1024xbf16, #tpu.memory_space<vmem>>, vector<1x144x1024xbf16>
    %54 = vector.shape_cast %53 : vector<1x144x1024xbf16> to vector<144x1024xbf16>
    %cst_30 = arith.constant dense<0.000000e+00> : vector<16x1024xf32>
    %55 = tpu.matmul %52, %54, %cst_30 {dimension_numbers = #tpu.dot_dimension_numbers<[1], [0], [0], [1], [0, 0, 1, 1], [], []>} : vector<16x144xbf16>, vector<144x1024xbf16>, vector<16x1024xf32> -> vector<16x1024xf32>
    %56 = arith.addf %5, %55 : vector<16x1024xf32>
    %c11_i32 = arith.constant 11 : i32
    %57 = tpu.dynamic_rotate %4 by %c11_i32 dim 1 : vector<16x1024xf32>, i32 -> vector<16x1024xf32>
    %58 = arith.truncf %57 : vector<16x1024xf32> to vector<16x1024xbf16>
    %c1 = arith.constant 1 : index
    %c0_31 = arith.constant 0 : index
    %c0_32 = arith.constant 0 : index
    %59 = vector.load %arg10[%c1, %c0_31, %c0_32] : memref<2x144x1024xbf16, #tpu.memory_space<vmem>>, vector<1x16x1024xbf16>
    %60 = vector.shape_cast %59 : vector<1x16x1024xbf16> to vector<16x1024xbf16>
    %61 = vector.shape_cast %58 : vector<16x1024xbf16> to vector<1x16x1024xbf16>
    tpu.vector_store %arg10[%c1, %c0_31, %c0_32], %61 {strides = array<i32>} : memref<2x144x1024xbf16, #tpu.memory_space<vmem>>, vector<1x16x1024xbf16>,
    %c10_i32 = arith.constant 10 : i32
    %62 = tpu.dynamic_rotate %4 by %c10_i32 dim 1 : vector<16x1024xf32>, i32 -> vector<16x1024xf32>
    %63 = arith.truncf %62 : vector<16x1024xf32> to vector<16x1024xbf16>
    %c1_33 = arith.constant 1 : index
    %c16_34 = arith.constant 16 : index
    %c0_35 = arith.constant 0 : index
    %64 = vector.load %arg10[%c1_33, %c16_34, %c0_35] : memref<2x144x1024xbf16, #tpu.memory_space<vmem>>, vector<1x16x1024xbf16>
    %65 = vector.shape_cast %64 : vector<1x16x1024xbf16> to vector<16x1024xbf16>
    %66 = vector.shape_cast %63 : vector<16x1024xbf16> to vector<1x16x1024xbf16>
    tpu.vector_store %arg10[%c1_33, %c16_34, %c0_35], %66 {strides = array<i32>} : memref<2x144x1024xbf16, #tpu.memory_space<vmem>>, vector<1x16x1024xbf16>,
    %c9_i32 = arith.constant 9 : i32
    %67 = tpu.dynamic_rotate %4 by %c9_i32 dim 1 : vector<16x1024xf32>, i32 -> vector<16x1024xf32>
    %68 = arith.truncf %67 : vector<16x1024xf32> to vector<16x1024xbf16>
    %c1_36 = arith.constant 1 : index
    %c32_37 = arith.constant 32 : index
    %c0_38 = arith.constant 0 : index
    %69 = vector.load %arg10[%c1_36, %c32_37, %c0_38] : memref<2x144x1024xbf16, #tpu.memory_space<vmem>>, vector<1x16x1024xbf16>
    %70 = vector.shape_cast %69 : vector<1x16x1024xbf16> to vector<16x1024xbf16>
    %71 = vector.shape_cast %68 : vector<16x1024xbf16> to vector<1x16x1024xbf16>
    tpu.vector_store %arg10[%c1_36, %c32_37, %c0_38], %71 {strides = array<i32>} : memref<2x144x1024xbf16, #tpu.memory_space<vmem>>, vector<1x16x1024xbf16>,
    %c1_i32 = arith.constant 1 : i32
    %72 = tpu.dynamic_rotate %4 by %c1_i32 dim 1 : vector<16x1024xf32>, i32 -> vector<16x1024xf32>
    %73 = arith.truncf %72 : vector<16x1024xf32> to vector<16x1024xbf16>
    %c1_39 = arith.constant 1 : index
    %c48_40 = arith.constant 48 : index
    %c0_41 = arith.constant 0 : index
    %74 = vector.load %arg10[%c1_39, %c48_40, %c0_41] : memref<2x144x1024xbf16, #tpu.memory_space<vmem>>, vector<1x16x1024xbf16>
    %75 = vector.shape_cast %74 : vector<1x16x1024xbf16> to vector<16x1024xbf16>
    %76 = vector.shape_cast %73 : vector<16x1024xbf16> to vector<1x16x1024xbf16>
    tpu.vector_store %arg10[%c1_39, %c48_40, %c0_41], %76 {strides = array<i32>} : memref<2x144x1024xbf16, #tpu.memory_space<vmem>>, vector<1x16x1024xbf16>,
    %77 = arith.truncf %4 : vector<16x1024xf32> to vector<16x1024xbf16>
    %c1_42 = arith.constant 1 : index
    %c64_43 = arith.constant 64 : index
    %c0_44 = arith.constant 0 : index
    %78 = vector.load %arg10[%c1_42, %c64_43, %c0_44] : memref<2x144x1024xbf16, #tpu.memory_space<vmem>>, vector<1x16x1024xbf16>
    %79 = vector.shape_cast %78 : vector<1x16x1024xbf16> to vector<16x1024xbf16>
    %80 = vector.shape_cast %77 : vector<16x1024xbf16> to vector<1x16x1024xbf16>
    tpu.vector_store %arg10[%c1_42, %c64_43, %c0_44], %80 {strides = array<i32>} : memref<2x144x1024xbf16, #tpu.memory_space<vmem>>, vector<1x16x1024xbf16>,
    %c1023_i32 = arith.constant 1023 : i32
    %81 = tpu.dynamic_rotate %4 by %c1023_i32 dim 1 : vector<16x1024xf32>, i32 -> vector<16x1024xf32>
    %82 = arith.truncf %81 : vector<16x1024xf32> to vector<16x1024xbf16>
    %c1_45 = arith.constant 1 : index
    %c80_46 = arith.constant 80 : index
    %c0_47 = arith.constant 0 : index
    %83 = vector.load %arg10[%c1_45, %c80_46, %c0_47] : memref<2x144x1024xbf16, #tpu.memory_space<vmem>>, vector<1x16x1024xbf16>
    %84 = vector.shape_cast %83 : vector<1x16x1024xbf16> to vector<16x1024xbf16>
    %85 = vector.shape_cast %82 : vector<16x1024xbf16> to vector<1x16x1024xbf16>
    tpu.vector_store %arg10[%c1_45, %c80_46, %c0_47], %85 {strides = array<i32>} : memref<2x144x1024xbf16, #tpu.memory_space<vmem>>, vector<1x16x1024xbf16>,
    %c1015_i32 = arith.constant 1015 : i32
    %86 = tpu.dynamic_rotate %4 by %c1015_i32 dim 1 : vector<16x1024xf32>, i32 -> vector<16x1024xf32>
    %87 = arith.truncf %86 : vector<16x1024xf32> to vector<16x1024xbf16>
    %c1_48 = arith.constant 1 : index
    %c96_49 = arith.constant 96 : index
    %c0_50 = arith.constant 0 : index
    %88 = vector.load %arg10[%c1_48, %c96_49, %c0_50] : memref<2x144x1024xbf16, #tpu.memory_space<vmem>>, vector<1x16x1024xbf16>
    %89 = vector.shape_cast %88 : vector<1x16x1024xbf16> to vector<16x1024xbf16>
    %90 = vector.shape_cast %87 : vector<16x1024xbf16> to vector<1x16x1024xbf16>
    tpu.vector_store %arg10[%c1_48, %c96_49, %c0_50], %90 {strides = array<i32>} : memref<2x144x1024xbf16, #tpu.memory_space<vmem>>, vector<1x16x1024xbf16>,
    %c1014_i32 = arith.constant 1014 : i32
    %91 = tpu.dynamic_rotate %4 by %c1014_i32 dim 1 : vector<16x1024xf32>, i32 -> vector<16x1024xf32>
    %92 = arith.truncf %91 : vector<16x1024xf32> to vector<16x1024xbf16>
    %c1_51 = arith.constant 1 : index
    %c112_52 = arith.constant 112 : index
    %c0_53 = arith.constant 0 : index
    %93 = vector.load %arg10[%c1_51, %c112_52, %c0_53] : memref<2x144x1024xbf16, #tpu.memory_space<vmem>>, vector<1x16x1024xbf16>
    %94 = vector.shape_cast %93 : vector<1x16x1024xbf16> to vector<16x1024xbf16>
    %95 = vector.shape_cast %92 : vector<16x1024xbf16> to vector<1x16x1024xbf16>
    tpu.vector_store %arg10[%c1_51, %c112_52, %c0_53], %95 {strides = array<i32>} : memref<2x144x1024xbf16, #tpu.memory_space<vmem>>, vector<1x16x1024xbf16>,
    %c1013_i32 = arith.constant 1013 : i32
    %96 = tpu.dynamic_rotate %4 by %c1013_i32 dim 1 : vector<16x1024xf32>, i32 -> vector<16x1024xf32>
    %97 = arith.truncf %96 : vector<16x1024xf32> to vector<16x1024xbf16>
    %c1_54 = arith.constant 1 : index
    %c128_55 = arith.constant 128 : index
    %c0_56 = arith.constant 0 : index
    %98 = vector.load %arg10[%c1_54, %c128_55, %c0_56] : memref<2x144x1024xbf16, #tpu.memory_space<vmem>>, vector<1x16x1024xbf16>
    %99 = vector.shape_cast %98 : vector<1x16x1024xbf16> to vector<16x1024xbf16>
    %100 = vector.shape_cast %97 : vector<16x1024xbf16> to vector<1x16x1024xbf16>
    tpu.vector_store %arg10[%c1_54, %c128_55, %c0_56], %100 {strides = array<i32>} : memref<2x144x1024xbf16, #tpu.memory_space<vmem>>, vector<1x16x1024xbf16>,
    %c1_57 = arith.constant 1 : index
    %c0_58 = arith.constant 0 : index
    %c0_59 = arith.constant 0 : index
    %101 = vector.load %arg2[%c1_57, %c0_58, %c0_59] : memref<3x16x144xbf16, #tpu.memory_space<vmem>>, vector<1x16x144xbf16>
    %102 = vector.shape_cast %101 : vector<1x16x144xbf16> to vector<16x144xbf16>
    %c1_60 = arith.constant 1 : index
    %c0_61 = arith.constant 0 : index
    %c0_62 = arith.constant 0 : index
    %103 = vector.load %arg10[%c1_60, %c0_61, %c0_62] : memref<2x144x1024xbf16, #tpu.memory_space<vmem>>, vector<1x144x1024xbf16>
    %104 = vector.shape_cast %103 : vector<1x144x1024xbf16> to vector<144x1024xbf16>
    %cst_63 = arith.constant dense<0.000000e+00> : vector<16x1024xf32>
    %105 = tpu.matmul %102, %104, %cst_63 {dimension_numbers = #tpu.dot_dimension_numbers<[1], [0], [0], [1], [0, 0, 1, 1], [], []>} : vector<16x144xbf16>, vector<144x1024xbf16>, vector<16x1024xf32> -> vector<16x1024xf32>
    %106 = arith.addf %56, %105 : vector<16x1024xf32>
    %c935_i32 = arith.constant 935 : i32
    %107 = tpu.dynamic_rotate %4 by %c935_i32 dim 1 : vector<16x1024xf32>, i32 -> vector<16x1024xf32>
    %108 = arith.truncf %107 : vector<16x1024xf32> to vector<16x1024xbf16>
    %c0_64 = arith.constant 0 : index
    %c0_65 = arith.constant 0 : index
    %c0_66 = arith.constant 0 : index
    %109 = vector.load %arg10[%c0_64, %c0_65, %c0_66] : memref<2x144x1024xbf16, #tpu.memory_space<vmem>>, vector<1x16x1024xbf16>
    %110 = vector.shape_cast %109 : vector<1x16x1024xbf16> to vector<16x1024xbf16>
    %111 = vector.shape_cast %108 : vector<16x1024xbf16> to vector<1x16x1024xbf16>
    tpu.vector_store %arg10[%c0_64, %c0_65, %c0_66], %111 {strides = array<i32>} : memref<2x144x1024xbf16, #tpu.memory_space<vmem>>, vector<1x16x1024xbf16>,
    %c934_i32 = arith.constant 934 : i32
    %112 = tpu.dynamic_rotate %4 by %c934_i32 dim 1 : vector<16x1024xf32>, i32 -> vector<16x1024xf32>
    %113 = arith.truncf %112 : vector<16x1024xf32> to vector<16x1024xbf16>
    %c0_67 = arith.constant 0 : index
    %c16_68 = arith.constant 16 : index
    %c0_69 = arith.constant 0 : index
    %114 = vector.load %arg10[%c0_67, %c16_68, %c0_69] : memref<2x144x1024xbf16, #tpu.memory_space<vmem>>, vector<1x16x1024xbf16>
    %115 = vector.shape_cast %114 : vector<1x16x1024xbf16> to vector<16x1024xbf16>
    %116 = vector.shape_cast %113 : vector<16x1024xbf16> to vector<1x16x1024xbf16>
    tpu.vector_store %arg10[%c0_67, %c16_68, %c0_69], %116 {strides = array<i32>} : memref<2x144x1024xbf16, #tpu.memory_space<vmem>>, vector<1x16x1024xbf16>,
    %c933_i32 = arith.constant 933 : i32
    %117 = tpu.dynamic_rotate %4 by %c933_i32 dim 1 : vector<16x1024xf32>, i32 -> vector<16x1024xf32>
    %118 = arith.truncf %117 : vector<16x1024xf32> to vector<16x1024xbf16>
    %c0_70 = arith.constant 0 : index
    %c32_71 = arith.constant 32 : index
    %c0_72 = arith.constant 0 : index
    %119 = vector.load %arg10[%c0_70, %c32_71, %c0_72] : memref<2x144x1024xbf16, #tpu.memory_space<vmem>>, vector<1x16x1024xbf16>
    %120 = vector.shape_cast %119 : vector<1x16x1024xbf16> to vector<16x1024xbf16>
    %121 = vector.shape_cast %118 : vector<16x1024xbf16> to vector<1x16x1024xbf16>
    tpu.vector_store %arg10[%c0_70, %c32_71, %c0_72], %121 {strides = array<i32>} : memref<2x144x1024xbf16, #tpu.memory_space<vmem>>, vector<1x16x1024xbf16>,
    %c925_i32 = arith.constant 925 : i32
    %122 = tpu.dynamic_rotate %4 by %c925_i32 dim 1 : vector<16x1024xf32>, i32 -> vector<16x1024xf32>
    %123 = arith.truncf %122 : vector<16x1024xf32> to vector<16x1024xbf16>
    %c0_73 = arith.constant 0 : index
    %c48_74 = arith.constant 48 : index
    %c0_75 = arith.constant 0 : index
    %124 = vector.load %arg10[%c0_73, %c48_74, %c0_75] : memref<2x144x1024xbf16, #tpu.memory_space<vmem>>, vector<1x16x1024xbf16>
    %125 = vector.shape_cast %124 : vector<1x16x1024xbf16> to vector<16x1024xbf16>
    %126 = vector.shape_cast %123 : vector<16x1024xbf16> to vector<1x16x1024xbf16>
    tpu.vector_store %arg10[%c0_73, %c48_74, %c0_75], %126 {strides = array<i32>} : memref<2x144x1024xbf16, #tpu.memory_space<vmem>>, vector<1x16x1024xbf16>,
    %c924_i32 = arith.constant 924 : i32
    %127 = tpu.dynamic_rotate %4 by %c924_i32 dim 1 : vector<16x1024xf32>, i32 -> vector<16x1024xf32>
    %128 = arith.truncf %127 : vector<16x1024xf32> to vector<16x1024xbf16>
    %c0_76 = arith.constant 0 : index
    %c64_77 = arith.constant 64 : index
    %c0_78 = arith.constant 0 : index
    %129 = vector.load %arg10[%c0_76, %c64_77, %c0_78] : memref<2x144x1024xbf16, #tpu.memory_space<vmem>>, vector<1x16x1024xbf16>
    %130 = vector.shape_cast %129 : vector<1x16x1024xbf16> to vector<16x1024xbf16>
    %131 = vector.shape_cast %128 : vector<16x1024xbf16> to vector<1x16x1024xbf16>
    tpu.vector_store %arg10[%c0_76, %c64_77, %c0_78], %131 {strides = array<i32>} : memref<2x144x1024xbf16, #tpu.memory_space<vmem>>, vector<1x16x1024xbf16>,
    %c923_i32 = arith.constant 923 : i32
    %132 = tpu.dynamic_rotate %4 by %c923_i32 dim 1 : vector<16x1024xf32>, i32 -> vector<16x1024xf32>
    %133 = arith.truncf %132 : vector<16x1024xf32> to vector<16x1024xbf16>
    %c0_79 = arith.constant 0 : index
    %c80_80 = arith.constant 80 : index
    %c0_81 = arith.constant 0 : index
    %134 = vector.load %arg10[%c0_79, %c80_80, %c0_81] : memref<2x144x1024xbf16, #tpu.memory_space<vmem>>, vector<1x16x1024xbf16>
    %135 = vector.shape_cast %134 : vector<1x16x1024xbf16> to vector<16x1024xbf16>
    %136 = vector.shape_cast %133 : vector<16x1024xbf16> to vector<1x16x1024xbf16>
    tpu.vector_store %arg10[%c0_79, %c80_80, %c0_81], %136 {strides = array<i32>} : memref<2x144x1024xbf16, #tpu.memory_space<vmem>>, vector<1x16x1024xbf16>,
    %c915_i32 = arith.constant 915 : i32
    %137 = tpu.dynamic_rotate %4 by %c915_i32 dim 1 : vector<16x1024xf32>, i32 -> vector<16x1024xf32>
    %138 = arith.truncf %137 : vector<16x1024xf32> to vector<16x1024xbf16>
    %c0_82 = arith.constant 0 : index
    %c96_83 = arith.constant 96 : index
    %c0_84 = arith.constant 0 : index
    %139 = vector.load %arg10[%c0_82, %c96_83, %c0_84] : memref<2x144x1024xbf16, #tpu.memory_space<vmem>>, vector<1x16x1024xbf16>
    %140 = vector.shape_cast %139 : vector<1x16x1024xbf16> to vector<16x1024xbf16>
    %141 = vector.shape_cast %138 : vector<16x1024xbf16> to vector<1x16x1024xbf16>
    tpu.vector_store %arg10[%c0_82, %c96_83, %c0_84], %141 {strides = array<i32>} : memref<2x144x1024xbf16, #tpu.memory_space<vmem>>, vector<1x16x1024xbf16>,
    %c914_i32 = arith.constant 914 : i32
    %142 = tpu.dynamic_rotate %4 by %c914_i32 dim 1 : vector<16x1024xf32>, i32 -> vector<16x1024xf32>
    %143 = arith.truncf %142 : vector<16x1024xf32> to vector<16x1024xbf16>
    %c0_85 = arith.constant 0 : index
    %c112_86 = arith.constant 112 : index
    %c0_87 = arith.constant 0 : index
    %144 = vector.load %arg10[%c0_85, %c112_86, %c0_87] : memref<2x144x1024xbf16, #tpu.memory_space<vmem>>, vector<1x16x1024xbf16>
    %145 = vector.shape_cast %144 : vector<1x16x1024xbf16> to vector<16x1024xbf16>
    %146 = vector.shape_cast %143 : vector<16x1024xbf16> to vector<1x16x1024xbf16>
    tpu.vector_store %arg10[%c0_85, %c112_86, %c0_87], %146 {strides = array<i32>} : memref<2x144x1024xbf16, #tpu.memory_space<vmem>>, vector<1x16x1024xbf16>,
    %c913_i32 = arith.constant 913 : i32
    %147 = tpu.dynamic_rotate %4 by %c913_i32 dim 1 : vector<16x1024xf32>, i32 -> vector<16x1024xf32>
    %148 = arith.truncf %147 : vector<16x1024xf32> to vector<16x1024xbf16>
    %c0_88 = arith.constant 0 : index
    %c128_89 = arith.constant 128 : index
    %c0_90 = arith.constant 0 : index
    %149 = vector.load %arg10[%c0_88, %c128_89, %c0_90] : memref<2x144x1024xbf16, #tpu.memory_space<vmem>>, vector<1x16x1024xbf16>
    %150 = vector.shape_cast %149 : vector<1x16x1024xbf16> to vector<16x1024xbf16>
    %151 = vector.shape_cast %148 : vector<16x1024xbf16> to vector<1x16x1024xbf16>
    tpu.vector_store %arg10[%c0_88, %c128_89, %c0_90], %151 {strides = array<i32>} : memref<2x144x1024xbf16, #tpu.memory_space<vmem>>, vector<1x16x1024xbf16>,
    %c2 = arith.constant 2 : index
    %c0_91 = arith.constant 0 : index
    %c0_92 = arith.constant 0 : index
    %152 = vector.load %arg2[%c2, %c0_91, %c0_92] : memref<3x16x144xbf16, #tpu.memory_space<vmem>>, vector<1x16x144xbf16>
    %153 = vector.shape_cast %152 : vector<1x16x144xbf16> to vector<16x144xbf16>
    %c0_93 = arith.constant 0 : index
    %c0_94 = arith.constant 0 : index
    %c0_95 = arith.constant 0 : index
    %154 = vector.load %arg10[%c0_93, %c0_94, %c0_95] : memref<2x144x1024xbf16, #tpu.memory_space<vmem>>, vector<1x144x1024xbf16>
    %155 = vector.shape_cast %154 : vector<1x144x1024xbf16> to vector<144x1024xbf16>
    %cst_96 = arith.constant dense<0.000000e+00> : vector<16x1024xf32>
    %156 = tpu.matmul %153, %155, %cst_96 {dimension_numbers = #tpu.dot_dimension_numbers<[1], [0], [0], [1], [0, 0, 1, 1], [], []>} : vector<16x144xbf16>, vector<144x1024xbf16>, vector<16x1024xf32> -> vector<16x1024xf32>
    %157 = arith.addf %106, %156 : vector<16x1024xf32>
    %c0_97 = arith.constant 0 : index
    %c0_98 = arith.constant 0 : index
    %c0_99 = arith.constant 0 : index
    %158 = vector.load %arg4[%c0_97, %c0_98, %c0_99] : memref<1x16x1xf32, #tpu.memory_space<vmem>>, vector<1x16x1xf32>
    %159 = vector.shape_cast %158 : vector<1x16x1xf32> to vector<16x1xf32>
    %160 = vector.broadcast %159 : vector<16x1xf32> to vector<16x1024xf32>
    %161 = arith.mulf %157, %160 : vector<16x1024xf32>
    %c0_100 = arith.constant 0 : index
    %c0_101 = arith.constant 0 : index
    %162 = vector.load %arg5[%c0_100, %c0_101] : memref<16x1xf32, #tpu.memory_space<vmem>>, vector<16x1xf32>
    %163 = vector.broadcast %162 : vector<16x1xf32> to vector<16x1024xf32>
    %164 = arith.addf %161, %163 : vector<16x1024xf32>
    %cst_102 = arith.constant 0.000000e+00 : f32
    %165 = vector.broadcast %cst_102 : f32 to vector<16x1024xf32>
    %166 = arith.maximumf %164, %165 : vector<16x1024xf32>
    %cst_103 = arith.constant 0.000000e+00 : f32
    %167 = vector.shape_cast %2 : vector<1x1024xi1> to vector<1x1024xi1>
    %168 = vector.broadcast %167 : vector<1x1024xi1> to vector<16x1024xi1>
    %169 = vector.broadcast %cst_103 : f32 to vector<16x1024xf32>
    %170 = arith.select %168, %166, %169 : vector<16x1024xi1>, vector<16x1024xf32>
    %cst_104 = arith.constant 0.000000e+00 : f32
    %171 = vector.broadcast %cst_104 : f32 to vector<16x1024xf32>
    %c111_i32_105 = arith.constant 111 : i32
    %172 = tpu.dynamic_rotate %170 by %c111_i32_105 dim 1 : vector<16x1024xf32>, i32 -> vector<16x1024xf32>
    %173 = arith.truncf %172 : vector<16x1024xf32> to vector<16x1024xbf16>
    %c0_106 = arith.constant 0 : index
    %c0_107 = arith.constant 0 : index
    %c0_108 = arith.constant 0 : index
    %174 = vector.load %arg10[%c0_106, %c0_107, %c0_108] : memref<2x144x1024xbf16, #tpu.memory_space<vmem>>, vector<1x16x1024xbf16>
    %175 = vector.shape_cast %174 : vector<1x16x1024xbf16> to vector<16x1024xbf16>
    %176 = vector.shape_cast %173 : vector<16x1024xbf16> to vector<1x16x1024xbf16>
    tpu.vector_store %arg10[%c0_106, %c0_107, %c0_108], %176 {strides = array<i32>} : memref<2x144x1024xbf16, #tpu.memory_space<vmem>>, vector<1x16x1024xbf16>,
    %c110_i32_109 = arith.constant 110 : i32
    %177 = tpu.dynamic_rotate %170 by %c110_i32_109 dim 1 : vector<16x1024xf32>, i32 -> vector<16x1024xf32>
    %178 = arith.truncf %177 : vector<16x1024xf32> to vector<16x1024xbf16>
    %c0_110 = arith.constant 0 : index
    %c16_111 = arith.constant 16 : index
    %c0_112 = arith.constant 0 : index
    %179 = vector.load %arg10[%c0_110, %c16_111, %c0_112] : memref<2x144x1024xbf16, #tpu.memory_space<vmem>>, vector<1x16x1024xbf16>
    %180 = vector.shape_cast %179 : vector<1x16x1024xbf16> to vector<16x1024xbf16>
    %181 = vector.shape_cast %178 : vector<16x1024xbf16> to vector<1x16x1024xbf16>
    tpu.vector_store %arg10[%c0_110, %c16_111, %c0_112], %181 {strides = array<i32>} : memref<2x144x1024xbf16, #tpu.memory_space<vmem>>, vector<1x16x1024xbf16>,
    %c109_i32_113 = arith.constant 109 : i32
    %182 = tpu.dynamic_rotate %170 by %c109_i32_113 dim 1 : vector<16x1024xf32>, i32 -> vector<16x1024xf32>
    %183 = arith.truncf %182 : vector<16x1024xf32> to vector<16x1024xbf16>
    %c0_114 = arith.constant 0 : index
    %c32_115 = arith.constant 32 : index
    %c0_116 = arith.constant 0 : index
    %184 = vector.load %arg10[%c0_114, %c32_115, %c0_116] : memref<2x144x1024xbf16, #tpu.memory_space<vmem>>, vector<1x16x1024xbf16>
    %185 = vector.shape_cast %184 : vector<1x16x1024xbf16> to vector<16x1024xbf16>
    %186 = vector.shape_cast %183 : vector<16x1024xbf16> to vector<1x16x1024xbf16>
    tpu.vector_store %arg10[%c0_114, %c32_115, %c0_116], %186 {strides = array<i32>} : memref<2x144x1024xbf16, #tpu.memory_space<vmem>>, vector<1x16x1024xbf16>,
    %c101_i32_117 = arith.constant 101 : i32
    %187 = tpu.dynamic_rotate %170 by %c101_i32_117 dim 1 : vector<16x1024xf32>, i32 -> vector<16x1024xf32>
    %188 = arith.truncf %187 : vector<16x1024xf32> to vector<16x1024xbf16>
    %c0_118 = arith.constant 0 : index
    %c48_119 = arith.constant 48 : index
    %c0_120 = arith.constant 0 : index
    %189 = vector.load %arg10[%c0_118, %c48_119, %c0_120] : memref<2x144x1024xbf16, #tpu.memory_space<vmem>>, vector<1x16x1024xbf16>
    %190 = vector.shape_cast %189 : vector<1x16x1024xbf16> to vector<16x1024xbf16>
    %191 = vector.shape_cast %188 : vector<16x1024xbf16> to vector<1x16x1024xbf16>
    tpu.vector_store %arg10[%c0_118, %c48_119, %c0_120], %191 {strides = array<i32>} : memref<2x144x1024xbf16, #tpu.memory_space<vmem>>, vector<1x16x1024xbf16>,
    %c100_i32_121 = arith.constant 100 : i32
    %192 = tpu.dynamic_rotate %170 by %c100_i32_121 dim 1 : vector<16x1024xf32>, i32 -> vector<16x1024xf32>
    %193 = arith.truncf %192 : vector<16x1024xf32> to vector<16x1024xbf16>
    %c0_122 = arith.constant 0 : index
    %c64_123 = arith.constant 64 : index
    %c0_124 = arith.constant 0 : index
    %194 = vector.load %arg10[%c0_122, %c64_123, %c0_124] : memref<2x144x1024xbf16, #tpu.memory_space<vmem>>, vector<1x16x1024xbf16>
    %195 = vector.shape_cast %194 : vector<1x16x1024xbf16> to vector<16x1024xbf16>
    %196 = vector.shape_cast %193 : vector<16x1024xbf16> to vector<1x16x1024xbf16>
    tpu.vector_store %arg10[%c0_122, %c64_123, %c0_124], %196 {strides = array<i32>} : memref<2x144x1024xbf16, #tpu.memory_space<vmem>>, vector<1x16x1024xbf16>,
    %c99_i32_125 = arith.constant 99 : i32
    %197 = tpu.dynamic_rotate %170 by %c99_i32_125 dim 1 : vector<16x1024xf32>, i32 -> vector<16x1024xf32>
    %198 = arith.truncf %197 : vector<16x1024xf32> to vector<16x1024xbf16>
    %c0_126 = arith.constant 0 : index
    %c80_127 = arith.constant 80 : index
    %c0_128 = arith.constant 0 : index
    %199 = vector.load %arg10[%c0_126, %c80_127, %c0_128] : memref<2x144x1024xbf16, #tpu.memory_space<vmem>>, vector<1x16x1024xbf16>
    %200 = vector.shape_cast %199 : vector<1x16x1024xbf16> to vector<16x1024xbf16>
    %201 = vector.shape_cast %198 : vector<16x1024xbf16> to vector<1x16x1024xbf16>
    tpu.vector_store %arg10[%c0_126, %c80_127, %c0_128], %201 {strides = array<i32>} : memref<2x144x1024xbf16, #tpu.memory_space<vmem>>, vector<1x16x1024xbf16>,
    %c91_i32_129 = arith.constant 91 : i32
    %202 = tpu.dynamic_rotate %170 by %c91_i32_129 dim 1 : vector<16x1024xf32>, i32 -> vector<16x1024xf32>
    %203 = arith.truncf %202 : vector<16x1024xf32> to vector<16x1024xbf16>
    %c0_130 = arith.constant 0 : index
    %c96_131 = arith.constant 96 : index
    %c0_132 = arith.constant 0 : index
    %204 = vector.load %arg10[%c0_130, %c96_131, %c0_132] : memref<2x144x1024xbf16, #tpu.memory_space<vmem>>, vector<1x16x1024xbf16>
    %205 = vector.shape_cast %204 : vector<1x16x1024xbf16> to vector<16x1024xbf16>
    %206 = vector.shape_cast %203 : vector<16x1024xbf16> to vector<1x16x1024xbf16>
    tpu.vector_store %arg10[%c0_130, %c96_131, %c0_132], %206 {strides = array<i32>} : memref<2x144x1024xbf16, #tpu.memory_space<vmem>>, vector<1x16x1024xbf16>,
    %c90_i32_133 = arith.constant 90 : i32
    %207 = tpu.dynamic_rotate %170 by %c90_i32_133 dim 1 : vector<16x1024xf32>, i32 -> vector<16x1024xf32>
    %208 = arith.truncf %207 : vector<16x1024xf32> to vector<16x1024xbf16>
    %c0_134 = arith.constant 0 : index
    %c112_135 = arith.constant 112 : index
    %c0_136 = arith.constant 0 : index
    %209 = vector.load %arg10[%c0_134, %c112_135, %c0_136] : memref<2x144x1024xbf16, #tpu.memory_space<vmem>>, vector<1x16x1024xbf16>
    %210 = vector.shape_cast %209 : vector<1x16x1024xbf16> to vector<16x1024xbf16>
    %211 = vector.shape_cast %208 : vector<16x1024xbf16> to vector<1x16x1024xbf16>
    tpu.vector_store %arg10[%c0_134, %c112_135, %c0_136], %211 {strides = array<i32>} : memref<2x144x1024xbf16, #tpu.memory_space<vmem>>, vector<1x16x1024xbf16>,
    %c89_i32_137 = arith.constant 89 : i32
    %212 = tpu.dynamic_rotate %170 by %c89_i32_137 dim 1 : vector<16x1024xf32>, i32 -> vector<16x1024xf32>
    %213 = arith.truncf %212 : vector<16x1024xf32> to vector<16x1024xbf16>
    %c0_138 = arith.constant 0 : index
    %c128_139 = arith.constant 128 : index
    %c0_140 = arith.constant 0 : index
    %214 = vector.load %arg10[%c0_138, %c128_139, %c0_140] : memref<2x144x1024xbf16, #tpu.memory_space<vmem>>, vector<1x16x1024xbf16>
    %215 = vector.shape_cast %214 : vector<1x16x1024xbf16> to vector<16x1024xbf16>
    %216 = vector.shape_cast %213 : vector<16x1024xbf16> to vector<1x16x1024xbf16>
    tpu.vector_store %arg10[%c0_138, %c128_139, %c0_140], %216 {strides = array<i32>} : memref<2x144x1024xbf16, #tpu.memory_space<vmem>>, vector<1x16x1024xbf16>,
    %c0_141 = arith.constant 0 : index
    %c0_142 = arith.constant 0 : index
    %c0_143 = arith.constant 0 : index
    %217 = vector.load %arg3[%c0_141, %c0_142, %c0_143] : memref<3x16x144xbf16, #tpu.memory_space<vmem>>, vector<1x16x144xbf16>
    %218 = vector.shape_cast %217 : vector<1x16x144xbf16> to vector<16x144xbf16>
    %c0_144 = arith.constant 0 : index
    %c0_145 = arith.constant 0 : index
    %c0_146 = arith.constant 0 : index
    %219 = vector.load %arg10[%c0_144, %c0_145, %c0_146] : memref<2x144x1024xbf16, #tpu.memory_space<vmem>>, vector<1x144x1024xbf16>
    %220 = vector.shape_cast %219 : vector<1x144x1024xbf16> to vector<144x1024xbf16>
    %cst_147 = arith.constant dense<0.000000e+00> : vector<16x1024xf32>
    %221 = tpu.matmul %218, %220, %cst_147 {dimension_numbers = #tpu.dot_dimension_numbers<[1], [0], [0], [1], [0, 0, 1, 1], [], []>} : vector<16x144xbf16>, vector<144x1024xbf16>, vector<16x1024xf32> -> vector<16x1024xf32>
    %222 = arith.addf %171, %221 : vector<16x1024xf32>
    %c11_i32_148 = arith.constant 11 : i32
    %223 = tpu.dynamic_rotate %170 by %c11_i32_148 dim 1 : vector<16x1024xf32>, i32 -> vector<16x1024xf32>
    %224 = arith.truncf %223 : vector<16x1024xf32> to vector<16x1024xbf16>
    %c1_149 = arith.constant 1 : index
    %c0_150 = arith.constant 0 : index
    %c0_151 = arith.constant 0 : index
    %225 = vector.load %arg10[%c1_149, %c0_150, %c0_151] : memref<2x144x1024xbf16, #tpu.memory_space<vmem>>, vector<1x16x1024xbf16>
    %226 = vector.shape_cast %225 : vector<1x16x1024xbf16> to vector<16x1024xbf16>
    %227 = vector.shape_cast %224 : vector<16x1024xbf16> to vector<1x16x1024xbf16>
    tpu.vector_store %arg10[%c1_149, %c0_150, %c0_151], %227 {strides = array<i32>} : memref<2x144x1024xbf16, #tpu.memory_space<vmem>>, vector<1x16x1024xbf16>,
    %c10_i32_152 = arith.constant 10 : i32
    %228 = tpu.dynamic_rotate %170 by %c10_i32_152 dim 1 : vector<16x1024xf32>, i32 -> vector<16x1024xf32>
    %229 = arith.truncf %228 : vector<16x1024xf32> to vector<16x1024xbf16>
    %c1_153 = arith.constant 1 : index
    %c16_154 = arith.constant 16 : index
    %c0_155 = arith.constant 0 : index
    %230 = vector.load %arg10[%c1_153, %c16_154, %c0_155] : memref<2x144x1024xbf16, #tpu.memory_space<vmem>>, vector<1x16x1024xbf16>
    %231 = vector.shape_cast %230 : vector<1x16x1024xbf16> to vector<16x1024xbf16>
    %232 = vector.shape_cast %229 : vector<16x1024xbf16> to vector<1x16x1024xbf16>
    tpu.vector_store %arg10[%c1_153, %c16_154, %c0_155], %232 {strides = array<i32>} : memref<2x144x1024xbf16, #tpu.memory_space<vmem>>, vector<1x16x1024xbf16>,
    %c9_i32_156 = arith.constant 9 : i32
    %233 = tpu.dynamic_rotate %170 by %c9_i32_156 dim 1 : vector<16x1024xf32>, i32 -> vector<16x1024xf32>
    %234 = arith.truncf %233 : vector<16x1024xf32> to vector<16x1024xbf16>
    %c1_157 = arith.constant 1 : index
    %c32_158 = arith.constant 32 : index
    %c0_159 = arith.constant 0 : index
    %235 = vector.load %arg10[%c1_157, %c32_158, %c0_159] : memref<2x144x1024xbf16, #tpu.memory_space<vmem>>, vector<1x16x1024xbf16>
    %236 = vector.shape_cast %235 : vector<1x16x1024xbf16> to vector<16x1024xbf16>
    %237 = vector.shape_cast %234 : vector<16x1024xbf16> to vector<1x16x1024xbf16>
    tpu.vector_store %arg10[%c1_157, %c32_158, %c0_159], %237 {strides = array<i32>} : memref<2x144x1024xbf16, #tpu.memory_space<vmem>>, vector<1x16x1024xbf16>,
    %c1_i32_160 = arith.constant 1 : i32
    %238 = tpu.dynamic_rotate %170 by %c1_i32_160 dim 1 : vector<16x1024xf32>, i32 -> vector<16x1024xf32>
    %239 = arith.truncf %238 : vector<16x1024xf32> to vector<16x1024xbf16>
    %c1_161 = arith.constant 1 : index
    %c48_162 = arith.constant 48 : index
    %c0_163 = arith.constant 0 : index
    %240 = vector.load %arg10[%c1_161, %c48_162, %c0_163] : memref<2x144x1024xbf16, #tpu.memory_space<vmem>>, vector<1x16x1024xbf16>
    %241 = vector.shape_cast %240 : vector<1x16x1024xbf16> to vector<16x1024xbf16>
    %242 = vector.shape_cast %239 : vector<16x1024xbf16> to vector<1x16x1024xbf16>
    tpu.vector_store %arg10[%c1_161, %c48_162, %c0_163], %242 {strides = array<i32>} : memref<2x144x1024xbf16, #tpu.memory_space<vmem>>, vector<1x16x1024xbf16>,
    %243 = arith.truncf %170 : vector<16x1024xf32> to vector<16x1024xbf16>
    %c1_164 = arith.constant 1 : index
    %c64_165 = arith.constant 64 : index
    %c0_166 = arith.constant 0 : index
    %244 = vector.load %arg10[%c1_164, %c64_165, %c0_166] : memref<2x144x1024xbf16, #tpu.memory_space<vmem>>, vector<1x16x1024xbf16>
    %245 = vector.shape_cast %244 : vector<1x16x1024xbf16> to vector<16x1024xbf16>
    %246 = vector.shape_cast %243 : vector<16x1024xbf16> to vector<1x16x1024xbf16>
    tpu.vector_store %arg10[%c1_164, %c64_165, %c0_166], %246 {strides = array<i32>} : memref<2x144x1024xbf16, #tpu.memory_space<vmem>>, vector<1x16x1024xbf16>,
    %c1023_i32_167 = arith.constant 1023 : i32
    %247 = tpu.dynamic_rotate %170 by %c1023_i32_167 dim 1 : vector<16x1024xf32>, i32 -> vector<16x1024xf32>
    %248 = arith.truncf %247 : vector<16x1024xf32> to vector<16x1024xbf16>
    %c1_168 = arith.constant 1 : index
    %c80_169 = arith.constant 80 : index
    %c0_170 = arith.constant 0 : index
    %249 = vector.load %arg10[%c1_168, %c80_169, %c0_170] : memref<2x144x1024xbf16, #tpu.memory_space<vmem>>, vector<1x16x1024xbf16>
    %250 = vector.shape_cast %249 : vector<1x16x1024xbf16> to vector<16x1024xbf16>
    %251 = vector.shape_cast %248 : vector<16x1024xbf16> to vector<1x16x1024xbf16>
    tpu.vector_store %arg10[%c1_168, %c80_169, %c0_170], %251 {strides = array<i32>} : memref<2x144x1024xbf16, #tpu.memory_space<vmem>>, vector<1x16x1024xbf16>,
    %c1015_i32_171 = arith.constant 1015 : i32
    %252 = tpu.dynamic_rotate %170 by %c1015_i32_171 dim 1 : vector<16x1024xf32>, i32 -> vector<16x1024xf32>
    %253 = arith.truncf %252 : vector<16x1024xf32> to vector<16x1024xbf16>
    %c1_172 = arith.constant 1 : index
    %c96_173 = arith.constant 96 : index
    %c0_174 = arith.constant 0 : index
    %254 = vector.load %arg10[%c1_172, %c96_173, %c0_174] : memref<2x144x1024xbf16, #tpu.memory_space<vmem>>, vector<1x16x1024xbf16>
    %255 = vector.shape_cast %254 : vector<1x16x1024xbf16> to vector<16x1024xbf16>
    %256 = vector.shape_cast %253 : vector<16x1024xbf16> to vector<1x16x1024xbf16>
    tpu.vector_store %arg10[%c1_172, %c96_173, %c0_174], %256 {strides = array<i32>} : memref<2x144x1024xbf16, #tpu.memory_space<vmem>>, vector<1x16x1024xbf16>,
    %c1014_i32_175 = arith.constant 1014 : i32
    %257 = tpu.dynamic_rotate %170 by %c1014_i32_175 dim 1 : vector<16x1024xf32>, i32 -> vector<16x1024xf32>
    %258 = arith.truncf %257 : vector<16x1024xf32> to vector<16x1024xbf16>
    %c1_176 = arith.constant 1 : index
    %c112_177 = arith.constant 112 : index
    %c0_178 = arith.constant 0 : index
    %259 = vector.load %arg10[%c1_176, %c112_177, %c0_178] : memref<2x144x1024xbf16, #tpu.memory_space<vmem>>, vector<1x16x1024xbf16>
    %260 = vector.shape_cast %259 : vector<1x16x1024xbf16> to vector<16x1024xbf16>
    %261 = vector.shape_cast %258 : vector<16x1024xbf16> to vector<1x16x1024xbf16>
    tpu.vector_store %arg10[%c1_176, %c112_177, %c0_178], %261 {strides = array<i32>} : memref<2x144x1024xbf16, #tpu.memory_space<vmem>>, vector<1x16x1024xbf16>,
    %c1013_i32_179 = arith.constant 1013 : i32
    %262 = tpu.dynamic_rotate %170 by %c1013_i32_179 dim 1 : vector<16x1024xf32>, i32 -> vector<16x1024xf32>
    %263 = arith.truncf %262 : vector<16x1024xf32> to vector<16x1024xbf16>
    %c1_180 = arith.constant 1 : index
    %c128_181 = arith.constant 128 : index
    %c0_182 = arith.constant 0 : index
    %264 = vector.load %arg10[%c1_180, %c128_181, %c0_182] : memref<2x144x1024xbf16, #tpu.memory_space<vmem>>, vector<1x16x1024xbf16>
    %265 = vector.shape_cast %264 : vector<1x16x1024xbf16> to vector<16x1024xbf16>
    %266 = vector.shape_cast %263 : vector<16x1024xbf16> to vector<1x16x1024xbf16>
    tpu.vector_store %arg10[%c1_180, %c128_181, %c0_182], %266 {strides = array<i32>} : memref<2x144x1024xbf16, #tpu.memory_space<vmem>>, vector<1x16x1024xbf16>,
    %c1_183 = arith.constant 1 : index
    %c0_184 = arith.constant 0 : index
    %c0_185 = arith.constant 0 : index
    %267 = vector.load %arg3[%c1_183, %c0_184, %c0_185] : memref<3x16x144xbf16, #tpu.memory_space<vmem>>, vector<1x16x144xbf16>
    %268 = vector.shape_cast %267 : vector<1x16x144xbf16> to vector<16x144xbf16>
    %c1_186 = arith.constant 1 : index
    %c0_187 = arith.constant 0 : index
    %c0_188 = arith.constant 0 : index
    %269 = vector.load %arg10[%c1_186, %c0_187, %c0_188] : memref<2x144x1024xbf16, #tpu.memory_space<vmem>>, vector<1x144x1024xbf16>
    %270 = vector.shape_cast %269 : vector<1x144x1024xbf16> to vector<144x1024xbf16>
    %cst_189 = arith.constant dense<0.000000e+00> : vector<16x1024xf32>
    %271 = tpu.matmul %268, %270, %cst_189 {dimension_numbers = #tpu.dot_dimension_numbers<[1], [0], [0], [1], [0, 0, 1, 1], [], []>} : vector<16x144xbf16>, vector<144x1024xbf16>, vector<16x1024xf32> -> vector<16x1024xf32>
    %272 = arith.addf %222, %271 : vector<16x1024xf32>
    %c935_i32_190 = arith.constant 935 : i32
    %273 = tpu.dynamic_rotate %170 by %c935_i32_190 dim 1 : vector<16x1024xf32>, i32 -> vector<16x1024xf32>
    %274 = arith.truncf %273 : vector<16x1024xf32> to vector<16x1024xbf16>
    %c0_191 = arith.constant 0 : index
    %c0_192 = arith.constant 0 : index
    %c0_193 = arith.constant 0 : index
    %275 = vector.load %arg10[%c0_191, %c0_192, %c0_193] : memref<2x144x1024xbf16, #tpu.memory_space<vmem>>, vector<1x16x1024xbf16>
    %276 = vector.shape_cast %275 : vector<1x16x1024xbf16> to vector<16x1024xbf16>
    %277 = vector.shape_cast %274 : vector<16x1024xbf16> to vector<1x16x1024xbf16>
    tpu.vector_store %arg10[%c0_191, %c0_192, %c0_193], %277 {strides = array<i32>} : memref<2x144x1024xbf16, #tpu.memory_space<vmem>>, vector<1x16x1024xbf16>,
    %c934_i32_194 = arith.constant 934 : i32
    %278 = tpu.dynamic_rotate %170 by %c934_i32_194 dim 1 : vector<16x1024xf32>, i32 -> vector<16x1024xf32>
    %279 = arith.truncf %278 : vector<16x1024xf32> to vector<16x1024xbf16>
    %c0_195 = arith.constant 0 : index
    %c16_196 = arith.constant 16 : index
    %c0_197 = arith.constant 0 : index
    %280 = vector.load %arg10[%c0_195, %c16_196, %c0_197] : memref<2x144x1024xbf16, #tpu.memory_space<vmem>>, vector<1x16x1024xbf16>
    %281 = vector.shape_cast %280 : vector<1x16x1024xbf16> to vector<16x1024xbf16>
    %282 = vector.shape_cast %279 : vector<16x1024xbf16> to vector<1x16x1024xbf16>
    tpu.vector_store %arg10[%c0_195, %c16_196, %c0_197], %282 {strides = array<i32>} : memref<2x144x1024xbf16, #tpu.memory_space<vmem>>, vector<1x16x1024xbf16>,
    %c933_i32_198 = arith.constant 933 : i32
    %283 = tpu.dynamic_rotate %170 by %c933_i32_198 dim 1 : vector<16x1024xf32>, i32 -> vector<16x1024xf32>
    %284 = arith.truncf %283 : vector<16x1024xf32> to vector<16x1024xbf16>
    %c0_199 = arith.constant 0 : index
    %c32_200 = arith.constant 32 : index
    %c0_201 = arith.constant 0 : index
    %285 = vector.load %arg10[%c0_199, %c32_200, %c0_201] : memref<2x144x1024xbf16, #tpu.memory_space<vmem>>, vector<1x16x1024xbf16>
    %286 = vector.shape_cast %285 : vector<1x16x1024xbf16> to vector<16x1024xbf16>
    %287 = vector.shape_cast %284 : vector<16x1024xbf16> to vector<1x16x1024xbf16>
    tpu.vector_store %arg10[%c0_199, %c32_200, %c0_201], %287 {strides = array<i32>} : memref<2x144x1024xbf16, #tpu.memory_space<vmem>>, vector<1x16x1024xbf16>,
    %c925_i32_202 = arith.constant 925 : i32
    %288 = tpu.dynamic_rotate %170 by %c925_i32_202 dim 1 : vector<16x1024xf32>, i32 -> vector<16x1024xf32>
    %289 = arith.truncf %288 : vector<16x1024xf32> to vector<16x1024xbf16>
    %c0_203 = arith.constant 0 : index
    %c48_204 = arith.constant 48 : index
    %c0_205 = arith.constant 0 : index
    %290 = vector.load %arg10[%c0_203, %c48_204, %c0_205] : memref<2x144x1024xbf16, #tpu.memory_space<vmem>>, vector<1x16x1024xbf16>
    %291 = vector.shape_cast %290 : vector<1x16x1024xbf16> to vector<16x1024xbf16>
    %292 = vector.shape_cast %289 : vector<16x1024xbf16> to vector<1x16x1024xbf16>
    tpu.vector_store %arg10[%c0_203, %c48_204, %c0_205], %292 {strides = array<i32>} : memref<2x144x1024xbf16, #tpu.memory_space<vmem>>, vector<1x16x1024xbf16>,
    %c924_i32_206 = arith.constant 924 : i32
    %293 = tpu.dynamic_rotate %170 by %c924_i32_206 dim 1 : vector<16x1024xf32>, i32 -> vector<16x1024xf32>
    %294 = arith.truncf %293 : vector<16x1024xf32> to vector<16x1024xbf16>
    %c0_207 = arith.constant 0 : index
    %c64_208 = arith.constant 64 : index
    %c0_209 = arith.constant 0 : index
    %295 = vector.load %arg10[%c0_207, %c64_208, %c0_209] : memref<2x144x1024xbf16, #tpu.memory_space<vmem>>, vector<1x16x1024xbf16>
    %296 = vector.shape_cast %295 : vector<1x16x1024xbf16> to vector<16x1024xbf16>
    %297 = vector.shape_cast %294 : vector<16x1024xbf16> to vector<1x16x1024xbf16>
    tpu.vector_store %arg10[%c0_207, %c64_208, %c0_209], %297 {strides = array<i32>} : memref<2x144x1024xbf16, #tpu.memory_space<vmem>>, vector<1x16x1024xbf16>,
    %c923_i32_210 = arith.constant 923 : i32
    %298 = tpu.dynamic_rotate %170 by %c923_i32_210 dim 1 : vector<16x1024xf32>, i32 -> vector<16x1024xf32>
    %299 = arith.truncf %298 : vector<16x1024xf32> to vector<16x1024xbf16>
    %c0_211 = arith.constant 0 : index
    %c80_212 = arith.constant 80 : index
    %c0_213 = arith.constant 0 : index
    %300 = vector.load %arg10[%c0_211, %c80_212, %c0_213] : memref<2x144x1024xbf16, #tpu.memory_space<vmem>>, vector<1x16x1024xbf16>
    %301 = vector.shape_cast %300 : vector<1x16x1024xbf16> to vector<16x1024xbf16>
    %302 = vector.shape_cast %299 : vector<16x1024xbf16> to vector<1x16x1024xbf16>
    tpu.vector_store %arg10[%c0_211, %c80_212, %c0_213], %302 {strides = array<i32>} : memref<2x144x1024xbf16, #tpu.memory_space<vmem>>, vector<1x16x1024xbf16>,
    %c915_i32_214 = arith.constant 915 : i32
    %303 = tpu.dynamic_rotate %170 by %c915_i32_214 dim 1 : vector<16x1024xf32>, i32 -> vector<16x1024xf32>
    %304 = arith.truncf %303 : vector<16x1024xf32> to vector<16x1024xbf16>
    %c0_215 = arith.constant 0 : index
    %c96_216 = arith.constant 96 : index
    %c0_217 = arith.constant 0 : index
    %305 = vector.load %arg10[%c0_215, %c96_216, %c0_217] : memref<2x144x1024xbf16, #tpu.memory_space<vmem>>, vector<1x16x1024xbf16>
    %306 = vector.shape_cast %305 : vector<1x16x1024xbf16> to vector<16x1024xbf16>
    %307 = vector.shape_cast %304 : vector<16x1024xbf16> to vector<1x16x1024xbf16>
    tpu.vector_store %arg10[%c0_215, %c96_216, %c0_217], %307 {strides = array<i32>} : memref<2x144x1024xbf16, #tpu.memory_space<vmem>>, vector<1x16x1024xbf16>,
    %c914_i32_218 = arith.constant 914 : i32
    %308 = tpu.dynamic_rotate %170 by %c914_i32_218 dim 1 : vector<16x1024xf32>, i32 -> vector<16x1024xf32>
    %309 = arith.truncf %308 : vector<16x1024xf32> to vector<16x1024xbf16>
    %c0_219 = arith.constant 0 : index
    %c112_220 = arith.constant 112 : index
    %c0_221 = arith.constant 0 : index
    %310 = vector.load %arg10[%c0_219, %c112_220, %c0_221] : memref<2x144x1024xbf16, #tpu.memory_space<vmem>>, vector<1x16x1024xbf16>
    %311 = vector.shape_cast %310 : vector<1x16x1024xbf16> to vector<16x1024xbf16>
    %312 = vector.shape_cast %309 : vector<16x1024xbf16> to vector<1x16x1024xbf16>
    tpu.vector_store %arg10[%c0_219, %c112_220, %c0_221], %312 {strides = array<i32>} : memref<2x144x1024xbf16, #tpu.memory_space<vmem>>, vector<1x16x1024xbf16>,
    %c913_i32_222 = arith.constant 913 : i32
    %313 = tpu.dynamic_rotate %170 by %c913_i32_222 dim 1 : vector<16x1024xf32>, i32 -> vector<16x1024xf32>
    %314 = arith.truncf %313 : vector<16x1024xf32> to vector<16x1024xbf16>
    %c0_223 = arith.constant 0 : index
    %c128_224 = arith.constant 128 : index
    %c0_225 = arith.constant 0 : index
    %315 = vector.load %arg10[%c0_223, %c128_224, %c0_225] : memref<2x144x1024xbf16, #tpu.memory_space<vmem>>, vector<1x16x1024xbf16>
    %316 = vector.shape_cast %315 : vector<1x16x1024xbf16> to vector<16x1024xbf16>
    %317 = vector.shape_cast %314 : vector<16x1024xbf16> to vector<1x16x1024xbf16>
    tpu.vector_store %arg10[%c0_223, %c128_224, %c0_225], %317 {strides = array<i32>} : memref<2x144x1024xbf16, #tpu.memory_space<vmem>>, vector<1x16x1024xbf16>,
    %c2_226 = arith.constant 2 : index
    %c0_227 = arith.constant 0 : index
    %c0_228 = arith.constant 0 : index
    %318 = vector.load %arg3[%c2_226, %c0_227, %c0_228] : memref<3x16x144xbf16, #tpu.memory_space<vmem>>, vector<1x16x144xbf16>
    %319 = vector.shape_cast %318 : vector<1x16x144xbf16> to vector<16x144xbf16>
    %c0_229 = arith.constant 0 : index
    %c0_230 = arith.constant 0 : index
    %c0_231 = arith.constant 0 : index
    %320 = vector.load %arg10[%c0_229, %c0_230, %c0_231] : memref<2x144x1024xbf16, #tpu.memory_space<vmem>>, vector<1x144x1024xbf16>
    %321 = vector.shape_cast %320 : vector<1x144x1024xbf16> to vector<144x1024xbf16>
    %cst_232 = arith.constant dense<0.000000e+00> : vector<16x1024xf32>
    %322 = tpu.matmul %319, %321, %cst_232 {dimension_numbers = #tpu.dot_dimension_numbers<[1], [0], [0], [1], [0, 0, 1, 1], [], []>} : vector<16x144xbf16>, vector<144x1024xbf16>, vector<16x1024xf32> -> vector<16x1024xf32>
    %323 = arith.addf %272, %322 : vector<16x1024xf32>
    %c0_233 = arith.constant 0 : index
    %c0_234 = arith.constant 0 : index
    %324 = vector.load %arg6[%c0_233, %c0_234] : memref<16x1xf32, #tpu.memory_space<vmem>>, vector<16x1xf32>
    %325 = vector.broadcast %324 : vector<16x1xf32> to vector<16x1024xf32>
    %326 = arith.mulf %323, %325 : vector<16x1024xf32>
    %c0_235 = arith.constant 0 : index
    %c0_236 = arith.constant 0 : index
    %327 = vector.load %arg7[%c0_235, %c0_236] : memref<16x1xf32, #tpu.memory_space<vmem>>, vector<16x1xf32>
    %328 = vector.broadcast %327 : vector<16x1xf32> to vector<16x1024xf32>
    %329 = arith.addf %326, %328 : vector<16x1024xf32>
    %c0_237 = arith.constant 0 : index
    %c0_238 = arith.constant 0 : index
    %c0_239 = arith.constant 0 : index
    %330 = vector.load %arg1[%c0_237, %c0_238, %c0_239] : memref<1x16x1024xf32, #tpu.memory_space<vmem>>, vector<1x16x1024xf32>
    %331 = vector.shape_cast %330 : vector<1x16x1024xf32> to vector<16x1024xf32>
    %332 = arith.addf %329, %331 : vector<16x1024xf32>
    %cst_240 = arith.constant 0.000000e+00 : f32
    %333 = vector.broadcast %cst_240 : f32 to vector<16x1024xf32>
    %334 = arith.maximumf %332, %333 : vector<16x1024xf32>
    %c0_241 = arith.constant 0 : index
    %c0_242 = arith.constant 0 : index
    %c0_243 = arith.constant 0 : index
    %335 = vector.load %arg9[%c0_241, %c0_242, %c0_243] : memref<1x16x1024xf32, #tpu.memory_space<vmem>>, vector<1x16x1024xf32>
    %336 = vector.shape_cast %335 : vector<1x16x1024xf32> to vector<16x1024xf32>
    %337 = vector.shape_cast %334 : vector<16x1024xf32> to vector<1x16x1024xf32>
    tpu.vector_store %arg9[%c0_241, %c0_242, %c0_243], %337 {strides = array<i32>} : memref<1x16x1024xf32, #tpu.memory_space<vmem>>, vector<1x16x1024xf32>,
    return
  }
  func.func @transform_0(%arg0: i32) -> (i32, i32, i32) {
    %c0_i32 = arith.constant 0 : i32
    %c0_i32_0 = arith.constant 0 : i32
    %c0_i32_1 = arith.constant 0 : i32
    return %arg0, %c0_i32, %c0_i32_0 : i32, i32, i32
  }
  func.func @transform_1(%arg0: i32) -> (i32, i32, i32) {
    %c0_i32 = arith.constant 0 : i32
    %c0_i32_0 = arith.constant 0 : i32
    %c0_i32_1 = arith.constant 0 : i32
    %c0_i32_2 = arith.constant 0 : i32
    return %c0_i32, %c0_i32_0, %c0_i32_1 : i32, i32, i32
  }
  func.func @transform_2(%arg0: i32) -> (i32, i32, i32) {
    %c0_i32 = arith.constant 0 : i32
    %c0_i32_0 = arith.constant 0 : i32
    %c0_i32_1 = arith.constant 0 : i32
    %c0_i32_2 = arith.constant 0 : i32
    return %c0_i32, %c0_i32_0, %c0_i32_1 : i32, i32, i32
  }
  func.func @transform_3(%arg0: i32) -> (i32, i32, i32) {
    %c0_i32 = arith.constant 0 : i32
    %c0_i32_0 = arith.constant 0 : i32
    %c0_i32_1 = arith.constant 0 : i32
    return %arg0, %c0_i32, %c0_i32_0 : i32, i32, i32
  }
  func.func @transform_4(%arg0: i32) -> (i32, i32) {
    %c0_i32 = arith.constant 0 : i32
    %c0_i32_0 = arith.constant 0 : i32
    %c0_i32_1 = arith.constant 0 : i32
    return %c0_i32, %c0_i32_0 : i32, i32
  }
  func.func @transform_5(%arg0: i32) -> (i32, i32) {
    %c0_i32 = arith.constant 0 : i32
    %c0_i32_0 = arith.constant 0 : i32
    %c0_i32_1 = arith.constant 0 : i32
    return %c0_i32, %c0_i32_0 : i32, i32
  }
  func.func @transform_6(%arg0: i32) -> (i32, i32) {
    %c0_i32 = arith.constant 0 : i32
    %c0_i32_0 = arith.constant 0 : i32
    %c0_i32_1 = arith.constant 0 : i32
    return %c0_i32, %c0_i32_0 : i32, i32
  }
  func.func @transform_7(%arg0: i32) -> (i32, i32) {
    %c0_i32 = arith.constant 0 : i32
    %c0_i32_0 = arith.constant 0 : i32
    %c0_i32_1 = arith.constant 0 : i32
    return %c0_i32, %c0_i32_0 : i32, i32
  }
  func.func @transform_8(%arg0: i32) -> (i32, i32, i32) {
    %c0_i32 = arith.constant 0 : i32
    %c0_i32_0 = arith.constant 0 : i32
    %c0_i32_1 = arith.constant 0 : i32
    return %arg0, %c0_i32, %c0_i32_0 : i32, i32, i32
  }
}

</mosaic_0001>

<bundles_post_ra>
// kernel: tpu_custom_call.1
= control target key start
LH: loop header
LB: loop body
LE: loop exit
PB: predicated region body
PF: predicated region fallthrough
CT: control target
= control target key end

     0   :  { %13 = vsyncpa [#allocation4], 0  ;;  %s15590_s0 = inlined_call_operand.hbm [shape: f32[2,16,1024], index: 0, kind: input, shape index: {}]   ;;  %s15591_s1 = inlined_call_operand.vmem [shape: bf16[3,16,144], index: 1, kind: input, shape index: {}]   ;;  %s15592_s2 = inlined_call_operand.hbm [shape: bf16[3,16,144], index: 2, kind: input, shape index: {}]   ;;  %s15593_s3 = inlined_call_operand.vmem [shape: f32[2,16,1], index: 3, kind: input, shape index: {}]   ;;  %s15594_s4 = inlined_call_operand.vmem [shape: f32[16,1], index: 4, kind: input, shape index: {}]   ;;  %s15595_s5 = inlined_call_operand.vmem [shape: f32[16,1], index: 5, kind: input, shape index: {}]   ;;  %s15596_s6 = inlined_call_operand.vmem [shape: f32[16,1], index: 6, kind: input, shape index: {}]   ;;  %s15597_s7 = inlined_call_operand.vmem [shape: f32[1,1024], index: 7, kind: input, shape index: {}]   ;;  %s15598_s8 = inlined_call_operand.hbm [shape: f32[2,16,1024], index: 8, kind: output, shape index: {}]  }
   0x1   :  { %15 = vsyncpa [#allocation4 + $0x1], 0 }
   0x2   :  { %16 = vsyncpa [#allocation7], 0 }
   0x3   :  { %17 = vsyncpa [#allocation5], 0 }
   0x4   :  { %19 = vsyncpa [#allocation5 + $0x1], 0  ;;  %s8287_s27 = smov 0   ;;  %s8289_s28 = smov 0  }
   0x5   :  { %s8291_s29 = smov 0   ;;  %s8293_s30 = smov 0  }
   0x6 LB: > { %s8308_s9 = sadd.s32 4294967295, %s8204_s30   ;;  %s5710_s10 = sadd.s32 4294967294, %s8204_s30   ;;  %s8204_s30 = sphi %s8293_s30, %s17735_s30   ;;  %s8200_s29 = sphi %s8291_s29, %s17738_s29   ;;  %s8196_s28 = sphi %s8289_s28, %s17737_s28   ;;  %s8192_s27 = sphi %s8287_s27, %s17736_s27  }
   0x7   : > { %p45_p0 = scmp.ne.s32.totalorder %s8196_s28, %s8192_s27  ;;  %p15599_p1 = scmp.eq.s32.totalorder %s8308_s9, 0 }
   0x8   : > { %p227_p3 = scmp.eq.s32.totalorder %s5710_s10, 1  ;;  %p5711_p5 = scmp.ge.s32.totalorder %s8204_s30, 1 }
   0x9   : > { %p8317_p4 = por %p15599_p1, %p45_p0  ;;  %p234_p7 = scmp.lt.s32.totalorder %s8204_s30, 3 }
   0xa   : > { %p8322_p6 = por %p227_p3, %p45_p0  ;;  %s8206_s14 = smov [#allocation6]  }
   0xb   : > { %s16147_s11 = scalar_select %p8317_p4, 1, 0 }
   0xc   : > { %s16148_s12 = scalar_select %p8322_p6, 1, 0 }
   0xd   : > { %p8327_p8 = pnand %p5711_p5, %p234_p7  ;;  %s249_s15 = sshll.u32 %s8206_s14, 4  ;;  %s8331_s15 = int_to_ptr.vmem [resolvable:$true] %s249_s15 }
   0xe   : > { %s8343_s17 = sadd.s32 1, %s8204_s30   ;;  %s32_s18 = sadd.s32 1, %s8200_s29 }
   0xf   : > { %s16149_s13 = scalar_select %p8327_p8, 1, 0 }
  0x10   : > { %p5867_p9 = pneg %p8327_p8  ;;  %16151 = sst [smem:[#allocation12_spill]] %s8343_s17 }
  0x11   : > { %s29_s19 = ssub.s32 %s8204_s30, %s8343_s17  ;;  %s8076_s22 = scalar_lea.hbm %s15592_s2, 768 }
  0x12   : > { %p8338_p11 = pnand %p5867_p9, %p15599_p1  ;;  %p8077_p12 = scmp.ne.s32.totalorder %s15592_s2, %s8076_s22 }
  0x13   : > { %p8083_p5 = scmp.lt.u32.totalorder %s8076_s22, %s15592_s2 }
  0x14   : > { %p8078_p13 = pneg %p8338_p11 }
  0x16   : > { %p8079_p0 = pnand %p8078_p13, %p8077_p12 }
  0x18   : > { %p8080_p3 = pneg %p8079_p0 }
  0x1a   : > { %p8085_p7 = pnand %p8083_p5, %p8080_p3 }
  0x1c   : > { %8088 = shalt.err (!%p8085_p7)
}
  0x1d   : > { %s8089_s10 = scalar_lea.vmem %s8331_s15, 768  ;;  %p8097_p2 = scmp.lt.s32.totalorder %s8331_s15, %s8331_s15 }
  0x1e   : > { %p8090_p9 = scmp.ne.s32.totalorder %s8331_s15, %s8089_s10  ;;  %p8098_p6 = scmp.lt.s32.totalorder %s8089_s10, %s8089_s10 }
  0x20   : > { %p8092_p10 = pnand %p8090_p9, %p8078_p13  ;;  %p8099_p4 = por %p8098_p6, %p8097_p2 }
  0x22   : > { %p8093_p1 = pneg %p8092_p10 }
  0x24   : > { %p8100_p8 = pnand %p8099_p4, %p8093_p1 }
  0x26   : > { %8103 = shalt.err (!%p8100_p8)
}
  0x27   : > { %s8207_s14 = smov 128   ;;  %s8208_s20 = smov 8  }
  0x28   : > { %5870 = dma.hbm_to_vmem [thread:$0]  (!%p8338_p11), %s15592_s2, 768, %s8331_s15, [#allocation7], %s8207_s14, %s8207_s14, %s8208_s20  }
  0x29   : > { %p30_p2 = scmp.eq.s32.totalorder %s29_s19, 0  ;;  %p39_p1 = scmp.ne.s32.totalorder %s8200_s29, %s8196_s28 }
  0x2a   : > { %p40_p4 = scmp.eq.s32.totalorder %s8204_s30, 0  ;;  %p5880_p6 = scmp.lt.s32.totalorder %s8204_s30, 2 }
  0x2b   : > { %s8374_s23 = scalar_select %p30_p2, %s8200_s29, %s32_s18  }
  0x2c   : > { %p41_p8 = por %p40_p4, %p39_p1  ;;  %p16152_p10 = scmp.eq.s32.totalorder %s8308_s9, 1 }
  0x2d   : > { %s275_s25 = sand.u32 1, %s8200_s29   ;;  %s5768_s26 = sshll.u32 %s8204_s30, 11 }
  0x2e   : > { %p8378_p12 = por %p16152_p10, %p39_p1  ;;  %s5714_s10 = sshll.u32 %s275_s25, 7 }
  0x2f   : > { %s8387_s21 = scalar_lea.hbm %s15590_s0, %s5768_s26  ;;  %s279_s15 = scalar_lea.vmem [#allocation3], %s5714_s10 }
  0x30   : > { %s286_s18 = sshll.u32 %s279_s15, 4  ;;  %p8389_p11 = pnand %p5880_p6, %p41_p8  ;;  %s8393_s18 = int_to_ptr.vmem [resolvable:$true] %s286_s18 }
  0x31   : > { %s8395_s14 = scalar_lea.sflag [#allocation4], %s275_s25  ;;  %s8104_s20 = scalar_lea.hbm %s8387_s21, 2048 }
  0x32   : > { %p8105_p13 = scmp.ne.s32.totalorder %s8387_s21, %s8104_s20  ;;  %p8106_p0 = pneg %p8389_p11 }
  0x33   : > { %s8109_s26 = scalar_lea.hbm %s15590_s0, 4096  ;;  %p8110_p7 = scmp.lt.u32.totalorder %s8387_s21, %s15590_s0 }
  0x34   : > { %p8107_p3 = pnand %p8106_p0, %p8105_p13  ;;  %p8111_p9 = scmp.lt.u32.totalorder %s8109_s26, %s8104_s20 }
  0x35   : > { %p8113_p1 = scmp.lt.u32.totalorder %s8104_s20, %s8387_s21 }
  0x36   : > { %p8108_p5 = pneg %p8107_p3  ;;  %p8112_p2 = por %p8111_p9, %p8110_p7 }
  0x38   : > { %p8114_p4 = por %p8113_p1, %p8112_p2 }
  0x3a   : > { %p8115_p6 = pnand %p8114_p4, %p8108_p5 }
  0x3c   : > { %8118 = shalt.err (!%p8115_p6)
}
  0x3d   : > { %s8119_s25 = scalar_lea.vmem %s8393_s18, 2048  ;;  %s8209_s15 = smov [#allocation3]  }
  0x3e   : > { %p8120_p8 = scmp.ne.s32.totalorder %s8393_s18, %s8119_s25  ;;  %s8124_s17 = sshll.u32 %s8209_s15, 4  ;;  %s8125_s17 = int_to_ptr.vmem [resolvable:$false] %s8124_s17 }
  0x3f   : > { %s8126_s22 = scalar_lea.vmem %s8125_s17, 4096  ;;  %p8127_p3 = scmp.lt.s32.totalorder %s8393_s18, %s8125_s17 }
  0x40   : > { %p8122_p10 = pnand %p8120_p8, %p8106_p0  ;;  %p8128_p7 = scmp.lt.s32.totalorder %s8126_s22, %s8119_s25 }
  0x42   : > { %p8123_p13 = pneg %p8122_p10  ;;  %p8129_p9 = por %p8128_p7, %p8127_p3 }
  0x44   : > { %p8130_p2 = pnand %p8129_p9, %p8123_p13 }
  0x46   : > { %8133 = shalt.err (!%p8130_p2)
}
  0x47   : > { %s8210_s20 = smov 1024   ;;  %s8211_s26 = smov 64  }
  0x48   : > { %5874 = dma.hbm_to_vmem [thread:$0]  (!%p8389_p11), %s8387_s21, 2048, %s8393_s18, %s8395_s14, %s8210_s20, %s8210_s20, %s8211_s26  }
  0x49   : > { %p16155_p0 = scmp.ne.s32.totalorder %s16149_s13, 0 }
  0x4b   : > { %306 = sbr.rel (%p16155_p0) target bundleno = 1741 (0x6cd), region = 52 }
  0x52   : > { %s8426_s10 = sand.u32 1, %s8196_s28   ;;  %p16156_p5 = scmp.ne.s32.totalorder %s16147_s11, 0 }
  0x53   : > { %s15604_s16 = sshll.u32 %s8426_s10, 7  ;;  %s309_s25 = scalar_lea.sflag [#allocation4], %s8426_s10 }
  0x54   : > { %s8432_s15 = scalar_lea.vmem [#allocation3], %s15604_s16 }
  0x55   : > { %8179 = dma.done.wait (%p16156_p5), %s309_s25, 2048  }
  0x56   : > { %8181 = vsyncadd (%p16156_p5), %s309_s25, 4294965248  ;;  %p16157_p11 = scmp.eq.s32.totalorder %s8308_s9, 0 }
  0x58   : > { %8183 = dma.done.wait (%p16157_p11), [#allocation7], 768   ;;  %p16158_p1 = pmov %p16157_p11 }
  0x59   : > { %v364_v0 = vld [vmem:[%s8432_s15 + $0x10] sm:$0xff]  ;;  %v362_v2 = vld [vmem:[%s8432_s15] sm:$0xff]  ;;  %v365_v5 = vld [vmem:[%s8432_s15 + $0x18] sm:$0xff]  ;;  %s8212_s11 = smov 111   ;;  %s8213_s13 = smov 110   ;;  %vm1660_vm0 = vcmask 130048  }
  0x5a   : > { %8185 = vsyncadd (%p16158_p1), [#allocation7], 4294966528  ;;  %v372_v1 = vld [vmem:[%s8432_s15 + $0x50] sm:$0xff]  ;;  %v370_v4 = vld [vmem:[%s8432_s15 + $0x40] sm:$0xff]  ;;  %s8214_s21 = smov 109   ;;  %s8215_s18 = smov 101  }
  0x5b   : > { %v8445_v3 = vpack.i.bf16 %v372_v1, %v364_v0  ;;  %v373_v6 = vld [vmem:[%s8432_s15 + $0x58] sm:$0xff]  ;;  %v8450_v7 = vpack.i.bf16 %v370_v4, %v362_v2  ;;  %v363_v8 = vld [vmem:[%s8432_s15 + $0x8] sm:$0xff]  ;;  %v366_v14 = vld [vmem:[%s8432_s15 + $0x20] sm:$0xff]  ;;  %s8216_s19 = smov 100   ;;  %s8217_s14 = smov 99  }
  0x5c   : > { %v371_v9 = vld [vmem:[%s8432_s15 + $0x48] sm:$0xff]  ;;  %v8456_v10 = vpack.i.bf16 %v373_v6, %v365_v5  ;;  %v8466_v15 = vld [vmem:[%s8432_s15 + $0x60] sm:$0xff]  ;;  %v369_v16 = vld [vmem:[%s8432_s15 + $0x38] sm:$0xff]  ;;  %s8218_s17 = smov 91   ;;  %s15836_s22 = smov 90  }
  0x5d   : > { %5960 = vrot.lane.b32.xlu1 %v8445_v3, %s8212_s11  ;;  %5950 = vrot.lane.b32.xlu0 %v8450_v7, %s8212_s11  ;;  %v8460_v11 = vpack.i.bf16 %v371_v9, %v363_v8  ;;  %v367_v12 = vld [vmem:[%s8432_s15 + $0x28] sm:$0xff]  ;;  %v377_v17 = vld [vmem:[%s8432_s15 + $0x78] sm:$0xff]  ;;  %v8477_v19 = vpack.i.bf16 %v8466_v15, %v366_v14  ;;  %s15636_s20 = smov 89   ;;  %s15633_s26 = smov 11  }
  0x5e   : > { %v375_v13 = vld [vmem:[%s8432_s15 + $0x68] sm:$0xff]  ;;  %v368_v20 = vld [vmem:[%s8432_s15 + $0x30] sm:$0xff]  ;;  %v8483_v22 = vpack.i.bf16 %v377_v17, %v369_v16  ;;  %s15605_s25 = smov 10   ;;  %s15607_s16 = smov 9  }
  0x5f   : > { %v8472_v18 = vpack.i.bf16 %v375_v13, %v367_v12  ;;  %v376_v21 = vld [vmem:[%s8432_s15 + $0x70] sm:$0xff]  ;;  %p354_p4 = scmp.lt.s32.totalorder %s8308_s9, 1 }
  0x60   : > { %v8487_v23 = vpack.i.bf16 %v376_v21, %v368_v20 }
  0x61   : > { %5965 = vrot.lane.b32.xlu1 %v8456_v10, %s8212_s11  ;;  %5955 = vrot.lane.b32.xlu0 %v8460_v11, %s8212_s11 }
  0x65   : > { %5975 = vrot.lane.b32.xlu1 %v8472_v18, %s8212_s11  ;;  %5970 = vrot.lane.b32.xlu0 %v8477_v19, %s8212_s11 }
  0x69   : > { %5985 = vrot.lane.b32.xlu1 %v8483_v22, %s8212_s11  ;;  %5980 = vrot.lane.b32.xlu0 %v8487_v23, %s8212_s11 }
  0x6d   : > { %5995 = vrot.lane.b32.xlu1 %v8460_v11, %s8213_s13  ;;  %5990 = vrot.lane.b32.xlu0 %v8450_v7, %s8213_s13 }
  0x71   : > { %6005 = vrot.lane.b32.xlu1 %v8456_v10, %s8213_s13  ;;  %6000 = vrot.lane.b32.xlu0 %v8445_v3, %s8213_s13 }
  0x75   : > { %6015 = vrot.lane.b32.xlu1 %v8472_v18, %s8213_s13  ;;  %6010 = vrot.lane.b32.xlu0 %v8477_v19, %s8213_s13 }
  0x79   : > { %6025 = vrot.lane.b32.xlu1 %v8483_v22, %s8213_s13  ;;  %6020 = vrot.lane.b32.xlu0 %v8487_v23, %s8213_s13 }
  0x7d   : > { %6035 = vrot.lane.b32.xlu1 %v8460_v11, %s8214_s21  ;;  %6030 = vrot.lane.b32.xlu0 %v8450_v7, %s8214_s21 }
  0x81   : > { %6045 = vrot.lane.b32.xlu1 %v8456_v10, %s8214_s21  ;;  %6040 = vrot.lane.b32.xlu0 %v8445_v3, %s8214_s21 }
  0x85   : > { %6055 = vrot.lane.b32.xlu1 %v8472_v18, %s8214_s21  ;;  %6050 = vrot.lane.b32.xlu0 %v8477_v19, %s8214_s21 }
  0x89   : > { %6065 = vrot.lane.b32.xlu1 %v8483_v22, %s8214_s21  ;;  %6060 = vrot.lane.b32.xlu0 %v8487_v23, %s8214_s21 }
  0x8d   : > { %6075 = vrot.lane.b32.xlu1 %v8460_v11, %s8215_s18  ;;  %6070 = vrot.lane.b32.xlu0 %v8450_v7, %s8215_s18 }
  0x91   : > { %6085 = vrot.lane.b32.xlu1 %v8456_v10, %s8215_s18  ;;  %6080 = vrot.lane.b32.xlu0 %v8445_v3, %s8215_s18 }
  0x95   : > { %6095 = vrot.lane.b32.xlu1 %v8472_v18, %s8215_s18  ;;  %6090 = vrot.lane.b32.xlu0 %v8477_v19, %s8215_s18 }
  0x99   : > { %6105 = vrot.lane.b32.xlu1 %v8483_v22, %s8215_s18  ;;  %6100 = vrot.lane.b32.xlu0 %v8487_v23, %s8215_s18 }
  0x9d   : > { %6115 = vrot.lane.b32.xlu1 %v8460_v11, %s8216_s19  ;;  %6110 = vrot.lane.b32.xlu0 %v8450_v7, %s8216_s19 }
  0xa1   : > { %6125 = vrot.lane.b32.xlu1 %v8456_v10, %s8216_s19  ;;  %6120 = vrot.lane.b32.xlu0 %v8445_v3, %s8216_s19 }
  0xa5   : > { %6135 = vrot.lane.b32.xlu1 %v8472_v18, %s8216_s19  ;;  %6130 = vrot.lane.b32.xlu0 %v8477_v19, %s8216_s19 }
  0xa9   : > { %6145 = vrot.lane.b32.xlu1 %v8483_v22, %s8216_s19  ;;  %6140 = vrot.lane.b32.xlu0 %v8487_v23, %s8216_s19 }
  0xad   : > { %6155 = vrot.lane.b32.xlu1 %v8460_v11, %s8217_s14  ;;  %6150 = vrot.lane.b32.xlu0 %v8450_v7, %s8217_s14 }
  0xb1   : > { %6165 = vrot.lane.b32.xlu1 %v8456_v10, %s8217_s14  ;;  %6160 = vrot.lane.b32.xlu0 %v8445_v3, %s8217_s14 }
  0xb5   : > { %6175 = vrot.lane.b32.xlu1 %v8472_v18, %s8217_s14  ;;  %6170 = vrot.lane.b32.xlu0 %v8477_v19, %s8217_s14 }
  0xb9   : > { %6185 = vrot.lane.b32.xlu1 %v8483_v22, %s8217_s14  ;;  %6180 = vrot.lane.b32.xlu0 %v8487_v23, %s8217_s14 }
  0xbd   : > { %6195 = vrot.lane.b32.xlu1 %v8460_v11, %s8218_s17  ;;  %6190 = vrot.lane.b32.xlu0 %v8450_v7, %s8218_s17 }
  0xc1   : > { %6205 = vrot.lane.b32.xlu1 %v8456_v10, %s8218_s17  ;;  %6200 = vrot.lane.b32.xlu0 %v8445_v3, %s8218_s17 }
  0xc5   : > { %6215 = vrot.lane.b32.xlu1 %v8472_v18, %s8218_s17  ;;  %6210 = vrot.lane.b32.xlu0 %v8477_v19, %s8218_s17 }
  0xc9   : > { %6225 = vrot.lane.b32.xlu1 %v8483_v22, %s8218_s17  ;;  %6220 = vrot.lane.b32.xlu0 %v8487_v23, %s8218_s17 }
  0xcd   : > { %6235 = vrot.lane.b32.xlu1 %v8460_v11, %s15836_s22  ;;  %6230 = vrot.lane.b32.xlu0 %v8450_v7, %s15836_s22 }
  0xcf   : > { %v8593_v24 = vpop.permute.xlu1 %5960  ;;  %v8595_v25 = vpop.permute.xlu0 %5950 }
  0xd1   : > { %6245 = vrot.lane.b32.xlu1 %v8456_v10, %s15836_s22  ;;  %6240 = vrot.lane.b32.xlu0 %v8445_v3, %s15836_s22 }
  0xd3   : > { %v8601_v26 = vpop.permute.xlu1 %5965  ;;  %v8603_v27 = vpop.permute.xlu0 %5955 }
  0xd5   : > { %6255 = vrot.lane.b32.xlu1 %v8472_v18, %s15836_s22  ;;  %6250 = vrot.lane.b32.xlu0 %v8477_v19, %s15836_s22 }
  0xd7   : > { %v8609_v28 = vpop.permute.xlu1 %5975  ;;  %v8611_v29 = vpop.permute.xlu0 %5970 }
  0xd9   : > { %6265 = vrot.lane.b32.xlu1 %v8483_v22, %s15836_s22  ;;  %6260 = vrot.lane.b32.xlu0 %v8487_v23, %s15836_s22 }
  0xdb   : > { %v8617_v30 = vpop.permute.xlu1 %5985  ;;  %v8619_v31 = vpop.permute.xlu0 %5980 }
  0xdd   : > { %6275 = vrot.lane.b32.xlu1 %v8460_v11, %s15636_s20  ;;  %6270 = vrot.lane.b32.xlu0 %v8450_v7, %s15636_s20 }
  0xdf   : > { %v8625_v32 = vpop.permute.xlu1 %5995  ;;  %v8627_v33 = vpop.permute.xlu0 %5990 }
  0xe1   : > { %6285 = vrot.lane.b32.xlu1 %v8456_v10, %s15636_s20  ;;  %6280 = vrot.lane.b32.xlu0 %v8445_v3, %s15636_s20 }
  0xe3   : > { %v8633_v34 = vpop.permute.xlu1 %6005  ;;  %v8635_v35 = vpop.permute.xlu0 %6000 }
  0xe5   : > { %6295 = vrot.lane.b32.xlu1 %v8472_v18, %s15636_s20  ;;  %6290 = vrot.lane.b32.xlu0 %v8477_v19, %s15636_s20 }
  0xe7   : > { %v8641_v36 = vpop.permute.xlu1 %6015  ;;  %v8643_v37 = vpop.permute.xlu0 %6010 }
  0xe9   : > { %6305 = vrot.lane.b32.xlu1 %v8483_v22, %s15636_s20  ;;  %6300 = vrot.lane.b32.xlu0 %v8487_v23, %s15636_s20  ;;  %s15793_s20 = smov 117  }
  0xeb   : > { %v8649_v38 = vpop.permute.xlu1 %6025  ;;  %v8651_v39 = vpop.permute.xlu0 %6020 }
  0xed   : > { %6315 = vrot.lane.b32.xlu1 %v8460_v11, %s15633_s26  ;;  %6310 = vrot.lane.b32.xlu0 %v8450_v7, %s15633_s26 }
  0xef   : > { %v8657_v40 = vpop.permute.xlu1 %6035  ;;  %v8659_v41 = vpop.permute.xlu0 %6030 }
  0xf1   : > { %6325 = vrot.lane.b32.xlu1 %v8456_v10, %s15633_s26  ;;  %6320 = vrot.lane.b32.xlu0 %v8445_v3, %s15633_s26 }
  0xf3   : > { %v8665_v42 = vpop.permute.xlu1 %6045  ;;  %v8667_v43 = vpop.permute.xlu0 %6040 }
  0xf5   : > { %6335 = vrot.lane.b32.xlu1 %v8472_v18, %s15633_s26  ;;  %6330 = vrot.lane.b32.xlu0 %v8477_v19, %s15633_s26 }
  0xf7   : > { %v8673_v44 = vpop.permute.xlu1 %6055  ;;  %v8675_v45 = vpop.permute.xlu0 %6050 }
  0xf9   : > { %6345 = vrot.lane.b32.xlu1 %v8483_v22, %s15633_s26  ;;  %6340 = vrot.lane.b32.xlu0 %v8487_v23, %s15633_s26  ;;  %s15787_s26 = smov 39  }
  0xfb   : > { %v8681_v46 = vpop.permute.xlu1 %6065  ;;  %v8683_v47 = vpop.permute.xlu0 %6060 }
  0xfd   : > { %6355 = vrot.lane.b32.xlu1 %v8460_v11, %s15605_s25  ;;  %6350 = vrot.lane.b32.xlu0 %v8450_v7, %s15605_s25 }
  0xff   : > { %v8689_v48 = vpop.permute.xlu1 %6075  ;;  %v8691_v49 = vpop.permute.xlu0 %6070 }
 0x101   : > { %6365 = vrot.lane.b32.xlu1 %v8456_v10, %s15605_s25  ;;  %6360 = vrot.lane.b32.xlu0 %v8445_v3, %s15605_s25 }
 0x103   : > { %v8697_v50 = vpop.permute.xlu1 %6085  ;;  %v8699_v51 = vpop.permute.xlu0 %6080 }
 0x105   : > { %6375 = vrot.lane.b32.xlu1 %v8472_v18, %s15605_s25  ;;  %6370 = vrot.lane.b32.xlu0 %v8477_v19, %s15605_s25 }
 0x107   : > { %v8705_v52 = vpop.permute.xlu1 %6095  ;;  %v8707_v53 = vpop.permute.xlu0 %6090 }
 0x108   : > { %16159 = vst [vmem:[#allocation13_spill] sm:$0xff] %v8707_v53 }
 0x109   : > { %6385 = vrot.lane.b32.xlu1 %v8483_v22, %s15605_s25  ;;  %6380 = vrot.lane.b32.xlu0 %v8487_v23, %s15605_s25  ;;  %s15610_s25 = smov 1  }
 0x10b   : > { %v8713_v54 = vpop.permute.xlu1 %6105  ;;  %v8715_v55 = vpop.permute.xlu0 %6100 }
 0x10c   : > { %16160 = vst [vmem:[#allocation14_spill] sm:$0xff] %v8713_v54  ;;  %16161 = vst [vmem:[#allocation15_spill] sm:$0xff] %v8715_v55 }
 0x10d   : > { %6395 = vrot.lane.b32.xlu1 %v8460_v11, %s15607_s16  ;;  %6390 = vrot.lane.b32.xlu0 %v8450_v7, %s15607_s16 }
 0x10f   : > { %v8721_v56 = vpop.permute.xlu1 %6115  ;;  %v8723_v57 = vpop.permute.xlu0 %6110 }
 0x110   : > { %16162 = vst [vmem:[#allocation16_spill] sm:$0xff] %v8721_v56  ;;  %16163 = vst [vmem:[#allocation17_spill] sm:$0xff] %v8723_v57 }
 0x111   : > { %6405 = vrot.lane.b32.xlu1 %v8456_v10, %s15607_s16  ;;  %6400 = vrot.lane.b32.xlu0 %v8445_v3, %s15607_s16 }
 0x113   : > { %v8729_v58 = vpop.permute.xlu1 %6125  ;;  %v8731_v59 = vpop.permute.xlu0 %6120 }
 0x114   : > { %16164 = vst [vmem:[#allocation18_spill] sm:$0xff] %v8729_v58  ;;  %16165 = vst [vmem:[#allocation19_spill] sm:$0xff] %v8731_v59 }
 0x115   : > { %6415 = vrot.lane.b32.xlu1 %v8472_v18, %s15607_s16  ;;  %6410 = vrot.lane.b32.xlu0 %v8477_v19, %s15607_s16 }
 0x117   : > { %v8737_v60 = vpop.permute.xlu1 %6135  ;;  %v8739_v61 = vpop.permute.xlu0 %6130 }
 0x118   : > { %16166 = vst [vmem:[#allocation20_spill] sm:$0xff] %v8737_v60  ;;  %16167 = vst [vmem:[#allocation21_spill] sm:$0xff] %v8739_v61 }
 0x119   : > { %6425 = vrot.lane.b32.xlu1 %v8483_v22, %s15607_s16  ;;  %6420 = vrot.lane.b32.xlu0 %v8487_v23, %s15607_s16  ;;  %s15620_s16 = smov 127  }
 0x11b   : > { %v8745_v62 = vpop.permute.xlu1 %6145  ;;  %v8747_v63 = vpop.permute.xlu0 %6140 }
 0x11c   : > { %16168 = vst [vmem:[#allocation22_spill] sm:$0xff] %v8745_v62  ;;  %16169 = vst [vmem:[#allocation23_spill] sm:$0xff] %v8747_v63 }
 0x11d   : > { %6435 = vrot.lane.b32.xlu1 %v8460_v11, %s15610_s25  ;;  %6430 = vrot.lane.b32.xlu0 %v8450_v7, %s15610_s25 }
 0x11f   : > { %v8753_v0 = vpop.permute.xlu1 %6155  ;;  %v8755_v1 = vpop.permute.xlu0 %6150 }
 0x120   : > { %16170 = vst [vmem:[#allocation24_spill] sm:$0xff] %v8753_v0  ;;  %16171 = vst [vmem:[#allocation25_spill] sm:$0xff] %v8755_v1 }
 0x121   : > { %6445 = vrot.lane.b32.xlu1 %v8456_v10, %s15610_s25  ;;  %6440 = vrot.lane.b32.xlu0 %v8445_v3, %s15610_s25 }
 0x123   : > { %v8761_v2 = vpop.permute.xlu1 %6165  ;;  %v8763_v4 = vpop.permute.xlu0 %6160 }
 0x124   : > { %16172 = vst [vmem:[#allocation26_spill] sm:$0xff] %v8761_v2  ;;  %16173 = vst [vmem:[#allocation27_spill] sm:$0xff] %v8763_v4 }
 0x125   : > { %6455 = vrot.lane.b32.xlu1 %v8472_v18, %s15610_s25  ;;  %6450 = vrot.lane.b32.xlu0 %v8477_v19, %s15610_s25 }
 0x127   : > { %v8769_v5 = vpop.permute.xlu1 %6175  ;;  %v8771_v6 = vpop.permute.xlu0 %6170 }
 0x128   : > { %16174 = vst [vmem:[#allocation28_spill] sm:$0xff] %v8769_v5  ;;  %16175 = vst [vmem:[#allocation29_spill] sm:$0xff] %v8771_v6 }
 0x129   : > { %6465 = vrot.lane.b32.xlu1 %v8483_v22, %s15610_s25  ;;  %6460 = vrot.lane.b32.xlu0 %v8487_v23, %s15610_s25  ;;  %s15631_s25 = smov 119  }
 0x12b   : > { %v8777_v8 = vpop.permute.xlu1 %6185  ;;  %v8779_v9 = vpop.permute.xlu0 %6180 }
 0x12c   : > { %16176 = vst [vmem:[#allocation30_spill] sm:$0xff] %v8777_v8  ;;  %16177 = vst [vmem:[#allocation31_spill] sm:$0xff] %v8779_v9 }
 0x12d   : > { %6475 = vrot.lane.b32.xlu1 %v8460_v11, %s15620_s16  ;;  %6470 = vrot.lane.b32.xlu0 %v8450_v7, %s15620_s16 }
 0x12f   : > { %v8785_v12 = vpop.permute.xlu1 %6195  ;;  %v8787_v13 = vpop.permute.xlu0 %6190 }
 0x130   : > { %16178 = vst [vmem:[#allocation32_spill] sm:$0xff] %v8785_v12  ;;  %16179 = vst [vmem:[#allocation33_spill] sm:$0xff] %v8787_v13 }
 0x131   : > { %6485 = vrot.lane.b32.xlu1 %v8456_v10, %s15620_s16  ;;  %6480 = vrot.lane.b32.xlu0 %v8445_v3, %s15620_s16 }
 0x133   : > { %v8793_v14 = vpop.permute.xlu1 %6205  ;;  %v8795_v16 = vpop.permute.xlu0 %6200 }
 0x134   : > { %16180 = vst [vmem:[#allocation34_spill] sm:$0xff] %v8793_v14  ;;  %16181 = vst [vmem:[#allocation35_spill] sm:$0xff] %v8795_v16  ;;  %v8031_v14 = vld [vmem:[%s15591_s1 + $0x14] ss:$8 sps:$4 sm:$0xff]  }
 0x135   : > { %6495 = vrot.lane.b32.xlu1 %v8472_v18, %s15620_s16  ;;  %6490 = vrot.lane.b32.xlu0 %v8477_v19, %s15620_s16 }
 0x136   : > { %5727 = vmatprep.mubr.msk.bf16.mxu0 %vm1660_vm0, %v8031_v14  ;;  %5728 = vmatprep.mubr.msk.bf16.mxu1 %vm1660_vm0, %v8031_v14 }
 0x137   : > { %v8801_v17 = vpop.permute.xlu1 %6215  ;;  %v8803_v20 = vpop.permute.xlu0 %6210 }
 0x138   : > { %16182 = vst [vmem:[#allocation36_spill] sm:$0xff] %v8801_v17  ;;  %16183 = vst [vmem:[#allocation37_spill] sm:$0xff] %v8803_v20 }
 0x139   : > { %6505 = vrot.lane.b32.xlu1 %v8483_v22, %s15620_s16  ;;  %6500 = vrot.lane.b32.xlu0 %v8487_v23, %s15620_s16  ;;  %s15834_s16 = smov 118  }
 0x13b   : > { %v8809_v21 = vpop.permute.xlu1 %6225  ;;  %v8811_v9 = vpop.permute.xlu0 %6220 }
 0x13c   : > { %16184 = vst [vmem:[#allocation38_spill] sm:$0xff] %v8809_v21  ;;  %16185 = vst [vmem:[#allocation39_spill] sm:$0xff] %v8811_v9 }
 0x13d   : > { %6515 = vrot.lane.b32.xlu1 %v8460_v11, %s15631_s25  ;;  %6510 = vrot.lane.b32.xlu0 %v8450_v7, %s15631_s25 }
 0x13f   : > { %v8817_v17 = vpop.permute.xlu1 %6235  ;;  %v8819_v20 = vpop.permute.xlu0 %6230 }
 0x140   : > { %16186 = vst [vmem:[#allocation40_spill] sm:$0xff] %v8817_v17  ;;  %16187 = vst [vmem:[#allocation41_spill] sm:$0xff] %v8819_v20 }
 0x141   : > { %6525 = vrot.lane.b32.xlu1 %v8456_v10, %s15631_s25  ;;  %6520 = vrot.lane.b32.xlu0 %v8445_v3, %s15631_s25 }
 0x143   : > { %v8825_v21 = vpop.permute.xlu1 %6245  ;;  %v8827_v9 = vpop.permute.xlu0 %6240 }
 0x144   : > { %16188 = vst [vmem:[#allocation42_spill] sm:$0xff] %v8825_v21  ;;  %16189 = vst [vmem:[#allocation43_spill] sm:$0xff] %v8827_v9 }
 0x145   : > { %6535 = vrot.lane.b32.xlu1 %v8472_v18, %s15631_s25  ;;  %6530 = vrot.lane.b32.xlu0 %v8477_v19, %s15631_s25 }
 0x147   : > { %v8833_v16 = vpop.permute.xlu1 %6255  ;;  %v8835_v17 = vpop.permute.xlu0 %6250 }
 0x148   : > { %16190 = vst [vmem:[#allocation44_spill] sm:$0xff] %v8833_v16  ;;  %16191 = vst [vmem:[#allocation45_spill] sm:$0xff] %v8835_v17 }
 0x149   : > { %6545 = vrot.lane.b32.xlu1 %v8483_v22, %s15631_s25  ;;  %6540 = vrot.lane.b32.xlu0 %v8487_v23, %s15631_s25  ;;  %s15687_s25 = smov 38  }
 0x14b   : > { %v8841_v20 = vpop.permute.xlu1 %6265  ;;  %v8843_v21 = vpop.permute.xlu0 %6260 }
 0x14c   : > { %16192 = vst [vmem:[#allocation46_spill] sm:$0xff] %v8841_v20  ;;  %16193 = vst [vmem:[#allocation47_spill] sm:$0xff] %v8843_v21 }
 0x14d   : > { %6555 = vrot.lane.b32.xlu1 %v8460_v11, %s15834_s16  ;;  %6550 = vrot.lane.b32.xlu0 %v8450_v7, %s15834_s16 }
 0x14f   : > { %v8849_v16 = vpop.permute.xlu1 %6275  ;;  %v8851_v17 = vpop.permute.xlu0 %6270 }
 0x150   : > { %16194 = vst [vmem:[#allocation48_spill] sm:$0xff] %v8849_v16  ;;  %16195 = vst [vmem:[#allocation49_spill] sm:$0xff] %v8851_v17  ;;  %v15645_v17 = vlaneseq }
 0x151   : > { %6565 = vrot.lane.b32.xlu1 %v8456_v10, %s15834_s16  ;;  %6560 = vrot.lane.b32.xlu0 %v8445_v3, %s15834_s16 }
 0x153   : > { %v8857_v20 = vpop.permute.xlu1 %6285  ;;  %v8859_v21 = vpop.permute.xlu0 %6280 }
 0x154   : > { %16196 = vst [vmem:[#allocation50_spill] sm:$0xff] %v8857_v20  ;;  %16197 = vst [vmem:[#allocation51_spill] sm:$0xff] %v8859_v21 }
 0x155   : > { %6575 = vrot.lane.b32.xlu1 %v8472_v18, %s15834_s16  ;;  %6570 = vrot.lane.b32.xlu0 %v8477_v19, %s15834_s16 }
 0x157   : > { %v8865_v9 = vpop.permute.xlu1 %6295  ;;  %v8867_v16 = vpop.permute.xlu0 %6290 }
 0x158   : > { %16198 = vst [vmem:[#allocation52_spill] sm:$0xff] %v8865_v9  ;;  %16199 = vst [vmem:[#allocation53_spill] sm:$0xff] %v8867_v16  ;;  %v8883_v16 = vand.u32 127, %v15645_v17 }
 0x159   : > { %6585 = vrot.lane.b32.xlu1 %v8483_v22, %s15834_s16  ;;  %6580 = vrot.lane.b32.xlu0 %v8487_v23, %s15834_s16  ;;  %s16877_s16 = smov 39  }
 0x15a   : > { %vm1071_vm1 = vcmp.lt.s32.totalorder %v8883_v16, 11  ;;  %vm1137_vm2 = vcmp.lt.s32.totalorder %v8883_v16, 10  ;;  %vm16012_vm3 = vcmp.lt.s32.totalorder %v8883_v16, 111  ;;  %vm1202_vm4 = vcmp.lt.s32.totalorder %v8883_v16, 9 }
 0x15b   : > { %v8873_v20 = vpop.permute.xlu1 %6305  ;;  %v8875_v21 = vpop.permute.xlu0 %6300  ;;  %vm16006_vm5 = vcmp.lt.s32.totalorder %v8883_v16, 110  ;;  %vm15894_vm6 = vcmp.lt.s32.totalorder %v8883_v16, 1  ;;  %vm15888_vm7 = vcmp.lt.s32.totalorder %v8883_v16, 127  ;;  %vm16005_vm8 = vcmp.lt.s32.totalorder %v8883_v16, 109 }
 0x15c   : > { %16200 = vst [vmem:[#allocation54_spill] sm:$0xff] %v8873_v20  ;;  %16201 = vst [vmem:[#allocation55_spill] sm:$0xff] %v8875_v21  ;;  %vm15880_vm9 = vcmp.lt.s32.totalorder %v8883_v16, 119  ;;  %vm16011_vm10 = vcmp.lt.s32.totalorder %v8883_v16, 101  ;;  %vm15823_vm11 = vcmp.lt.s32.totalorder %v8883_v16, 118  ;;  %vm15810_vm12 = vcmp.lt.s32.totalorder %v8883_v16, 117 }
 0x15d   : > { %6595 = vrot.lane.b32.xlu1 %v8460_v11, %s15793_s20  ;;  %6590 = vrot.lane.b32.xlu0 %v8450_v7, %s15793_s20  ;;  %vm15889_vm13 = vcmp.lt.s32.totalorder %v8883_v16, 100  ;;  %vm15884_vm14 = vcmp.lt.s32.totalorder %v8883_v16, 99  ;;  %vm15866_vm15 = vcmp.lt.s32.totalorder %v8883_v16, 91 }
 0x15f   : > { %v6316_v9 = vpop.permute.xlu1 %6315  ;;  %v6311_v13 = vpop.permute.xlu0 %6310 }
 0x160   : > { %v6318_v21 = vunpack.i.h.bf16 %v6316_v9  ;;  %v6317_v20 = vunpack.i.l.bf16 %v6316_v9  ;;  %v6313_v12 = vunpack.i.h.bf16 %v6311_v13  ;;  %v6312_v6 = vunpack.i.l.bf16 %v6311_v13 }
 0x161   : > { %6605 = vrot.lane.b32.xlu1 %v8456_v10, %s15793_s20  ;;  %6600 = vrot.lane.b32.xlu0 %v8445_v3, %s15793_s20 }
 0x162   : > { %v1084_v5 = vsel %vm1071_vm1, %v6312_v6, %v6317_v20  ;;  %v1085_v14 = vsel %vm1071_vm1, %v6313_v12, %v6318_v21 }
 0x163   : > { %v6326_v17 = vpop.permute.xlu1 %6325  ;;  %v6321_v4 = vpop.permute.xlu0 %6320  ;;  %v1089_v2 = vpack.c.bf16 %v1085_v14, %v1084_v5 }
 0x164   : > { %v6328_v8 = vunpack.i.h.bf16 %v6326_v17  ;;  %v6327_v9 = vunpack.i.l.bf16 %v6326_v17  ;;  %v6323_v1 = vunpack.i.h.bf16 %v6321_v4  ;;  %v6322_v0 = vunpack.i.l.bf16 %v6321_v4 }
 0x165   : > { %6615 = vrot.lane.b32.xlu1 %v8472_v18, %s15793_s20  ;;  %6610 = vrot.lane.b32.xlu0 %v8477_v19, %s15793_s20 }
 0x166   : > { %1664 = vmatprep.subr.bf16.mxu0 %v1089_v2  ;;  %v1080_v63 = vsel %vm1071_vm1, %v6322_v0, %v6327_v9  ;;  %v1081_v62 = vsel %vm1071_vm1, %v6323_v1, %v6328_v8  ;;  %v1082_v5 = vsel %vm1071_vm1, %v6317_v20, %v6322_v0  ;;  %v1083_v4 = vsel %vm1071_vm1, %v6318_v21, %v6323_v1 }
 0x167   : > { %v8902_v13 = vpop.permute.xlu1 %6335  ;;  %v8912_v17 = vpop.permute.xlu0 %6330  ;;  %v1091_v14 = vpack.c.bf16 %v1081_v62, %v1080_v63  ;;  %v1090_v60 = vpack.c.bf16 %v1083_v4, %v1082_v5 }
 0x168   : > { %16202 = vst [vmem:[#allocation56_spill] sm:$0xff] %v8912_v17  ;;  %v15656_v2 = vunpack.i.h.bf16 %v8912_v17  ;;  %v15657_v61 = vunpack.i.l.bf16 %v8912_v17 }
 0x169   : > { %6625 = vrot.lane.b32.xlu1 %v8483_v22, %s15793_s20  ;;  %6620 = vrot.lane.b32.xlu0 %v8487_v23, %s15793_s20  ;;  %s15808_s20 = smov 17  }
 0x16a   : > { %1707 = vmatprep.subr.bf16.mxu1 %v1091_v14  ;;  %v8924_v0 = vsel %vm1071_vm1, %v6328_v8, %v15656_v2  ;;  %v8930_v62 = vsel %vm1071_vm1, %v6327_v9, %v15657_v61 }
 0x16b   : > { %16203 = vst [vmem:[#allocation57_spill] sm:$0xff] %v8924_v0  ;;  %16204 = vst [vmem:[#allocation58_spill] sm:$0xff] %v8930_v62  ;;  %1708 = vmatpush1.bf16.msra.mxu1 %v1090_v60  ;;  %v6346_v63 = vpop.permute.xlu1 %6345  ;;  %v8932_v21 = vpop.permute.xlu0 %6340 }
 0x16c   : > { %v6348_v1 = vunpack.i.h.bf16 %v6346_v63  ;;  %v6347_v20 = vunpack.i.l.bf16 %v6346_v63  ;;  %16205 = vst [vmem:[#allocation59_spill] sm:$0xff] %v8932_v21  ;;  %v15660_v8 = vunpack.i.l.bf16 %v8932_v21  ;;  %v16207_v59 = vunpack.i.h.bf16 %v8932_v21 }
 0x16d   : > { %6635 = vrot.lane.b32.xlu1 %v8460_v11, %s15787_s26  ;;  %6630 = vrot.lane.b32.xlu0 %v8450_v7, %s15787_s26 }
 0x16e   : > { %v1086_v60 = vsel %vm1071_vm1, %v6347_v20, %v6312_v6  ;;  %v1087_v9 = vsel %vm1071_vm1, %v6348_v1, %v6313_v12  ;;  %v8950_v5 = vsel %vm1071_vm1, %v15660_v8, %v6347_v20  ;;  %v8957_v6 = vsel %vm1071_vm1, %v16207_v59, %v6348_v1 }
 0x16f   : > { %v6356_v14 = vpop.permute.xlu1 %6355  ;;  %v1088_v63 = vpack.c.bf16 %v1087_v9, %v1086_v60  ;;  %16206 = vst [vmem:[#allocation60_spill] sm:$0xff] %v8950_v5  ;;  %v6351_v4 = vpop.permute.xlu0 %6350  ;;  %16208 = vst [vmem:[#allocation61_spill] sm:$0xff] %v8957_v6  ;;  %v5963_v6 = vunpack.i.h.bf16 %v8593_v24 }
 0x170   : > { %v6358_v2 = vunpack.i.h.bf16 %v6356_v14  ;;  %v6357_v61 = vunpack.i.l.bf16 %v6356_v14  ;;  %v6353_v12 = vunpack.i.h.bf16 %v6351_v4  ;;  %v6352_v58 = vunpack.i.l.bf16 %v6351_v4 }
 0x171   : > { %6645 = vrot.lane.b32.xlu1 %v8456_v10, %s15787_s26  ;;  %1665 = vmatpush1.bf16.msra.mxu0 %v1088_v63 }
 0x172   : > { %6640 = vrot.lane.b32.xlu0 %v8445_v3, %s15787_s26  ;;  %v1150_v9 = vsel %vm1137_vm2, %v6352_v58, %v6357_v61  ;;  %v1151_v59 = vsel %vm1137_vm2, %v6353_v12, %v6358_v2 }
 0x173   : > { %v6366_v60 = vpop.permute.xlu1 %6365  ;;  %v6361_v4 = vpop.permute.xlu0 %6360  ;;  %v1155_v8 = vpack.c.bf16 %v1151_v59, %v1150_v9 }
 0x174   : > { %v6368_v1 = vunpack.i.h.bf16 %v6366_v60  ;;  %v6367_v14 = vunpack.i.l.bf16 %v6366_v60  ;;  %v6363_v57 = vunpack.i.h.bf16 %v6361_v4  ;;  %v6362_v56 = vunpack.i.l.bf16 %v6361_v4 }
 0x175   : > { %6655 = vrot.lane.b32.xlu1 %v8472_v18, %s15787_s26  ;;  %1666 = vmatprep.subr.bf16.mxu0 %v1155_v8 }
 0x176   : > { %6650 = vrot.lane.b32.xlu0 %v8477_v19, %s15787_s26  ;;  %v1146_v20 = vsel %vm1137_vm2, %v6362_v56, %v6367_v14  ;;  %v1147_v55 = vsel %vm1137_vm2, %v6363_v57, %v6368_v1  ;;  %v1148_v60 = vsel %vm1137_vm2, %v6357_v61, %v6362_v56  ;;  %v1149_v9 = vsel %vm1137_vm2, %v6358_v2, %v6363_v57 }
 0x177   : > { %v8973_v63 = vpop.permute.xlu1 %6375  ;;  %v8983_v59 = vpop.permute.xlu0 %6370  ;;  %v1157_v4 = vpack.c.bf16 %v1147_v55, %v1146_v20  ;;  %v1156_v5 = vpack.c.bf16 %v1149_v9, %v1148_v60  ;;  %v5962_v56 = vunpack.i.l.bf16 %v8593_v24  ;;  %v15676_v60 = vunpack.i.l.bf16 %v8595_v25 }
 0x178   : > { %16209 = vst [vmem:[#allocation62_spill] sm:$0xff] %v8973_v63  ;;  %16210 = vst [vmem:[#allocation63_spill] sm:$0xff] %v8983_v59  ;;  %v15666_v19 = vunpack.i.h.bf16 %v8983_v59  ;;  %v15667_v8 = vunpack.i.l.bf16 %v8983_v59 }
 0x179   : > { %6665 = vrot.lane.b32.xlu1 %v8483_v22, %s15787_s26  ;;  %1709 = vmatprep.subr.bf16.mxu1 %v1157_v4 }
 0x17a   : > { %6660 = vrot.lane.b32.xlu0 %v8487_v23, %s15787_s26  ;;  %v8999_v57 = vsel %vm1137_vm2, %v6368_v1, %v15666_v19  ;;  %v9005_v22 = vsel %vm1137_vm2, %v6367_v14, %v15667_v8  ;;  %1710 = vmatpush1.bf16.msra.mxu1 %v1156_v5  ;;  %v5958_v5 = vunpack.i.h.bf16 %v8603_v27  ;;  %v5957_v19 = vunpack.i.l.bf16 %v8603_v27  ;;  %s15832_s26 = smov 18  }
 0x17b   : > { %16211 = vst [vmem:[#allocation64_spill] sm:$0xff] %v8999_v57  ;;  %16212 = vst [vmem:[#allocation65_spill] sm:$0xff] %v9005_v22  ;;  %v6386_v61 = vpop.permute.xlu1 %6385  ;;  %v9008_v20 = vpop.permute.xlu0 %6380 }
 0x17c   : > { %v6388_v2 = vunpack.i.h.bf16 %v6386_v61  ;;  %v6387_v24 = vunpack.i.l.bf16 %v6386_v61  ;;  %16213 = vst [vmem:[#allocation66_spill] sm:$0xff] %v9008_v20  ;;  %v15669_v9 = vunpack.i.h.bf16 %v9008_v20  ;;  %v15668_v4 = vunpack.i.l.bf16 %v9008_v20  ;;  %v9156_v20 = vld [vmem:[%s8432_s15] sm:$0xff] }
 0x17d   : > { %6675 = vrot.lane.b32.xlu1 %v8460_v11, %s15687_s25 }
 0x17e   : > { %6670 = vrot.lane.b32.xlu0 %v8450_v7, %s15687_s25  ;;  %v1152_v14 = vsel %vm1137_vm2, %v6387_v24, %v6352_v58  ;;  %v1153_v61 = vsel %vm1137_vm2, %v6388_v2, %v6353_v12  ;;  %v9030_v11 = vsel %vm1137_vm2, %v15668_v4, %v6387_v24  ;;  %v9039_v27 = vsel %vm1137_vm2, %v15669_v9, %v6388_v2  ;;  %v9054_v2 = vld [vmem:[%s8432_s15 + $0x20] sm:$0xff] }
 0x17f   : > { %v6396_v8 = vpop.permute.xlu1 %6395  ;;  %v1154_v55 = vpack.c.bf16 %v1153_v61, %v1152_v14  ;;  %16214 = vst [vmem:[#allocation67_spill] sm:$0xff] %v9030_v11  ;;  %v9032_v1 = vpop.permute.xlu0 %6390  ;;  %16215 = vst [vmem:[#allocation68_spill] sm:$0xff] %v9039_v27  ;;  %v9049_v24 = vsel %vm16012_vm3, %v5958_v5, %v5963_v6  ;;  %v6689_v14 = vpack.i.bf16 %v8466_v15, %v9054_v2  ;;  %v16217_v61 = vunpack.i.l.bf16 %v8601_v26 }
 0x180   : > { %v6398_v7 = vunpack.i.h.bf16 %v6396_v8  ;;  %v6397_v23 = vunpack.i.l.bf16 %v6396_v8  ;;  %v15673_v58 = vunpack.i.h.bf16 %v9032_v1  ;;  %v15672_v12 = vunpack.i.l.bf16 %v9032_v1  ;;  %16216 = vst [vmem:[#allocation69_spill] sm:$0xff] %v9049_v24 }
 0x181   : > { %6685 = vrot.lane.b32.xlu1 %v8456_v10, %s15687_s25  ;;  %1667 = vmatpush1.bf16.msra.mxu0 %v1154_v55  ;;  %v9062_v10 = vsel %vm16012_vm3, %v5962_v56, %v16217_v61  ;;  %v16219_v55 = vunpack.i.h.bf16 %v8601_v26  ;;  %v16223_v27 = vunpack.i.h.bf16 %v8595_v25  ;;  %v16235_v24 = vunpack.i.h.bf16 %v8609_v28 }
 0x182   : > { %6680 = vrot.lane.b32.xlu0 %v8445_v3, %s15687_s25  ;;  %16218 = vst [vmem:[#allocation70_spill] sm:$0xff] %v9062_v10  ;;  %v9072_v3 = vsel %vm16012_vm3, %v5957_v19, %v5962_v56  ;;  %v1215_v15 = vsel %vm1202_vm4, %v15672_v12, %v6397_v23  ;;  %v1216_v61 = vsel %vm1202_vm4, %v15673_v58, %v6398_v7  ;;  %v5983_v10 = vunpack.i.h.bf16 %v8619_v31 }
 0x183   : > { %v9068_v8 = vsel %vm16012_vm3, %v5963_v6, %v16219_v55  ;;  %16221 = vst [vmem:[#allocation72_spill] sm:$0xff] %v9072_v3  ;;  %v6406_v4 = vpop.permute.xlu1 %6405  ;;  %v9086_v6 = vsel %vm16012_vm3, %v15676_v60, %v5957_v19  ;;  %v6401_v9 = vpop.permute.xlu0 %6400  ;;  %v1220_v11 = vpack.c.bf16 %v1216_v61, %v1215_v15  ;;  %v9092_v12 = vsel %vm16012_vm3, %v16223_v27, %v5958_v5  ;;  %v8050_v19 = vld [vmem:[%s8432_s15 + $0x38] sm:$0xff]  ;;  %v8052_v5 = vld [vmem:[%s8432_s15 + $0x30] sm:$0xff] }
 0x184   : > { %16220 = vst [vmem:[#allocation71_spill] sm:$0xff] %v9068_v8  ;;  %16222 = vst [vmem:[#allocation73_spill] sm:$0xff] %v9086_v6  ;;  %v6408_v55 = vunpack.i.h.bf16 %v6406_v4  ;;  %v6407_v56 = vunpack.i.l.bf16 %v6406_v4  ;;  %v6403_v22 = vunpack.i.h.bf16 %v6401_v9  ;;  %v6402_v57 = vunpack.i.l.bf16 %v6401_v9  ;;  %v8051_v60 = vld [vmem:[%s8432_s15 + $0x78] sm:$0xff]  ;;  %v8053_v27 = vld [vmem:[%s8432_s15 + $0x70] sm:$0xff] }
 0x185   : > { %16224 = vst [vmem:[#allocation74_spill] sm:$0xff] %v9092_v12  ;;  %6695 = vrot.lane.b32.xlu1 %v8472_v18, %s15687_s25  ;;  %v9099_v4 = vpack.i.bf16 %v8051_v60, %v8050_v19  ;;  %v5973_v15 = vunpack.i.h.bf16 %v8611_v29  ;;  %v5972_v61 = vunpack.i.l.bf16 %v8611_v29  ;;  %1668 = vmatprep.subr.bf16.mxu0 %v1220_v11  ;;  %v9107_v9 = vpack.i.bf16 %v8053_v27, %v8052_v5  ;;  %v9159_v27 = vld [vmem:[%s8432_s15 + $0x40] sm:$0xff] }
 0x186   : > { %6690 = vrot.lane.b32.xlu0 %v6689_v14, %s15687_s25  ;;  %v1211_v60 = vsel %vm1202_vm4, %v6402_v57, %v6407_v56  ;;  %v1212_v19 = vsel %vm1202_vm4, %v6403_v22, %v6408_v55  ;;  %v1213_v29 = vsel %vm1202_vm4, %v6397_v23, %v6402_v57  ;;  %v1214_v11 = vsel %vm1202_vm4, %v6398_v7, %v6403_v22  ;;  %v9130_v57 = vld [vmem:[%s8432_s15 + $0x8] sm:$0xff] }
 0x187   : > { %v9109_v18 = vpop.permute.xlu1 %6415  ;;  %v9119_v14 = vpop.permute.xlu0 %6410  ;;  %v1222_v58 = vpack.c.bf16 %v1212_v19, %v1211_v60  ;;  %v1221_v5 = vpack.c.bf16 %v1214_v11, %v1213_v29  ;;  %v9133_v22 = vld [vmem:[%s8432_s15 + $0x48] sm:$0xff]  ;;  %v16227_v60 = vunpack.i.h.bf16 %v8601_v26  ;;  %v16229_v29 = vunpack.i.l.bf16 %v8601_v26 }
 0x188   : > { %16225 = vst [vmem:[#allocation75_spill] sm:$0xff] %v9109_v18  ;;  %16226 = vst [vmem:[#allocation76_spill] sm:$0xff] %v9119_v14  ;;  %v15683_v62 = vunpack.i.h.bf16 %v9119_v14  ;;  %v15684_v0 = vunpack.i.l.bf16 %v9119_v14  ;;  %v9137_v23 = vpack.i.bf16 %v9133_v22, %v9130_v57  ;;  %v9163_v7 = vpack.i.bf16 %v9159_v27, %v9156_v20 }
 0x189   : > { %6705 = vrot.lane.b32.xlu1 %v9099_v4, %s15687_s25  ;;  %v9145_v19 = vsel %vm16012_vm3, %v16227_v60, %v5973_v15  ;;  %v9151_v11 = vsel %vm16012_vm3, %v16229_v29, %v5972_v61  ;;  %1711 = vmatprep.subr.bf16.mxu1 %v1222_v58  ;;  %v16233_v29 = vunpack.i.l.bf16 %v8609_v28  ;;  %v16238_v6 = vunpack.i.l.bf16 %v9032_v1 }
 0x18a   : > { %16228 = vst [vmem:[#allocation77_spill] sm:$0xff] %v9145_v19  ;;  %16230 = vst [vmem:[#allocation78_spill] sm:$0xff] %v9151_v11  ;;  %6700 = vrot.lane.b32.xlu0 %v9107_v9, %s15687_s25  ;;  %v9169_v26 = vsel %vm1202_vm4, %v6408_v55, %v15683_v62  ;;  %v9175_v58 = vsel %vm1202_vm4, %v6407_v56, %v15684_v0  ;;  %1712 = vmatpush1.bf16.msra.mxu1 %v1221_v5  ;;  %s15717_s25 = smov 37   ;;  %v9213_v62 = vld [vmem:[%s8432_s15 + $0x10] sm:$0xff]  ;;  %v5982_v14 = vunpack.i.l.bf16 %v8619_v31 }
 0x18b   : > { %16231 = vst [vmem:[#allocation79_spill] sm:$0xff] %v9169_v26  ;;  %16232 = vst [vmem:[#allocation80_spill] sm:$0xff] %v9175_v58  ;;  %v6426_v60 = vpop.permute.xlu1 %6425  ;;  %v9181_v3 = vsel %vm16012_vm3, %v5972_v61, %v16233_v29  ;;  %v9187_v55 = vsel %vm16012_vm3, %v5973_v15, %v16235_v24  ;;  %v9190_v5 = vpop.permute.xlu0 %6420  ;;  %v5987_v61 = vunpack.i.l.bf16 %v8617_v30  ;;  %v9200_v24 = vld [vmem:[%s8432_s15 + $0x18] sm:$0xff]  ;;  %v9216_v29 = vld [vmem:[%s8432_s15 + $0x50] sm:$0xff]  ;;  %v16239_v58 = vunpack.i.h.bf16 %v9032_v1 }
 0x18c   : > { %16234 = vst [vmem:[#allocation81_spill] sm:$0xff] %v9181_v3  ;;  %16236 = vst [vmem:[#allocation82_spill] sm:$0xff] %v9187_v55  ;;  %v6428_v56 = vunpack.i.h.bf16 %v6426_v60  ;;  %v6427_v0 = vunpack.i.l.bf16 %v6426_v60  ;;  %v9203_v15 = vld [vmem:[%s8432_s15 + $0x58] sm:$0xff]  ;;  %v9220_v8 = vpack.i.bf16 %v9216_v29, %v9213_v62  ;;  %v16240_v18 = vunpack.i.l.bf16 %v9190_v5  ;;  %v9282_v55 = vld [vmem:[%s8432_s15 + $0x60] sm:$0xff] }
 0x18d   : > { %16237 = vst [vmem:[#allocation83_spill] sm:$0xff] %v9190_v5  ;;  %6715 = vrot.lane.b32.xlu1 %v9137_v23, %s15717_s25  ;;  %v9207_v60 = vpack.i.bf16 %v9203_v15, %v9200_v24  ;;  %v16242_v31 = vunpack.i.h.bf16 %v9190_v5  ;;  %16251 = vst [vmem:[#allocation90_spill] sm:$0xff] %v9282_v55 }
 0x18e   : > { %6710 = vrot.lane.b32.xlu0 %v9163_v7, %s15717_s25  ;;  %v1217_v12 = vsel %vm1202_vm4, %v6427_v0, %v16238_v6  ;;  %v1218_v26 = vsel %vm1202_vm4, %v6428_v56, %v16239_v58  ;;  %v9235_v59 = vsel %vm1202_vm4, %v16240_v18, %v6427_v0  ;;  %v16248_v18 = vunpack.i.h.bf16 %v8595_v25 }
 0x18f   : > { %v6436_v54 = vpop.permute.xlu1 %6435  ;;  %v1219_v21 = vpack.c.bf16 %v1218_v26, %v1217_v12  ;;  %16241 = vst [vmem:[#allocation84_spill] sm:$0xff] %v9235_v59  ;;  %v9240_v63 = vpop.permute.xlu0 %6430  ;;  %v9247_v12 = vsel %vm1202_vm4, %v16242_v31, %v6428_v56  ;;  %v9254_v26 = vld [vmem:[%s8432_s15 + $0x28] sm:$0xff]  ;;  %v16246_v31 = vunpack.i.l.bf16 %v8595_v25  ;;  %v9286_v56 = vpack.i.bf16 %v9282_v55, %v9054_v2 }
 0x190   : > { %v6438_v1 = vunpack.i.h.bf16 %v6436_v54  ;;  %v6437_v58 = vunpack.i.l.bf16 %v6436_v54  ;;  %16243 = vst [vmem:[#allocation85_spill] sm:$0xff] %v9247_v12  ;;  %16244 = vst [vmem:[#allocation86_spill] sm:$0xff] %v9254_v26  ;;  %v9257_v54 = vld [vmem:[%s8432_s15 + $0x68] sm:$0xff]  ;;  %v16252_v25 = vunpack.i.h.bf16 %v8609_v28  ;;  %v16256_v59 = vunpack.i.l.bf16 %v9240_v63 }
 0x191   : > { %6725 = vrot.lane.b32.xlu1 %v9207_v60, %s15717_s25  ;;  %1669 = vmatpush1.bf16.msra.mxu0 %v1219_v21  ;;  %16245 = vst [vmem:[#allocation87_spill] sm:$0xff] %v9257_v54  ;;  %v9261_v6 = vpack.i.bf16 %v9257_v54, %v9254_v26  ;;  %v9269_v0 = vsel %vm16012_vm3, %v5987_v61, %v16246_v31  ;;  %v16249_v21 = vunpack.i.h.bf16 %v8617_v30  ;;  %v16257_v31 = vunpack.i.h.bf16 %v9240_v63 }
 0x192   : > { %16247 = vst [vmem:[#allocation88_spill] sm:$0xff] %v9269_v0  ;;  %6720 = vrot.lane.b32.xlu0 %v9220_v8, %s15717_s25  ;;  %v9294_v54 = vsel %vm16012_vm3, %v16252_v25, %v5983_v10  ;;  %v1280_v2 = vsel %vm15894_vm6, %v16256_v59, %v6437_v58 }
 0x193   : > { %v9277_v3 = vsel %vm16012_vm3, %v16249_v21, %v16248_v18  ;;  %16253 = vst [vmem:[#allocation91_spill] sm:$0xff] %v9294_v54  ;;  %v16254_v18 = vunpack.i.l.bf16 %v8609_v28  ;;  %v6446_v26 = vpop.permute.xlu1 %6445  ;;  %v1281_v11 = vsel %vm15894_vm6, %v16257_v31, %v6438_v1  ;;  %v6441_v12 = vpop.permute.xlu0 %6440  ;;  %v9312_v28 = vsel %vm16012_vm3, %v5982_v14, %v5987_v61 }
 0x194   : > { %16250 = vst [vmem:[#allocation89_spill] sm:$0xff] %v9277_v3  ;;  %v6448_v19 = vunpack.i.h.bf16 %v6446_v26  ;;  %v6447_v25 = vunpack.i.l.bf16 %v6446_v26  ;;  %v1285_v5 = vpack.c.bf16 %v1281_v11, %v1280_v2  ;;  %16258 = vst [vmem:[#allocation93_spill] sm:$0xff] %v9312_v28  ;;  %v6443_v55 = vunpack.i.h.bf16 %v6441_v12 }
 0x195   : > { %v9300_v21 = vsel %vm16012_vm3, %v16254_v18, %v5982_v14  ;;  %v6442_v17 = vunpack.i.l.bf16 %v6441_v12  ;;  %6735 = vrot.lane.b32.xlu1 %v9261_v6, %s15717_s25  ;;  %v16259_v11 = vunpack.i.h.bf16 %v8617_v30  ;;  %v15721_v30 = vunpack.i.h.bf16 %v8627_v33 }
 0x196   : > { %16255 = vst [vmem:[#allocation92_spill] sm:$0xff] %v9300_v21  ;;  %6730 = vrot.lane.b32.xlu0 %v9286_v56, %s15717_s25  ;;  %1670 = vmatprep.subr.bf16.mxu0 %v1285_v5  ;;  %v1277_v26 = vsel %vm15894_vm6, %v6443_v55, %v6448_v19  ;;  %v1279_v5 = vsel %vm15894_vm6, %v6438_v1, %v6443_v55  ;;  %v6027_v21 = vunpack.i.l.bf16 %v8649_v38  ;;  %v6047_v3 = vunpack.i.l.bf16 %v8665_v42 }
 0x197   : > { %v9325_v14 = vsel %vm16012_vm3, %v5983_v10, %v16259_v11  ;;  %v9327_v61 = vpop.permute.xlu1 %6455  ;;  %v1276_v12 = vsel %vm15894_vm6, %v6442_v17, %v6447_v25  ;;  %v1278_v31 = vsel %vm15894_vm6, %v6437_v58, %v6442_v17  ;;  %v9338_v2 = vpop.permute.xlu0 %6450  ;;  %v1303_v18 = vpack.c.bf16 %v9203_v15, %v9200_v24 }
 0x198   : > { %16260 = vst [vmem:[#allocation94_spill] sm:$0xff] %v9325_v14  ;;  %v1287_v10 = vpack.c.bf16 %v1277_v26, %v1276_v12  ;;  %v1286_v11 = vpack.c.bf16 %v1279_v5, %v1278_v31  ;;  %v15719_v53 = vunpack.i.h.bf16 %v9338_v2  ;;  %v15720_v59 = vunpack.i.l.bf16 %v9338_v2 }
 0x199   : > { %6745 = vrot.lane.b32.xlu1 %v9099_v4, %s15717_s25  ;;  %v1302_v12 = vpack.c.bf16 %v9216_v29, %v9213_v62  ;;  %v16261_v26 = vunpack.i.l.bf16 %v8625_v32  ;;  %v16262_v31 = vunpack.i.l.bf16 %v8627_v33  ;;  %v1301_v17 = vpack.c.bf16 %v9133_v22, %v9130_v57 }
 0x19a   : > { %6740 = vrot.lane.b32.xlu0 %v9107_v9, %s15717_s25  ;;  %1713 = vmatprep.subr.bf16.mxu1 %v1287_v10  ;;  %v9358_v15 = vsel %vm15894_vm6, %v6448_v19, %v15719_v53  ;;  %v9364_v1 = vsel %vm15894_vm6, %v6447_v25, %v15720_v59  ;;  %s15734_s25 = smov 29   ;;  %v6003_v25 = vunpack.i.h.bf16 %v8635_v35  ;;  %v6002_v53 = vunpack.i.l.bf16 %v8635_v35 }
 0x19b   : > { %1714 = vmatpush1.bf16.msra.mxu1 %v1286_v11  ;;  %v6466_v58 = vpop.permute.xlu1 %6465  ;;  %v9374_v5 = vsel %vm16006_vm5, %v16262_v31, %v16261_v26  ;;  %v9376_v24 = vpop.permute.xlu0 %6460  ;;  %v16264_v11 = vunpack.i.h.bf16 %v8625_v32  ;;  %v1300_v22 = vpack.c.bf16 %v9159_v27, %v9156_v20  ;;  %v16270_v20 = vunpack.i.l.bf16 %v8625_v32 }
 0x19c   : > { %16263 = vst [vmem:[#allocation95_spill] sm:$0xff] %v9374_v5  ;;  %v6468_v19 = vunpack.i.h.bf16 %v6466_v58  ;;  %v6467_v10 = vunpack.i.l.bf16 %v6466_v58  ;;  %1715 = vmatprep.subr.bf16.mxu1 %v1303_v18  ;;  %v15723_v26 = vunpack.i.h.bf16 %v9376_v24  ;;  %v15722_v58 = vunpack.i.l.bf16 %v9376_v24 }
 0x19d   : > { %v9386_v62 = vsel %vm16006_vm5, %v15721_v30, %v16264_v11  ;;  %6755 = vrot.lane.b32.xlu1 %v9137_v23, %s15734_s25  ;;  %v16266_v18 = vunpack.i.l.bf16 %v9240_v63  ;;  %v16267_v11 = vunpack.i.h.bf16 %v9240_v63  ;;  %v15724_v63 = vunpack.i.h.bf16 %v8633_v34 }
 0x19e   : > { %16265 = vst [vmem:[#allocation96_spill] sm:$0xff] %v9386_v62  ;;  %6750 = vrot.lane.b32.xlu0 %v9163_v7, %s15734_s25  ;;  %v9420_v57 = vsel %vm15894_vm6, %v15723_v26, %v6468_v19  ;;  %v9444_v27 = vsel %vm16006_vm5, %v16270_v20, %v6002_v53  ;;  %v16272_v35 = vunpack.i.l.bf16 %v8633_v34 }
 0x19f   : > { %v1282_v31 = vsel %vm15894_vm6, %v6467_v10, %v16266_v18  ;;  %v1283_v55 = vsel %vm15894_vm6, %v6468_v19, %v16267_v11  ;;  %v6476_v59 = vpop.permute.xlu1 %6475  ;;  %1716 = vmatpush1.bf16.msra.mxu1 %v1302_v12  ;;  %v9411_v18 = vsel %vm15894_vm6, %v15722_v58, %v6467_v10  ;;  %v9414_v29 = vpop.permute.xlu0 %6470  ;;  %v16268_v11 = vunpack.i.h.bf16 %v8625_v32  ;;  %16271 = vst [vmem:[#allocation98_spill] sm:$0xff] %v9444_v27 }
 0x1a0   : > { %v1284_v30 = vpack.c.bf16 %v1283_v55, %v1282_v31  ;;  %v6478_v12 = vunpack.i.h.bf16 %v6476_v59  ;;  %v6477_v10 = vunpack.i.l.bf16 %v6476_v59  ;;  %v6472_v19 = vunpack.i.l.bf16 %v9414_v29 }
 0x1a1   : > { %6765 = vrot.lane.b32.xlu1 %v9207_v60, %s15734_s25  ;;  %v6012_v58 = vunpack.i.l.bf16 %v8643_v37  ;;  %v9460_v20 = vsel %vm16006_vm5, %v6003_v25, %v15724_v63  ;;  %v6013_v63 = vunpack.i.h.bf16 %v8643_v37 }
 0x1a2   : > { %1671 = vmatpush1.bf16.msra.mxu0 %v1284_v30  ;;  %6760 = vrot.lane.b32.xlu0 %v9220_v8, %s15734_s25  ;;  %v9438_v30 = vsel %vm16006_vm5, %v16268_v11, %v6003_v25  ;;  %16274 = vst [vmem:[#allocation100_spill] sm:$0xff] %v9460_v20  ;;  %v1361_v55 = vsel %vm15888_vm7, %v6472_v19, %v6477_v10  ;;  %v16275_v11 = vunpack.i.h.bf16 %v9414_v29 }
 0x1a3   : > { %1672 = vmatprep.subr.bf16.mxu0 %v1301_v17  ;;  %16269 = vst [vmem:[#allocation97_spill] sm:$0xff] %v9438_v30  ;;  %v6486_v59 = vpop.permute.xlu1 %6485  ;;  %v9451_v17 = vsel %vm16006_vm5, %v6002_v53, %v16272_v35  ;;  %v6481_v32 = vpop.permute.xlu0 %6480  ;;  %v16300_v30 = vunpack.i.l.bf16 %v8659_v41 }
 0x1a4   : > { %16273 = vst [vmem:[#allocation99_spill] sm:$0xff] %v9451_v17  ;;  %v6483_v26 = vunpack.i.h.bf16 %v6481_v32  ;;  %v6482_v31 = vunpack.i.l.bf16 %v6481_v32  ;;  %v6488_v53 = vunpack.i.h.bf16 %v6486_v59  ;;  %v6487_v35 = vunpack.i.l.bf16 %v6486_v59 }
 0x1a5   : > { %6775 = vrot.lane.b32.xlu1 %v9261_v6, %s15734_s25  ;;  %v1362_v25 = vsel %vm15888_vm7, %v16275_v11, %v6478_v12  ;;  %v16276_v11 = vunpack.i.l.bf16 %v8641_v36 }
 0x1a6   : > { %1673 = vmatpush1.bf16.msra.mxu0 %v1300_v22  ;;  %6770 = vrot.lane.b32.xlu0 %v9286_v56, %s15734_s25  ;;  %v1359_v22 = vsel %vm15888_vm7, %v6477_v10, %v6482_v31  ;;  %v1360_v59 = vsel %vm15888_vm7, %v6478_v12, %v6483_v26  ;;  %v1365_v12 = vpack.c.bf16 %v1362_v25, %v1361_v55 }
 0x1a7   : > { %v9473_v32 = vpop.permute.xlu1 %6495  ;;  %v6491_v14 = vpop.permute.xlu0 %6490  ;;  %v1366_v5 = vpack.c.bf16 %v1360_v59, %v1359_v22  ;;  %v9487_v37 = vsel %vm16006_vm5, %v6012_v58, %v16276_v11  ;;  %v1357_v22 = vsel %vm15888_vm7, %v6482_v31, %v6487_v35  ;;  %v1358_v59 = vsel %vm15888_vm7, %v6483_v26, %v6488_v53 }
 0x1a8   : > { %v15731_v54 = vunpack.i.h.bf16 %v9473_v32  ;;  %v15733_v28 = vunpack.i.l.bf16 %v9473_v32  ;;  %16277 = vst [vmem:[#allocation101_spill] sm:$0xff] %v9487_v37  ;;  %v6493_v62 = vunpack.i.h.bf16 %v6491_v14  ;;  %v6492_v10 = vunpack.i.l.bf16 %v6491_v14 }
 0x1a9   : > { %6785 = vrot.lane.b32.xlu1 %v9099_v4, %s15734_s25  ;;  %1674 = vmatprep.subr.bf16.mxu0 %v1366_v5  ;;  %v16292_v37 = vunpack.i.h.bf16 %v8641_v36 }
 0x1aa   : > { %6780 = vrot.lane.b32.xlu0 %v9107_v9, %s15734_s25  ;;  %v9502_v14 = vsel %vm15888_vm7, %v6493_v62, %v15731_v54  ;;  %v9508_v55 = vsel %vm15888_vm7, %v6492_v10, %v15733_v28  ;;  %1675 = vmatpush1.bf16.msra.mxu0 %v1365_v12  ;;  %v1355_v31 = vsel %vm15888_vm7, %v6487_v35, %v6492_v10  ;;  %v6028_v12 = vunpack.i.h.bf16 %v8649_v38  ;;  %s15749_s25 = smov 28  }
 0x1ab   : > { %16278 = vst [vmem:[#allocation102_spill] sm:$0xff] %v9508_v55  ;;  %v9510_v5 = vpop.permute.xlu1 %6505  ;;  %v1356_v26 = vsel %vm15888_vm7, %v6488_v53, %v6493_v62  ;;  %v9518_v54 = vpop.permute.xlu0 %6500  ;;  %v1367_v35 = vpack.c.bf16 %v1358_v59, %v1357_v22  ;;  %v16279_v10 = vunpack.i.h.bf16 %v8641_v36  ;;  %v16282_v53 = vunpack.i.h.bf16 %v9414_v29 }
 0x1ac   : > { %v15737_v25 = vunpack.i.h.bf16 %v9510_v5  ;;  %v15736_v11 = vunpack.i.l.bf16 %v9510_v5  ;;  %v1368_v17 = vpack.c.bf16 %v1356_v26, %v1355_v31  ;;  %v16284_v59 = vunpack.i.h.bf16 %v8633_v34 }
 0x1ad   : > { %6795 = vrot.lane.b32.xlu1 %v9137_v23, %s15749_s25  ;;  %v9529_v62 = vsel %vm16006_vm5, %v6013_v63, %v16279_v10  ;;  %v6023_v29 = vunpack.i.h.bf16 %v8651_v39  ;;  %v6038_v10 = vunpack.i.h.bf16 %v8657_v40 }
 0x1ae   : > { %16280 = vst [vmem:[#allocation103_spill] sm:$0xff] %v9529_v62  ;;  %6790 = vrot.lane.b32.xlu0 %v9163_v7, %s15749_s25  ;;  %1717 = vmatprep.subr.bf16.mxu1 %v1368_v17  ;;  %v9538_v38 = vsel %vm15888_vm7, %v15736_v11, %v6472_v19  ;;  %v9546_v22 = vsel %vm15888_vm7, %v15737_v25, %v16282_v53  ;;  %v16286_v17 = vunpack.i.l.bf16 %v8633_v34  ;;  %v16288_v53 = vunpack.i.l.bf16 %v8627_v33 }
 0x1af   : > { %16281 = vst [vmem:[#allocation104_spill] sm:$0xff] %v9538_v38  ;;  %16283 = vst [vmem:[#allocation105_spill] sm:$0xff] %v9546_v22  ;;  %v9552_v31 = vsel %vm16006_vm5, %v16284_v59, %v6013_v63  ;;  %1718 = vmatpush1.bf16.msra.mxu1 %v1367_v35  ;;  %v6516_v26 = vpop.permute.xlu1 %6515  ;;  %v6022_v63 = vunpack.i.l.bf16 %v8651_v39  ;;  %v9570_v34 = vpop.permute.xlu0 %6510  ;;  %v16290_v59 = vunpack.i.h.bf16 %v8627_v33  ;;  %v6037_v33 = vunpack.i.l.bf16 %v8657_v40 }
 0x1b0   : > { %16285 = vst [vmem:[#allocation106_spill] sm:$0xff] %v9552_v31  ;;  %v9558_v19 = vsel %vm16006_vm5, %v16286_v17, %v6012_v58  ;;  %v9567_v28 = vsel %vm16006_vm5, %v6027_v21, %v16288_v53  ;;  %v6518_v39 = vunpack.i.h.bf16 %v6516_v26  ;;  %v6517_v53 = vunpack.i.l.bf16 %v6516_v26 }
 0x1b1   : > { %16287 = vst [vmem:[#allocation107_spill] sm:$0xff] %v9558_v19  ;;  %16289 = vst [vmem:[#allocation108_spill] sm:$0xff] %v9567_v28  ;;  %v9580_v17 = vsel %vm16006_vm5, %v6028_v12, %v16290_v59  ;;  %6805 = vrot.lane.b32.xlu1 %v9207_v60, %s15749_s25  ;;  %v9597_v26 = vsel %vm16006_vm5, %v16292_v37, %v6023_v29  ;;  %v16294_v11 = vunpack.i.l.bf16 %v8641_v36 }
 0x1b2   : > { %16291 = vst [vmem:[#allocation109_spill] sm:$0xff] %v9580_v17  ;;  %6800 = vrot.lane.b32.xlu0 %v9220_v8, %s15749_s25  ;;  %16293 = vst [vmem:[#allocation110_spill] sm:$0xff] %v9597_v26  ;;  %v9607_v35 = vsel %vm16006_vm5, %v6022_v63, %v6027_v21  ;;  %v9611_v59 = vsel %vm16006_vm5, %v6023_v29, %v6028_v12  ;;  %v9635_v20 = vsel %vm16005_vm8, %v16300_v30, %v6037_v33 }
 0x1b3   : > { %v6526_v25 = vpop.permute.xlu1 %6525  ;;  %v9603_v58 = vsel %vm16006_vm5, %v16294_v11, %v6022_v63  ;;  %v6521_v40 = vpop.permute.xlu0 %6520  ;;  %16296 = vst [vmem:[#allocation112_spill] sm:$0xff] %v9607_v35  ;;  %16297 = vst [vmem:[#allocation113_spill] sm:$0xff] %v9611_v59  ;;  %v16298_v11 = vunpack.i.l.bf16 %v9570_v34  ;;  %v16299_v63 = vunpack.i.h.bf16 %v9570_v34 }
 0x1b4   : > { %16295 = vst [vmem:[#allocation111_spill] sm:$0xff] %v9603_v58  ;;  %v6523_v62 = vunpack.i.h.bf16 %v6521_v40  ;;  %v6522_v27 = vunpack.i.l.bf16 %v6521_v40  ;;  %v6528_v37 = vunpack.i.h.bf16 %v6526_v25  ;;  %v6527_v36 = vunpack.i.l.bf16 %v6526_v25  ;;  %16301 = vst [vmem:[#allocation114_spill] sm:$0xff] %v9635_v20 }
 0x1b5   : > { %6815 = vrot.lane.b32.xlu1 %v9261_v6, %s15749_s25  ;;  %v1426_v21 = vsel %vm15880_vm9, %v16298_v11, %v6517_v53  ;;  %v1427_v12 = vsel %vm15880_vm9, %v16299_v63, %v6518_v39  ;;  %v16302_v11 = vunpack.i.h.bf16 %v8659_v41  ;;  %v6048_v63 = vunpack.i.h.bf16 %v8665_v42 }
 0x1b6   : > { %6810 = vrot.lane.b32.xlu0 %v9286_v56, %s15749_s25  ;;  %v1424_v40 = vsel %vm15880_vm9, %v6517_v53, %v6522_v27  ;;  %v1425_v25 = vsel %vm15880_vm9, %v6518_v39, %v6523_v62  ;;  %v6043_v53 = vunpack.i.h.bf16 %v8667_v43  ;;  %v1430_v55 = vpack.c.bf16 %v1427_v12, %v1426_v21 }
 0x1b7   : > { %v9625_v29 = vpop.permute.xlu1 %6535  ;;  %v9641_v0 = vsel %vm16005_vm8, %v16302_v11, %v6038_v10  ;;  %v9646_v38 = vpop.permute.xlu0 %6530  ;;  %v1431_v39 = vpack.c.bf16 %v1425_v25, %v1424_v40  ;;  %v6042_v11 = vunpack.i.l.bf16 %v8667_v43  ;;  %v1422_v42 = vsel %vm15880_vm9, %v6522_v27, %v6527_v36 }
 0x1b8   : > { %16303 = vst [vmem:[#allocation115_spill] sm:$0xff] %v9641_v0  ;;  %v15751_v22 = vunpack.i.h.bf16 %v9646_v38  ;;  %v15748_v30 = vunpack.i.l.bf16 %v9646_v38  ;;  %v1423_v40 = vsel %vm15880_vm9, %v6523_v62, %v6528_v37  ;;  %v6053_v12 = vunpack.i.h.bf16 %v8675_v45 }
 0x1b9   : > { %6825 = vrot.lane.b32.xlu1 %v9099_v4, %s15749_s25  ;;  %1676 = vmatprep.subr.bf16.mxu0 %v1431_v39  ;;  %v6068_v27 = vunpack.i.h.bf16 %v8681_v46  ;;  %v6067_v39 = vunpack.i.l.bf16 %v8681_v46  ;;  %v6078_v0 = vunpack.i.h.bf16 %v8689_v48 }
 0x1ba   : > { %6820 = vrot.lane.b32.xlu0 %v9107_v9, %s15749_s25  ;;  %1677 = vmatpush1.bf16.msra.mxu0 %v1430_v55  ;;  %v1420_v21 = vsel %vm15880_vm9, %v6527_v36, %v15748_v30  ;;  %v1421_v43 = vsel %vm15880_vm9, %v6528_v37, %v15751_v22  ;;  %v9683_v37 = vsel %vm16005_vm8, %v6038_v10, %v6043_v53  ;;  %s15766_s25 = smov 27   ;;  %v6058_v36 = vunpack.i.h.bf16 %v8673_v44 }
 0x1bb   : > { %v9659_v25 = vpop.permute.xlu1 %6545  ;;  %v9673_v62 = vpop.permute.xlu0 %6540  ;;  %v1433_v55 = vpack.c.bf16 %v1421_v43, %v1420_v21  ;;  %16304 = vst [vmem:[#allocation116_spill] sm:$0xff] %v9683_v37  ;;  %v1432_v21 = vpack.c.bf16 %v1423_v40, %v1422_v42  ;;  %v9692_v43 = vsel %vm16005_vm8, %v6042_v11, %v6047_v3  ;;  %v9696_v30 = vsel %vm16005_vm8, %v6043_v53, %v6048_v63 }
 0x1bc   : > { %16305 = vst [vmem:[#allocation117_spill] sm:$0xff] %v9692_v43  ;;  %16306 = vst [vmem:[#allocation118_spill] sm:$0xff] %v9696_v30  ;;  %v9700_v10 = vsel %vm16005_vm8, %v6037_v33, %v6042_v11  ;;  %v6057_v42 = vunpack.i.l.bf16 %v8673_v44  ;;  %v6052_v40 = vunpack.i.l.bf16 %v8675_v45  ;;  %v6063_v22 = vunpack.i.h.bf16 %v8683_v47 }
 0x1bd   : > { %6835 = vrot.lane.b32.xlu1 %v9137_v23, %s15766_s25  ;;  %1719 = vmatprep.subr.bf16.mxu1 %v1433_v55  ;;  %16307 = vst [vmem:[#allocation119_spill] sm:$0xff] %v9700_v10  ;;  %v6062_v53 = vunpack.i.l.bf16 %v8683_v47  ;;  %v9714_v11 = vsel %vm16005_vm8, %v6048_v63, %v6053_v12  ;;  %v16313_v44 = vunpack.i.l.bf16 %v8659_v41 }
 0x1be   : > { %6830 = vrot.lane.b32.xlu0 %v9163_v7, %s15766_s25  ;;  %1720 = vmatpush1.bf16.msra.mxu1 %v1432_v21  ;;  %16309 = vst [vmem:[#allocation121_spill] sm:$0xff] %v9714_v11  ;;  %v9726_v58 = vsel %vm16005_vm8, %v6047_v3, %v6052_v40  ;;  %v9731_v26 = vsel %vm16005_vm8, %v6052_v40, %v6057_v42  ;;  %v16315_v3 = vunpack.i.h.bf16 %v8659_v41 }
 0x1bf   : > { %v6556_v55 = vpop.permute.xlu1 %6555  ;;  %v9710_v33 = vpop.permute.xlu0 %6550  ;;  %16310 = vst [vmem:[#allocation122_spill] sm:$0xff] %v9726_v58  ;;  %16311 = vst [vmem:[#allocation123_spill] sm:$0xff] %v9731_v26  ;;  %v9741_v21 = vsel %vm16005_vm8, %v6067_v39, %v16313_v44  ;;  %v9751_v40 = vsel %vm16005_vm8, %v6058_v36, %v6063_v22  ;;  %v16335_v26 = vld [vmem:[#allocation62_spill] sm:$0xff] }
 0x1c0   : > { %16308 = vst [vmem:[#allocation120_spill] sm:$0xff] %v9710_v33  ;;  %v6558_v45 = vunpack.i.h.bf16 %v6556_v55  ;;  %v6557_v46 = vunpack.i.l.bf16 %v6556_v55  ;;  %v9735_v55 = vsel %vm16005_vm8, %v6053_v12, %v6058_v36  ;;  %16314 = vst [vmem:[#allocation125_spill] sm:$0xff] %v9741_v21  ;;  %v9747_v47 = vsel %vm16005_vm8, %v6068_v27, %v16315_v3 }
 0x1c1   : > { %6845 = vrot.lane.b32.xlu1 %v9207_v60, %s15766_s25  ;;  %16312 = vst [vmem:[#allocation124_spill] sm:$0xff] %v9735_v55  ;;  %16316 = vst [vmem:[#allocation126_spill] sm:$0xff] %v9751_v40  ;;  %v9755_v12 = vsel %vm16005_vm8, %v6057_v42, %v6062_v53  ;;  %v16318_v3 = vunpack.i.l.bf16 %v9710_v33  ;;  %v16319_v31 = vunpack.i.h.bf16 %v9710_v33  ;;  %v6377_v55 = vunpack.i.l.bf16 %v16335_v26 }
 0x1c2   : > { %6840 = vrot.lane.b32.xlu0 %v9220_v8, %s15766_s25  ;;  %16317 = vst [vmem:[#allocation127_spill] sm:$0xff] %v9755_v12 }
 0x1c3   : > { %v6566_v63 = vpop.permute.xlu1 %6565  ;;  %v6561_v35 = vpop.permute.xlu0 %6560  ;;  %v1491_v36 = vsel %vm15823_vm11, %v16318_v3, %v6557_v46  ;;  %v1492_v42 = vsel %vm15823_vm11, %v16319_v31, %v6558_v45  ;;  %v15770_v3 = vunpack.i.h.bf16 %v8691_v49  ;;  %v9783_v31 = vsel %vm16005_vm8, %v6062_v53, %v6067_v39 }
 0x1c4   : > { %v6563_v59 = vunpack.i.h.bf16 %v6561_v35  ;;  %v6562_v19 = vunpack.i.l.bf16 %v6561_v35  ;;  %v6568_v44 = vunpack.i.h.bf16 %v6566_v63  ;;  %v6567_v41 = vunpack.i.l.bf16 %v6566_v63  ;;  %16320 = vst [vmem:[#allocation128_spill] sm:$0xff] %v9783_v31 }
 0x1c5   : > { %6855 = vrot.lane.b32.xlu1 %v9261_v6, %s15766_s25  ;;  %v6077_v35 = vunpack.i.l.bf16 %v8689_v48 }
 0x1c6   : > { %6850 = vrot.lane.b32.xlu0 %v9286_v56, %s15766_s25  ;;  %v1489_v63 = vsel %vm15823_vm11, %v6557_v46, %v6562_v19  ;;  %v1490_v20 = vsel %vm15823_vm11, %v6558_v45, %v6563_v59  ;;  %v1495_v46 = vpack.c.bf16 %v1492_v42, %v1491_v36  ;;  %v1487_v48 = vsel %vm15823_vm11, %v6562_v19, %v6567_v41 }
 0x1c7   : > { %v9771_v30 = vpop.permute.xlu1 %6575  ;;  %v9779_v28 = vpop.permute.xlu0 %6570  ;;  %v1496_v17 = vpack.c.bf16 %v1490_v20, %v1489_v63  ;;  %v1488_v20 = vsel %vm15823_vm11, %v6563_v59, %v6568_v44  ;;  %v9813_v59 = vsel %vm16005_vm8, %v6063_v22, %v6068_v27  ;;  %v15771_v36 = vunpack.i.l.bf16 %v8697_v50 }
 0x1c8   : > { %v15769_v43 = vunpack.i.h.bf16 %v9779_v28  ;;  %v15768_v33 = vunpack.i.l.bf16 %v9779_v28  ;;  %16323 = vst [vmem:[#allocation130_spill] sm:$0xff] %v9813_v59  ;;  %v6083_v42 = vunpack.i.h.bf16 %v8699_v51  ;;  %v9827_v22 = vsel %vm16011_vm10, %v15770_v3, %v6078_v0 }
 0x1c9   : > { %6865 = vrot.lane.b32.xlu1 %v9099_v4, %s15766_s25  ;;  %1678 = vmatprep.subr.bf16.mxu0 %v1496_v17  ;;  %v16321_v17 = vunpack.i.l.bf16 %v8691_v49  ;;  %16324 = vst [vmem:[#allocation131_spill] sm:$0xff] %v9827_v22  ;;  %v6338_v3 = vunpack.i.h.bf16 %v8902_v13 }
 0x1ca   : > { %6860 = vrot.lane.b32.xlu0 %v9107_v9, %s15766_s25  ;;  %1679 = vmatpush1.bf16.msra.mxu0 %v1495_v46  ;;  %v1485_v53 = vsel %vm15823_vm11, %v6567_v41, %v15768_v33  ;;  %v1486_v45 = vsel %vm15823_vm11, %v6568_v44, %v15769_v43  ;;  %v6082_v41 = vunpack.i.l.bf16 %v8699_v51  ;;  %v15772_v44 = vunpack.i.h.bf16 %v8697_v50  ;;  %s15785_s25 = smov 19   ;;  %v16331_v43 = vld [vmem:[#allocation56_spill] sm:$0xff] }
 0x1cb   : > { %v9795_v39 = vpop.permute.xlu1 %6585  ;;  %v9809_v19 = vsel %vm16011_vm10, %v16321_v17, %v6077_v35  ;;  %v9818_v63 = vpop.permute.xlu0 %6580  ;;  %v1498_v46 = vpack.c.bf16 %v1486_v45, %v1485_v53  ;;  %v1497_v17 = vpack.c.bf16 %v1488_v20, %v1487_v48  ;;  %v9845_v51 = vsel %vm16011_vm10, %v6078_v0, %v6083_v42 }
 0x1cc   : > { %16322 = vst [vmem:[#allocation129_spill] sm:$0xff] %v9809_v19  ;;  %16325 = vst [vmem:[#allocation132_spill] sm:$0xff] %v9845_v51  ;;  %v9859_v45 = vsel %vm16011_vm10, %v6082_v41, %v15771_v36  ;;  %v9868_v0 = vsel %vm16011_vm10, %v6083_v42, %v15772_v44  ;;  %v16329_v42 = vld [vmem:[#allocation13_spill] sm:$0xff]  ;;  %v16332_v40 = vunpack.i.l.bf16 %v16331_v43  ;;  %v16392_v51 = vld [vmem:[#allocation79_spill] sm:$0xff] }
 0x1cd   : > { %6875 = vrot.lane.b32.xlu1 %v9137_v23, %s15785_s25  ;;  %1721 = vmatprep.subr.bf16.mxu1 %v1498_v46  ;;  %16327 = vst [vmem:[#allocation134_spill] sm:$0xff] %v9859_v45  ;;  %16328 = vst [vmem:[#allocation135_spill] sm:$0xff] %v9868_v0  ;;  %v6093_v44 = vunpack.i.h.bf16 %v16329_v42  ;;  %v16393_v19 = vld [vmem:[#allocation80_spill] sm:$0xff] }
 0x1ce   : > { %6870 = vrot.lane.b32.xlu0 %v9163_v7, %s15785_s25  ;;  %1722 = vmatpush1.bf16.msra.mxu1 %v1497_v17  ;;  %v9849_v17 = vsel %vm16011_vm10, %v6077_v35, %v6082_v41  ;;  %v16330_v41 = vunpack.i.l.bf16 %v8902_v13 }
 0x1cf   : > { %v6596_v53 = vpop.permute.xlu1 %6595  ;;  %16326 = vst [vmem:[#allocation133_spill] sm:$0xff] %v9849_v17  ;;  %v9851_v27 = vpop.permute.xlu0 %6590  ;;  %v16362_v17 = vld [vmem:[#allocation76_spill] sm:$0xff] }
 0x1d0   : > { %v6598_v35 = vunpack.i.h.bf16 %v6596_v53  ;;  %v6597_v20 = vunpack.i.l.bf16 %v6596_v53  ;;  %v6092_v53 = vunpack.i.l.bf16 %v16329_v42  ;;  %v1076_v31 = vsel %vm1071_vm1, %v16332_v40, %v16330_v41 }
 0x1d1   : > { %6885 = vrot.lane.b32.xlu1 %v9207_v60, %s15785_s25  ;;  %v16333_v42 = vunpack.i.l.bf16 %v9851_v27  ;;  %v16334_v48 = vunpack.i.h.bf16 %v9851_v27 }
 0x1d2   : > { %6880 = vrot.lane.b32.xlu0 %v9220_v8, %s15785_s25 }
 0x1d3   : > { %v6606_v36 = vpop.permute.xlu1 %6605  ;;  %v6601_v46 = vpop.permute.xlu0 %6600  ;;  %v1557_v11 = vsel %vm15810_vm12, %v16334_v48, %v6598_v35 }
 0x1d4   : > { %v6603_v33 = vunpack.i.h.bf16 %v6601_v46  ;;  %v6602_v12 = vunpack.i.l.bf16 %v6601_v46  ;;  %v6608_v59 = vunpack.i.h.bf16 %v6606_v36  ;;  %v6607_v58 = vunpack.i.l.bf16 %v6606_v36 }
 0x1d5   : > { %6895 = vrot.lane.b32.xlu1 %v9261_v6, %s15785_s25  ;;  %v1556_v46 = vsel %vm15810_vm12, %v16333_v42, %v6597_v20  ;;  %v16336_v36 = vunpack.i.h.bf16 %v16331_v43  ;;  %v6378_v42 = vunpack.i.h.bf16 %v16335_v26 }
 0x1d6   : > { %6890 = vrot.lane.b32.xlu0 %v9286_v56, %s15785_s25  ;;  %v1554_v40 = vsel %vm15810_vm12, %v6597_v20, %v6602_v12  ;;  %v1555_v56 = vsel %vm15810_vm12, %v6598_v35, %v6603_v33  ;;  %v1560_v35 = vpack.c.bf16 %v1557_v11, %v1556_v46  ;;  %v1552_v26 = vsel %vm15810_vm12, %v6602_v12, %v6607_v58  ;;  %v16339_v12 = vld [vmem:[#allocation63_spill] sm:$0xff] }
 0x1d7   : > { %v9901_v45 = vpop.permute.xlu1 %6615  ;;  %v1077_v41 = vsel %vm1071_vm1, %v16336_v36, %v6338_v3  ;;  %v9912_v0 = vpop.permute.xlu0 %6610  ;;  %v1561_v48 = vpack.c.bf16 %v1555_v56, %v1554_v40  ;;  %v1553_v40 = vsel %vm15810_vm12, %v6603_v33, %v6608_v59  ;;  %v16337_v56 = vunpack.i.h.bf16 %v8697_v50  ;;  %v9945_v33 = vld [vmem:[%s15591_s1 + $0x10] ss:$8 sps:$4 sm:$0xff]  }
 0x1d8   : > { %v15790_v37 = vunpack.i.h.bf16 %v9912_v0  ;;  %v15789_v20 = vunpack.i.l.bf16 %v9912_v0  ;;  %v1093_v43 = vpack.c.bf16 %v1077_v41, %v1076_v31  ;;  %v16340_v31 = vunpack.i.l.bf16 %v16339_v12  ;;  %v16341_v41 = vld [vmem:[#allocation75_spill] sm:$0xff] }
 0x1d9   : > { %6905 = vrot.lane.b32.xlu1 %v9099_v4, %s15785_s25  ;;  %1680 = vmatprep.subr.bf16.mxu0 %v1561_v48  ;;  %v9930_v36 = vsel %vm16011_vm10, %v16337_v56, %v6093_v44  ;;  %v6418_v48 = vunpack.i.h.bf16 %v16341_v41 }
 0x1da   : > { %6900 = vrot.lane.b32.xlu0 %v9107_v9, %s15785_s25  ;;  %16338 = vst [vmem:[#allocation13_spill] sm:$0xff] %v9930_v36  ;;  %1681 = vmatpush1.bf16.msra.mxu0 %v1560_v35  ;;  %v1550_v9 = vsel %vm15810_vm12, %v6607_v58, %v15789_v20  ;;  %v1551_v11 = vsel %vm15810_vm12, %v6608_v59, %v15790_v37  ;;  %v6417_v35 = vunpack.i.l.bf16 %v16341_v41  ;;  %v16342_v59 = vunpack.i.h.bf16 %v16339_v12 }
 0x1db   : > { %v9932_v4 = vpop.permute.xlu1 %6625  ;;  %v1142_v46 = vsel %vm1137_vm2, %v16340_v31, %v6377_v55  ;;  %v9953_v58 = vpop.permute.xlu0 %6620  ;;  %1750 = vmatprep.subr.bf16.mxu0 %v1093_v43  ;;  %v1563_v56 = vpack.c.bf16 %v1551_v11, %v1550_v9  ;;  %v1562_v20 = vpack.c.bf16 %v1553_v40, %v1552_v26  ;;  %v16343_v31 = vunpack.i.l.bf16 %v8705_v52  ;;  %v16347_v9 = vld [vmem:[#allocation59_spill] sm:$0xff] }
 0x1dc   : > { %v1143_v10 = vsel %vm1137_vm2, %v16342_v59, %v6378_v42  ;;  %v16345_v41 = vunpack.i.h.bf16 %v8705_v52  ;;  %v16348_v11 = vunpack.i.h.bf16 %v16347_v9  ;;  %v16350_v26 = vunpack.i.l.bf16 %v8902_v13 }
 0x1dd   : > { %6915 = vrot.lane.b32.xlu1 %v9137_v23, %s15832_s26  ;;  %v9965_v37 = vsel %vm16011_vm10, %v6092_v53, %v16343_v31  ;;  %v16349_v23 = vunpack.i.l.bf16 %v16347_v9  ;;  %1723 = vmatprep.subr.bf16.mxu1 %v1563_v56  ;;  %v16351_v59 = vunpack.i.l.bf16 %v8697_v50  ;;  %v16353_v31 = vld [vmem:[#allocation14_spill] sm:$0xff]  ;;  %v1159_v9 = vpack.c.bf16 %v1143_v10, %v1142_v46  ;;  %v16355_v50 = vld [vmem:[#allocation57_spill] sm:$0xff] }
 0x1de   : > { %16344 = vst [vmem:[#allocation56_spill] sm:$0xff] %v9965_v37  ;;  %v9971_v43 = vsel %vm16011_vm10, %v6093_v44, %v16345_v41  ;;  %v1075_v12 = vsel %vm1071_vm1, %v6338_v3, %v16348_v11  ;;  %6910 = vrot.lane.b32.xlu0 %v9163_v7, %s15832_s26  ;;  %v6107_v3 = vunpack.i.l.bf16 %v16353_v31  ;;  %1697 = vmatmul.mubr.bf16.vlgmr.msra.gmra.mrb[0].mxu0 %v9945_v33  ;;  %v16356_v56 = vld [vmem:[#allocation58_spill] sm:$0xff]  ;;  %v16364_v46 = vunpack.i.h.bf16 %v16362_v17  ;;  %v16365_v7 = vld [vmem:[#allocation15_spill] sm:$0xff]  ;;  %v16375_v37 = vld [vmem:[#allocation65_spill] sm:$0xff] }
 0x1df   : > { %16346 = vst [vmem:[#allocation62_spill] sm:$0xff] %v9971_v43  ;;  %v1074_v40 = vsel %vm1071_vm1, %v16350_v26, %v16349_v23  ;;  %v9989_v44 = vsel %vm16011_vm10, %v16351_v59, %v6092_v53  ;;  %1724 = vmatpush1.bf16.msra.mxu1 %v1562_v20  ;;  %v9994_v13 = vpop.permute.xlu1 %6635  ;;  %v16357_v23 = vpack.c.bf16 %v16355_v50, %v16356_v56  ;;  %v10001_v53 = vpop.permute.xlu0 %6630  ;;  %v16359_v26 = vld [vmem:[#allocation61_spill] sm:$0xff]  ;;  %v16360_v59 = vld [vmem:[#allocation60_spill] sm:$0xff]  ;;  %v16363_v20 = vunpack.i.l.bf16 %v16362_v17  ;;  %v16366_v56 = vld [vmem:[#allocation66_spill] sm:$0xff] }
 0x1e0   : > { %16352 = vst [vmem:[#allocation63_spill] sm:$0xff] %v9989_v44  ;;  %16354 = vst [vmem:[#allocation75_spill] sm:$0xff] %v9994_v13  ;;  %v16361_v41 = vpack.c.bf16 %v16359_v26, %v16360_v59  ;;  %v1208_v11 = vsel %vm1202_vm4, %v16364_v46, %v6418_v48  ;;  %v6103_v13 = vunpack.i.h.bf16 %v16365_v7  ;;  %v1094_v50 = vpack.c.bf16 %v1075_v12, %v1074_v40  ;;  %v16369_v12 = vld [vmem:[#allocation90_spill] sm:$0xff]  ;;  %v16378_v43 = vld [vmem:[#allocation68_spill] sm:$0xff] }
 0x1e1   : > { %1751 = vmatpush1.bf16.msra.mxu0 %v16357_v23  ;;  %16358 = vst [vmem:[#allocation59_spill] sm:$0xff] %v10001_v53  ;;  %v1207_v10 = vsel %vm1202_vm4, %v16363_v20, %v6417_v35  ;;  %6925 = vrot.lane.b32.xlu1 %v9207_v60, %s15832_s26  ;;  %v16367_v23 = vunpack.i.h.bf16 %v16366_v56  ;;  %v16368_v17 = vunpack.i.l.bf16 %v16366_v56  ;;  %v16370_v20 = vunpack.i.l.bf16 %v8691_v49 }
 0x1e2   : > { %1793 = vmatprep.subr.bf16.mxu1 %v16361_v41  ;;  %1752 = vmatprep.subr.bf16.mxu0 %v1159_v9  ;;  %v10031_v9 = vld [vmem:[%s8432_s15 + $0x20] sm:$0xff]  ;;  %v6102_v46 = vunpack.i.l.bf16 %v16365_v7  ;;  %v1224_v56 = vpack.c.bf16 %v1208_v11, %v1207_v10  ;;  %v16373_v41 = vunpack.i.h.bf16 %v16353_v31 }
 0x1e3   : > { %v1141_v26 = vsel %vm1137_vm2, %v6378_v42, %v16367_v23  ;;  %v1140_v59 = vsel %vm1137_vm2, %v6377_v55, %v16368_v17  ;;  %6920 = vrot.lane.b32.xlu0 %v9220_v8, %s15832_s26  ;;  %1740 = vmatmul.mubr.bf16.vlgmr.msra.gmra.mrb[0].mxu1 %v9945_v33  ;;  %v10035_v40 = vpack.i.bf16 %v16369_v12, %v10031_v9  ;;  %v10044_v55 = vpop.permute.xlu1 %6645  ;;  %v8066_v23 = vld [vmem:[%s15591_s1 + $0x14] ss:$8 sps:$4 sm:$0xff]   ;;  %v16382_v17 = vunpack.i.l.bf16 %v9338_v2 }
 0x1e4   : > { %v10041_v42 = vsel %vm16011_vm10, %v6107_v3, %v16370_v20  ;;  %1794 = vmatpush1.bf16.msra.mxu1 %v1094_v50  ;;  %16371 = vst [vmem:[#allocation14_spill] sm:$0xff] %v10044_v55  ;;  %5729 = vmatprep.mubr.msk.bf16.mxu0 %vm1660_vm0, %v8066_v23  ;;  %v16372_v20 = vunpack.i.h.bf16 %v8691_v49  ;;  %v16374_v50 = vld [vmem:[#allocation64_spill] sm:$0xff]  ;;  %v10063_v10 = vpop.permute.xlu0 %6640  ;;  %v16379_v55 = vld [vmem:[#allocation67_spill] sm:$0xff]  ;;  %v16381_v49 = vunpack.i.l.bf16 %v9327_v61 }
 0x1e5   : > { %v16376_v11 = vpack.c.bf16 %v16374_v50, %v16375_v37  ;;  %16377 = vst [vmem:[#allocation57_spill] sm:$0xff] %v10063_v10  ;;  %v16380_v53 = vpack.c.bf16 %v16378_v43, %v16379_v55  ;;  %v16384_v37 = vunpack.i.h.bf16 %v9338_v2  ;;  %6935 = vrot.lane.b32.xlu1 %v9261_v6, %s15832_s26  ;;  %v10089_v55 = vld [vmem:[%s8432_s15 + $0x38] sm:$0xff]  ;;  %5730 = vmatprep.mubr.msk.bf16.mxu1 %vm1660_vm0, %v8066_v23  ;;  %v6503_v23 = vunpack.i.h.bf16 %v9518_v54 }
 0x1e6   : > { %v10058_v7 = vsel %vm16011_vm10, %v16373_v41, %v16372_v20  ;;  %v1272_v41 = vsel %vm15894_vm6, %v16382_v17, %v16381_v49  ;;  %v16383_v20 = vunpack.i.h.bf16 %v9327_v61  ;;  %v10092_v17 = vld [vmem:[%s8432_s15 + $0x78] sm:$0xff]  ;;  %v16386_v49 = vld [vmem:[#allocation83_spill] sm:$0xff]  ;;  %v10130_v10 = vsel %vm16011_vm10, %v6102_v46, %v6107_v3 }
 0x1e7   : > { %1753 = vmatpush1.bf16.msra.mxu0 %v16376_v11  ;;  %1795 = vmatprep.subr.bf16.mxu1 %v16380_v53  ;;  %v16385_v11 = vunpack.i.h.bf16 %v8705_v52  ;;  %v1160_v53 = vpack.c.bf16 %v1141_v26, %v1140_v59  ;;  %v10096_v2 = vpack.i.bf16 %v10092_v17, %v10089_v55  ;;  %v10109_v26 = vld [vmem:[%s8432_s15 + $0x30] sm:$0xff]  ;;  %v16399_v3 = vunpack.i.h.bf16 %v16353_v31 }
 0x1e8   : > { %v1273_v50 = vsel %vm15894_vm6, %v16384_v37, %v16383_v20  ;;  %1754 = vmatprep.subr.bf16.mxu0 %v1224_v56  ;;  %v16387_v20 = vunpack.i.h.bf16 %v16386_v49  ;;  %6930 = vrot.lane.b32.xlu0 %v10035_v40, %s15832_s26  ;;  %v10112_v59 = vld [vmem:[%s8432_s15 + $0x70] sm:$0xff]  ;;  %v10137_v22 = vpop.permute.xlu0 %6650  ;;  %v16403_v31 = vunpack.i.h.bf16 %v9327_v61 }
 0x1e9   : > { %v10084_v43 = vsel %vm16011_vm10, %v16385_v11, %v6103_v13  ;;  %v16388_v11 = vunpack.i.l.bf16 %v16386_v49  ;;  %v10116_v44 = vpack.i.bf16 %v10112_v59, %v10109_v26  ;;  %v16390_v49 = vld [vmem:[#allocation16_spill] sm:$0xff]  ;;  %1796 = vmatpush1.bf16.msra.mxu1 %v1160_v53  ;;  %v1289_v36 = vpack.c.bf16 %v1273_v50, %v1272_v41  ;;  %16395 = vst [vmem:[#allocation61_spill] sm:$0xff] %v10137_v22  ;;  %v16396_v53 = vld [vmem:[#allocation85_spill] sm:$0xff] }
 0x1ea   : > { %v1206_v37 = vsel %vm1202_vm4, %v6418_v48, %v16387_v20  ;;  %v16389_v48 = vunpack.i.l.bf16 %v8705_v52  ;;  %v6502_v52 = vunpack.i.l.bf16 %v9518_v54  ;;  %v16397_v20 = vld [vmem:[#allocation84_spill] sm:$0xff]  ;;  %v6117_v54 = vunpack.i.l.bf16 %v16390_v49  ;;  %6945 = vrot.lane.b32.xlu1 %v10096_v2, %s15832_s26 }
 0x1eb   : > { %v1205_v56 = vsel %vm1202_vm4, %v6417_v35, %v16388_v11  ;;  %v10126_v11 = vpop.permute.xlu1 %6655  ;;  %v8071_v41 = vld [vmem:[%s8432_s15 + $0x8] sm:$0xff] }
 0x1ec   : > { %v10123_v35 = vsel %vm16011_vm10, %v16389_v48, %v6102_v46  ;;  %16391 = vst [vmem:[#allocation58_spill] sm:$0xff] %v10126_v11  ;;  %v16394_v48 = vpack.c.bf16 %v16392_v51, %v16393_v19  ;;  %v16398_v11 = vpack.c.bf16 %v16396_v53, %v16397_v20  ;;  %v8072_v50 = vld [vmem:[%s8432_s15 + $0x48] sm:$0xff]  ;;  %v10148_v46 = vsel %vm16011_vm10, %v6103_v13, %v16399_v3  ;;  %v8073_v51 = vld [vmem:[%s8432_s15] sm:$0xff] }
 0x1ed   : > { %v6954_v21 = vpack.i.bf16 %v8072_v50, %v8071_v41  ;;  %v1225_v19 = vpack.c.bf16 %v1206_v37, %v1205_v56  ;;  %v16401_v53 = vld [vmem:[#allocation87_spill] sm:$0xff]  ;;  %v16402_v41 = vunpack.i.h.bf16 %v9376_v24  ;;  %v16404_v50 = vunpack.i.l.bf16 %v9376_v24  ;;  %6940 = vrot.lane.b32.xlu0 %v10116_v44, %s15832_s26  ;;  %s16806_s26 = smov 90  }
 0x1ee   : > { %1755 = vmatpush1.bf16.msra.mxu0 %v16394_v48  ;;  %1797 = vmatprep.subr.bf16.mxu1 %v16398_v11  ;;  %v8074_v48 = vld [vmem:[%s8432_s15 + $0x40] sm:$0xff]  ;;  %v16400_v11 = vld [vmem:[#allocation86_spill] sm:$0xff]  ;;  %v1304_v56 = vpack.c.bf16 %v16369_v12, %v10031_v9  ;;  %v6538_v3 = vunpack.i.h.bf16 %v9625_v29  ;;  %v1307_v24 = vpack.c.bf16 %v10092_v17, %v10089_v55  ;;  %v16407_v9 = vpack.c.bf16 %v9420_v57, %v9411_v18  ;;  %v16410_v17 = vld [vmem:[#allocation17_spill] sm:$0xff] }
 0x1ef   : > { %1756 = vmatprep.subr.bf16.mxu0 %v1289_v36  ;;  %v6949_v20 = vpack.i.bf16 %v8074_v48, %v8073_v51  ;;  %v1305_v22 = vpack.c.bf16 %v16401_v53, %v16400_v11  ;;  %v1271_v13 = vsel %vm15894_vm6, %v16403_v31, %v16402_v41  ;;  %v16405_v36 = vunpack.i.l.bf16 %v9327_v61  ;;  %1798 = vmatpush1.bf16.msra.mxu1 %v1225_v19  ;;  %v10175_v48 = vpop.permute.xlu1 %6665  ;;  %v10184_v41 = vpop.permute.xlu0 %6660 }
 0x1f0   : > { %v6537_v51 = vunpack.i.l.bf16 %v9625_v29  ;;  %v6543_v61 = vunpack.i.h.bf16 %v9673_v62  ;;  %v6542_v11 = vunpack.i.l.bf16 %v9673_v62  ;;  %v16406_v53 = vpack.c.bf16 %v9358_v15, %v9364_v1  ;;  %1799 = vmatprep.subr.bf16.mxu1 %v16407_v9  ;;  %6955 = vrot.lane.b32.xlu1 %v6954_v21, %s15808_s20 }
 0x1f1   : > { %v1270_v37 = vsel %vm15894_vm6, %v16405_v36, %v16404_v50  ;;  %v16408_v29 = vunpack.i.l.bf16 %v9473_v32  ;;  %v16409_v55 = vunpack.i.h.bf16 %v9473_v32  ;;  %v6113_v19 = vunpack.i.h.bf16 %v16410_v17  ;;  %6950 = vrot.lane.b32.xlu0 %v6949_v20, %s15808_s20 }
 0x1f2   : > { %1757 = vmatpush1.bf16.msra.mxu0 %v16406_v53  ;;  %v1290_v15 = vpack.c.bf16 %v1271_v13, %v1270_v37  ;;  %v1306_v1 = vpack.c.bf16 %v10112_v59, %v10109_v26  ;;  %v16411_v18 = vunpack.i.h.bf16 %v9510_v5  ;;  %v16412_v32 = vunpack.i.l.bf16 %v9510_v5 }
 0x1f3   : > { %v1351_v12 = vsel %vm15888_vm7, %v16408_v29, %v6502_v52  ;;  %v1352_v62 = vsel %vm15888_vm7, %v16409_v55, %v6503_v23  ;;  %1758 = vmatprep.subr.bf16.mxu0 %v1305_v22  ;;  %v6548_v50 = vunpack.i.h.bf16 %v9659_v25  ;;  %v6547_v36 = vunpack.i.l.bf16 %v9659_v25  ;;  %v10220_v5 = vpop.permute.xlu1 %6675  ;;  %v10224_v20 = vpop.permute.xlu0 %6670 }
 0x1f4   : > { %v1350_v57 = vsel %vm15888_vm7, %v6503_v23, %v16411_v18  ;;  %v1349_v31 = vsel %vm15888_vm7, %v6502_v52, %v16412_v32  ;;  %v16413_v21 = vunpack.i.h.bf16 %v9646_v38  ;;  %v16414_v26 = vunpack.i.l.bf16 %v9646_v38  ;;  %1800 = vmatpush1.bf16.msra.mxu1 %v1290_v15  ;;  %6965 = vrot.lane.b32.xlu1 %v9207_v60, %s15808_s20  ;;  %v16417_v15 = vld [vmem:[#allocation102_spill] sm:$0xff]  ;;  %v16421_v32 = vld [vmem:[#allocation104_spill] sm:$0xff] }
 0x1f5   : > { %v1370_v23 = vpack.c.bf16 %v1352_v62, %v1351_v12  ;;  %v6583_v52 = vunpack.i.h.bf16 %v9818_v63  ;;  %v6582_v25 = vunpack.i.l.bf16 %v9818_v63  ;;  %1801 = vmatprep.subr.bf16.mxu1 %v1307_v24  ;;  %v1416_v13 = vsel %vm15880_vm9, %v6537_v51, %v6542_v11  ;;  %6960 = vrot.lane.b32.xlu0 %v9220_v8, %s15808_s20 }
 0x1f6   : > { %v1419_v22 = vsel %vm15880_vm9, %v16413_v21, %v6538_v3  ;;  %v1418_v59 = vsel %vm15880_vm9, %v16414_v26, %v6537_v51  ;;  %1759 = vmatpush1.bf16.msra.mxu0 %v1304_v56  ;;  %v1417_v38 = vsel %vm15880_vm9, %v6538_v3, %v6543_v61  ;;  %v6578_v37 = vunpack.i.h.bf16 %v9771_v30 }
 0x1f7   : > { %1760 = vmatprep.subr.bf16.mxu0 %v1370_v23  ;;  %v1371_v53 = vpack.c.bf16 %v1350_v57, %v1349_v31  ;;  %v6577_v63 = vunpack.i.l.bf16 %v9771_v30  ;;  %v6587_v56 = vunpack.i.l.bf16 %v9795_v39  ;;  %v16415_v51 = vunpack.i.l.bf16 %v9570_v34  ;;  %v10249_v29 = vpop.permute.xlu1 %6685  ;;  %v10256_v18 = vpop.permute.xlu0 %6680  ;;  %v16420_v57 = vld [vmem:[#allocation105_spill] sm:$0xff] }
 0x1f8   : > { %v16416_v24 = vunpack.i.h.bf16 %v9570_v34  ;;  %v1415_v60 = vsel %vm15880_vm9, %v6543_v61, %v6548_v50  ;;  %v6588_v30 = vunpack.i.h.bf16 %v9795_v39  ;;  %1802 = vmatpush1.bf16.msra.mxu1 %v1306_v1  ;;  %v1435_v12 = vpack.c.bf16 %v1417_v38, %v1416_v13  ;;  %16419 = vst [vmem:[#allocation60_spill] sm:$0xff] %v10256_v18  ;;  %6975 = vrot.lane.b32.xlu1 %v9261_v6, %s15808_s20 }
 0x1f9   : > { %v1428_v3 = vsel %vm15880_vm9, %v6547_v36, %v16415_v51  ;;  %v1434_v8 = vpack.c.bf16 %v1419_v22, %v1418_v59  ;;  %v6623_v55 = vunpack.i.h.bf16 %v9953_v58  ;;  %v6622_v62 = vunpack.i.l.bf16 %v9953_v58  ;;  %6970 = vrot.lane.b32.xlu0 %v10035_v40, %s15808_s20  ;;  %v16429_v51 = vld [vmem:[#allocation18_spill] sm:$0xff] }
 0x1fa   : > { %v1429_v9 = vsel %vm15880_vm9, %v6548_v50, %v16416_v24  ;;  %v16418_v34 = vpack.c.bf16 %v9502_v14, %v16417_v15  ;;  %v16422_v61 = vpack.c.bf16 %v16420_v57, %v16421_v32  ;;  %v1481_v39 = vsel %vm15823_vm11, %v6577_v63, %v6582_v25 }
 0x1fb   : > { %v1482_v1 = vsel %vm15823_vm11, %v6578_v37, %v6583_v52  ;;  %v6112_v31 = vunpack.i.l.bf16 %v16410_v17  ;;  %v1414_v58 = vsel %vm15880_vm9, %v6542_v11, %v6547_v36  ;;  %v16423_v14 = vunpack.i.h.bf16 %v9779_v28  ;;  %v16425_v11 = vld [vmem:[#allocation120_spill] sm:$0xff]  ;;  %v16466_v17 = vld [vmem:[#allocation69_spill] sm:$0xff] }
 0x1fc   : > { %1761 = vmatpush1.bf16.msra.mxu0 %v16418_v34  ;;  %1803 = vmatprep.subr.bf16.mxu1 %v16422_v61  ;;  %v1437_v21 = vpack.c.bf16 %v1429_v9, %v1428_v3  ;;  %v16424_v22 = vunpack.i.l.bf16 %v9779_v28  ;;  %v6618_v59 = vunpack.i.h.bf16 %v9901_v45  ;;  %v6617_v23 = vunpack.i.l.bf16 %v9901_v45  ;;  %v10288_v28 = vpop.permute.xlu1 %6695  ;;  %v16430_v3 = vld [vmem:[#allocation19_spill] sm:$0xff]  ;;  %v10296_v9 = vpop.permute.xlu0 %6690 }
 0x1fd   : > { %v1484_v50 = vsel %vm15823_vm11, %v16423_v14, %v6578_v37  ;;  %1762 = vmatprep.subr.bf16.mxu0 %v1435_v12  ;;  %v16426_v36 = vunpack.i.l.bf16 %v16425_v11  ;;  %v6628_v6 = vunpack.i.h.bf16 %v9932_v4  ;;  %v6627_v38 = vunpack.i.l.bf16 %v9932_v4  ;;  %1804 = vmatpush1.bf16.msra.mxu1 %v1371_v53  ;;  %16427 = vst [vmem:[#allocation76_spill] sm:$0xff] %v10288_v28  ;;  %16431 = vst [vmem:[#allocation15_spill] sm:$0xff] %v10296_v9 }
 0x1fe   : > { %v1483_v26 = vsel %vm15823_vm11, %v16424_v22, %v6577_v63  ;;  %v1500_v37 = vpack.c.bf16 %v1482_v1, %v1481_v39  ;;  %v16428_v63 = vunpack.i.h.bf16 %v16425_v11  ;;  %v6127_v40 = vunpack.i.l.bf16 %v16429_v51  ;;  %1805 = vmatprep.subr.bf16.mxu1 %v1437_v21  ;;  %6985 = vrot.lane.b32.xlu1 %v10096_v2, %s15808_s20  ;;  %v16439_v22 = vld [vmem:[#allocation21_spill] sm:$0xff] }
 0x1ff   : > { %v1493_v13 = vsel %vm15823_vm11, %v6587_v56, %v16426_v36  ;;  %v6122_v24 = vunpack.i.l.bf16 %v16430_v3  ;;  %v1546_v4 = vsel %vm15810_vm12, %v6617_v23, %v6622_v62  ;;  %v1547_v53 = vsel %vm15810_vm12, %v6618_v59, %v6623_v55  ;;  %6980 = vrot.lane.b32.xlu0 %v10116_v44, %s15808_s20  ;;  %s355_s20 = scalar_select %p354_p4, %s8308_s9, 1 }
 0x200   : > { %v1494_v45 = vsel %vm15823_vm11, %v6588_v30, %v16428_v63  ;;  %1763 = vmatpush1.bf16.msra.mxu0 %v1434_v8  ;;  %v6128_v12 = vunpack.i.h.bf16 %v16429_v51  ;;  %v6123_v15 = vunpack.i.h.bf16 %v16430_v3  ;;  %v1499_v34 = vpack.c.bf16 %v1484_v50, %v1483_v26  ;;  %v10330_v44 = vpop.permute.xlu0 %6700  ;;  %v16478_v51 = vld [vmem:[#allocation115_spill] sm:$0xff] }
 0x201   : > { %1764 = vmatprep.subr.bf16.mxu0 %v1500_v37  ;;  %v1436_v57 = vpack.c.bf16 %v1415_v60, %v1414_v58  ;;  %v1480_v8 = vsel %vm15823_vm11, %v6583_v52, %v6588_v30  ;;  %v1479_v32 = vsel %vm15823_vm11, %v6582_v25, %v6587_v56  ;;  %v16432_v61 = vunpack.i.h.bf16 %v9912_v0  ;;  %v10320_v60 = vpop.permute.xlu1 %6705  ;;  %16437 = vst [vmem:[#allocation90_spill] sm:$0xff] %v10330_v44  ;;  %v16496_v44 = vld [vmem:[#allocation33_spill] sm:$0xff]  ;;  %s5769_s25 = sshll.u32 %s355_s20, 4  ;;  %s16807_s20 = smov 89  }
 0x202   : > { %v1502_v1 = vpack.c.bf16 %v1494_v45, %v1493_v13  ;;  %v16433_v14 = vunpack.i.l.bf16 %v9912_v0  ;;  %16434 = vst [vmem:[#allocation66_spill] sm:$0xff] %v10320_v60  ;;  %v1565_v52 = vpack.c.bf16 %v1547_v53, %v1546_v4  ;;  %v16435_v25 = vunpack.i.l.bf16 %v9851_v27  ;;  %v16475_v4 = vld [vmem:[#allocation100_spill] sm:$0xff]  ;;  %v16497_v60 = vld [vmem:[#allocation131_spill] sm:$0xff]  ;;  %s358_s22 = scalar_lea.vmem %s15593_s3, %s5769_s25  ;;  %s16855_s25 = smov 117  }
 0x203   : > { %v1549_v39 = vsel %vm15810_vm12, %v16432_v61, %v6618_v59  ;;  %1806 = vmatpush1.bf16.msra.mxu1 %v1436_v57  ;;  %v16436_v30 = vunpack.i.h.bf16 %v9851_v27  ;;  %v10338_v0 = vsel %vm15889_vm13, %v6112_v31, %v6117_v54  ;;  %v16438_v50 = vunpack.i.h.bf16 %v16390_v49  ;;  %v16443_v57 = vld [vmem:[#allocation22_spill] sm:$0xff]  ;;  %v10401_v49 = vld [vmem:[%s15591_s1 + $0x4] ss:$8 sps:$4 sm:$0xff]  }
 0x204   : > { %v1548_v2 = vsel %vm15810_vm12, %v16433_v14, %v6617_v23  ;;  %v1558_v56 = vsel %vm15810_vm12, %v6627_v38, %v16435_v25  ;;  %1765 = vmatpush1.bf16.msra.mxu0 %v1499_v34  ;;  %1807 = vmatprep.subr.bf16.mxu1 %v1502_v1  ;;  %v10350_v21 = vsel %vm15889_vm13, %v6122_v24, %v6127_v40  ;;  %v6133_v26 = vunpack.i.h.bf16 %v16439_v22  ;;  %v16446_v1 = vld [vmem:[#allocation73_spill] sm:$0xff] }
 0x205   : > { %v1559_v58 = vsel %vm15810_vm12, %v6628_v6, %v16436_v30  ;;  %v10346_v27 = vsel %vm15889_vm13, %v6113_v19, %v16438_v50  ;;  %v6132_v59 = vunpack.i.l.bf16 %v16439_v22  ;;  %1766 = vmatprep.subr.bf16.mxu0 %v1565_v52  ;;  %v1501_v23 = vpack.c.bf16 %v1480_v8, %v1479_v32  ;;  %v10362_v45 = vpop.permute.xlu1 %6715  ;;  %v10381_v32 = vpop.permute.xlu0 %6710  ;;  %v16449_v30 = vld [vmem:[#allocation24_spill] sm:$0xff]  ;;  %v16450_v22 = vld [vmem:[#allocation25_spill] sm:$0xff]  ;;  %v16476_v52 = vld [vmem:[#allocation99_spill] sm:$0xff] }
 0x206   : > { %v10356_v11 = vsel %vm15889_vm13, %v6123_v15, %v6128_v12  ;;  %v1545_v36 = vsel %vm15810_vm12, %v6623_v55, %v6628_v6  ;;  %v1544_v13 = vsel %vm15810_vm12, %v6622_v62, %v6627_v38  ;;  %v1564_v37 = vpack.c.bf16 %v1549_v39, %v1548_v2  ;;  %16440 = vst [vmem:[#allocation64_spill] sm:$0xff] %v10362_v45  ;;  %v16442_v38 = vld [vmem:[#allocation20_spill] sm:$0xff]  ;;  %v16445_v39 = vld [vmem:[#allocation74_spill] sm:$0xff]  ;;  %v16462_v55 = vld [vmem:[#allocation95_spill] sm:$0xff] }
 0x207   : > { %v1567_v63 = vpack.c.bf16 %v1559_v58, %v1558_v56  ;;  %1808 = vmatpush1.bf16.msra.mxu1 %v1501_v23  ;;  %v16441_v6 = vmov %v16438_v50  ;;  %v6138_v53 = vunpack.i.h.bf16 %v16442_v38  ;;  %v6137_v34 = vunpack.i.l.bf16 %v16442_v38  ;;  %16444 = vst [vmem:[#allocation65_spill] sm:$0xff] %v10381_v32  ;;  %v16504_v45 = vld [vmem:[#allocation41_spill] sm:$0xff] }
 0x208   : > { %v10376_v62 = vsel %vm15889_vm13, %v16441_v6, %v6123_v15  ;;  %v6147_v8 = vunpack.i.l.bf16 %v16443_v57  ;;  %1767 = vmatpush1.bf16.msra.mxu0 %v1564_v37  ;;  %v10387_v61 = vsel %vm15889_vm13, %v6117_v54, %v6122_v24  ;;  %v10391_v15 = vsel %vm15889_vm13, %v6128_v12, %v6133_v26  ;;  %v16448_v12 = vld [vmem:[#allocation23_spill] sm:$0xff]  ;;  %v16452_v37 = vld [vmem:[#allocation89_spill] sm:$0xff] }
 0x209   : > { %1809 = vmatprep.subr.bf16.mxu1 %v1567_v63  ;;  %v16447_v14 = vpack.c.bf16 %v16445_v39, %v16446_v1  ;;  %v1566_v2 = vpack.c.bf16 %v1545_v36, %v1544_v13  ;;  %v10405_v54 = vsel %vm15889_vm13, %v6127_v40, %v6132_v59  ;;  %v6148_v24 = vunpack.i.h.bf16 %v16443_v57  ;;  %v10415_v13 = vpop.permute.xlu1 %6725  ;;  %v16453_v63 = vld [vmem:[#allocation88_spill] sm:$0xff]  ;;  %v10427_v38 = vpop.permute.xlu0 %6720  ;;  %v16456_v57 = vld [vmem:[#allocation71_spill] sm:$0xff]  ;;  %v16457_v39 = vld [vmem:[#allocation70_spill] sm:$0xff] }
 0x20a   : > { %v6143_v25 = vunpack.i.h.bf16 %v16448_v12  ;;  %v6142_v56 = vunpack.i.l.bf16 %v16448_v12  ;;  %v6158_v58 = vunpack.i.h.bf16 %v16449_v30  ;;  %v6157_v50 = vunpack.i.l.bf16 %v16449_v30  ;;  %16451 = vst [vmem:[#allocation68_spill] sm:$0xff] %v10415_v13  ;;  %16455 = vst [vmem:[#allocation67_spill] sm:$0xff] %v10427_v38  ;;  %v16503_v13 = vld [vmem:[#allocation40_spill] sm:$0xff] }
 0x20b   : > { %1848 = vmatprep.subr.bf16.mxu0 %v16447_v14  ;;  %v6153_v23 = vunpack.i.h.bf16 %v16450_v22  ;;  %v6152_v36 = vunpack.i.l.bf16 %v16450_v22  ;;  %1783 = vmatmul.mubr.bf16.vlgmr.msra.gmra.mrb[4].mxu0 %v9945_v33  ;;  %v10421_v40 = vsel %vm15889_vm13, %v6147_v8, %v6112_v31  ;;  %v16454_v6 = vpack.c.bf16 %v16452_v37, %v16453_v63  ;;  %v16460_v22 = vld [vmem:[#allocation27_spill] sm:$0xff] }
 0x20c   : > { %1810 = vmatpush1.bf16.msra.mxu1 %v1566_v2  ;;  %v16458_v1 = vpack.c.bf16 %v16456_v57, %v16457_v39  ;;  %v10434_v14 = vsel %vm15889_vm13, %v6132_v59, %v6137_v34  ;;  %v10438_v31 = vsel %vm15889_vm13, %v6133_v26, %v6138_v53  ;;  %v16459_v2 = vld [vmem:[#allocation26_spill] sm:$0xff]  ;;  %v6163_v37 = vunpack.i.h.bf16 %v16460_v22  ;;  %5733 = vmatprep.mubr.msk.bf16.mxu0 %vm1660_vm0, %v10401_v49 }
 0x20d   : > { %1849 = vmatpush1.bf16.msra.mxu0 %v16454_v6  ;;  %v15812_v12 = vunpack.i.h.bf16 %v16459_v2  ;;  %v15811_v30 = vunpack.i.l.bf16 %v16459_v2  ;;  %v6162_v63 = vunpack.i.l.bf16 %v16460_v22  ;;  %v16461_v6 = vld [vmem:[#allocation96_spill] sm:$0xff]  ;;  %v10453_v26 = vsel %vm15889_vm13, %v6148_v24, %v6113_v19  ;;  %v10472_v22 = vpop.permute.xlu1 %6735 }
 0x20e   : > { %1891 = vmatprep.subr.bf16.mxu1 %v16458_v1  ;;  %v16463_v57 = vpack.c.bf16 %v16461_v6, %v16462_v55  ;;  %v10457_v59 = vsel %vm15889_vm13, %v6138_v53, %v6143_v25  ;;  %v10461_v39 = vsel %vm15889_vm13, %v6137_v34, %v6142_v56  ;;  %v10466_v55 = vsel %vm15889_vm13, %v6142_v56, %v6147_v8  ;;  %v16467_v1 = vld [vmem:[#allocation72_spill] sm:$0xff]  ;;  %v16470_v8 = vld [vmem:[#allocation30_spill] sm:$0xff] }
 0x20f   : > { %16464 = vst [vmem:[#allocation83_spill] sm:$0xff] %v10457_v59  ;;  %16465 = vst [vmem:[#allocation16_spill] sm:$0xff] %v10461_v39  ;;  %1826 = vmatmul.mubr.bf16.vlgmr.msra.gmra.mrb[4].mxu1 %v9945_v33  ;;  %v16468_v19 = vpack.c.bf16 %v16466_v17, %v16467_v1  ;;  %v10476_v53 = vsel %vm15884_vm14, %v6152_v36, %v6157_v50  ;;  %v10480_v34 = vsel %vm15884_vm14, %v6153_v23, %v6158_v58  ;;  %v16472_v17 = vld [vmem:[#allocation108_spill] sm:$0xff]  ;;  %v16479_v56 = vld [vmem:[#allocation114_spill] sm:$0xff] }
 0x210   : > { %1850 = vmatprep.subr.bf16.mxu0 %v16463_v57  ;;  %16469 = vst [vmem:[#allocation79_spill] sm:$0xff] %v10472_v22  ;;  %5734 = vmatprep.mubr.msk.bf16.mxu1 %vm1660_vm0, %v10401_v49  ;;  %v10486_v33 = vsel %vm15889_vm13, %v6143_v25, %v6148_v24  ;;  %vm15852_vm12 = vcmp.lt.s32.totalorder %v8883_v16, 90  ;;  %v16471_v57 = vld [vmem:[#allocation109_spill] sm:$0xff]  ;;  %v16477_v3 = vpack.c.bf16 %v16475_v4, %v16476_v52  ;;  %v16484_v24 = vld [vmem:[#allocation98_spill] sm:$0xff]  ;;  %vm15863_vm11 = vcmp.lt.s32.totalorder %v8883_v16, 89  ;;  %v16535_v59 = vld [vmem:[#allocation48_spill] sm:$0xff] }
 0x211   : > { %1892 = vmatpush1.bf16.msra.mxu1 %v16468_v19  ;;  %v16473_v1 = vpack.c.bf16 %v16471_v57, %v16472_v17  ;;  %v10494_v19 = vpop.permute.xlu0 %6730  ;;  %v16480_v6 = vpack.c.bf16 %v16478_v51, %v16479_v56  ;;  %v689_v57 = vpack.c.bf16 %v10453_v26, %v10421_v40  ;;  %v10512_v17 = vsel %vm15884_vm14, %v6162_v63, %v15811_v30  ;;  %v16482_v25 = vld [vmem:[#allocation29_spill] sm:$0xff]  ;;  %v10542_v52 = vpop.permute.xlu1 %6745  ;;  %v16534_v39 = vld [vmem:[#allocation46_spill] sm:$0xff] }
 0x212   : > { %16474 = vst [vmem:[#allocation80_spill] sm:$0xff] %v10494_v19  ;;  %1893 = vmatprep.subr.bf16.mxu1 %v16477_v3  ;;  %v10518_v3 = vsel %vm15884_vm14, %v6163_v37, %v15812_v12  ;;  %v10524_v51 = vsel %vm15884_vm14, %v6158_v58, %v6163_v37  ;;  %v10534_v56 = vsel %vm15884_vm14, %v6157_v50, %v6162_v63  ;;  %v6173_v58 = vunpack.i.h.bf16 %v16482_v25  ;;  %v16483_v37 = vld [vmem:[#allocation97_spill] sm:$0xff]  ;;  %v16502_v19 = vld [vmem:[#allocation38_spill] sm:$0xff] }
 0x213   : > { %1851 = vmatpush1.bf16.msra.mxu0 %v16473_v1  ;;  %v16485_v30 = vpack.c.bf16 %v16483_v37, %v16484_v24  ;;  %16486 = vst [vmem:[#allocation85_spill] sm:$0xff] %v10542_v52  ;;  %v6172_v40 = vunpack.i.l.bf16 %v16482_v25  ;;  %v16487_v26 = vunpack.i.l.bf16 %v16470_v8  ;;  %v16488_v63 = vunpack.i.h.bf16 %v16470_v8  ;;  %v16489_v4 = vld [vmem:[#allocation125_spill] sm:$0xff]  ;;  %v16492_v37 = vld [vmem:[#allocation118_spill] sm:$0xff] }
 0x214   : > { %1852 = vmatprep.subr.bf16.mxu0 %v16480_v6  ;;  %v16481_v6 = vld [vmem:[#allocation28_spill] sm:$0xff]  ;;  %v16490_v24 = vpack.c.bf16 %v9747_v47, %v16489_v4  ;;  %v16493_v25 = vld [vmem:[#allocation117_spill] sm:$0xff]  ;;  %v6233_v32 = vunpack.i.h.bf16 %v16504_v45  ;;  %v16538_v18 = vpack.c.bf16 %v10376_v62, %v10387_v61  ;;  %v16543_v62 = vunpack.i.l.bf16 %v16534_v39 }
 0x215   : > { %1894 = vmatpush1.bf16.msra.mxu1 %v16485_v30  ;;  %v10549_v50 = vsel %vm15884_vm14, %v16487_v26, %v6152_v36  ;;  %v10555_v1 = vsel %vm15884_vm14, %v16488_v63, %v6153_v23  ;;  %v10560_v30 = vpop.permute.xlu0 %6740  ;;  %v16494_v12 = vpack.c.bf16 %v16492_v37, %v16493_v25  ;;  %v16495_v26 = vld [vmem:[#allocation32_spill] sm:$0xff]  ;;  %v6193_v23 = vunpack.i.h.bf16 %v16496_v44  ;;  %v16498_v47 = vld [vmem:[#allocation129_spill] sm:$0xff] }
 0x216   : > { %16491 = vst [vmem:[#allocation84_spill] sm:$0xff] %v10560_v30  ;;  %v6198_v52 = vunpack.i.h.bf16 %v16495_v26  ;;  %v6197_v22 = vunpack.i.l.bf16 %v16495_v26  ;;  %v6192_v63 = vunpack.i.l.bf16 %v16496_v44  ;;  %v16499_v4 = vpack.c.bf16 %v16497_v60, %v16498_v47  ;;  %v16505_v60 = vld [vmem:[#allocation116_spill] sm:$0xff]  ;;  %v16506_v47 = vld [vmem:[#allocation119_spill] sm:$0xff]  ;;  %v10586_v30 = vpop.permute.xlu1 %6755 }
 0x217   : > { %1853 = vmatpush1.bf16.msra.mxu0 %v16490_v24  ;;  %1895 = vmatprep.subr.bf16.mxu1 %v16494_v12  ;;  %v16500_v24 = vld [vmem:[#allocation34_spill] sm:$0xff]  ;;  %v16501_v12 = vld [vmem:[#allocation35_spill] sm:$0xff]  ;;  %v6232_v44 = vunpack.i.l.bf16 %v16504_v45  ;;  %16508 = vst [vmem:[#allocation86_spill] sm:$0xff] %v10586_v30  ;;  %v16509_v37 = vunpack.i.h.bf16 %v16459_v2  ;;  %v16510_v26 = vpack.c.bf16 %v10058_v7, %v10041_v42  ;;  %v756_v30 = vpack.c.bf16 %v10524_v51, %v10534_v56 }
 0x218   : > { %1854 = vmatprep.subr.bf16.mxu0 %v16499_v4  ;;  %v6203_v25 = vunpack.i.h.bf16 %v16501_v12  ;;  %v6202_v36 = vunpack.i.l.bf16 %v16501_v12  ;;  %v16507_v4 = vpack.c.bf16 %v16505_v60, %v16506_v47  ;;  %v16512_v60 = vld [vmem:[#allocation135_spill] sm:$0xff]  ;;  %v16513_v47 = vld [vmem:[#allocation134_spill] sm:$0xff]  ;;  %v16517_v42 = vpack.c.bf16 %v10346_v27, %v10338_v0 }
 0x219   : > { %v10592_v12 = vsel %vm15884_vm14, %v16509_v37, %v6173_v58  ;;  %v10599_v9 = vpop.permute.xlu0 %6750  ;;  %v16515_v37 = vunpack.i.l.bf16 %v16459_v2  ;;  %v16516_v45 = vld [vmem:[#allocation31_spill] sm:$0xff]  ;;  %v16518_v7 = vunpack.i.l.bf16 %v16481_v6  ;;  %v16519_v51 = vunpack.i.h.bf16 %v16481_v6 }
 0x21a   : > { %1896 = vmatpush1.bf16.msra.mxu1 %v16507_v4  ;;  %16511 = vst [vmem:[#allocation87_spill] sm:$0xff] %v10599_v9  ;;  %v16514_v4 = vpack.c.bf16 %v16512_v60, %v16513_v47  ;;  %v754_v56 = vpack.c.bf16 %v10555_v1, %v10549_v50  ;;  %v815_v60 = vsel %vm15866_vm15, %v6192_v63, %v6197_v22  ;;  %v16520_v27 = vunpack.i.l.bf16 %v16500_v24  ;;  %v16523_v50 = vld [vmem:[#allocation132_spill] sm:$0xff] }
 0x21b   : > { %1855 = vmatpush1.bf16.msra.mxu0 %v16510_v26  ;;  %v10610_v38 = vsel %vm15884_vm14, %v16515_v37, %v6172_v40  ;;  %v10620_v26 = vsel %vm15884_vm14, %v6172_v40, %v16518_v7  ;;  %v10626_v2 = vsel %vm15884_vm14, %v6173_v58, %v16519_v51  ;;  %v816_v0 = vsel %vm15866_vm15, %v6193_v23, %v6198_v52  ;;  %v16524_v37 = vld [vmem:[#allocation133_spill] sm:$0xff]  ;;  %v10649_v7 = vpop.permute.xlu1 %6765 }
 0x21c   : > { %1897 = vmatprep.subr.bf16.mxu1 %v16514_v4  ;;  %1856 = vmatprep.subr.bf16.mxu0 %v16517_v42  ;;  %v811_v40 = vsel %vm15866_vm15, %v6202_v36, %v16520_v27  ;;  %v16521_v47 = vunpack.i.l.bf16 %v16502_v19  ;;  %v16522_v4 = vunpack.i.h.bf16 %v16502_v19  ;;  %v16525_v42 = vpack.c.bf16 %v16523_v50, %v16524_v37  ;;  %16526 = vst [vmem:[#allocation17_spill] sm:$0xff] %v10649_v7  ;;  %v16530_v50 = vld [vmem:[#allocation43_spill] sm:$0xff] }
 0x21d   : > { %v16527_v51 = vunpack.i.l.bf16 %v16503_v13  ;;  %v16528_v28 = vunpack.i.h.bf16 %v16500_v24  ;;  %v6242_v37 = vunpack.i.l.bf16 %v16530_v50  ;;  %v16532_v7 = vpack.c.bf16 %v10356_v11, %v10350_v21  ;;  %v16537_v11 = vld [vmem:[#allocation49_spill] sm:$0xff] }
 0x21e   : > { %v817_v58 = vsel %vm15866_vm15, %v16521_v47, %v6192_v63  ;;  %v818_v1 = vsel %vm15866_vm15, %v16522_v4, %v6193_v23  ;;  %1898 = vmatpush1.bf16.msra.mxu1 %v16525_v42  ;;  %v16529_v47 = vld [vmem:[#allocation42_spill] sm:$0xff]  ;;  %v10664_v42 = vpop.permute.xlu0 %6760  ;;  %v813_v23 = vsel %vm15866_vm15, %v6197_v22, %v6202_v36  ;;  %v6182_v21 = vunpack.i.l.bf16 %v16516_v45 }
 0x21f   : > { %v10655_v27 = vsel %vm15852_vm12, %v6232_v44, %v16527_v51  ;;  %v812_v63 = vsel %vm15866_vm15, %v6203_v25, %v16528_v28  ;;  %1857 = vmatpush1.bf16.msra.mxu0 %v689_v57  ;;  %16531 = vst [vmem:[#allocation102_spill] sm:$0xff] %v10664_v42  ;;  %1899 = vmatprep.subr.bf16.mxu1 %v16532_v7  ;;  %v16533_v51 = vunpack.i.h.bf16 %v16503_v13  ;;  %v6243_v28 = vunpack.i.h.bf16 %v16530_v50 }
 0x220   : > { %v16536_v57 = vpack.c.bf16 %v10480_v34, %v10476_v53  ;;  %v6273_v7 = vunpack.i.h.bf16 %v16537_v11  ;;  %v814_v50 = vsel %vm15866_vm15, %v6198_v52, %v6203_v25  ;;  %v10691_v53 = vpop.permute.xlu1 %6775  ;;  %v820_v34 = vpack.c.bf16 %v816_v0, %v815_v60  ;;  %v16546_v60 = vld [vmem:[#allocation50_spill] sm:$0xff] }
 0x221   : > { %v881_v9 = vsel %vm15852_vm12, %v6233_v32, %v16533_v51  ;;  %v6272_v51 = vunpack.i.l.bf16 %v16537_v11  ;;  %16539 = vst [vmem:[#allocation105_spill] sm:$0xff] %v10691_v53  ;;  %v16541_v11 = vpack.c.bf16 %v10518_v3, %v10512_v17  ;;  %v819_v52 = vpack.c.bf16 %v818_v1, %v817_v58 }
 0x222   : > { %1858 = vmatprep.subr.bf16.mxu0 %v16536_v57  ;;  %1900 = vmatpush1.bf16.msra.mxu1 %v16538_v18  ;;  %v822_v57 = vpack.c.bf16 %v812_v63, %v811_v40  ;;  %v10694_v4 = vpop.permute.xlu0 %6770  ;;  %v885_v22 = vpack.c.bf16 %v881_v9, %v10655_v27  ;;  %v16542_v36 = vunpack.i.l.bf16 %v16529_v47  ;;  %v882_v61 = vsel %vm15852_vm12, %v16543_v62, %v6232_v44  ;;  %v16549_v27 = vld [vmem:[#allocation51_spill] sm:$0xff]  ;;  %v2881_v40 = vld [vmem:[%s358_s22 + $0x8] sm:$0xff]  ;;  %v16556_v62 = vld [vmem:[#allocation37_spill] sm:$0xff] }
 0x223   : > { %1859 = vmatpush1.bf16.msra.mxu0 %v754_v56  ;;  %16540 = vst [vmem:[#allocation104_spill] sm:$0xff] %v10694_v4  ;;  %1901 = vmatprep.subr.bf16.mxu1 %v16541_v11  ;;  %v16544_v25 = vunpack.i.h.bf16 %v16534_v39  ;;  %v16545_v9 = vunpack.i.h.bf16 %v16529_v47  ;;  %v15838_v56 = vmov 0   ;;  %v16547_v44 = vunpack.i.l.bf16 %v16535_v59  ;;  %v16550_v11 = vld [vmem:[#allocation54_spill] sm:$0xff] }
 0x224   : > { %v876_v18 = vsel %vm15852_vm12, %v6242_v37, %v16542_v36  ;;  %1860 = vmatprep.subr.bf16.mxu0 %v820_v34  ;;  %6990 = vset.pattern.permute.xlu1 %v15838_v56  ;;  %v6283_v63 = vunpack.i.h.bf16 %v16549_v27  ;;  %v6282_v34 = vunpack.i.l.bf16 %v16549_v27  ;;  %v16554_v27 = vunpack.i.l.bf16 %v16481_v6  ;;  %v2880_v36 = vld [vmem:[%s358_s22] sm:$0xff]  ;;  %s16892_s22 = smov 38  }
 0x225   : > { %v883_v17 = vsel %vm15852_vm12, %v16544_v25, %v6233_v32  ;;  %v877_v3 = vsel %vm15852_vm12, %v6243_v28, %v16545_v9  ;;  %v945_v58 = vsel %vm15863_vm11, %v6272_v51, %v16547_v44  ;;  %v16548_v32 = vunpack.i.h.bf16 %v16535_v59  ;;  %6989 = vset.pattern.permute.xlu0 %v15838_v56  ;;  %v10735_v25 = vpop.permute.xlu1 %6785  ;;  %2889 = vperm.xlu1 %6990, %v2881_v40  }
 0x226   : > { %1902 = vmatpush1.bf16.msra.mxu1 %v756_v30  ;;  %16551 = vst [vmem:[#allocation120_spill] sm:$0xff] %v10735_v25  ;;  %v16552_v9 = vunpack.i.h.bf16 %v16516_v45  ;;  %v16553_v44 = vunpack.i.h.bf16 %v16481_v6  ;;  %v10752_v56 = vsel %vm15884_vm14, %v16554_v27, %v6182_v21  ;;  %v10754_v30 = vpop.permute.xlu0 %6780  ;;  %v6213_v25 = vunpack.i.h.bf16 %v16556_v62  ;;  %2884 = vperm.xlu0 %6989, %v2880_v36  }
 0x227   : > { %v946_v1 = vsel %vm15863_vm11, %v6273_v7, %v16548_v32  ;;  %1861 = vmatpush1.bf16.msra.mxu0 %v819_v52  ;;  %16555 = vst [vmem:[#allocation18_spill] sm:$0xff] %v10754_v30  ;;  %1903 = vmatprep.subr.bf16.mxu1 %v822_v57  ;;  %v821_v27 = vpack.c.bf16 %v814_v50, %v813_v23  ;;  %v16558_v52 = vunpack.i.l.bf16 %v16503_v13  ;;  %v16559_v4 = vunpack.i.l.bf16 %v16550_v11 }
 0x228   : > { %v10746_v32 = vsel %vm15884_vm14, %v16553_v44, %v16552_v9  ;;  %v6212_v9 = vunpack.i.l.bf16 %v16556_v62  ;;  %v16557_v44 = vunpack.i.h.bf16 %v16503_v13  ;;  %1862 = vmatprep.subr.bf16.mxu0 %v885_v22  ;;  %v884_v0 = vpack.c.bf16 %v883_v17, %v882_v61  ;;  %v2908_v62 = vld [vmem:[%s15594_s4] sm:$0xff] }
 0x229   : > { %v878_v57 = vsel %vm15852_vm12, %v16558_v52, %v6242_v37  ;;  %v950_v30 = vpack.c.bf16 %v946_v1, %v945_v58  ;;  %v887_v53 = vpack.c.bf16 %v877_v3, %v876_v18  ;;  %v16560_v23 = vunpack.i.h.bf16 %v16550_v11  ;;  %v10779_v37 = vpop.permute.xlu1 %6795  ;;  %2912 = vperm.xlu1 %6990, %v2908_v62  }
 0x22a   : > { %v879_v6 = vsel %vm15852_vm12, %v16557_v44, %v6243_v28  ;;  %v947_v28 = vsel %vm15863_vm11, %v16559_v4, %v6272_v51  ;;  %1904 = vmatpush1.bf16.msra.mxu1 %v821_v27  ;;  %16561 = vst [vmem:[#allocation19_spill] sm:$0xff] %v10779_v37  ;;  %v16562_v50 = vunpack.i.l.bf16 %v16546_v60  ;;  %v16563_v18 = vunpack.i.h.bf16 %v16546_v60  ;;  %v2909_v4 = vld [vmem:[%s15594_s4 + $0x8] sm:$0xff]  ;;  %v10794_v3 = vpop.permute.xlu0 %6790  ;;  %v16569_v27 = vld [vmem:[#allocation39_spill] sm:$0xff] }
 0x22b   : > { %v948_v13 = vsel %vm15863_vm11, %v16560_v23, %v6273_v7  ;;  %v16564_v51 = vld [vmem:[#allocation36_spill] sm:$0xff]  ;;  %1863 = vmatpush1.bf16.msra.mxu0 %v884_v0  ;;  %16565 = vst [vmem:[#allocation21_spill] sm:$0xff] %v10794_v3  ;;  %1905 = vmatprep.subr.bf16.mxu1 %v887_v53  ;;  %v16566_v40 = vunpack.i.l.bf16 %v16470_v8  ;;  %v16567_v1 = vunpack.i.h.bf16 %v16470_v8  ;;  %v16568_v36 = vunpack.i.h.bf16 %v16516_v45  ;;  %v16599_v3 = vld [vmem:[#allocation101_spill] sm:$0xff] }
 0x22c   : > { %v941_v22 = vsel %vm15863_vm11, %v6282_v34, %v16562_v50  ;;  %v942_v61 = vsel %vm15863_vm11, %v6283_v63, %v16563_v18  ;;  %v6218_v17 = vunpack.i.h.bf16 %v16564_v51  ;;  %v6217_v7 = vunpack.i.l.bf16 %v16564_v51  ;;  %1864 = vmatprep.subr.bf16.mxu0 %v950_v30  ;;  %2917 = vperm.xlu0 %6989, %v2909_v4  }
 0x22d   : > { %v10800_v58 = vsel %vm15884_vm14, %v6182_v21, %v16566_v40  ;;  %v10808_v44 = vsel %vm15884_vm14, %v16568_v36, %v16567_v1  ;;  %v6223_v52 = vunpack.i.h.bf16 %v16569_v27  ;;  %v6222_v0 = vunpack.i.l.bf16 %v16569_v27  ;;  %v16578_v1 = vld [vmem:[#allocation44_spill] sm:$0xff] }
 0x22e   : > { %v886_v53 = vpack.c.bf16 %v879_v6, %v878_v57  ;;  %v16570_v21 = vunpack.i.h.bf16 %v16535_v59  ;;  %v16571_v45 = vunpack.i.l.bf16 %v16535_v59  ;;  %v949_v18 = vpack.c.bf16 %v948_v13, %v947_v28  ;;  %v10834_v59 = vpop.permute.xlu1 %6805  ;;  %v16576_v13 = vld [vmem:[#allocation45_spill] sm:$0xff]  ;;  %v16584_v28 = vld [vmem:[#allocation52_spill] sm:$0xff] }
 0x22f   : > { %v952_v51 = vpack.c.bf16 %v942_v61, %v941_v22  ;;  %v16572_v30 = vunpack.i.h.bf16 %v16500_v24  ;;  %v16573_v57 = vunpack.i.l.bf16 %v16500_v24  ;;  %16574 = vst [vmem:[#allocation20_spill] sm:$0xff] %v10834_v59  ;;  %v6253_v24 = vunpack.i.h.bf16 %v16576_v13  ;;  %v10847_v61 = vpop.permute.xlu0 %6800 }
 0x230   : > { %v944_v8 = vsel %vm15863_vm11, %v16570_v21, %v6283_v63  ;;  %v943_v50 = vsel %vm15863_vm11, %v16571_v45, %v6282_v34  ;;  %1906 = vmatpush1.bf16.msra.mxu1 %v886_v53  ;;  %v10839_v63 = vld [vmem:[%s15591_s1] ss:$8 sps:$4 sm:$0xff]   ;;  %v6252_v22 = vunpack.i.l.bf16 %v16576_v13  ;;  %1865 = vmatpush1.bf16.msra.mxu0 %v949_v18  ;;  %16577 = vst [vmem:[#allocation74_spill] sm:$0xff] %v10847_v61  ;;  %v6258_v36 = vunpack.i.h.bf16 %v16578_v1  ;;  %v16580_v45 = vld [vmem:[#allocation82_spill] sm:$0xff] }
 0x231   : > { %v10826_v6 = vsel %vm15866_vm15, %v16572_v30, %v6213_v25  ;;  %v10832_v62 = vsel %vm15866_vm15, %v16573_v57, %v6212_v9  ;;  %16575 = vst [vmem:[#allocation22_spill] sm:$0xff] %v10839_v63  ;;  %1907 = vmatprep.subr.bf16.mxu1 %v952_v51  ;;  %v10851_v4 = vsel %vm15866_vm15, %v6212_v9, %v6217_v7  ;;  %v6257_v27 = vunpack.i.l.bf16 %v16578_v1  ;;  %v16579_v53 = vld [vmem:[#allocation47_spill] sm:$0xff]  ;;  %v16581_v30 = vld [vmem:[#allocation81_spill] sm:$0xff]  ;;  %v16590_v34 = vld [vmem:[#allocation78_spill] sm:$0xff] }
 0x232   : > { %v10855_v40 = vsel %vm15866_vm15, %v6213_v25, %v6218_v17  ;;  %v6263_v21 = vunpack.i.h.bf16 %v16579_v53  ;;  %v16582_v18 = vpack.c.bf16 %v16580_v45, %v16581_v30  ;;  %v951_v57 = vpack.c.bf16 %v944_v8, %v943_v50  ;;  %v16585_v50 = vld [vmem:[#allocation53_spill] sm:$0xff] }
 0x233   : > { %v10865_v51 = vsel %vm15866_vm15, %v6218_v17, %v6223_v52  ;;  %v10869_v9 = vsel %vm15866_vm15, %v6217_v7, %v6222_v0  ;;  %v6262_v25 = vunpack.i.l.bf16 %v16579_v53  ;;  %v16583_v13 = vunpack.i.l.bf16 %v16502_v19  ;;  %1881 = vmatmul.mubr.bf16.vlgmr.msra.gmra.mrb[0].mxu0 %v10839_v63  ;;  %v10883_v7 = vpop.permute.xlu1 %6815  ;;  %v10900_v23 = vpop.permute.xlu0 %6810 }
 0x234   : > { %1934 = vmatprep.subr.bf16.mxu0 %v16582_v18  ;;  %v6298_v45 = vunpack.i.h.bf16 %v16584_v28  ;;  %v6297_v8 = vunpack.i.l.bf16 %v16584_v28  ;;  %v6293_v30 = vunpack.i.h.bf16 %v16585_v50  ;;  %v6292_v17 = vunpack.i.l.bf16 %v16585_v50  ;;  %1908 = vmatpush1.bf16.msra.mxu1 %v951_v57  ;;  %16586 = vst [vmem:[#allocation73_spill] sm:$0xff] %v10883_v7  ;;  %16592 = vst [vmem:[#allocation23_spill] sm:$0xff] %v10900_v23  ;;  %v16593_v57 = vld [vmem:[#allocation94_spill] sm:$0xff]  ;;  %v16594_v7 = vld [vmem:[#allocation93_spill] sm:$0xff] }
 0x235   : > { %v10876_v1 = vsel %vm15866_vm15, %v6222_v0, %v16583_v13  ;;  %v16587_v53 = vunpack.i.h.bf16 %v16529_v47  ;;  %v16588_v0 = vunpack.i.l.bf16 %v16529_v47  ;;  %v16589_v13 = vld [vmem:[#allocation77_spill] sm:$0xff]  ;;  %v16595_v61 = vpack.c.bf16 %v16593_v57, %v16594_v7  ;;  %5735 = vmatprep.mubr.msk.bf16.mxu0 %vm1660_vm0, %v10401_v49 }
 0x236   : > { %v16591_v50 = vpack.c.bf16 %v16589_v13, %v16590_v34  ;;  %v16596_v59 = vunpack.i.h.bf16 %v16502_v19  ;;  %v10913_v47 = vsel %vm15852_vm12, %v6258_v36, %v6263_v21  ;;  %v10920_v13 = vsel %vm15852_vm12, %v6252_v22, %v6257_v27 }
 0x237   : > { %v10889_v18 = vsel %vm15852_vm12, %v16587_v53, %v6253_v24  ;;  %v10895_v28 = vsel %vm15852_vm12, %v16588_v0, %v6252_v22  ;;  %1977 = vmatprep.subr.bf16.mxu1 %v16595_v61  ;;  %16597 = vst [vmem:[#allocation24_spill] sm:$0xff] %v10913_v47  ;;  %v16598_v0 = vld [vmem:[#allocation103_spill] sm:$0xff]  ;;  %v10924_v61 = vsel %vm15852_vm12, %v6253_v24, %v6258_v36  ;;  %v16605_v24 = vunpack.i.h.bf16 %v16534_v39  ;;  %v16642_v47 = vld [vmem:[#allocation57_spill] sm:$0xff] }
 0x238   : > { %1935 = vmatpush1.bf16.msra.mxu0 %v16591_v50  ;;  %v10909_v53 = vsel %vm15866_vm15, %v6223_v52, %v16596_v59  ;;  %v16600_v34 = vpack.c.bf16 %v16598_v0, %v16599_v3  ;;  %v10930_v19 = vsel %vm15852_vm12, %v6257_v27, %v6262_v25  ;;  %v16602_v52 = vld [vmem:[#allocation55_spill] sm:$0xff]  ;;  %1924 = vmatmul.mubr.bf16.vlgmr.msra.gmra.mrb[0].mxu1 %v10839_v63  ;;  %v16603_v3 = vunpack.i.l.bf16 %v16534_v39  ;;  %v16608_v50 = vld [vmem:[#allocation92_spill] sm:$0xff]  ;;  %v10950_v0 = vpop.permute.xlu1 %6825 }
 0x239   : > { %16601 = vst [vmem:[#allocation25_spill] sm:$0xff] %v10930_v19  ;;  %v6303_v59 = vunpack.i.h.bf16 %v16602_v52  ;;  %v10944_v36 = vsel %vm15852_vm12, %v6263_v21, %v16605_v24  ;;  %v6302_v7 = vunpack.i.l.bf16 %v16602_v52  ;;  %v16607_v27 = vld [vmem:[#allocation91_spill] sm:$0xff]  ;;  %16610 = vst [vmem:[#allocation71_spill] sm:$0xff] %v10950_v0  ;;  %v10960_v39 = vsel %vm15863_vm11, %v6293_v30, %v6298_v45  ;;  %5736 = vmatprep.mubr.msk.bf16.mxu1 %vm1660_vm0, %v10401_v49  ;;  %v16613_v21 = vld [vmem:[#allocation106_spill] sm:$0xff]  ;;  %v10967_v24 = vpop.permute.xlu0 %6820 }
 0x23a   : > { %1936 = vmatprep.subr.bf16.mxu0 %v16600_v34  ;;  %v10938_v22 = vsel %vm15852_vm12, %v6262_v25, %v16603_v3  ;;  %16606 = vst [vmem:[#allocation88_spill] sm:$0xff] %v10944_v36  ;;  %v16609_v57 = vpack.c.bf16 %v16607_v27, %v16608_v50  ;;  %v10956_v25 = vsel %vm15863_vm11, %v6292_v17, %v6297_v8  ;;  %16612 = vst [vmem:[#allocation26_spill] sm:$0xff] %v10960_v39  ;;  %v16614_v52 = vld [vmem:[#allocation107_spill] sm:$0xff]  ;;  %v16617_v27 = vld [vmem:[#allocation113_spill] sm:$0xff] }
 0x23b   : > { %16604 = vst [vmem:[#allocation89_spill] sm:$0xff] %v10938_v22  ;;  %16611 = vst [vmem:[#allocation70_spill] sm:$0xff] %v10956_v25  ;;  %v16615_v3 = vpack.c.bf16 %v16613_v21, %v16614_v52  ;;  %v16618_v50 = vld [vmem:[#allocation112_spill] sm:$0xff]  ;;  %v16621_v63 = vld [vmem:[#allocation123_spill] sm:$0xff]  ;;  %vm15870_vm12 = vcmp.lt.s32.totalorder %v8883_v16, 39  ;;  %v6642_v25 = vunpack.i.l.bf16 %v16642_v47  ;;  %v6662_v22 = vunpack.i.l.bf16 %v10184_v41 }
 0x23c   : > { %1978 = vmatpush1.bf16.msra.mxu1 %v16609_v57  ;;  %16616 = vst [vmem:[#allocation27_spill] sm:$0xff] %v10967_v24  ;;  %v16619_v57 = vpack.c.bf16 %v16617_v27, %v16618_v50  ;;  %v16620_v49 = vld [vmem:[#allocation124_spill] sm:$0xff]  ;;  %v16623_v50 = vunpack.i.h.bf16 %v16546_v60  ;;  %v11009_v27 = vsel %vm15863_vm11, %v6297_v8, %v6302_v7  ;;  %v11015_v52 = vpop.permute.xlu1 %6835  ;;  %v16634_v0 = vld [vmem:[#allocation121_spill] sm:$0xff]  ;;  %v16635_v34 = vld [vmem:[#allocation122_spill] sm:$0xff]  ;;  %vm15905_vm15 = vcmp.lt.s32.totalorder %v8883_v16, 37 }
 0x23d   : > { %1937 = vmatpush1.bf16.msra.mxu0 %v16615_v3  ;;  %v16622_v37 = vpack.c.bf16 %v16620_v49, %v16621_v63  ;;  %v11003_v49 = vsel %vm15863_vm11, %v6298_v45, %v6303_v59  ;;  %16628 = vst [vmem:[#allocation96_spill] sm:$0xff] %v11015_v52  ;;  %v16632_v3 = vld [vmem:[#allocation75_spill] sm:$0xff]  ;;  %v16636_v24 = vpack.c.bf16 %v16634_v0, %v16635_v34  ;;  %v16643_v39 = vld [vmem:[#allocation62_spill] sm:$0xff]  ;;  %v16646_v0 = vld [vmem:[#allocation61_spill] sm:$0xff]  ;;  %vm15903_vm9 = vcmp.lt.s32.totalorder %v8883_v16, 28 }
 0x23e   : > { %1979 = vmatprep.subr.bf16.mxu1 %v16619_v57  ;;  %v10993_v57 = vsel %vm15863_vm11, %v16623_v50, %v6293_v30  ;;  %v16625_v30 = vld [vmem:[#allocation110_spill] sm:$0xff]  ;;  %v16626_v50 = vld [vmem:[#allocation111_spill] sm:$0xff]  ;;  %v6638_v23 = vunpack.i.h.bf16 %v16632_v3  ;;  %v6637_v21 = vunpack.i.l.bf16 %v16632_v3  ;;  %v6643_v3 = vunpack.i.h.bf16 %v16642_v47 }
 0x23f   : > { %1938 = vmatprep.subr.bf16.mxu0 %v16622_v37  ;;  %v16624_v37 = vunpack.i.l.bf16 %v16546_v60  ;;  %v16627_v60 = vpack.c.bf16 %v16625_v30, %v16626_v50  ;;  %v16633_v30 = vld [vmem:[#allocation59_spill] sm:$0xff]  ;;  %v6653_v34 = vunpack.i.h.bf16 %v16646_v0  ;;  %v6663_v47 = vunpack.i.h.bf16 %v10184_v41 }
 0x240   : > { %v6633_v50 = vunpack.i.h.bf16 %v16633_v30  ;;  %v11061_v36 = vpop.permute.xlu1 %6845  ;;  %vm15902_vm14 = vcmp.lt.s32.totalorder %v8883_v16, 27  ;;  %vm15901_vm7 = vcmp.lt.s32.totalorder %v8883_v16, 19  ;;  %vm15900_vm13 = vcmp.lt.s32.totalorder %v8883_v16, 18 }
 0x241   : > { %v10999_v63 = vsel %vm15863_vm11, %v16624_v37, %v6292_v17  ;;  %1980 = vmatpush1.bf16.msra.mxu1 %v16627_v60  ;;  %v16629_v17 = vunpack.i.l.bf16 %v16550_v11  ;;  %v16631_v37 = vunpack.i.h.bf16 %v16550_v11  ;;  %v6632_v60 = vunpack.i.l.bf16 %v16633_v30  ;;  %1939 = vmatpush1.bf16.msra.mxu0 %v16636_v24  ;;  %v16639_v11 = vld [vmem:[#allocation128_spill] sm:$0xff]  ;;  %16651 = vst [vmem:[#allocation72_spill] sm:$0xff] %v11061_v36 }
 0x242   : > { %v16644_v30 = vld [vmem:[#allocation56_spill] sm:$0xff]  ;;  %v6652_v24 = vunpack.i.l.bf16 %v16646_v0  ;;  %v11065_v0 = vsel %vm15870_vm12, %v6633_v50, %v6638_v23  ;;  %vm15899_vm6 = vcmp.lt.s32.totalorder %v8883_v16, 17 }
 0x243   : > { %v11021_v45 = vsel %vm15863_vm11, %v6302_v7, %v16629_v17  ;;  %v11027_v8 = vsel %vm15863_vm11, %v6303_v59, %v16631_v37  ;;  %v11036_v7 = vpop.permute.xlu0 %6830  ;;  %v16638_v17 = vld [vmem:[#allocation130_spill] sm:$0xff]  ;;  %v16645_v42 = vpack.c.bf16 %v16643_v39, %v16644_v30  ;;  %vm15906_vm11 = vcmp.lt.s32.totalorder %v8883_v16, 38 }
 0x244   : > { %16630 = vst [vmem:[#allocation95_spill] sm:$0xff] %v11021_v45  ;;  %16637 = vst [vmem:[#allocation69_spill] sm:$0xff] %v11036_v7  ;;  %v16640_v52 = vpack.c.bf16 %v16638_v17, %v16639_v11  ;;  %v16641_v59 = vld [vmem:[#allocation14_spill] sm:$0xff]  ;;  %v16653_v17 = vld [vmem:[#allocation63_spill] sm:$0xff] }
 0x245   : > { %v6648_v37 = vunpack.i.h.bf16 %v16641_v59  ;;  %v6647_v19 = vunpack.i.l.bf16 %v16641_v59  ;;  %1940 = vmatprep.subr.bf16.mxu0 %v16645_v42  ;;  %v16647_v11 = vld [vmem:[#allocation58_spill] sm:$0xff]  ;;  %v16649_v42 = vld [vmem:[#allocation127_spill] sm:$0xff] }
 0x246   : > { %1981 = vmatprep.subr.bf16.mxu1 %v16640_v52  ;;  %v6658_v59 = vunpack.i.h.bf16 %v16647_v11  ;;  %v6657_v7 = vunpack.i.l.bf16 %v16647_v11  ;;  %v16648_v39 = vld [vmem:[#allocation126_spill] sm:$0xff]  ;;  %v11069_v52 = vsel %vm15870_vm12, %v6632_v60, %v6637_v21  ;;  %v16652_v11 = vld [vmem:[#allocation13_spill] sm:$0xff] }
 0x247   : > { %v16650_v30 = vpack.c.bf16 %v16648_v39, %v16649_v42  ;;  %v16654_v45 = vpack.c.bf16 %v16652_v11, %v16653_v17  ;;  %v11075_v41 = vpop.permute.xlu0 %6840  ;;  %v16655_v39 = vpack.c.bf16 %v10148_v46, %v10130_v10  ;;  %v11088_v36 = vsel %vm15870_vm12, %v6642_v25, %v6647_v19 }
 0x248   : > { %v11095_v17 = vsel %vm15870_vm12, %v6637_v21, %v6642_v25  ;;  %v11099_v10 = vsel %vm15870_vm12, %v6638_v23, %v6643_v3  ;;  %v6668_v46 = vunpack.i.h.bf16 %v10175_v48  ;;  %v6667_v11 = vunpack.i.l.bf16 %v10175_v48 }
 0x249   : > { %1982 = vmatpush1.bf16.msra.mxu1 %v16650_v30  ;;  %1941 = vmatpush1.bf16.msra.mxu0 %v16654_v45  ;;  %v11084_v30 = vsel %vm15870_vm12, %v6643_v3, %v6648_v37  ;;  %v16656_v45 = vpack.c.bf16 %v10438_v31, %v10434_v14  ;;  %v11109_v14 = vsel %vm15870_vm12, %v6648_v37, %v6653_v34  ;;  %v6678_v37 = vunpack.i.h.bf16 %v10220_v5 }
 0x24a   : > { %1983 = vmatprep.subr.bf16.mxu1 %v16655_v39  ;;  %v11105_v39 = vsel %vm15870_vm12, %v6647_v19, %v6652_v24  ;;  %v11113_v31 = vsel %vm15870_vm12, %v6653_v34, %v6658_v59  ;;  %v11117_v23 = vsel %vm15870_vm12, %v6652_v24, %v6657_v7  ;;  %v16657_v48 = vpack.c.bf16 %v10084_v43, %v10123_v35  ;;  %v11123_v19 = vpop.permute.xlu1 %6855 }
 0x24b   : > { %1942 = vmatprep.subr.bf16.mxu0 %v16656_v45  ;;  %16658 = vst [vmem:[#allocation30_spill] sm:$0xff] %v11123_v19  ;;  %v11127_v25 = vsel %vm15870_vm12, %v6657_v7, %v6662_v22  ;;  %v11131_v21 = vsel %vm15870_vm12, %v6658_v59, %v6663_v47  ;;  %v6677_v3 = vunpack.i.l.bf16 %v10220_v5  ;;  %v15867_v34 = vunpack.i.h.bf16 %v10224_v20  ;;  %v11140_v35 = vpop.permute.xlu0 %6850  ;;  %v16677_v5 = vld [vmem:[#allocation65_spill] sm:$0xff] }
 0x24c   : > { %v15868_v24 = vunpack.i.l.bf16 %v10224_v20  ;;  %v16659_v43 = vpack.c.bf16 %v10391_v15, %v10405_v54  ;;  %v16660_v7 = vpack.c.bf16 %v10486_v33, %v10466_v55  ;;  %v16661_v59 = vpack.c.bf16 %v10626_v2, %v10620_v26  ;;  %v16667_v54 = vld [vmem:[#allocation16_spill] sm:$0xff]  ;;  %v16692_v19 = vld [vmem:[#allocation89_spill] sm:$0xff] }
 0x24d   : > { %1984 = vmatpush1.bf16.msra.mxu1 %v16657_v48  ;;  %v11158_v55 = vsel %vm15870_vm12, %v6663_v47, %v6668_v46  ;;  %v11164_v26 = vsel %vm15870_vm12, %v6667_v11, %v6632_v60  ;;  %v11168_v2 = vsel %vm15870_vm12, %v6668_v46, %v6633_v50  ;;  %v11172_v48 = vsel %vm15870_vm12, %v6662_v22, %v6667_v11  ;;  %v16673_v60 = vld [vmem:[#allocation76_spill] sm:$0xff] }
 0x24e   : > { %1943 = vmatpush1.bf16.msra.mxu0 %v16659_v43  ;;  %1985 = vmatprep.subr.bf16.mxu1 %v16660_v7  ;;  %16662 = vst [vmem:[#allocation109_spill] sm:$0xff] %v11158_v55  ;;  %16663 = vst [vmem:[#allocation108_spill] sm:$0xff] %v11164_v26  ;;  %v6688_v43 = vunpack.i.h.bf16 %v10249_v29  ;;  %v16665_v7 = vld [vmem:[#allocation60_spill] sm:$0xff]  ;;  %v11179_v33 = vpop.permute.xlu1 %6865  ;;  %v11187_v50 = vsel %vm15906_vm11, %v15867_v34, %v6678_v37  ;;  %v11193_v22 = vsel %vm15906_vm11, %v15868_v24, %v6677_v3  ;;  %v16674_v24 = vld [vmem:[#allocation15_spill] sm:$0xff] }
 0x24f   : > { %1944 = vmatprep.subr.bf16.mxu0 %v16661_v59  ;;  %16664 = vst [vmem:[#allocation100_spill] sm:$0xff] %v11172_v48  ;;  %v6683_v47 = vunpack.i.h.bf16 %v16665_v7  ;;  %v16666_v59 = vld [vmem:[#allocation83_spill] sm:$0xff]  ;;  %16669 = vst [vmem:[#allocation99_spill] sm:$0xff] %v11179_v33  ;;  %v6687_v46 = vunpack.i.l.bf16 %v10249_v29  ;;  %v6682_v11 = vunpack.i.l.bf16 %v16665_v7  ;;  %v15873_v34 = vunpack.i.h.bf16 %v16673_v60  ;;  %v16695_v55 = vld [vmem:[#allocation26_spill] sm:$0xff] }
 0x250   : > { %v16668_v15 = vpack.c.bf16 %v16666_v59, %v16667_v54  ;;  %v11200_v54 = vpop.permute.xlu0 %6860  ;;  %v16672_v59 = vpack.c.bf16 %v10808_v44, %v10800_v58  ;;  %v15874_v45 = vunpack.i.l.bf16 %v16673_v60  ;;  %v6693_v42 = vunpack.i.h.bf16 %v16674_v24 }
 0x251   : > { %16671 = vst [vmem:[#allocation115_spill] sm:$0xff] %v11200_v54  ;;  %v6692_v29 = vunpack.i.l.bf16 %v16674_v24  ;;  %v16675_v7 = vpack.c.bf16 %v10855_v40, %v10851_v4  ;;  %v15871_v33 = vunpack.i.h.bf16 %v16677_v5  ;;  %v15872_v58 = vunpack.i.l.bf16 %v16677_v5  ;;  %v16689_v4 = vld [vmem:[#allocation87_spill] sm:$0xff] }
 0x252   : > { %1986 = vmatpush1.bf16.msra.mxu1 %v16668_v15  ;;  %v16670_v15 = vpack.c.bf16 %v10592_v12, %v10610_v38  ;;  %v16676_v38 = vld [vmem:[#allocation64_spill] sm:$0xff]  ;;  %v11218_v44 = vsel %vm15906_vm11, %v6683_v47, %v6688_v43  ;;  %v11223_v24 = vpop.permute.xlu1 %6875  ;;  %vm15904_vm12 = vcmp.lt.s32.totalorder %v8883_v16, 29  ;;  %v11246_v40 = vsel %vm15906_vm11, %v6677_v3, %v6682_v11 }
 0x253   : > { %1987 = vmatprep.subr.bf16.mxu1 %v16672_v59  ;;  %v6718_v12 = vunpack.i.h.bf16 %v16676_v38  ;;  %v16678_v59 = vpack.c.bf16 %v10746_v32, %v10752_v56  ;;  %v16679_v56 = vpack.c.bf16 %v10826_v6, %v10832_v62  ;;  %v11256_v6 = vsel %vm15906_vm11, %v6693_v42, %v15873_v34 }
 0x254   : > { %1945 = vmatpush1.bf16.msra.mxu0 %v16670_v15  ;;  %v6717_v15 = vunpack.i.l.bf16 %v16676_v38  ;;  %v11233_v38 = vsel %vm15906_vm11, %v6682_v11, %v6687_v46  ;;  %v11239_v32 = vpop.permute.xlu0 %6870  ;;  %16681 = vst [vmem:[#allocation114_spill] sm:$0xff] %v11256_v6  ;;  %v11262_v62 = vsel %vm15906_vm11, %v6692_v29, %v15874_v45  ;;  %v15881_v54 = vunpack.i.h.bf16 %v16689_v4 }
 0x255   : > { %1946 = vmatprep.subr.bf16.mxu0 %v16675_v7  ;;  %v11250_v7 = vsel %vm15906_vm11, %v6678_v37, %v6683_v47  ;;  %16682 = vst [vmem:[#allocation28_spill] sm:$0xff] %v11262_v62  ;;  %v11273_v37 = vsel %vm15906_vm11, %v6688_v43, %v6693_v42  ;;  %v11279_v3 = vsel %vm15905_vm15, %v15871_v33, %v6718_v12  ;;  %v16686_v43 = vld [vmem:[#allocation80_spill] sm:$0xff]  ;;  %v16715_v62 = vld [vmem:[#allocation22_spill] sm:$0xff] }
 0x256   : > { %1988 = vmatpush1.bf16.msra.mxu1 %v16678_v59  ;;  %v16680_v59 = vpack.c.bf16 %v10909_v53, %v10876_v1  ;;  %v16683_v1 = vpack.c.bf16 %v10924_v61, %v10920_v13  ;;  %v11269_v53 = vsel %vm15906_vm11, %v6687_v46, %v6692_v29  ;;  %v11285_v13 = vsel %vm15905_vm15, %v15872_v58, %v6717_v15  ;;  %v16684_v61 = vld [vmem:[#allocation68_spill] sm:$0xff]  ;;  %v16685_v46 = vld [vmem:[#allocation67_spill] sm:$0xff]  ;;  %v11296_v33 = vpop.permute.xlu1 %6885  ;;  %v16688_v58 = vld [vmem:[#allocation86_spill] sm:$0xff] }
 0x257   : > { %v6728_v47 = vunpack.i.h.bf16 %v16684_v61  ;;  %v6723_v11 = vunpack.i.h.bf16 %v16685_v46  ;;  %v6727_v29 = vunpack.i.l.bf16 %v16684_v61  ;;  %v6722_v42 = vunpack.i.l.bf16 %v16685_v46 }
 0x258   : > { %1947 = vmatpush1.bf16.msra.mxu0 %v16679_v56  ;;  %1989 = vmatprep.subr.bf16.mxu1 %v16680_v59  ;;  %v6758_v34 = vunpack.i.h.bf16 %v16688_v58  ;;  %v6757_v45 = vunpack.i.l.bf16 %v16688_v58  ;;  %v16690_v46 = vpack.c.bf16 %v10889_v18, %v10895_v28  ;;  %v11305_v56 = vpop.permute.xlu0 %6880  ;;  %v16691_v59 = vld [vmem:[#allocation88_spill] sm:$0xff]  ;;  %v16696_v58 = vld [vmem:[#allocation70_spill] sm:$0xff]  ;;  %v2135_v61 = vpack.c.bf16 %v11250_v7, %v11246_v40  ;;  %v16699_v7 = vld [vmem:[#allocation25_spill] sm:$0xff] }
 0x259   : > { %1948 = vmatprep.subr.bf16.mxu0 %v16683_v1  ;;  %v16687_v1 = vpack.c.bf16 %v10865_v51, %v10869_v9  ;;  %v16693_v51 = vpack.c.bf16 %v16691_v59, %v16692_v19  ;;  %v16694_v9 = vld [vmem:[#allocation102_spill] sm:$0xff]  ;;  %v16697_v26 = vpack.c.bf16 %v16695_v55, %v16696_v58  ;;  %v11321_v28 = vsel %vm15905_vm15, %v6723_v11, %v6728_v47  ;;  %v16698_v40 = vld [vmem:[#allocation24_spill] sm:$0xff] }
 0x25a   : > { %v6762_v48 = vunpack.i.l.bf16 %v16694_v9  ;;  %v11344_v58 = vsel %vm15905_vm15, %v6718_v12, %v6723_v11  ;;  %v16702_v55 = vunpack.i.l.bf16 %v16686_v43  ;;  %v16704_v12 = vpack.c.bf16 %v10993_v57, %v10999_v63  ;;  %v16713_v19 = vld [vmem:[#allocation20_spill] sm:$0xff] }
 0x25b   : > { %1990 = vmatpush1.bf16.msra.mxu1 %v16687_v1  ;;  %v6763_v1 = vunpack.i.h.bf16 %v16694_v9  ;;  %v11340_v9 = vsel %vm15905_vm15, %v6717_v15, %v6722_v42  ;;  %v16709_v57 = vpack.c.bf16 %v11099_v10, %v11095_v17  ;;  %v16719_v6 = vpack.c.bf16 %v11109_v14, %v11105_v39 }
 0x25c   : > { %1949 = vmatpush1.bf16.msra.mxu0 %v16690_v46  ;;  %1991 = vmatprep.subr.bf16.mxu1 %v16693_v51  ;;  %v16700_v46 = vpack.c.bf16 %v16698_v40, %v16699_v7  ;;  %v11336_v51 = vpop.permute.xlu1 %6895  ;;  %v11350_v59 = vsel %vm15905_vm15, %v6727_v29, %v16702_v55  ;;  %v11356_v40 = vsel %vm15904_vm12, %v15881_v54, %v6758_v34  ;;  %v16703_v7 = vunpack.i.l.bf16 %v16689_v4  ;;  %v11368_v11 = vpop.permute.xlu0 %6890 }
 0x25d   : > { %1950 = vmatprep.subr.bf16.mxu0 %v16697_v26  ;;  %v11331_v26 = vsel %vm15905_vm15, %v6722_v42, %v6727_v29  ;;  %16701 = vst [vmem:[#allocation29_spill] sm:$0xff] %v11336_v51  ;;  %v16705_v29 = vld [vmem:[#allocation95_spill] sm:$0xff]  ;;  %v16707_v55 = vunpack.i.h.bf16 %v16686_v43  ;;  %v11386_v63 = vsel %vm15904_vm12, %v6757_v45, %v6762_v48  ;;  %v16714_v51 = vld [vmem:[#allocation74_spill] sm:$0xff] }
 0x25e   : > { %v11362_v15 = vsel %vm15904_vm12, %v16703_v7, %v6757_v45  ;;  %v16706_v42 = vpack.c.bf16 %v11027_v8, %v16705_v29  ;;  %v16708_v7 = vld [vmem:[#allocation17_spill] sm:$0xff]  ;;  %v11390_v8 = vsel %vm15904_vm12, %v6758_v34, %v6763_v1  ;;  %v6803_v4 = vunpack.i.h.bf16 %v16714_v51 }
 0x25f   : > { %1992 = vmatpush1.bf16.msra.mxu1 %v16700_v46  ;;  %v11377_v46 = vsel %vm15905_vm15, %v6728_v47, %v16707_v55  ;;  %v6768_v54 = vunpack.i.h.bf16 %v16708_v7  ;;  %v6767_v18 = vunpack.i.l.bf16 %v16708_v7  ;;  %v11395_v47 = vld [vmem:[%s15591_s1 + $0x24] ss:$8 sps:$4 sm:$0xff]   ;;  %v16712_v7 = vld [vmem:[#allocation21_spill] sm:$0xff]  ;;  %v16716_v29 = vpack.c.bf16 %v11003_v49, %v11009_v27 }
 0x260   : > { %1951 = vmatpush1.bf16.msra.mxu0 %v16704_v12  ;;  %1993 = vmatprep.subr.bf16.mxu1 %v16706_v42  ;;  %v16710_v12 = vld [vmem:[#allocation104_spill] sm:$0xff]  ;;  %v16711_v55 = vld [vmem:[#allocation19_spill] sm:$0xff]  ;;  %v11410_v42 = vpop.permute.xlu1 %6905  ;;  %v6802_v45 = vunpack.i.l.bf16 %v16714_v51  ;;  %v11417_v34 = vpop.permute.xlu0 %6900  ;;  %v2200_v27 = vpack.c.bf16 %v11344_v58, %v11340_v9  ;;  %v2201_v49 = vpack.c.bf16 %v11321_v28, %v11331_v26  ;;  %v2265_v14 = vpack.c.bf16 %v11390_v8, %v11386_v63  ;;  %v16727_v63 = vld [vmem:[#allocation90_spill] sm:$0xff] }
 0x261   : > { %2692 = vmatprep.subr.bf16.mxu0 %v16709_v57  ;;  %v6798_v17 = vunpack.i.h.bf16 %v16711_v55  ;;  %v6797_v10 = vunpack.i.l.bf16 %v16711_v55  ;;  %16717 = vst [vmem:[#allocation97_spill] sm:$0xff] %v11410_v42  ;;  %v6807_v55 = vunpack.i.l.bf16 %v16713_v19  ;;  %v16718_v57 = vpack.c.bf16 %v11065_v0, %v11069_v52  ;;  %v16731_v42 = vld [vmem:[#allocation96_spill] sm:$0xff] }
 0x262   : > { %v11429_v51 = vsel %vm15904_vm12, %v6763_v1, %v6768_v54  ;;  %v2202_v52 = vpack.c.bf16 %v11377_v46, %v11350_v59  ;;  %v11439_v39 = vsel %vm15904_vm12, %v6762_v48, %v6767_v18  ;;  %v16722_v1 = vunpack.i.h.bf16 %v16710_v12 }
 0x263   : > { %1967 = vmatmul.mubr.bf16.vlgmr.msra.gmra.mrb[4].mxu0 %v16715_v62  ;;  %1994 = vmatpush1.bf16.msra.mxu1 %v16716_v29  ;;  %v16720_v29 = vld [vmem:[#allocation66_spill] sm:$0xff]  ;;  %v16723_v48 = vunpack.i.h.bf16 %v16712_v7  ;;  %v16724_v26 = vunpack.i.l.bf16 %v16712_v7  ;;  %v6838_v8 = vunpack.i.h.bf16 %v16731_v42  ;;  %v6702_v59 = vunpack.i.l.bf16 %v16727_v63 }
 0x264   : > { %2693 = vmatpush1.bf16.msra.mxu0 %v16718_v57  ;;  %2735 = vmatprep.subr.bf16.mxu1 %v16719_v6  ;;  %v16721_v6 = vunpack.i.l.bf16 %v16710_v12  ;;  %v2255_v28 = vsel %vm15904_vm12, %v6768_v54, %v16722_v1  ;;  %v16726_v54 = vpack.c.bf16 %v11084_v30, %v11088_v36  ;;  %v11474_v46 = vpop.permute.xlu1 %6915  ;;  %v11481_v57 = vsel %vm15903_vm9, %v6802_v45, %v6807_v55  ;;  %v11487_v1 = vpop.permute.xlu0 %6910 }
 0x265   : > { %2694 = vmatprep.subr.bf16.mxu0 %v2135_v61  ;;  %5741 = vmatprep.mubr.msk.bf16.mxu0 %vm1660_vm0, %v11395_v47  ;;  %v11463_v9 = vsel %vm15903_vm9, %v16724_v26, %v6797_v10  ;;  %v16729_v36 = vpack.c.bf16 %v11273_v37, %v11269_v53  ;;  %v2323_v30 = vsel %vm15903_vm9, %v6797_v10, %v6802_v45  ;;  %v16730_v26 = vld [vmem:[#allocation23_spill] sm:$0xff]  ;;  %v6843_v37 = vunpack.i.h.bf16 %v11075_v41 }
 0x266   : > { %2010 = vmatmul.mubr.bf16.vlgmr.msra.gmra.mrb[4].mxu1 %v16715_v62  ;;  %v2254_v61 = vsel %vm15904_vm12, %v6767_v18, %v16721_v6  ;;  %v11457_v62 = vsel %vm15903_vm9, %v16723_v48, %v6798_v17  ;;  %v16725_v18 = vunpack.i.h.bf16 %v16713_v19  ;;  %v16728_v6 = vpack.c.bf16 %v11187_v50, %v11193_v22  ;;  %v16732_v22 = vld [vmem:[#allocation69_spill] sm:$0xff] }
 0x267   : > { %2736 = vmatpush1.bf16.msra.mxu1 %v16726_v54  ;;  %5742 = vmatprep.mubr.msk.bf16.mxu1 %vm1660_vm0, %v11395_v47  ;;  %v2324_v48 = vsel %vm15903_vm9, %v6798_v17, %v6803_v4  ;;  %v15893_v54 = vunpack.i.l.bf16 %v16730_v26  ;;  %v6837_v50 = vunpack.i.l.bf16 %v16731_v42  ;;  %v15891_v53 = vunpack.i.l.bf16 %v16732_v22 }
 0x268   : > { %v11469_v58 = vsel %vm15903_vm9, %v6803_v4, %v16725_v18  ;;  %2695 = vmatpush1.bf16.msra.mxu0 %v16728_v6  ;;  %2737 = vmatprep.subr.bf16.mxu1 %v16729_v36  ;;  %v6813_v18 = vunpack.i.h.bf16 %v16730_v26  ;;  %v15890_v6 = vunpack.i.h.bf16 %v16732_v22  ;;  %v6842_v10 = vunpack.i.l.bf16 %v11075_v41  ;;  %v11509_v36 = vpop.permute.xlu1 %6925  ;;  %v11517_v41 = vpop.permute.xlu0 %6920 }
 0x269   : > { %2696 = vmatprep.subr.bf16.mxu0 %v2200_v27  ;;  %v15892_v4 = vunpack.i.l.bf16 %v11140_v35  ;;  %v16733_v17 = vpack.c.bf16 %v11218_v44, %v11233_v38  ;;  %v2267_v42 = vpack.c.bf16 %v2255_v28, %v2254_v61  ;;  %v2266_v27 = vpack.c.bf16 %v11429_v51, %v11439_v39  ;;  %v16735_v61 = vld [vmem:[#allocation72_spill] sm:$0xff] }
 0x26a   : > { %v16734_v0 = vpack.c.bf16 %v11279_v3, %v11285_v13  ;;  %v2330_v45 = vpack.c.bf16 %v2324_v48, %v2323_v30  ;;  %v2329_v44 = vpack.c.bf16 %v11457_v62, %v11463_v9  ;;  %v2331_v38 = vpack.c.bf16 %v11469_v58, %v11481_v57 }
 0x26b   : > { %2738 = vmatpush1.bf16.msra.mxu1 %v16733_v17  ;;  %v6848_v28 = vunpack.i.h.bf16 %v16735_v61  ;;  %v6847_v51 = vunpack.i.l.bf16 %v16735_v61  ;;  %v2319_v3 = vsel %vm15903_vm9, %v6807_v55, %v15893_v54  ;;  %v16736_v13 = vunpack.i.h.bf16 %v16713_v19 }
 0x26c   : > { %2697 = vmatpush1.bf16.msra.mxu0 %v16734_v0  ;;  %2739 = vmatprep.subr.bf16.mxu1 %v2202_v52  ;;  %v2391_v0 = vsel %vm15902_vm14, %v15890_v6, %v6838_v8  ;;  %v2390_v39 = vsel %vm15902_vm14, %v15891_v53, %v6837_v50  ;;  %v2388_v55 = vsel %vm15902_vm14, %v6837_v50, %v6842_v10  ;;  %v15895_v62 = vunpack.i.h.bf16 %v11239_v32  ;;  %v11550_v9 = vpop.permute.xlu1 %6935  ;;  %v11567_v61 = vpop.permute.xlu0 %6930 }
 0x26d   : > { %2698 = vmatprep.subr.bf16.mxu0 %v2265_v14  ;;  %v2320_v52 = vsel %vm15903_vm9, %v16736_v13, %v6813_v18  ;;  %v2389_v19 = vsel %vm15902_vm14, %v6838_v8, %v6843_v37  ;;  %v6878_v14 = vunpack.i.h.bf16 %v11223_v24  ;;  %v2384_v58 = vsel %vm15902_vm14, %v6847_v51, %v15892_v4 }
 0x26e   : > { %v16737_v57 = vunpack.i.h.bf16 %v11140_v35  ;;  %v6877_v48 = vunpack.i.l.bf16 %v11223_v24  ;;  %v15896_v8 = vunpack.i.l.bf16 %v11239_v32  ;;  %v6883_v50 = vunpack.i.h.bf16 %v11305_v56 }
 0x26f   : > { %2740 = vmatpush1.bf16.msra.mxu1 %v2201_v49  ;;  %v6882_v49 = vunpack.i.l.bf16 %v11305_v56  ;;  %v16738_v17 = vpack.c.bf16 %v11356_v40, %v11362_v15  ;;  %v2387_v13 = vsel %vm15902_vm14, %v6843_v37, %v6848_v28  ;;  %v2332_v24 = vpack.c.bf16 %v2320_v52, %v2319_v3 }
 0x270   : > { %v2385_v30 = vsel %vm15902_vm14, %v6848_v28, %v16737_v57  ;;  %2741 = vmatprep.subr.bf16.mxu1 %v2267_v42  ;;  %v15897_v57 = vunpack.i.l.bf16 %v11368_v11  ;;  %v2394_v6 = vpack.c.bf16 %v2391_v0, %v2390_v39  ;;  %v2386_v53 = vsel %vm15902_vm14, %v6842_v10, %v6847_v51  ;;  %v11582_v42 = vpop.permute.xlu1 %6945  ;;  %v11589_v51 = vpop.permute.xlu0 %6940 }
 0x271   : > { %2699 = vmatpush1.bf16.msra.mxu0 %v16738_v17  ;;  %v6893_v56 = vunpack.i.h.bf16 %v11368_v11  ;;  %v2395_v4 = vpack.c.bf16 %v2389_v19, %v2388_v55  ;;  %v2397_v54 = vpack.c.bf16 %v2385_v30, %v2384_v58  ;;  %v2456_v40 = vsel %vm15901_vm7, %v15895_v62, %v6878_v14 }
 0x272   : > { %2700 = vmatprep.subr.bf16.mxu0 %v2330_v45  ;;  %v6887_v15 = vunpack.i.l.bf16 %v11296_v33  ;;  %v6923_v37 = vunpack.i.h.bf16 %v11517_v41  ;;  %v6922_v45 = vunpack.i.l.bf16 %v11517_v41  ;;  %v2455_v10 = vsel %vm15901_vm7, %v15896_v8, %v6877_v48 }
 0x273   : > { %2742 = vmatpush1.bf16.msra.mxu1 %v2266_v27  ;;  %v6888_v28 = vunpack.i.h.bf16 %v11296_v33  ;;  %v2453_v3 = vsel %vm15901_vm7, %v6877_v48, %v6882_v49  ;;  %v2454_v27 = vsel %vm15901_vm7, %v6878_v14, %v6883_v50  ;;  %v6918_v41 = vunpack.i.h.bf16 %v11474_v46 }
 0x274   : > { %2743 = vmatprep.subr.bf16.mxu1 %v2332_v24  ;;  %v6917_v52 = vunpack.i.l.bf16 %v11474_v46  ;;  %v15898_v0 = vunpack.i.h.bf16 %v11487_v1  ;;  %v2449_v33 = vsel %vm15901_vm7, %v6887_v15, %v15897_v57  ;;  %v6933_v39 = vunpack.i.h.bf16 %v11567_v61  ;;  %v6956_v46 = vpop.permute.xlu1 %6955 }
 0x275   : > { %2701 = vmatpush1.bf16.msra.mxu0 %v2329_v44  ;;  %v6912_v44 = vunpack.i.l.bf16 %v11487_v1  ;;  %v6932_v55 = vunpack.i.l.bf16 %v11567_v61  ;;  %v2450_v19 = vsel %vm15901_vm7, %v6888_v28, %v6893_v56  ;;  %v2460_v14 = vpack.c.bf16 %v2454_v27, %v2453_v3  ;;  %v11624_v3 = vpop.permute.xlu0 %6950 }
 0x276   : > { %2702 = vmatprep.subr.bf16.mxu0 %v2395_v4  ;;  %v2518_v4 = vsel %vm15900_vm13, %v6917_v52, %v6922_v45  ;;  %v2519_v58 = vsel %vm15900_vm13, %v6918_v41, %v6923_v37  ;;  %v16739_v30 = vunpack.i.l.bf16 %v10224_v20  ;;  %v16740_v48 = vunpack.i.l.bf16 %v16720_v29 }
 0x277   : > { %2744 = vmatpush1.bf16.msra.mxu1 %v2331_v38  ;;  %v6928_v24 = vunpack.i.h.bf16 %v11509_v36  ;;  %v6927_v38 = vunpack.i.l.bf16 %v11509_v36  ;;  %v2459_v27 = vpack.c.bf16 %v2456_v40, %v2455_v10  ;;  %v2396_v62 = vpack.c.bf16 %v2387_v13, %v2386_v53  ;;  %v16741_v10 = vld [vmem:[#allocation79_spill] sm:$0xff] }
 0x278   : > { %v11620_v17 = vsel %vm15906_vm11, %v16740_v48, %v16739_v30  ;;  %2745 = vmatprep.subr.bf16.mxu1 %v2397_v54  ;;  %v2452_v8 = vsel %vm15901_vm7, %v6883_v50, %v6888_v28  ;;  %v2451_v57 = vsel %vm15901_vm7, %v6882_v49, %v6887_v15  ;;  %v2521_v30 = vsel %vm15900_vm13, %v15898_v0, %v6918_v41  ;;  %v6966_v15 = vpop.permute.xlu1 %6965 }
 0x279   : > { %2703 = vmatpush1.bf16.msra.mxu0 %v2394_v6  ;;  %v2462_v48 = vpack.c.bf16 %v2450_v19, %v2449_v33  ;;  %v2520_v54 = vsel %vm15900_vm13, %v6912_v44, %v6917_v52  ;;  %v2525_v6 = vpack.c.bf16 %v2519_v58, %v2518_v4  ;;  %v2514_v53 = vsel %vm15900_vm13, %v6927_v38, %v6932_v55  ;;  %v6961_v41 = vpop.permute.xlu0 %6960 }
 0x27a   : > { %2704 = vmatprep.subr.bf16.mxu0 %v2460_v14  ;;  %v2515_v36 = vsel %vm15900_vm13, %v6928_v24, %v6933_v39  ;;  %v6958_v50 = vunpack.i.h.bf16 %v6956_v46  ;;  %v6957_v49 = vunpack.i.l.bf16 %v6956_v46  ;;  %v6953_v13 = vunpack.i.h.bf16 %v11624_v3 }
 0x27b   : > { %v6952_v40 = vunpack.i.l.bf16 %v11624_v3  ;;  %2746 = vmatpush1.bf16.msra.mxu1 %v2396_v62  ;;  %v6738_v28 = vunpack.i.h.bf16 %v16741_v10  ;;  %v2461_v52 = vpack.c.bf16 %v2452_v8, %v2451_v57  ;;  %v16742_v33 = vunpack.i.l.bf16 %v16673_v60  ;;  %v360_v3 = vld [vmem:[%s15597_s7] sm:$0xff] }
 0x27c   : > { %2747 = vmatprep.subr.bf16.mxu1 %v2462_v48  ;;  %v16743_v46 = vunpack.i.h.bf16 %v16727_v63  ;;  %v16744_v14 = vunpack.i.h.bf16 %v16673_v60  ;;  %v2517_v4 = vsel %vm15900_vm13, %v6923_v37, %v6928_v24  ;;  %v6963_v8 = vunpack.i.h.bf16 %v6961_v41 }
 0x27d   : > { %2705 = vmatpush1.bf16.msra.mxu0 %v2459_v27  ;;  %v11655_v19 = vsel %vm15906_vm11, %v16742_v33, %v6702_v59  ;;  %v6962_v57 = vunpack.i.l.bf16 %v6961_v41  ;;  %v2524_v58 = vpack.c.bf16 %v2521_v30, %v2520_v54  ;;  %v2516_v27 = vsel %vm15900_vm13, %v6922_v45, %v6927_v38  ;;  %v16745_v30 = vld [vmem:[#allocation85_spill] sm:$0xff] }
 0x27e   : > { %v11663_v62 = vsel %vm15906_vm11, %v16744_v14, %v16743_v46  ;;  %2706 = vmatprep.subr.bf16.mxu0 %v2525_v6  ;;  %v6968_v48 = vunpack.i.h.bf16 %v6966_v15  ;;  %v6967_v33 = vunpack.i.l.bf16 %v6966_v15  ;;  %v2527_v0 = vpack.c.bf16 %v2515_v36, %v2514_v53  ;;  %v11684_v53 = vpop.permute.xlu0 %6970  ;;  %v16746_v15 = vld [vmem:[#allocation84_spill] sm:$0xff] }
 0x27f   : > { %v2586_v60 = vsel %vm15899_vm6, %v6953_v13, %v6958_v50  ;;  %v2585_v37 = vsel %vm15899_vm6, %v6952_v40, %v6957_v49  ;;  %2748 = vmatpush1.bf16.msra.mxu1 %v2461_v52  ;;  %v2583_v24 = vsel %vm15899_vm6, %v6957_v49, %v6962_v57  ;;  %v2584_v45 = vsel %vm15899_vm6, %v6958_v50, %v6963_v8 }
 0x280   : > { %v6737_v38 = vunpack.i.l.bf16 %v16741_v10  ;;  %v6748_v54 = vunpack.i.h.bf16 %v16745_v30  ;;  %v6747_v6 = vunpack.i.l.bf16 %v16745_v30  ;;  %2749 = vmatprep.subr.bf16.mxu1 %v2527_v0  ;;  %v2590_v36 = vpack.c.bf16 %v2584_v45, %v2583_v24 }
 0x281   : > { %2707 = vmatpush1.bf16.msra.mxu0 %v2524_v58  ;;  %v6743_v41 = vunpack.i.h.bf16 %v16746_v15  ;;  %v6973_v52 = vunpack.i.h.bf16 %v11684_v53  ;;  %v6972_v49 = vunpack.i.l.bf16 %v11684_v53  ;;  %v2526_v46 = vpack.c.bf16 %v2517_v4, %v2516_v27  ;;  %v11705_v4 = vld [vmem:[%s15591_s1 + $0x20] ss:$8 sps:$4 sm:$0xff]  }
 0x282   : > { %v6742_v50 = vunpack.i.l.bf16 %v16746_v15  ;;  %v2582_v10 = vsel %vm15899_vm6, %v6963_v8, %v6968_v48  ;;  %v2581_v14 = vsel %vm15899_vm6, %v6962_v57, %v6967_v33  ;;  %2708 = vmatprep.subr.bf16.mxu0 %v2590_v36  ;;  %v2589_v58 = vpack.c.bf16 %v2586_v60, %v2585_v37 }
 0x283   : > { %v16747_v0 = vunpack.i.h.bf16 %v16720_v29  ;;  %v16748_v24 = vunpack.i.h.bf16 %v16727_v63  ;;  %2750 = vmatpush1.bf16.msra.mxu1 %v2526_v46  ;;  %v2579_v8 = vsel %vm15899_vm6, %v6967_v33, %v6972_v49  ;;  %v2580_v57 = vsel %vm15899_vm6, %v6968_v48, %v6973_v52 }
 0x284   : > { %v16749_v27 = vunpack.i.h.bf16 %v10224_v20  ;;  %v16751_v30 = vunpack.i.l.bf16 %v16720_v29  ;;  %v16752_v33 = vunpack.i.h.bf16 %v16686_v43  ;;  %v2592_v20 = vpack.c.bf16 %v2580_v57, %v2579_v8 }
 0x285   : > { %v11700_v45 = vsel %vm15906_vm11, %v16748_v24, %v16747_v0  ;;  %v16750_v60 = vmov %v16747_v0  ;;  %2709 = vmatpush1.bf16.msra.mxu0 %v2589_v58  ;;  %v2139_v48 = vpack.c.bf16 %v11663_v62, %v11655_v19  ;;  %v16753_v46 = vunpack.i.l.bf16 %v16686_v43  ;;  %v16757_v62 = vld [vmem:[#allocation105_spill] sm:$0xff] }
 0x286   : > { %v2133_v37 = vsel %vm15906_vm11, %v16750_v60, %v16749_v27  ;;  %v2118_v36 = vsel %vm15906_vm11, %v6702_v59, %v16751_v30  ;;  %v11731_v15 = vsel %vm15905_vm15, %v16752_v33, %v6738_v28  ;;  %v16754_v63 = vpack.c.bf16 %v11131_v21, %v11127_v25  ;;  %2751 = vmatprep.subr.bf16.mxu1 %v2592_v20  ;;  %v16759_v30 = vld [vmem:[#allocation120_spill] sm:$0xff] }
 0x287   : > { %v2187_v29 = vsel %vm15905_vm15, %v16753_v46, %v6737_v38  ;;  %v2591_v59 = vpack.c.bf16 %v2582_v10, %v2581_v14  ;;  %v16755_v0 = vunpack.i.l.bf16 %v16677_v5  ;;  %v16756_v58 = vunpack.i.h.bf16 %v16677_v5  ;;  %v16758_v10 = vld [vmem:[#allocation18_spill] sm:$0xff]  ;;  %v16761_v20 = vld [vmem:[#allocation108_spill] sm:$0xff] }
 0x288   : > { %2778 = vmatprep.subr.bf16.mxu0 %v16754_v63  ;;  %v6778_v43 = vunpack.i.h.bf16 %v16757_v62  ;;  %v6777_v8 = vunpack.i.l.bf16 %v16757_v62  ;;  %v2185_v25 = vsel %vm15905_vm15, %v6737_v38, %v6742_v50  ;;  %v2186_v21 = vsel %vm15905_vm15, %v6738_v28, %v6743_v41  ;;  %2725 = vmatmul.mubr.bf16.vlgmr.msra.gmra.mrb[0].mxu0 %v11705_v4 }
 0x289   : > { %v2197_v24 = vsel %vm15905_vm15, %v6747_v6, %v16755_v0  ;;  %v2198_v19 = vsel %vm15905_vm15, %v6748_v54, %v16756_v58  ;;  %v6783_v14 = vunpack.i.h.bf16 %v16758_v10  ;;  %v6782_v57 = vunpack.i.l.bf16 %v16758_v10  ;;  %2752 = vmatpush1.bf16.msra.mxu1 %v2591_v59  ;;  %5743 = vmatprep.mubr.msk.bf16.mxu0 %vm1660_vm0, %v11395_v47  ;;  %v16768_v59 = vld [vmem:[#allocation100_spill] sm:$0xff]  ;;  %v16770_v58 = vld [vmem:[#allocation114_spill] sm:$0xff] }
 0x28a   : > { %v2141_v5 = vpack.c.bf16 %v2133_v37, %v11620_v17  ;;  %v2140_v27 = vpack.c.bf16 %v11700_v45, %v2118_v36  ;;  %v2184_v60 = vsel %vm15905_vm15, %v6743_v41, %v6748_v54  ;;  %v6788_v33 = vunpack.i.h.bf16 %v16759_v30  ;;  %v16765_v37 = vld [vmem:[#allocation73_spill] sm:$0xff] }
 0x28b   : > { %v6787_v38 = vunpack.i.l.bf16 %v16759_v30  ;;  %v16760_v28 = vpack.c.bf16 %v11113_v31, %v11117_v23  ;;  %v16762_v46 = vpack.c.bf16 %v11168_v2, %v16761_v20  ;;  %v2203_v63 = vpack.c.bf16 %v11731_v15, %v2187_v29  ;;  %v16767_v29 = vld [vmem:[#allocation109_spill] sm:$0xff]  ;;  %v16776_v20 = vld [vmem:[#allocation71_spill] sm:$0xff] }
 0x28c   : > { %v2183_v17 = vsel %vm15905_vm15, %v6742_v50, %v6747_v6  ;;  %v2204_v45 = vpack.c.bf16 %v2186_v21, %v2185_v25  ;;  %v2206_v54 = vpack.c.bf16 %v2198_v19, %v2197_v24  ;;  %v16763_v41 = vunpack.i.h.bf16 %v16710_v12  ;;  %2768 = vmatmul.mubr.bf16.vlgmr.msra.gmra.mrb[0].mxu1 %v11705_v4  ;;  %v16766_v50 = vld [vmem:[#allocation27_spill] sm:$0xff]  ;;  %v16771_v19 = vld [vmem:[#allocation28_spill] sm:$0xff] }
 0x28d   : > { %2779 = vmatpush1.bf16.msra.mxu0 %v16760_v28  ;;  %2821 = vmatprep.subr.bf16.mxu1 %v16762_v46  ;;  %v16764_v23 = vunpack.i.l.bf16 %v16710_v12  ;;  %v6818_v36 = vunpack.i.h.bf16 %v16765_v37  ;;  %v6817_v6 = vunpack.i.l.bf16 %v16765_v37  ;;  %v6823_v15 = vunpack.i.h.bf16 %v16766_v50  ;;  %v16773_v21 = vld [vmem:[#allocation87_spill] sm:$0xff] }
 0x28e   : > { %2780 = vmatprep.subr.bf16.mxu0 %v2139_v48  ;;  %v2253_v31 = vsel %vm15904_vm12, %v16763_v41, %v6778_v43  ;;  %v6822_v48 = vunpack.i.l.bf16 %v16766_v50  ;;  %v16769_v0 = vpack.c.bf16 %v16767_v29, %v16768_v59  ;;  %v2250_v12 = vsel %vm15904_vm12, %v6777_v8, %v6782_v57  ;;  %5744 = vmatprep.mubr.msk.bf16.mxu1 %vm1660_vm0, %v11395_v47  ;;  %v16779_v50 = vld [vmem:[#allocation115_spill] sm:$0xff] }
 0x28f   : > { %v2252_v2 = vsel %vm15904_vm12, %v16764_v23, %v6777_v8  ;;  %v2251_v24 = vsel %vm15904_vm12, %v6778_v43, %v6783_v14  ;;  %v16772_v62 = vpack.c.bf16 %v16770_v58, %v16771_v19  ;;  %v2205_v25 = vpack.c.bf16 %v2184_v60, %v2183_v17 }
 0x290   : > { %2822 = vmatpush1.bf16.msra.mxu1 %v16769_v0  ;;  %v16774_v10 = vunpack.i.l.bf16 %v16773_v21  ;;  %v16775_v28 = vunpack.i.h.bf16 %v16773_v21  ;;  %v2249_v43 = vsel %vm15904_vm12, %v6783_v14, %v6788_v33  ;;  %v2248_v47 = vsel %vm15904_vm12, %v6782_v57, %v6787_v38  ;;  %v16785_v21 = vld [vmem:[#allocation29_spill] sm:$0xff] }
 0x291   : > { %2781 = vmatpush1.bf16.msra.mxu0 %v16772_v62  ;;  %2823 = vmatprep.subr.bf16.mxu1 %v2141_v5  ;;  %v6828_v46 = vunpack.i.h.bf16 %v16776_v20  ;;  %v6827_v5 = vunpack.i.l.bf16 %v16776_v20  ;;  %v2318_v60 = vsel %vm15903_vm9, %v6813_v18, %v6818_v36  ;;  %v16777_v17 = vunpack.i.l.bf16 %v16730_v26 }
 0x292   : > { %v2262_v30 = vsel %vm15904_vm12, %v6787_v38, %v16774_v10  ;;  %v2263_v8 = vsel %vm15904_vm12, %v6788_v33, %v16775_v28  ;;  %2782 = vmatprep.subr.bf16.mxu0 %v2204_v45  ;;  %v2269_v23 = vpack.c.bf16 %v2251_v24, %v2250_v12  ;;  %v2268_v14 = vpack.c.bf16 %v2253_v31, %v2252_v2  ;;  %v16778_v33 = vld [vmem:[#allocation30_spill] sm:$0xff] }
 0x293   : > { %v2317_v41 = vsel %vm15903_vm9, %v16777_v17, %v6817_v6  ;;  %v6858_v37 = vunpack.i.h.bf16 %v16778_v33  ;;  %v6857_v57 = vunpack.i.l.bf16 %v16778_v33  ;;  %v2315_v38 = vsel %vm15903_vm9, %v6817_v6, %v6822_v48 }
 0x294   : > { %2824 = vmatpush1.bf16.msra.mxu1 %v2140_v27  ;;  %v2316_v45 = vsel %vm15903_vm9, %v6818_v36, %v6823_v15  ;;  %v6863_v18 = vunpack.i.h.bf16 %v16779_v50  ;;  %v6862_v26 = vunpack.i.l.bf16 %v16779_v50  ;;  %v2271_v29 = vpack.c.bf16 %v2263_v8, %v2262_v30  ;;  %v6981_v50 = vpop.permute.xlu0 %6980 }
 0x295   : > { %2783 = vmatpush1.bf16.msra.mxu0 %v2203_v63  ;;  %2825 = vmatprep.subr.bf16.mxu1 %v2206_v54  ;;  %v2270_v59 = vpack.c.bf16 %v2249_v43, %v2248_v47  ;;  %v2314_v31 = vsel %vm15903_vm9, %v6823_v15, %v6828_v46  ;;  %v2333_v2 = vpack.c.bf16 %v2318_v60, %v2317_v41  ;;  %v16780_v27 = vunpack.i.l.bf16 %v16712_v7  ;;  %v16782_v54 = vld [vmem:[#allocation99_spill] sm:$0xff]  ;;  %v16786_v43 = vld [vmem:[#allocation97_spill] sm:$0xff]  ;;  %v11865_v60 = vpop.permute.xlu1 %6975 }
 0x296   : > { %2784 = vmatprep.subr.bf16.mxu0 %v2269_v23  ;;  %v16781_v36 = vunpack.i.h.bf16 %v16712_v7  ;;  %v2313_v63 = vsel %vm15903_vm9, %v6822_v48, %v6827_v5  ;;  %v6868_v12 = vunpack.i.h.bf16 %v16782_v54  ;;  %v6867_v24 = vunpack.i.l.bf16 %v16782_v54 }
 0x297   : > { %v2327_v6 = vsel %vm15903_vm9, %v6827_v5, %v16780_v27  ;;  %v2334_v15 = vpack.c.bf16 %v2316_v45, %v2315_v38  ;;  %v16783_v58 = vunpack.i.h.bf16 %v11140_v35  ;;  %v16784_v62 = vunpack.i.l.bf16 %v11140_v35 }
 0x298   : > { %v2328_v0 = vsel %vm15903_vm9, %v6828_v46, %v16781_v36  ;;  %v6898_v10 = vunpack.i.h.bf16 %v16785_v21  ;;  %v6897_v30 = vunpack.i.l.bf16 %v16785_v21  ;;  %2826 = vmatpush1.bf16.msra.mxu1 %v2205_v25  ;;  %v6903_v48 = vunpack.i.h.bf16 %v11417_v34 }
 0x299   : > { %v2383_v19 = vsel %vm15902_vm14, %v16783_v58, %v6858_v37  ;;  %v2382_v7 = vsel %vm15902_vm14, %v16784_v62, %v6857_v57  ;;  %v6902_v28 = vunpack.i.l.bf16 %v11417_v34  ;;  %2785 = vmatpush1.bf16.msra.mxu0 %v2268_v14  ;;  %2827 = vmatprep.subr.bf16.mxu1 %v2271_v29  ;;  %v2380_v8 = vsel %vm15902_vm14, %v6857_v57, %v6862_v26 }
 0x29a   : > { %v2381_v35 = vsel %vm15902_vm14, %v6858_v37, %v6863_v18  ;;  %v6908_v47 = vunpack.i.h.bf16 %v16786_v43  ;;  %v6907_v20 = vunpack.i.l.bf16 %v16786_v43  ;;  %2786 = vmatprep.subr.bf16.mxu0 %v2334_v15  ;;  %v2336_v46 = vpack.c.bf16 %v2328_v0, %v2327_v6 }
 0x29b   : > { %v2335_v5 = vpack.c.bf16 %v2314_v31, %v2313_v63  ;;  %v2379_v25 = vsel %vm15902_vm14, %v6863_v18, %v6868_v12  ;;  %v2398_v34 = vpack.c.bf16 %v2383_v19, %v2382_v7  ;;  %v16787_v17 = vunpack.i.l.bf16 %v16732_v22 }
 0x29c   : > { %v16788_v23 = vunpack.i.h.bf16 %v16732_v22  ;;  %v2378_v33 = vsel %vm15902_vm14, %v6862_v26, %v6867_v24  ;;  %v2448_v37 = vsel %vm15901_vm7, %v6893_v56, %v6898_v10  ;;  %v16789_v57 = vunpack.i.l.bf16 %v11368_v11  ;;  %2828 = vmatpush1.bf16.msra.mxu1 %v2270_v59 }
 0x29d   : > { %v2392_v41 = vsel %vm15902_vm14, %v6867_v24, %v16787_v17  ;;  %v2399_v45 = vpack.c.bf16 %v2381_v35, %v2380_v8  ;;  %v6943_v22 = vunpack.i.h.bf16 %v11589_v51  ;;  %v6942_v18 = vunpack.i.l.bf16 %v11589_v51  ;;  %2787 = vmatpush1.bf16.msra.mxu0 %v2333_v2  ;;  %2829 = vmatprep.subr.bf16.mxu1 %v2336_v46 }
 0x29e   : > { %v2393_v14 = vsel %vm15902_vm14, %v6868_v12, %v16788_v23  ;;  %v2447_v38 = vsel %vm15901_vm7, %v16789_v57, %v6897_v30  ;;  %v2445_v26 = vsel %vm15901_vm7, %v6897_v30, %v6902_v28  ;;  %v2446_v56 = vsel %vm15901_vm7, %v6898_v10, %v6903_v48 }
 0x29f   : > { %v6938_v11 = vunpack.i.h.bf16 %v11550_v9  ;;  %2788 = vmatprep.subr.bf16.mxu0 %v2399_v45  ;;  %v2401_v29 = vpack.c.bf16 %v2393_v14, %v2392_v41  ;;  %v16790_v59 = vunpack.i.l.bf16 %v11239_v32  ;;  %v16791_v27 = vunpack.i.h.bf16 %v11239_v32  ;;  %v6986_v32 = vpop.permute.xlu1 %6985 }
 0x2a0   : > { %v6937_v2 = vunpack.i.l.bf16 %v11550_v9  ;;  %v6947_v6 = vunpack.i.l.bf16 %v11582_v42  ;;  %v6983_v36 = vunpack.i.h.bf16 %v6981_v50  ;;  %v6982_v0 = vunpack.i.l.bf16 %v6981_v50  ;;  %2830 = vmatpush1.bf16.msra.mxu1 %v2335_v5 }
 0x2a1   : > { %v2457_v31 = vsel %vm15901_vm7, %v6907_v20, %v16790_v59  ;;  %v2458_v51 = vsel %vm15901_vm7, %v6908_v47, %v16791_v27  ;;  %v6948_v63 = vunpack.i.h.bf16 %v11582_v42  ;;  %v2464_v54 = vpack.c.bf16 %v2446_v56, %v2445_v26  ;;  %2789 = vmatpush1.bf16.msra.mxu0 %v2398_v34  ;;  %2831 = vmatprep.subr.bf16.mxu1 %v2401_v29 }
 0x2a2   : > { %v2463_v12 = vpack.c.bf16 %v2448_v37, %v2447_v38  ;;  %v2400_v24 = vpack.c.bf16 %v2379_v25, %v2378_v33  ;;  %v6978_v15 = vunpack.i.h.bf16 %v11865_v60  ;;  %v6977_v58 = vunpack.i.l.bf16 %v11865_v60 }
 0x2a3   : > { %v2510_v9 = vsel %vm15900_vm13, %v6937_v2, %v6942_v18  ;;  %v2511_v19 = vsel %vm15900_vm13, %v6938_v11, %v6943_v22  ;;  %v2444_v42 = vsel %vm15901_vm7, %v6903_v48, %v6908_v47  ;;  %v2443_v62 = vsel %vm15901_vm7, %v6902_v28, %v6907_v20  ;;  %2790 = vmatprep.subr.bf16.mxu0 %v2464_v54 }
 0x2a4   : > { %v2513_v7 = vsel %vm15900_vm13, %v6933_v39, %v6938_v11  ;;  %v2466_v21 = vpack.c.bf16 %v2458_v51, %v2457_v31  ;;  %v2512_v10 = vsel %vm15900_vm13, %v6932_v55, %v6937_v2  ;;  %v2522_v30 = vsel %vm15900_vm13, %v6947_v6, %v6912_v44  ;;  %2832 = vmatpush1.bf16.msra.mxu1 %v2400_v24  ;;  %v11972_v26 = vpop.permute.xlu1 %2889 }
 0x2a5   : > { %v2575_v48 = vsel %vm15899_vm6, %v6977_v58, %v6982_v0  ;;  %v2576_v28 = vsel %vm15899_vm6, %v6978_v15, %v6983_v36  ;;  %v6988_v8 = vunpack.i.h.bf16 %v6986_v32  ;;  %v6987_v39 = vunpack.i.l.bf16 %v6986_v32  ;;  %2791 = vmatpush1.bf16.msra.mxu0 %v2463_v12  ;;  %v11974_v31 = vpop.permute.xlu0 %2884 }
 0x2a6   : > { %v2529_v35 = vpack.c.bf16 %v2511_v19, %v2510_v9  ;;  %v16792_v61 = vunpack.i.h.bf16 %v11487_v1  ;;  %2833 = vmatprep.subr.bf16.mxu1 %v2466_v21  ;;  %v2465_v43 = vpack.c.bf16 %v2444_v42, %v2443_v62  ;;  %v2594_v44 = vpack.c.bf16 %v2576_v28, %v2575_v48 }
 0x2a7   : > { %v2509_v47 = vsel %vm15900_vm13, %v6943_v22, %v6948_v63  ;;  %v2508_v20 = vsel %vm15900_vm13, %v6942_v18, %v6947_v6  ;;  %v2528_v46 = vpack.c.bf16 %v2513_v7, %v2512_v10  ;;  %v2578_v1 = vsel %vm15899_vm6, %v6973_v52, %v6978_v15 }
 0x2a8   : > { %v2523_v55 = vsel %vm15900_vm13, %v6948_v63, %v16792_v61  ;;  %2792 = vmatprep.subr.bf16.mxu0 %v2529_v35  ;;  %v2577_v25 = vsel %vm15899_vm6, %v6972_v49, %v6977_v58  ;;  %2834 = vmatpush1.bf16.msra.mxu1 %v2465_v43  ;;  %v2587_v60 = vsel %vm15899_vm6, %v6987_v39, %v6952_v40  ;;  %v16794_v33 = vmov 0   ;;  %v11980_v6 = vpop.permute.xlu1 %2912 }
 0x2a9   : > { %v2531_v5 = vpack.c.bf16 %v2523_v55, %v2522_v30  ;;  %v2588_v34 = vsel %vm15899_vm6, %v6988_v8, %v6953_v13  ;;  %v2574_v17 = vsel %vm15899_vm6, %v6983_v36, %v6988_v8  ;;  %v2573_v53 = vsel %vm15899_vm6, %v6982_v0, %v6987_v39  ;;  %2793 = vmatpush1.bf16.msra.mxu0 %v2528_v46 }
 0x2aa   : > { %2794 = vmatprep.subr.bf16.mxu0 %v2594_v44  ;;  %v2530_v52 = vpack.c.bf16 %v2509_v47, %v2508_v20  ;;  %v2593_v49 = vpack.c.bf16 %v2578_v1, %v2577_v25  ;;  %v2596_v41 = vpack.c.bf16 %v2588_v34, %v2587_v60  ;;  %v2595_v23 = vpack.c.bf16 %v2574_v17, %v2573_v53 }
 0x2ab   : > { %2835 = vmatprep.subr.bf16.mxu1 %v2531_v5  ;;  %vm361_vm6 = vcmp.ne.f32.partialorder %v360_v3, 0.0  ;;  %v16793_v13 = vlaneseq  ;;  %v11992_v19 = vpop.permute.xlu0 %2917 }
 0x2ac   : > { %2836 = vmatpush1.bf16.msra.mxu1 %v2530_v52  ;;  %v2952_v37 = vsel %vm361_vm6, 1, %v16794_v33 }
 0x2ad   : > { %2795 = vmatpush1.bf16.msra.mxu0 %v2593_v49  ;;  %2837 = vmatprep.subr.bf16.mxu1 %v2596_v41  ;;  %v2954_v40 = vshrl.u32 %v16793_v13, 7 }
 0x2af   : > { %v2971_v14 = vsub.s32 4, %v2954_v40  ;;  %v2975_v38 = vsub.s32 5, %v2954_v40  ;;  %v2979_v50 = vsub.s32 6, %v2954_v40  ;;  %v2983_v22 = vsub.s32 7, %v2954_v40 }
 0x2b0   : > { %2811 = vmatmul.mubr.bf16.vlgmr.msra.gmra.mrb[4].mxu0 %v11705_v4  ;;  %2838 = vmatpush1.bf16.msra.mxu1 %v2595_v23  ;;  %v2959_v56 = vsub.s32 1, %v2954_v40  ;;  %v2955_v11 = vsub.s32 0, %v2954_v40  ;;  %v2963_v29 = vsub.s32 2, %v2954_v40  ;;  %v2967_v59 = vsub.s32 3, %v2954_v40 }
 0x2b1   : > { %v11964_v57 = vrot.slane %v2952_v37, %v2971_v14  ;;  %v11966_v45 = vrot.slane %v2952_v37, %v2975_v38  ;;  %v11968_v18 = vrot.slane %v2952_v37, %v2979_v50 }
 0x2b2   : > { %v11976_v27 = vrot.slane %v2952_v37, %v2959_v56  ;;  %v11978_v51 = vrot.slane %v2952_v37, %v2955_v11  ;;  %v11982_v36 = vrot.slane %v2952_v37, %v2963_v29  ;;  %v11985_v54 = vrot.slane %v2952_v37, %v2967_v59 }
 0x2b3   : > { %2854 = vmatmul.mubr.bf16.vlgmr.msra.gmra.mrb[4].mxu1 %v11705_v4  ;;  %16795 = vst [vmem:[#allocation98_spill] sm:$0xff] %v11964_v57  ;;  %16796 = vst [vmem:[#allocation125_spill] sm:$0xff] %v11966_v45  ;;  %v11970_v4 = vrot.slane %v2952_v37, %v2983_v22  ;;  %vm2989_vm9 = vcmp.eq.s32.totalorder %v11964_v57, 1  ;;  %vm2990_vm12 = vcmp.eq.s32.totalorder %v11966_v45, 1  ;;  %vm2991_vm15 = vcmp.eq.s32.totalorder %v11968_v18, 1 }
 0x2b4   : > { %16797 = vst [vmem:[#allocation118_spill] sm:$0xff] %v11968_v18  ;;  %vm2986_vm6 = vcmp.eq.s32.totalorder %v11976_v27, 1  ;;  %vm2985_vm13 = vcmp.eq.s32.totalorder %v11978_v51, 1  ;;  %vm2987_vm7 = vcmp.eq.s32.totalorder %v11982_v36, 1  ;;  %vm2988_vm14 = vcmp.eq.s32.totalorder %v11985_v54, 1 }
 0x2b5   : > { %16798 = vst [vmem:[#allocation117_spill] sm:$0xff] %v11970_v4  ;;  %vm2992_vm11 = vcmp.eq.s32.totalorder %v11970_v4, 1 }
 0x35b   : > { %v2726_v2 = vpop.f32.mrb[0].mxu0 }
 0x35c   : > { %v2892_v0 = vmul.f32 %v11974_v31, %v2726_v2  ;;  %v2728_v63 = vpop.f32.mrb[1].mxu0 }
 0x35d   : > { %v2893_v12 = vmul.f32 %v11974_v31, %v2728_v63  ;;  %v2730_v24 = vpop.f32.mrb[2].mxu0 }
 0x35e   : > { %v2900_v15 = vmul.f32 %v11972_v26, %v2730_v24  ;;  %v2920_v58 = vadd.f32 %v11980_v6, %v2892_v0  ;;  %v2732_v32 = vpop.f32.mrb[3].mxu0 }
 0x35f   : > { %v2769_v9 = vpop.f32.mrb[0].mxu1  ;;  %v2921_v42 = vadd.f32 %v11980_v6, %v2893_v12  ;;  %v2901_v62 = vmul.f32 %v11972_v26, %v2732_v32 }
 0x360   : > { %v2894_v7 = vmul.f32 %v11974_v31, %v2769_v9  ;;  %v2771_v21 = vpop.f32.mrb[1].mxu1  ;;  %v2928_v10 = vadd.f32 %v11992_v19, %v2900_v15  ;;  %v2936_v30 = vmax.f32 %v2920_v58, 0.0 }
 0x361   : > { %v2895_v48 = vmul.f32 %v11974_v31, %v2771_v21  ;;  %v2773_v28 = vpop.f32.mrb[2].mxu1  ;;  %v2937_v8 = vmax.f32 %v2921_v42, 0.0  ;;  %v2929_v39 = vadd.f32 %v11992_v19, %v2901_v62 }
 0x362   : > { %v2922_v35 = vadd.f32 %v11980_v6, %v2894_v7  ;;  %v2902_v61 = vmul.f32 %v11972_v26, %v2773_v28  ;;  %v2775_v55 = vpop.f32.mrb[3].mxu1  ;;  %v2944_v43 = vmax.f32 %v2928_v10, 0.0  ;;  %v2993_v44 = vsel %vm2985_vm13, %v2936_v30, 0.0 }
 0x363   : > { %v2923_v47 = vadd.f32 %v11980_v6, %v2895_v48  ;;  %v2903_v20 = vmul.f32 %v11972_v26, %v2775_v55  ;;  %v2994_v46 = vsel %vm2986_vm6, %v2937_v8, 0.0  ;;  %v2945_v5 = vmax.f32 %v2929_v39, 0.0 }
 0x364   : > { %v2938_v1 = vmax.f32 %v2922_v35, 0.0  ;;  %v2930_v25 = vadd.f32 %v11992_v19, %v2902_v61  ;;  %v3001_v60 = vsel %vm2985_vm13, %v2944_v43, 0.0  ;;  %v12013_v34 = vpack.c.bf16 %v2944_v43, %v2936_v30 }
 0x365   : > { %v2939_v17 = vmax.f32 %v2923_v47, 0.0  ;;  %v2931_v53 = vadd.f32 %v11992_v19, %v2903_v20  ;;  %v3002_v52 = vsel %vm2986_vm6, %v2945_v5, 0.0  ;;  %v12018_v49 = vpack.c.bf16 %v2945_v5, %v2937_v8 }
 0x366   : > { %v2995_v41 = vsel %vm2987_vm7, %v2938_v1, 0.0  ;;  %v2946_v23 = vmax.f32 %v2930_v25, 0.0  ;;  %v12024_v40 = vpack.i.bf16 %v3001_v60, %v2993_v44  ;;  %v12026_v14 = vpack.i.bf16 %v3002_v52, %v2994_v46 }
 0x367   : > { %v2996_v3 = vsel %vm2988_vm14, %v2939_v17, 0.0  ;;  %v2947_v13 = vmax.f32 %v2931_v53, 0.0 }
 0x368   : > { %v3003_v33 = vsel %vm2987_vm7, %v2946_v23, 0.0  ;;  %v12030_v37 = vpack.c.bf16 %v2946_v23, %v2938_v1  ;;  %6992 = vrot.lane.b32.xlu1 %v12024_v40, %s8212_s11  ;;  %7082 = vrot.lane.b32.xlu0 %v12026_v14, %s8212_s11 }
 0x369   : > { %v3004_v38 = vsel %vm2988_vm14, %v2947_v13, 0.0  ;;  %v12034_v50 = vpack.c.bf16 %v2947_v13, %v2939_v17  ;;  %v12040_v22 = vpack.i.bf16 %v3003_v33, %v2995_v41 }
 0x36a   : > { %v12042_v56 = vpack.i.bf16 %v3004_v38, %v2996_v3 }
 0x36c   : > { %6997 = vrot.lane.b32.xlu1 %v12040_v22, %s8212_s11  ;;  %7087 = vrot.lane.b32.xlu0 %v12042_v56, %s8212_s11 }
 0x370   : > { %7002 = vrot.lane.b32.xlu1 %v12024_v40, %s8213_s13  ;;  %7092 = vrot.lane.b32.xlu0 %v12026_v14, %s8213_s13 }
 0x374   : > { %7007 = vrot.lane.b32.xlu1 %v12040_v22, %s8213_s13  ;;  %7097 = vrot.lane.b32.xlu0 %v12042_v56, %s8213_s13 }
 0x378   : > { %7012 = vrot.lane.b32.xlu1 %v12024_v40, %s8214_s21  ;;  %7102 = vrot.lane.b32.xlu0 %v12026_v14, %s8214_s21 }
 0x37c   : > { %7017 = vrot.lane.b32.xlu1 %v12040_v22, %s8214_s21  ;;  %7107 = vrot.lane.b32.xlu0 %v12042_v56, %s8214_s21 }
 0x380   : > { %7022 = vrot.lane.b32.xlu1 %v12024_v40, %s8215_s18  ;;  %7112 = vrot.lane.b32.xlu0 %v12026_v14, %s8215_s18 }
 0x383   : > { %v2812_v11 = vpop.f32.mrb[4].mxu0 }
 0x384   : > { %v2896_v29 = vmul.f32 %v11974_v31, %v2812_v11  ;;  %v2814_v59 = vpop.f32.mrb[5].mxu0  ;;  %7027 = vrot.lane.b32.xlu1 %v12040_v22, %s8215_s18  ;;  %7117 = vrot.lane.b32.xlu0 %v12042_v56, %s8215_s18 }
 0x385   : > { %v2897_v2 = vmul.f32 %v11974_v31, %v2814_v59  ;;  %v2816_v0 = vpop.f32.mrb[6].mxu0 }
 0x386   : > { %v2924_v63 = vadd.f32 %v11980_v6, %v2896_v29  ;;  %v2904_v12 = vmul.f32 %v11972_v26, %v2816_v0  ;;  %v2818_v24 = vpop.f32.mrb[7].mxu0  ;;  %v2855_v15 = vpop.f32.mrb[4].mxu1 }
 0x387   : > { %v2925_v58 = vadd.f32 %v11980_v6, %v2897_v2  ;;  %v2905_v32 = vmul.f32 %v11972_v26, %v2818_v24  ;;  %v2898_v9 = vmul.f32 %v11974_v31, %v2855_v15  ;;  %v2857_v42 = vpop.f32.mrb[5].mxu1 }
 0x388   : > { %v2940_v62 = vmax.f32 %v2924_v63, 0.0  ;;  %v2932_v7 = vadd.f32 %v11992_v19, %v2904_v12  ;;  %v2899_v21 = vmul.f32 %v11974_v31, %v2857_v42  ;;  %v2859_v10 = vpop.f32.mrb[6].mxu1  ;;  %7032 = vrot.lane.b32.xlu1 %v12024_v40, %s8216_s19  ;;  %7122 = vrot.lane.b32.xlu0 %v12026_v14, %s8216_s19 }
 0x389   : > { %v2941_v30 = vmax.f32 %v2925_v58, 0.0  ;;  %v2933_v48 = vadd.f32 %v11992_v19, %v2905_v32  ;;  %v2926_v28 = vadd.f32 %v11980_v6, %v2898_v9  ;;  %v2906_v8 = vmul.f32 %v11972_v26, %v2859_v10  ;;  %v2861_v39 = vpop.f32.mrb[7].mxu1 }
 0x38a   : > { %v2997_v35 = vsel %vm2989_vm9, %v2940_v62, 0.0  ;;  %v2948_v61 = vmax.f32 %v2932_v7, 0.0  ;;  %v2927_v55 = vadd.f32 %v11980_v6, %v2899_v21  ;;  %v2907_v31 = vmul.f32 %v11972_v26, %v2861_v39 }
 0x38b   : > { %v2998_v43 = vsel %vm2990_vm12, %v2941_v30, 0.0  ;;  %v2949_v44 = vmax.f32 %v2933_v48, 0.0  ;;  %v2942_v47 = vmax.f32 %v2926_v28, 0.0  ;;  %v2934_v20 = vadd.f32 %v11992_v19, %v2906_v8 }
 0x38c   : > { %v3005_v46 = vsel %vm2989_vm9, %v2948_v61, 0.0  ;;  %v12097_v5 = vpack.c.bf16 %v2948_v61, %v2940_v62  ;;  %v2943_v1 = vmax.f32 %v2927_v55, 0.0  ;;  %v2935_v25 = vadd.f32 %v11992_v19, %v2907_v31  ;;  %7037 = vrot.lane.b32.xlu1 %v12040_v22, %s8216_s19  ;;  %7127 = vrot.lane.b32.xlu0 %v12042_v56, %s8216_s19 }
 0x38d   : > { %v3006_v26 = vsel %vm2990_vm12, %v2949_v44, 0.0  ;;  %v12106_v6 = vpack.c.bf16 %v2949_v44, %v2941_v30  ;;  %v2999_v60 = vsel %vm2991_vm15, %v2942_v47, 0.0  ;;  %v2950_v17 = vmax.f32 %v2934_v20, 0.0 }
 0x38e   : > { %16799 = vst [vmem:[#allocation32_spill] sm:$0xff] %v12097_v5  ;;  %v3000_v53 = vsel %vm2992_vm11, %v2943_v1, 0.0  ;;  %v2951_v52 = vmax.f32 %v2935_v25, 0.0  ;;  %v12112_v19 = vpack.i.bf16 %v3005_v46, %v2997_v35  ;;  %v12114_v41 = vpack.i.bf16 %v3006_v26, %v2998_v43 }
 0x38f   : > { %16800 = vst [vmem:[#allocation33_spill] sm:$0xff] %v12106_v6  ;;  %v3007_v23 = vsel %vm2991_vm15, %v2950_v17, 0.0  ;;  %v12118_v3 = vpack.c.bf16 %v2950_v17, %v2942_v47 }
 0x390   : > { %16801 = vst [vmem:[#allocation131_spill] sm:$0xff] %v12114_v41  ;;  %v3008_v13 = vsel %vm2992_vm11, %v2951_v52, 0.0  ;;  %v12122_v33 = vpack.c.bf16 %v2951_v52, %v2943_v1  ;;  %v12128_v38 = vpack.i.bf16 %v3007_v23, %v2999_v60  ;;  %7042 = vrot.lane.b32.xlu1 %v12024_v40, %s8217_s14  ;;  %7132 = vrot.lane.b32.xlu0 %v12026_v14, %s8217_s14 }
 0x391   : > { %16802 = vst [vmem:[#allocation129_spill] sm:$0xff] %v12118_v3  ;;  %v12130_v11 = vpack.i.bf16 %v3008_v13, %v3000_v53 }
 0x392   : > { %16803 = vst [vmem:[#allocation34_spill] sm:$0xff] %v12122_v33  ;;  %16804 = vst [vmem:[#allocation35_spill] sm:$0xff] %v12128_v38 }
 0x393   : > { %16805 = vst [vmem:[#allocation38_spill] sm:$0xff] %v12130_v11 }
 0x394   : > { %7047 = vrot.lane.b32.xlu1 %v12040_v22, %s8217_s14  ;;  %7137 = vrot.lane.b32.xlu0 %v12042_v56, %s8217_s14 }
 0x398   : > { %7052 = vrot.lane.b32.xlu1 %v12024_v40, %s8218_s17  ;;  %7142 = vrot.lane.b32.xlu0 %v12026_v14, %s8218_s17 }
 0x39c   : > { %7057 = vrot.lane.b32.xlu1 %v12040_v22, %s8218_s17  ;;  %7147 = vrot.lane.b32.xlu0 %v12042_v56, %s8218_s17 }
 0x3a0   : > { %7062 = vrot.lane.b32.xlu1 %v12024_v40, %s16806_s26  ;;  %7152 = vrot.lane.b32.xlu0 %v12026_v14, %s16806_s26 }
 0x3a4   : > { %7067 = vrot.lane.b32.xlu1 %v12040_v22, %s16806_s26  ;;  %7157 = vrot.lane.b32.xlu0 %v12042_v56, %s16806_s26 }
 0x3a8   : > { %7072 = vrot.lane.b32.xlu1 %v12024_v40, %s16807_s20  ;;  %7162 = vrot.lane.b32.xlu0 %v12026_v14, %s16807_s20 }
 0x3ac   : > { %7077 = vrot.lane.b32.xlu1 %v12040_v22, %s16807_s20  ;;  %7167 = vrot.lane.b32.xlu0 %v12042_v56, %s16807_s20 }
 0x3b0   : > { %7172 = vrot.lane.b32.xlu1 %v12112_v19, %s8212_s11  ;;  %7262 = vrot.lane.b32.xlu0 %v12114_v41, %s8212_s11 }
 0x3b4   : > { %7177 = vrot.lane.b32.xlu1 %v12128_v38, %s8212_s11  ;;  %7267 = vrot.lane.b32.xlu0 %v12130_v11, %s8212_s11  ;;  %s16816_s11 = smov 11  }
 0x3b8   : > { %7182 = vrot.lane.b32.xlu1 %v12112_v19, %s8213_s13  ;;  %7272 = vrot.lane.b32.xlu0 %v12114_v41, %s8213_s13 }
 0x3bc   : > { %7187 = vrot.lane.b32.xlu1 %v12128_v38, %s8213_s13  ;;  %7277 = vrot.lane.b32.xlu0 %v12130_v11, %s8213_s13  ;;  %s16820_s13 = smov 10  }
 0x3c0   : > { %7192 = vrot.lane.b32.xlu1 %v12112_v19, %s8214_s21  ;;  %7282 = vrot.lane.b32.xlu0 %v12114_v41, %s8214_s21 }
 0x3c4   : > { %7197 = vrot.lane.b32.xlu1 %v12128_v38, %s8214_s21  ;;  %7287 = vrot.lane.b32.xlu0 %v12130_v11, %s8214_s21  ;;  %s16826_s21 = smov 9  }
 0x3c8   : > { %7202 = vrot.lane.b32.xlu1 %v12112_v19, %s8215_s18  ;;  %7292 = vrot.lane.b32.xlu0 %v12114_v41, %s8215_s18 }
 0x3cc   : > { %7207 = vrot.lane.b32.xlu1 %v12128_v38, %s8215_s18  ;;  %7297 = vrot.lane.b32.xlu0 %v12130_v11, %s8215_s18  ;;  %s16831_s18 = smov 1  }
 0x3d0   : > { %7212 = vrot.lane.b32.xlu1 %v12112_v19, %s8216_s19  ;;  %7302 = vrot.lane.b32.xlu0 %v12114_v41, %s8216_s19 }
 0x3d4   : > { %7217 = vrot.lane.b32.xlu1 %v12128_v38, %s8216_s19  ;;  %7307 = vrot.lane.b32.xlu0 %v12130_v11, %s8216_s19  ;;  %s16838_s19 = smov 127  }
 0x3d8   : > { %7222 = vrot.lane.b32.xlu1 %v12112_v19, %s8217_s14  ;;  %7312 = vrot.lane.b32.xlu0 %v12114_v41, %s8217_s14 }
 0x3da   : > { %v12208_v29 = vpop.permute.xlu1 %6992  ;;  %v12210_v59 = vpop.permute.xlu0 %7082 }
 0x3db   : > { %16808 = vst [vmem:[#allocation40_spill] sm:$0xff] %v12208_v29 }
 0x3dc   : > { %7227 = vrot.lane.b32.xlu1 %v12128_v38, %s8217_s14  ;;  %7317 = vrot.lane.b32.xlu0 %v12130_v11, %s8217_s14  ;;  %s16843_s14 = smov 119  }
 0x3de   : > { %v12216_v2 = vpop.permute.xlu1 %6997  ;;  %v12218_v0 = vpop.permute.xlu0 %7087 }
 0x3df   : > { %16809 = vst [vmem:[#allocation41_spill] sm:$0xff] %v12218_v0 }
 0x3e0   : > { %7232 = vrot.lane.b32.xlu1 %v12112_v19, %s8218_s17  ;;  %7322 = vrot.lane.b32.xlu0 %v12114_v41, %s8218_s17 }
 0x3e2   : > { %v12224_v63 = vpop.permute.xlu1 %7002  ;;  %v12226_v12 = vpop.permute.xlu0 %7092 }
 0x3e3   : > { %16810 = vst [vmem:[#allocation116_spill] sm:$0xff] %v12224_v63 }
 0x3e4   : > { %7237 = vrot.lane.b32.xlu1 %v12128_v38, %s8218_s17  ;;  %7327 = vrot.lane.b32.xlu0 %v12130_v11, %s8218_s17  ;;  %s16850_s17 = smov 118  }
 0x3e6   : > { %v12232_v24 = vpop.permute.xlu1 %7007  ;;  %v12234_v15 = vpop.permute.xlu0 %7097 }
 0x3e7   : > { %16811 = vst [vmem:[#allocation119_spill] sm:$0xff] %v12234_v15 }
 0x3e8   : > { %7242 = vrot.lane.b32.xlu1 %v12112_v19, %s16806_s26  ;;  %7332 = vrot.lane.b32.xlu0 %v12114_v41, %s16806_s26 }
 0x3ea   : > { %v12240_v58 = vpop.permute.xlu1 %7012  ;;  %v12242_v32 = vpop.permute.xlu0 %7102 }
 0x3eb   : > { %16812 = vst [vmem:[#allocation135_spill] sm:$0xff] %v12240_v58 }
 0x3ec   : > { %7247 = vrot.lane.b32.xlu1 %v12128_v38, %s16806_s26  ;;  %7337 = vrot.lane.b32.xlu0 %v12130_v11, %s16806_s26  ;;  %s16913_s26 = smov 37  }
 0x3ee   : > { %v12248_v9 = vpop.permute.xlu1 %7017  ;;  %v12250_v42 = vpop.permute.xlu0 %7107 }
 0x3ef   : > { %16813 = vst [vmem:[#allocation134_spill] sm:$0xff] %v12250_v42 }
 0x3f0   : > { %7252 = vrot.lane.b32.xlu1 %v12112_v19, %s16807_s20  ;;  %7342 = vrot.lane.b32.xlu0 %v12114_v41, %s16807_s20 }
 0x3f2   : > { %v12256_v62 = vpop.permute.xlu1 %7022  ;;  %v12258_v7 = vpop.permute.xlu0 %7112 }
 0x3f3   : > { %16814 = vst [vmem:[#allocation31_spill] sm:$0xff] %v12256_v62 }
 0x3f4   : > { %7257 = vrot.lane.b32.xlu1 %v12128_v38, %s16807_s20  ;;  %7347 = vrot.lane.b32.xlu0 %v12130_v11, %s16807_s20  ;;  %s16922_s20 = smov 29  }
 0x3f6   : > { %v12264_v21 = vpop.permute.xlu1 %7027  ;;  %v12266_v10 = vpop.permute.xlu0 %7117 }
 0x3f7   : > { %16815 = vst [vmem:[#allocation132_spill] sm:$0xff] %v12266_v10 }
 0x3f8   : > { %7352 = vrot.lane.b32.xlu1 %v12024_v40, %s16816_s11  ;;  %7357 = vrot.lane.b32.xlu0 %v12026_v14, %s16816_s11 }
 0x3fa   : > { %v12272_v30 = vpop.permute.xlu1 %7032  ;;  %v12274_v48 = vpop.permute.xlu0 %7122 }
 0x3fc   : > { %7362 = vrot.lane.b32.xlu1 %v12040_v22, %s16816_s11  ;;  %7367 = vrot.lane.b32.xlu0 %v12042_v56, %s16816_s11 }
 0x3fe   : > { %v12280_v28 = vpop.permute.xlu1 %7037  ;;  %v12282_v8 = vpop.permute.xlu0 %7127 }
 0x3ff   : > { %16817 = vst [vmem:[#allocation133_spill] sm:$0xff] %v12282_v8  ;;  %v16955_v27 = vunpack.i.h.bf16 %v12282_v8 }
 0x400   : > { %7372 = vrot.lane.b32.xlu1 %v12112_v19, %s16816_s11  ;;  %7377 = vrot.lane.b32.xlu0 %v12114_v41, %s16816_s11 }
 0x402   : > { %v12288_v39 = vpop.permute.xlu1 %7042  ;;  %v12290_v35 = vpop.permute.xlu0 %7132 }
 0x403   : > { %16818 = vst [vmem:[#allocation42_spill] sm:$0xff] %v12288_v39 }
 0x404   : > { %7382 = vrot.lane.b32.xlu1 %v12128_v38, %s16816_s11  ;;  %7387 = vrot.lane.b32.xlu0 %v12130_v11, %s16816_s11  ;;  %s16942_s11 = smov 28  }
 0x406   : > { %v12296_v61 = vpop.permute.xlu1 %7047  ;;  %v12298_v55 = vpop.permute.xlu0 %7137 }
 0x407   : > { %16819 = vst [vmem:[#allocation43_spill] sm:$0xff] %v12298_v55 }
 0x408   : > { %7392 = vrot.lane.b32.xlu1 %v12024_v40, %s16820_s13  ;;  %7397 = vrot.lane.b32.xlu0 %v12026_v14, %s16820_s13 }
 0x40a   : > { %v12304_v31 = vpop.permute.xlu1 %7052  ;;  %v12306_v43 = vpop.permute.xlu0 %7142 }
 0x40b   : > { %16821 = vst [vmem:[#allocation46_spill] sm:$0xff] %v12304_v31 }
 0x40c   : > { %7402 = vrot.lane.b32.xlu1 %v12040_v22, %s16820_s13  ;;  %7407 = vrot.lane.b32.xlu0 %v12042_v56, %s16820_s13 }
 0x40e   : > { %v12312_v44 = vpop.permute.xlu1 %7057  ;;  %v12314_v47 = vpop.permute.xlu0 %7147 }
 0x40f   : > { %16822 = vst [vmem:[#allocation48_spill] sm:$0xff] %v12314_v47 }
 0x410   : > { %7412 = vrot.lane.b32.xlu1 %v12112_v19, %s16820_s13  ;;  %7417 = vrot.lane.b32.xlu0 %v12114_v41, %s16820_s13 }
 0x412   : > { %v12320_v20 = vpop.permute.xlu1 %7062  ;;  %v12322_v46 = vpop.permute.xlu0 %7152 }
 0x413   : > { %16823 = vst [vmem:[#allocation49_spill] sm:$0xff] %v12320_v20 }
 0x414   : > { %7422 = vrot.lane.b32.xlu1 %v12128_v38, %s16820_s13  ;;  %7427 = vrot.lane.b32.xlu0 %v12130_v11, %s16820_s13  ;;  %s16968_s13 = smov 27  }
 0x416   : > { %v12328_v1 = vpop.permute.xlu1 %7067  ;;  %v12330_v25 = vpop.permute.xlu0 %7157 }
 0x417   : > { %16824 = vst [vmem:[#allocation50_spill] sm:$0xff] %v12328_v1  ;;  %16825 = vst [vmem:[#allocation51_spill] sm:$0xff] %v12330_v25 }
 0x418   : > { %7432 = vrot.lane.b32.xlu1 %v12024_v40, %s16826_s21  ;;  %7437 = vrot.lane.b32.xlu0 %v12026_v14, %s16826_s21 }
 0x41a   : > { %v12336_v26 = vpop.permute.xlu1 %7072  ;;  %v12338_v60 = vpop.permute.xlu0 %7162 }
 0x41b   : > { %16827 = vst [vmem:[#allocation54_spill] sm:$0xff] %v12336_v26  ;;  %16828 = vst [vmem:[#allocation37_spill] sm:$0xff] %v12338_v60 }
 0x41c   : > { %7442 = vrot.lane.b32.xlu1 %v12040_v22, %s16826_s21  ;;  %7447 = vrot.lane.b32.xlu0 %v12042_v56, %s16826_s21 }
 0x41e   : > { %v12344_v17 = vpop.permute.xlu1 %7077  ;;  %v12346_v53 = vpop.permute.xlu0 %7167 }
 0x41f   : > { %16829 = vst [vmem:[#allocation36_spill] sm:$0xff] %v12344_v17  ;;  %16830 = vst [vmem:[#allocation39_spill] sm:$0xff] %v12346_v53 }
 0x420   : > { %7452 = vrot.lane.b32.xlu1 %v12130_v11, %s16826_s21  ;;  %7457 = vrot.lane.b32.xlu0 %v12024_v40, %s16831_s18 }
 0x422   : > { %v12352_v52 = vpop.permute.xlu1 %7172  ;;  %v12354_v23 = vpop.permute.xlu0 %7262 }
 0x423   : > { %16832 = vst [vmem:[#allocation45_spill] sm:$0xff] %v12352_v52  ;;  %16833 = vst [vmem:[#allocation44_spill] sm:$0xff] %v12354_v23 }
 0x424   : > { %7462 = vrot.lane.b32.xlu1 %v12026_v14, %s16831_s18  ;;  %7467 = vrot.lane.b32.xlu0 %v12040_v22, %s16831_s18 }
 0x426   : > { %v12360_v13 = vpop.permute.xlu1 %7177  ;;  %v12362_v3 = vpop.permute.xlu0 %7267 }
 0x427   : > { %16834 = vst [vmem:[#allocation47_spill] sm:$0xff] %v12360_v13  ;;  %16835 = vst [vmem:[#allocation82_spill] sm:$0xff] %v12362_v3 }
 0x428   : > { %7472 = vrot.lane.b32.xlu1 %v12042_v56, %s16831_s18  ;;  %7477 = vrot.lane.b32.xlu0 %v12130_v11, %s16831_s18 }
 0x42a   : > { %v12368_v5 = vpop.permute.xlu1 %7182  ;;  %v12370_v52 = vpop.permute.xlu0 %7272 }
 0x42b   : > { %16836 = vst [vmem:[#allocation81_spill] sm:$0xff] %v12368_v5  ;;  %16837 = vst [vmem:[#allocation52_spill] sm:$0xff] %v12370_v52 }
 0x42c   : > { %7482 = vrot.lane.b32.xlu1 %v12026_v14, %s16838_s19  ;;  %7487 = vrot.lane.b32.xlu0 %v12040_v22, %s16838_s19 }
 0x42e   : > { %v12376_v23 = vpop.permute.xlu1 %7187  ;;  %v12378_v13 = vpop.permute.xlu0 %7277 }
 0x42f   : > { %16839 = vst [vmem:[#allocation53_spill] sm:$0xff] %v12376_v23  ;;  %16840 = vst [vmem:[#allocation77_spill] sm:$0xff] %v12378_v13 }
 0x430   : > { %7492 = vrot.lane.b32.xlu1 %v12042_v56, %s16838_s19  ;;  %7497 = vrot.lane.b32.xlu0 %v12112_v19, %s16838_s19 }
 0x432   : > { %v12384_v3 = vpop.permute.xlu1 %7192  ;;  %v12386_v5 = vpop.permute.xlu0 %7282 }
 0x433   : > { %16841 = vst [vmem:[#allocation78_spill] sm:$0xff] %v12384_v3  ;;  %16842 = vst [vmem:[#allocation94_spill] sm:$0xff] %v12386_v5 }
 0x434   : > { %7502 = vrot.lane.b32.xlu1 %v12024_v40, %s16838_s19  ;;  %7507 = vrot.lane.b32.xlu0 %v12026_v14, %s16843_s14 }
 0x436   : > { %v12392_v52 = vpop.permute.xlu1 %7197  ;;  %v12394_v23 = vpop.permute.xlu0 %7287 }
 0x437   : > { %16844 = vst [vmem:[#allocation93_spill] sm:$0xff] %v12392_v52  ;;  %16845 = vst [vmem:[#allocation103_spill] sm:$0xff] %v12394_v23 }
 0x438   : > { %7512 = vrot.lane.b32.xlu1 %v12040_v22, %s16843_s14  ;;  %7517 = vrot.lane.b32.xlu0 %v12042_v56, %s16843_s14 }
 0x43a   : > { %v12400_v13 = vpop.permute.xlu1 %7202  ;;  %v12402_v3 = vpop.permute.xlu0 %7292 }
 0x43b   : > { %16846 = vst [vmem:[#allocation101_spill] sm:$0xff] %v12400_v13  ;;  %16847 = vst [vmem:[#allocation55_spill] sm:$0xff] %v12402_v3 }
 0x43c   : > { %7522 = vrot.lane.b32.xlu1 %v12112_v19, %s16843_s14  ;;  %7527 = vrot.lane.b32.xlu0 %v12024_v40, %s16843_s14 }
 0x43e   : > { %v12408_v5 = vpop.permute.xlu1 %7207  ;;  %v12410_v52 = vpop.permute.xlu0 %7297 }
 0x43f   : > { %16848 = vst [vmem:[#allocation91_spill] sm:$0xff] %v12408_v5  ;;  %16849 = vst [vmem:[#allocation92_spill] sm:$0xff] %v12410_v52 }
 0x440   : > { %7532 = vrot.lane.b32.xlu1 %v12026_v14, %s16850_s17  ;;  %7537 = vrot.lane.b32.xlu0 %v12040_v22, %s16850_s17 }
 0x442   : > { %v12416_v23 = vpop.permute.xlu1 %7212  ;;  %v12418_v13 = vpop.permute.xlu0 %7302 }
 0x443   : > { %16851 = vst [vmem:[#allocation106_spill] sm:$0xff] %v12416_v23  ;;  %16852 = vst [vmem:[#allocation107_spill] sm:$0xff] %v12418_v13 }
 0x444   : > { %7542 = vrot.lane.b32.xlu1 %v12042_v56, %s16850_s17  ;;  %7547 = vrot.lane.b32.xlu0 %v12112_v19, %s16850_s17 }
 0x446   : > { %v12424_v3 = vpop.permute.xlu1 %7217  ;;  %v12426_v5 = vpop.permute.xlu0 %7307 }
 0x447   : > { %16853 = vst [vmem:[#allocation113_spill] sm:$0xff] %v12424_v3  ;;  %16854 = vst [vmem:[#allocation112_spill] sm:$0xff] %v12426_v5  ;;  %v8040_v5 = vld [vmem:[#allocation6 + $0x14] ss:$8 sps:$4 sm:$0xff]  }
 0x448   : > { %7552 = vrot.lane.b32.xlu1 %v12024_v40, %s16850_s17  ;;  %7557 = vrot.lane.b32.xlu0 %v12026_v14, %s16855_s25 }
 0x449   : > { %5747 = vmatprep.mubr.msk.bf16.mxu0 %vm1660_vm0, %v8040_v5  ;;  %5748 = vmatprep.mubr.msk.bf16.mxu1 %vm1660_vm0, %v8040_v5 }
 0x44a   : > { %v12432_v52 = vpop.permute.xlu1 %7222  ;;  %v12434_v23 = vpop.permute.xlu0 %7312 }
 0x44b   : > { %16856 = vst [vmem:[#allocation124_spill] sm:$0xff] %v12432_v52  ;;  %16857 = vst [vmem:[#allocation123_spill] sm:$0xff] %v12434_v23 }
 0x44c   : > { %7562 = vrot.lane.b32.xlu1 %v12040_v22, %s16855_s25  ;;  %7567 = vrot.lane.b32.xlu0 %v12042_v56, %s16855_s25 }
 0x44e   : > { %v12440_v13 = vpop.permute.xlu1 %7227  ;;  %v12442_v3 = vpop.permute.xlu0 %7317 }
 0x44f   : > { %16858 = vst [vmem:[#allocation110_spill] sm:$0xff] %v12440_v13  ;;  %16859 = vst [vmem:[#allocation111_spill] sm:$0xff] %v12442_v3 }
 0x450   : > { %7572 = vrot.lane.b32.xlu1 %v12112_v19, %s16855_s25  ;;  %7577 = vrot.lane.b32.xlu0 %v12024_v40, %s16855_s25 }
 0x452   : > { %v12449_v23 = vpop.permute.xlu1 %7232  ;;  %v12451_v52 = vpop.permute.xlu0 %7322 }
 0x453   : > { %16860 = vst [vmem:[#allocation75_spill] sm:$0xff] %v12449_v23  ;;  %16861 = vst [vmem:[#allocation59_spill] sm:$0xff] %v12451_v52 }
 0x454   : > { %7582 = vrot.lane.b32.xlu1 %v12112_v19, %s16826_s21  ;;  %7587 = vrot.lane.b32.xlu0 %v12114_v41, %s16826_s21 }
 0x456   : > { %v12458_v13 = vpop.permute.xlu1 %7237  ;;  %v12460_v3 = vpop.permute.xlu0 %7327 }
 0x457   : > { %16862 = vst [vmem:[#allocation121_spill] sm:$0xff] %v12458_v13  ;;  %16863 = vst [vmem:[#allocation122_spill] sm:$0xff] %v12460_v3 }
 0x458   : > { %7592 = vrot.lane.b32.xlu1 %v12128_v38, %s16826_s21  ;;  %7597 = vrot.lane.b32.xlu0 %v12112_v19, %s16831_s18  ;;  %s16987_s21 = smov 19  }
 0x45a   : > { %v12466_v23 = vpop.permute.xlu1 %7242  ;;  %v12468_v52 = vpop.permute.xlu0 %7332 }
 0x45b   : > { %16864 = vst [vmem:[#allocation130_spill] sm:$0xff] %v12466_v23  ;;  %16865 = vst [vmem:[#allocation128_spill] sm:$0xff] %v12468_v52 }
 0x45c   : > { %7602 = vrot.lane.b32.xlu1 %v12114_v41, %s16831_s18  ;;  %7607 = vrot.lane.b32.xlu0 %v12128_v38, %s16831_s18  ;;  %s17017_s18 = smov 18  }
 0x45e   : > { %v12474_v5 = vpop.permute.xlu1 %7247  ;;  %v12476_v13 = vpop.permute.xlu0 %7337 }
 0x45f   : > { %16866 = vst [vmem:[#allocation14_spill] sm:$0xff] %v12474_v5  ;;  %16867 = vst [vmem:[#allocation57_spill] sm:$0xff] %v12476_v13 }
 0x460   : > { %7612 = vrot.lane.b32.xlu1 %v12114_v41, %s16838_s19  ;;  %7617 = vrot.lane.b32.xlu0 %v12128_v38, %s16838_s19 }
 0x462   : > { %v12482_v3 = vpop.permute.xlu1 %7252  ;;  %v12484_v23 = vpop.permute.xlu0 %7342 }
 0x463   : > { %16868 = vst [vmem:[#allocation62_spill] sm:$0xff] %v12482_v3  ;;  %16869 = vst [vmem:[#allocation56_spill] sm:$0xff] %v12484_v23 }
 0x464   : > { %7622 = vrot.lane.b32.xlu1 %v12130_v11, %s16838_s19  ;;  %7627 = vrot.lane.b32.xlu0 %v12114_v41, %s16843_s14  ;;  %s17039_s19 = smov 17  }
 0x466   : > { %v12490_v52 = vpop.permute.xlu1 %7257  ;;  %v12492_v5 = vpop.permute.xlu0 %7347 }
 0x467   : > { %16870 = vst [vmem:[#allocation61_spill] sm:$0xff] %v12490_v52  ;;  %16871 = vst [vmem:[#allocation58_spill] sm:$0xff] %v12492_v5 }
 0x468   : > { %7632 = vrot.lane.b32.xlu1 %v12128_v38, %s16843_s14  ;;  %7637 = vrot.lane.b32.xlu0 %v12130_v11, %s16843_s14 }
 0x46a   : > { %v7353_v13 = vpop.permute.xlu1 %7352  ;;  %v7358_v3 = vpop.permute.xlu0 %7357 }
 0x46b   : > { %v7355_v18 = vunpack.i.h.bf16 %v7353_v13  ;;  %v7354_v23 = vunpack.i.l.bf16 %v7353_v13  ;;  %v7360_v33 = vunpack.i.h.bf16 %v7358_v3  ;;  %v7359_v57 = vunpack.i.l.bf16 %v7358_v3 }
 0x46c   : > { %7642 = vrot.lane.b32.xlu1 %v12114_v41, %s16850_s17  ;;  %7647 = vrot.lane.b32.xlu0 %v12128_v38, %s16850_s17 }
 0x46d   : > { %v3703_v52 = vsel %vm1071_vm1, %v7354_v23, %v7359_v57  ;;  %v3704_v5 = vsel %vm1071_vm1, %v7355_v18, %v7360_v33 }
 0x46e   : > { %v7363_v6 = vpop.permute.xlu1 %7362  ;;  %v7368_v4 = vpop.permute.xlu0 %7367  ;;  %v3708_v45 = vpack.c.bf16 %v3704_v5, %v3703_v52 }
 0x46f   : > { %v7365_v53 = vunpack.i.h.bf16 %v7363_v6  ;;  %v7364_v17 = vunpack.i.l.bf16 %v7363_v6  ;;  %v7370_v13 = vunpack.i.h.bf16 %v7368_v4  ;;  %v7369_v60 = vunpack.i.l.bf16 %v7368_v4 }
 0x470   : > { %7652 = vrot.lane.b32.xlu1 %v12130_v11, %s16850_s17  ;;  %7657 = vrot.lane.b32.xlu0 %v12114_v41, %s16855_s25  ;;  %s5602_s17 = scalar_lea.sflag [#allocation5], %s8426_s10 }
 0x471   : > { %v3702_v3 = vsel %vm1071_vm1, %v7360_v33, %v7365_v53  ;;  %v3701_v26 = vsel %vm1071_vm1, %v7359_v57, %v7364_v17  ;;  %4274 = vmatprep.subr.bf16.mxu0 %v3708_v45  ;;  %v3699_v52 = vsel %vm1071_vm1, %v7364_v17, %v7369_v60  ;;  %v3700_v6 = vsel %vm1071_vm1, %v7365_v53, %v7370_v13 }
 0x472   : > { %v12518_v4 = vpop.permute.xlu1 %7372  ;;  %v12520_v5 = vpop.permute.xlu0 %7377  ;;  %v3710_v25 = vpack.c.bf16 %v3700_v6, %v3699_v52  ;;  %v3709_v53 = vpack.c.bf16 %v3702_v3, %v3701_v26  ;;  %v6999_v17 = vunpack.i.l.bf16 %v12216_v2  ;;  %v16882_v26 = vunpack.i.h.bf16 %v12208_v29 }
 0x473   : > { %16872 = vst [vmem:[#allocation126_spill] sm:$0xff] %v12518_v4  ;;  %16873 = vst [vmem:[#allocation127_spill] sm:$0xff] %v12520_v5  ;;  %v15955_v1 = vunpack.i.h.bf16 %v12518_v4  ;;  %v15958_v33 = vunpack.i.l.bf16 %v12518_v4 }
 0x474   : > { %7662 = vrot.lane.b32.xlu1 %v12128_v38, %s16855_s25  ;;  %7667 = vrot.lane.b32.xlu0 %v12130_v11, %s16855_s25  ;;  %v7000_v11 = vunpack.i.h.bf16 %v12216_v2 }
 0x475   : > { %v12536_v52 = vsel %vm1071_vm1, %v7370_v13, %v15955_v1  ;;  %v12542_v6 = vsel %vm1071_vm1, %v7369_v60, %v15958_v33  ;;  %4317 = vmatprep.subr.bf16.mxu1 %v3710_v25  ;;  %v16878_v25 = vunpack.i.l.bf16 %v12210_v59  ;;  %v16879_v60 = vunpack.i.l.bf16 %v12208_v29 }
 0x476   : > { %16874 = vst [vmem:[#allocation13_spill] sm:$0xff] %v12536_v52  ;;  %16875 = vst [vmem:[#allocation63_spill] sm:$0xff] %v12542_v6  ;;  %v12544_v41 = vpop.permute.xlu1 %7382  ;;  %4318 = vmatpush1.bf16.msra.mxu1 %v3709_v53  ;;  %v7388_v45 = vpop.permute.xlu0 %7387 }
 0x477   : > { %16876 = vst [vmem:[#allocation60_spill] sm:$0xff] %v12544_v41  ;;  %v7390_v13 = vunpack.i.h.bf16 %v7388_v45  ;;  %v7389_v1 = vunpack.i.l.bf16 %v7388_v45  ;;  %v12562_v53 = vsel %vm16012_vm3, %v16879_v60, %v16878_v25  ;;  %v16881_v45 = vunpack.i.h.bf16 %v12210_v59 }
 0x478   : > { %7672 = vrot.lane.b32.xlu1 %v12026_v14, %s16877_s16  ;;  %7677 = vrot.lane.b32.xlu0 %v12040_v22, %s16877_s16  ;;  %16880 = vst [vmem:[#allocation83_spill] sm:$0xff] %v12562_v53  ;;  %v16884_v29 = vunpack.i.l.bf16 %v12544_v41  ;;  %v16886_v2 = vunpack.i.h.bf16 %v12544_v41 }
 0x479   : > { %v12570_v33 = vsel %vm16012_vm3, %v16882_v26, %v16881_v45  ;;  %v3705_v57 = vsel %vm1071_vm1, %v7389_v1, %v7354_v23  ;;  %v3706_v38 = vsel %vm1071_vm1, %v7390_v13, %v7355_v18 }
 0x47a   : > { %16883 = vst [vmem:[#allocation16_spill] sm:$0xff] %v12570_v33  ;;  %v12578_v25 = vpop.permute.xlu1 %7392  ;;  %v7398_v60 = vpop.permute.xlu0 %7397  ;;  %v3707_v6 = vpack.c.bf16 %v3706_v38, %v3705_v57  ;;  %v12584_v26 = vsel %vm1071_vm1, %v16884_v29, %v7389_v1  ;;  %v12590_v45 = vsel %vm1071_vm1, %v16886_v2, %v7390_v13  ;;  %v16888_v1 = vunpack.i.l.bf16 %v12218_v0 }
 0x47b   : > { %16885 = vst [vmem:[#allocation76_spill] sm:$0xff] %v12584_v26  ;;  %16887 = vst [vmem:[#allocation15_spill] sm:$0xff] %v12590_v45  ;;  %v15974_v23 = vunpack.i.h.bf16 %v12578_v25  ;;  %v15967_v18 = vunpack.i.l.bf16 %v12578_v25  ;;  %v7400_v3 = vunpack.i.h.bf16 %v7398_v60  ;;  %v7399_v52 = vunpack.i.l.bf16 %v7398_v60 }
 0x47c   : > { %7682 = vrot.lane.b32.xlu1 %v12042_v56, %s16877_s16  ;;  %7687 = vrot.lane.b32.xlu0 %v12112_v19, %s16877_s16  ;;  %v12606_v57 = vsel %vm16012_vm3, %v6999_v17, %v16888_v1  ;;  %v16890_v29 = vunpack.i.h.bf16 %v12218_v0  ;;  %v7094_v13 = vunpack.i.l.bf16 %v12226_v12  ;;  %v7009_v0 = vunpack.i.l.bf16 %v12232_v24 }
 0x47d   : > { %16889 = vst [vmem:[#allocation64_spill] sm:$0xff] %v12606_v57  ;;  %4275 = vmatpush1.bf16.msra.mxu0 %v3707_v6  ;;  %v3767_v60 = vsel %vm1137_vm2, %v15967_v18, %v7399_v52  ;;  %v3768_v2 = vsel %vm1137_vm2, %v15974_v23, %v7400_v3  ;;  %v7095_v6 = vunpack.i.h.bf16 %v12226_v12  ;;  %v7010_v23 = vunpack.i.h.bf16 %v12232_v24 }
 0x47e   : > { %v12621_v38 = vsel %vm16012_vm3, %v7000_v11, %v16890_v29  ;;  %v7403_v53 = vpop.permute.xlu1 %7402  ;;  %v7408_v33 = vpop.permute.xlu0 %7407  ;;  %v3772_v18 = vpack.c.bf16 %v3768_v2, %v3767_v60  ;;  %v16893_v60 = vunpack.i.h.bf16 %v12210_v59  ;;  %v16895_v29 = vunpack.i.l.bf16 %v12210_v59 }
 0x47f   : > { %16891 = vst [vmem:[#allocation65_spill] sm:$0xff] %v12621_v38  ;;  %v7405_v26 = vunpack.i.h.bf16 %v7403_v53  ;;  %v7404_v45 = vunpack.i.l.bf16 %v7403_v53  ;;  %v7410_v41 = vunpack.i.h.bf16 %v7408_v33  ;;  %v7409_v4 = vunpack.i.l.bf16 %v7408_v33 }
 0x480   : > { %7692 = vrot.lane.b32.xlu1 %v12024_v40, %s16877_s16  ;;  %7697 = vrot.lane.b32.xlu0 %v12026_v14, %s16892_s22  ;;  %v12646_v2 = vsel %vm16012_vm3, %v16893_v60, %v7000_v11  ;;  %v16897_v11 = vunpack.i.l.bf16 %v12224_v63 }
 0x481   : > { %v3766_v12 = vsel %vm1137_vm2, %v7400_v3, %v7405_v26  ;;  %v3765_v33 = vsel %vm1137_vm2, %v7399_v52, %v7404_v45  ;;  %4276 = vmatprep.subr.bf16.mxu0 %v3772_v18  ;;  %v3763_v24 = vsel %vm1137_vm2, %v7404_v45, %v7409_v4  ;;  %v3764_v53 = vsel %vm1137_vm2, %v7405_v26, %v7410_v41 }
 0x482   : > { %16894 = vst [vmem:[#allocation68_spill] sm:$0xff] %v12646_v2  ;;  %v12652_v3 = vsel %vm16012_vm3, %v16895_v29, %v6999_v17  ;;  %v12654_v52 = vpop.permute.xlu1 %7412  ;;  %v12656_v18 = vpop.permute.xlu0 %7417  ;;  %v3774_v45 = vpack.c.bf16 %v3764_v53, %v3763_v24  ;;  %v12666_v59 = vsel %vm16006_vm5, %v16897_v11, %v7094_v13  ;;  %v16899_v17 = vunpack.i.h.bf16 %v12224_v63 }
 0x483   : > { %16896 = vst [vmem:[#allocation67_spill] sm:$0xff] %v12652_v3  ;;  %v15978_v5 = vunpack.i.h.bf16 %v12654_v52  ;;  %v15979_v1 = vunpack.i.l.bf16 %v12654_v52  ;;  %16898 = vst [vmem:[#allocation80_spill] sm:$0xff] %v12666_v59  ;;  %v12676_v24 = vsel %vm16006_vm5, %v7095_v6, %v7010_v23  ;;  %v12680_v53 = vsel %vm16006_vm5, %v7094_v13, %v7009_v0 }
 0x484   : > { %v12672_v29 = vsel %vm16006_vm5, %v16899_v17, %v7095_v6  ;;  %16901 = vst [vmem:[#allocation88_spill] sm:$0xff] %v12676_v24  ;;  %16902 = vst [vmem:[#allocation89_spill] sm:$0xff] %v12680_v53  ;;  %7702 = vrot.lane.b32.xlu1 %v12040_v22, %s16892_s22  ;;  %7707 = vrot.lane.b32.xlu0 %v12042_v56, %s16892_s22  ;;  %v3773_v60 = vpack.c.bf16 %v3766_v12, %v3765_v33  ;;  %v16904_v13 = vunpack.i.l.bf16 %v12234_v15 }
 0x485   : > { %16900 = vst [vmem:[#allocation86_spill] sm:$0xff] %v12672_v29  ;;  %v12690_v11 = vsel %vm1137_vm2, %v7410_v41, %v15978_v5  ;;  %v12696_v6 = vsel %vm1137_vm2, %v7409_v4, %v15979_v1  ;;  %4319 = vmatprep.subr.bf16.mxu1 %v3774_v45  ;;  %v16906_v12 = vunpack.i.h.bf16 %v12234_v15  ;;  %v7104_v26 = vunpack.i.l.bf16 %v12242_v32 }
 0x486   : > { %16903 = vst [vmem:[#allocation102_spill] sm:$0xff] %v12696_v6  ;;  %v12702_v17 = vsel %vm16006_vm5, %v7009_v0, %v16904_v13  ;;  %v12712_v5 = vpop.permute.xlu1 %7422  ;;  %4320 = vmatpush1.bf16.msra.mxu1 %v3773_v60  ;;  %v7428_v4 = vpop.permute.xlu0 %7427  ;;  %v7105_v13 = vunpack.i.h.bf16 %v12242_v32  ;;  %v16909_v15 = vunpack.i.h.bf16 %v12578_v25  ;;  %v7020_v24 = vunpack.i.h.bf16 %v12248_v9 }
 0x487   : > { %16905 = vst [vmem:[#allocation26_spill] sm:$0xff] %v12702_v17  ;;  %v12708_v33 = vsel %vm16006_vm5, %v7010_v23, %v16906_v12  ;;  %v7430_v23 = vunpack.i.h.bf16 %v7428_v4  ;;  %v7429_v12 = vunpack.i.l.bf16 %v7428_v4  ;;  %v16908_v4 = vunpack.i.l.bf16 %v12578_v25 }
 0x488   : > { %16907 = vst [vmem:[#allocation70_spill] sm:$0xff] %v12708_v33  ;;  %7712 = vrot.lane.b32.xlu1 %v12112_v19, %s16892_s22  ;;  %7717 = vrot.lane.b32.xlu0 %v12024_v40, %s16892_s22  ;;  %v16910_v17 = vunpack.i.l.bf16 %v12712_v5  ;;  %v16911_v32 = vunpack.i.h.bf16 %v12712_v5  ;;  %v16912_v25 = vunpack.i.l.bf16 %v12240_v58  ;;  %v7114_v33 = vunpack.i.l.bf16 %v12258_v7 }
 0x489   : > { %v3769_v1 = vsel %vm1137_vm2, %v7429_v12, %v16908_v4  ;;  %v3770_v60 = vsel %vm1137_vm2, %v7430_v23, %v16909_v15  ;;  %v12782_v38 = vsel %vm16005_vm8, %v7105_v13, %v7020_v24  ;;  %v16917_v6 = vunpack.i.l.bf16 %v12250_v42 }
 0x48a   : > { %v7433_v3 = vpop.permute.xlu1 %7432  ;;  %v7438_v2 = vpop.permute.xlu0 %7437  ;;  %v3771_v45 = vpack.c.bf16 %v3770_v60, %v3769_v1  ;;  %v12744_v0 = vsel %vm1137_vm2, %v16910_v17, %v7429_v12  ;;  %v12750_v41 = vsel %vm1137_vm2, %v16911_v32, %v7430_v23  ;;  %v12756_v15 = vsel %vm16005_vm8, %v16912_v25, %v7104_v26  ;;  %16914 = vst [vmem:[#allocation24_spill] sm:$0xff] %v12782_v38 }
 0x48b   : > { %v7435_v4 = vunpack.i.h.bf16 %v7433_v3  ;;  %v7434_v1 = vunpack.i.l.bf16 %v7433_v3  ;;  %v7440_v60 = vunpack.i.h.bf16 %v7438_v2  ;;  %v7439_v53 = vunpack.i.l.bf16 %v7438_v2 }
 0x48c   : > { %v7019_v17 = vunpack.i.l.bf16 %v12248_v9  ;;  %7722 = vrot.lane.b32.xlu1 %v12026_v14, %s16913_s26  ;;  %7727 = vrot.lane.b32.xlu0 %v12040_v22, %s16913_s26  ;;  %v7115_v12 = vunpack.i.h.bf16 %v12258_v7  ;;  %v16916_v7 = vunpack.i.h.bf16 %v12240_v58 }
 0x48d   : > { %4277 = vmatpush1.bf16.msra.mxu0 %v3771_v45  ;;  %v3831_v2 = vsel %vm1202_vm4, %v7434_v1, %v7439_v53  ;;  %v3832_v9 = vsel %vm1202_vm4, %v7435_v4, %v7440_v60 }
 0x48e   : > { %v7443_v59 = vpop.permute.xlu1 %7442  ;;  %v12776_v29 = vpop.permute.xlu0 %7447  ;;  %v3836_v23 = vpack.c.bf16 %v3832_v9, %v3831_v2  ;;  %v12786_v25 = vsel %vm16005_vm8, %v7104_v26, %v7019_v17 }
 0x48f   : > { %v7445_v32 = vunpack.i.h.bf16 %v7443_v59  ;;  %v7444_v57 = vunpack.i.l.bf16 %v7443_v59  ;;  %v15998_v45 = vunpack.i.h.bf16 %v12776_v29  ;;  %v15997_v3 = vunpack.i.l.bf16 %v12776_v29  ;;  %16915 = vst [vmem:[#allocation25_spill] sm:$0xff] %v12786_v25 }
 0x490   : > { %7732 = vrot.lane.b32.xlu1 %v12042_v56, %s16913_s26  ;;  %7737 = vrot.lane.b32.xlu0 %v12112_v19, %s16913_s26  ;;  %v12796_v59 = vsel %vm16005_vm8, %v16916_v7, %v7105_v13  ;;  %v7030_v13 = vunpack.i.h.bf16 %v12264_v21 }
 0x491   : > { %v3830_v2 = vsel %vm1202_vm4, %v7440_v60, %v7445_v32  ;;  %v3829_v9 = vsel %vm1202_vm4, %v7439_v53, %v7444_v57  ;;  %4278 = vmatprep.subr.bf16.mxu0 %v3836_v23  ;;  %v3827_v26 = vsel %vm1202_vm4, %v7444_v57, %v15997_v3  ;;  %v3828_v58 = vsel %vm1202_vm4, %v7445_v32, %v15998_v45 }
 0x492   : > { %v12811_v7 = vpop.permute.xlu1 %7452  ;;  %v7458_v63 = vpop.permute.xlu0 %7457  ;;  %v3838_v60 = vpack.c.bf16 %v3828_v58, %v3827_v26  ;;  %v12817_v53 = vsel %vm16005_vm8, %v7019_v17, %v16917_v6  ;;  %v16919_v23 = vunpack.i.h.bf16 %v12250_v42  ;;  %v16920_v45 = vunpack.i.l.bf16 %v12256_v62 }
 0x493   : > { %16918 = vst [vmem:[#allocation95_spill] sm:$0xff] %v12817_v53  ;;  %v16001_v3 = vunpack.i.l.bf16 %v12811_v7  ;;  %v16921_v26 = vunpack.i.h.bf16 %v12256_v62  ;;  %v7029_v17 = vunpack.i.l.bf16 %v12264_v21  ;;  %v16923_v21 = vunpack.i.h.bf16 %v12811_v7 }
 0x494   : > { %v12823_v57 = vsel %vm16005_vm8, %v7020_v24, %v16919_v23  ;;  %v12831_v58 = vsel %vm16011_vm10, %v16920_v45, %v7114_v33  ;;  %7742 = vrot.lane.b32.xlu1 %v12024_v40, %s16913_s26  ;;  %7747 = vrot.lane.b32.xlu0 %v12026_v14, %s16922_s20  ;;  %v3837_v23 = vpack.c.bf16 %v3830_v2, %v3829_v9  ;;  %v7460_v62 = vunpack.i.h.bf16 %v7458_v63 }
 0x495   : > { %v12837_v6 = vsel %vm16011_vm10, %v16921_v26, %v7115_v12  ;;  %v3833_v26 = vsel %vm1202_vm4, %v16001_v3, %v7434_v1  ;;  %v3834_v24 = vsel %vm1202_vm4, %v16923_v21, %v7435_v4  ;;  %4321 = vmatprep.subr.bf16.mxu1 %v3838_v60  ;;  %v12860_v2 = vsel %vm16011_vm10, %v7115_v12, %v7030_v13 }
 0x496   : > { %v7463_v9 = vpop.permute.xlu1 %7462  ;;  %4322 = vmatpush1.bf16.msra.mxu1 %v3837_v23  ;;  %v7468_v45 = vpop.permute.xlu0 %7467  ;;  %v3835_v32 = vpack.c.bf16 %v3834_v24, %v3833_v26  ;;  %v7459_v4 = vunpack.i.l.bf16 %v7458_v63  ;;  %v12868_v42 = vsel %vm16011_vm10, %v7114_v33, %v7029_v17  ;;  %v16925_v24 = vunpack.i.l.bf16 %v12266_v10 }
 0x497   : > { %v7465_v60 = vunpack.i.h.bf16 %v7463_v9  ;;  %v7464_v21 = vunpack.i.l.bf16 %v7463_v9  ;;  %16924 = vst [vmem:[#allocation17_spill] sm:$0xff] %v12868_v42  ;;  %v7470_v12 = vunpack.i.h.bf16 %v7468_v45  ;;  %v7469_v53 = vunpack.i.l.bf16 %v7468_v45 }
 0x498   : > { %7752 = vrot.lane.b32.xlu1 %v12040_v22, %s16922_s20  ;;  %4279 = vmatpush1.bf16.msra.mxu0 %v3835_v32  ;;  %v12876_v23 = vsel %vm16011_vm10, %v7029_v17, %v16925_v24  ;;  %vm16927_vm8 = vcmp.lt.s32.totalorder %v8883_v16, 1  ;;  %v16929_v26 = vunpack.i.h.bf16 %v12266_v10  ;;  %v7125_v9 = vunpack.i.h.bf16 %v12274_v48 }
 0x499   : > { %16926 = vst [vmem:[#allocation104_spill] sm:$0xff] %v12876_v23  ;;  %7757 = vrot.lane.b32.xlu0 %v12042_v56, %s16922_s20  ;;  %v3895_v33 = vsel %vm16927_vm8, %v7459_v4, %v7464_v21  ;;  %vm16928_vm5 = vmmov %vm16927_vm8  ;;  %v7124_v24 = vunpack.i.l.bf16 %v12274_v48  ;;  %v16938_v23 = vunpack.i.h.bf16 %v12272_v30 }
 0x49a   : > { %v3896_v45 = vsel %vm16928_vm5, %v7460_v62, %v7465_v60  ;;  %v12889_v32 = vsel %vm16011_vm10, %v7030_v13, %v16929_v26  ;;  %v12894_v3 = vpop.permute.xlu1 %7472  ;;  %v12896_v1 = vpop.permute.xlu0 %7477  ;;  %v3893_v26 = vsel %vm16928_vm5, %v7464_v21, %v7469_v53  ;;  %vm16931_vm8 = vmmov %vm16928_vm5 }
 0x49b   : > { %16930 = vst [vmem:[#allocation19_spill] sm:$0xff] %v12889_v32  ;;  %v3900_v63 = vpack.c.bf16 %v3896_v45, %v3895_v33  ;;  %v16017_v25 = vunpack.i.h.bf16 %v12894_v3  ;;  %v16016_v38 = vunpack.i.l.bf16 %v12894_v3  ;;  %v16014_v10 = vunpack.i.h.bf16 %v12896_v1  ;;  %vm16932_vm10 = vmmov %vm16928_vm5 }
 0x49c   : > { %v16013_v13 = vunpack.i.l.bf16 %v12896_v1  ;;  %v3894_v17 = vsel %vm16931_vm8, %v7465_v60, %v7470_v12  ;;  %7762 = vrot.lane.b32.xlu1 %v12112_v19, %s16922_s20  ;;  %vm16933_vm3 = vmmov %vm16928_vm5 }
 0x49d   : > { %4280 = vmatprep.subr.bf16.mxu0 %v3900_v63  ;;  %v3898_v21 = vsel %vm16933_vm3, %v16014_v10, %v7460_v62  ;;  %7767 = vrot.lane.b32.xlu0 %v12024_v40, %s16922_s20  ;;  %vm16934_vm5 = vmmov %vm16933_vm3  ;;  %v16936_v62 = vunpack.i.l.bf16 %v12272_v30 }
 0x49e   : > { %v3897_v33 = vsel %vm16932_vm10, %v16013_v13, %v7459_v4  ;;  %v3891_v60 = vsel %vm16934_vm5, %v7469_v53, %v16016_v38  ;;  %vm16935_vm8 = vmmov %vm16933_vm3  ;;  %v12928_v45 = vpop.permute.xlu1 %7482  ;;  %v7488_v4 = vpop.permute.xlu0 %7487  ;;  %vm16937_vm3 = vcmp.lt.s32.totalorder %v8883_v16, 100 }
 0x49f   : > { %v3892_v63 = vsel %vm16935_vm8, %v7470_v12, %v16017_v25  ;;  %v3899_v13 = vpack.c.bf16 %v3898_v21, %v3897_v33  ;;  %v12934_v10 = vsel %vm16937_vm3, %v16936_v62, %v7124_v24  ;;  %vm16939_vm10 = vmmov %vm16937_vm3  ;;  %v16019_v38 = vunpack.i.h.bf16 %v12928_v45 }
 0x4a0   : > { %v3902_v48 = vpack.c.bf16 %v3892_v63, %v3891_v60  ;;  %v12940_v53 = vsel %vm16939_vm10, %v16938_v23, %v7125_v9  ;;  %v7484_v12 = vunpack.i.l.bf16 %v12928_v45  ;;  %v7490_v25 = vunpack.i.h.bf16 %v7488_v4  ;;  %vm12947_vm5 = vmpackc.low %vm2986_vm6, %vm2986_vm6  ;;  %7772 = vrot.lane.b32.xlu1 %v12026_v14, %s16942_s11 }
 0x4a1   : > { %v7489_v32 = vunpack.i.l.bf16 %v7488_v4  ;;  %v7040_v21 = vunpack.i.h.bf16 %v12280_v28  ;;  %v7039_v60 = vunpack.i.l.bf16 %v12280_v28  ;;  %v3901_v63 = vpack.c.bf16 %v3894_v17, %v3893_v26  ;;  %vm12959_vm8 = vmpackc.low %vm2988_vm14, %vm2988_vm14  ;;  %7777 = vrot.lane.b32.xlu0 %v12040_v22, %s16942_s11  ;;  %4281 = vmatpush1.bf16.msra.mxu0 %v3899_v13 }
 0x4a2   : > { %4323 = vmatprep.subr.bf16.mxu1 %v3902_v48  ;;  %vm16945_vm6 = vcmp.lt.s32.totalorder %v8883_v16, 127  ;;  %v16020_v17 = vunpack.i.l.bf16 %v12288_v39  ;;  %v7135_v26 = vunpack.i.h.bf16 %v12290_v35  ;;  %v7134_v48 = vunpack.i.l.bf16 %v12290_v35  ;;  %v7493_v62 = vpop.permute.xlu1 %7492  ;;  %5773 = vmatprep.subr.msk.bf16.mxu0 %vm12947_vm5, %v12018_v49  ;;  %v12979_v13 = vpop.permute.xlu0 %7497  ;;  %vm5774_vm14 = vmpackc.low %vm2985_vm13, %vm2985_vm13 }
 0x4a3   : > { %v3973_v28 = vsel %vm16945_vm6, %v7484_v12, %v7489_v32  ;;  %vm16946_vm3 = vmmov %vm16945_vm6  ;;  %4324 = vmatpush1.bf16.msra.mxu1 %v3901_v63  ;;  %v7494_v4 = vunpack.i.l.bf16 %v7493_v62  ;;  %v16022_v35 = vunpack.i.h.bf16 %v12979_v13  ;;  %v16021_v63 = vunpack.i.l.bf16 %v12979_v13 }
 0x4a4   : > { %v3974_v54 = vsel %vm16946_vm3, %v16019_v38, %v7490_v25  ;;  %v7495_v38 = vunpack.i.h.bf16 %v7493_v62  ;;  %5779 = vmatprep.subr.msk.bf16.mxu1 %vm12959_vm8, %v12034_v50  ;;  %vm5780_vm10 = vmpackc.low %vm2987_vm7, %vm2987_vm7  ;;  %vm16947_vm5 = vcmp.lt.s32.totalorder %v8883_v16, 100  ;;  %7782 = vrot.lane.b32.xlu1 %v12042_v56, %s16942_s11 }
 0x4a5   : > { %v3980_v23 = vpack.c.bf16 %v3974_v54, %v3973_v28  ;;  %v12994_v51 = vsel %vm16947_vm5, %v7125_v9, %v7040_v21  ;;  %vm16949_vm13 = vmmov %vm16947_vm5  ;;  %7787 = vrot.lane.b32.xlu0 %v12112_v19, %s16942_s11  ;;  %5776 = vmatpush1.bf16.msk.msra.mxu0 %vm5774_vm14, %v12013_v34  ;;  %v16952_v9 = vunpack.i.l.bf16 %v12282_v8  ;;  %v7050_v28 = vunpack.i.h.bf16 %v12296_v61 }
 0x4a6   : > { %16948 = vst [vmem:[#allocation21_spill] sm:$0xff] %v12994_v51  ;;  %v12998_v49 = vsel %vm16949_vm13, %v7124_v24, %v7039_v60  ;;  %vm16951_vm7 = vmmov %vm16946_vm3  ;;  %v3972_v34 = vsel %vm16946_vm3, %v7490_v25, %v7495_v38  ;;  %v13031_v33 = vpop.permute.xlu1 %7502  ;;  %vm16960_vm13 = vcmp.lt.s32.totalorder %v8883_v16, 99 }
 0x4a7   : > { %16950 = vst [vmem:[#allocation20_spill] sm:$0xff] %v12998_v49  ;;  %v3969_v36 = vsel %vm16951_vm7, %v7494_v4, %v16021_v63  ;;  %vm16953_vm8 = vmmov %vm16947_vm5  ;;  %5782 = vmatpush1.bf16.msk.msra.mxu1 %vm5780_vm10, %v12030_v37  ;;  %4284 = vmatprep.subr.bf16.mxu0 %v3980_v23  ;;  %v13043_v25 = vsel %vm16960_vm13, %v16020_v17, %v7134_v48  ;;  %v16962_v37 = vunpack.i.h.bf16 %v12288_v39  ;;  %v7049_v23 = vunpack.i.l.bf16 %v12296_v61 }
 0x4a8   : > { %v13017_v24 = vsel %vm16953_vm8, %v7039_v60, %v16952_v9  ;;  %vm16956_vm6 = vmmov %vm16947_vm5  ;;  %v7508_v60 = vpop.permute.xlu0 %7507  ;;  %v16024_v9 = vunpack.i.h.bf16 %v13031_v33  ;;  %16961 = vst [vmem:[#allocation66_spill] sm:$0xff] %v13043_v25  ;;  %7792 = vrot.lane.b32.xlu1 %v12024_v40, %s16942_s11 }
 0x4a9   : > { %16954 = vst [vmem:[#allocation74_spill] sm:$0xff] %v13017_v24  ;;  %v13023_v62 = vsel %vm16956_vm6, %v7040_v21, %v16955_v27  ;;  %vm16958_vm14 = vmmov %vm16946_vm3  ;;  %v16023_v27 = vunpack.i.l.bf16 %v13031_v33  ;;  %7797 = vrot.lane.b32.xlu0 %v12026_v14, %s16968_s13 }
 0x4aa   : > { %16957 = vst [vmem:[#allocation22_spill] sm:$0xff] %v13023_v62  ;;  %v3971_v54 = vsel %vm16958_vm14, %v7489_v32, %v7494_v4  ;;  %vm16959_vm5 = vmmov %vm16946_vm3  ;;  %v7513_v50 = vpop.permute.xlu1 %7512 }
 0x4ab   : > { %v3970_v21 = vsel %vm16959_vm5, %v7495_v38, %v16022_v35  ;;  %vm16963_vm10 = vmmov %vm16960_vm13  ;;  %v7514_v38 = vunpack.i.l.bf16 %v7513_v50  ;;  %vm16976_vm5 = vcmp.lt.s32.totalorder %v8883_v16, 119 }
 0x4ac   : > { %v13049_v32 = vsel %vm16963_vm10, %v16962_v37, %v7135_v26  ;;  %v3982_v4 = vpack.c.bf16 %v3970_v21, %v3969_v36  ;;  %vm16965_vm7 = vmmov %vm16946_vm3  ;;  %v16966_v37 = vunpack.i.h.bf16 %v12928_v45  ;;  %v3981_v36 = vpack.c.bf16 %v3972_v34, %v3971_v54  ;;  %v7518_v35 = vpop.permute.xlu0 %7517  ;;  %7802 = vrot.lane.b32.xlu1 %v12040_v22, %s16968_s13 }
 0x4ad   : > { %16964 = vst [vmem:[#allocation90_spill] sm:$0xff] %v13049_v32  ;;  %v3975_v63 = vsel %vm16965_vm7, %v16023_v27, %v7484_v12  ;;  %vm16967_vm8 = vmmov %vm16946_vm3  ;;  %v7510_v27 = vunpack.i.h.bf16 %v7508_v60  ;;  %v7519_v54 = vunpack.i.l.bf16 %v7518_v35  ;;  %7807 = vrot.lane.b32.xlu0 %v12042_v56, %s16968_s13 }
 0x4ae   : > { %v3976_v61 = vsel %vm16967_vm8, %v16024_v9, %v16966_v37  ;;  %vm16969_vm6 = vmmov %vm16963_vm10  ;;  %4327 = vmatprep.subr.bf16.mxu1 %v3982_v4  ;;  %v7509_v37 = vunpack.i.l.bf16 %v7508_v60  ;;  %v7515_v9 = vunpack.i.h.bf16 %v7513_v50  ;;  %v16978_v50 = vunpack.i.h.bf16 %v12298_v55 }
 0x4af   : > { %v13072_v21 = vsel %vm16969_vm6, %v7135_v26, %v7050_v28  ;;  %v3979_v17 = vpack.c.bf16 %v3976_v61, %v3975_v63  ;;  %4328 = vmatpush1.bf16.msra.mxu1 %v3981_v36  ;;  %vm16971_vm3 = vmmov %vm16969_vm6  ;;  %v7520_v26 = vunpack.i.h.bf16 %v7518_v35  ;;  %v16973_v63 = vunpack.i.l.bf16 %v12298_v55 }
 0x4b0   : > { %16970 = vst [vmem:[#allocation23_spill] sm:$0xff] %v13072_v21  ;;  %v13080_v34 = vsel %vm16971_vm3, %v7134_v48, %v7049_v23  ;;  %vm16974_vm14 = vmmov %vm16971_vm3  ;;  %v4037_v48 = vsel %vm16976_vm5, %v7509_v37, %v7514_v38  ;;  %v7145_v61 = vunpack.i.h.bf16 %v12306_v43  ;;  %v7144_v36 = vunpack.i.l.bf16 %v12306_v43  ;;  %v13108_v12 = vpop.permute.xlu0 %7527  ;;  %7812 = vrot.lane.b32.xlu1 %v12112_v19, %s16968_s13 }
 0x4b1   : > { %16972 = vst [vmem:[#allocation96_spill] sm:$0xff] %v13080_v34  ;;  %4285 = vmatpush1.bf16.msra.mxu0 %v3979_v17  ;;  %v13088_v4 = vsel %vm16974_vm14, %v7049_v23, %v16973_v63  ;;  %vm16977_vm13 = vmmov %vm16976_vm5  ;;  %v13106_v63 = vpop.permute.xlu1 %7522  ;;  %v16031_v55 = vunpack.i.h.bf16 %v13108_v12  ;;  %v7059_v23 = vunpack.i.l.bf16 %v12312_v44  ;;  %7817 = vrot.lane.b32.xlu0 %v12024_v40, %s16968_s13 }
 0x4b2   : > { %16975 = vst [vmem:[#allocation69_spill] sm:$0xff] %v13088_v4  ;;  %v4038_v35 = vsel %vm16977_vm13, %v7510_v27, %v7515_v9  ;;  %vm16979_vm10 = vmmov %vm16971_vm3  ;;  %v16038_v60 = vunpack.i.h.bf16 %v13106_v63  ;;  %v16037_v8 = vunpack.i.l.bf16 %v13106_v63  ;;  %vm16989_vm13 = vcmp.lt.s32.totalorder %v8883_v16, 91  ;;  %v17036_v4 = vld [vmem:[#allocation37_spill] sm:$0xff] }
 0x4b3   : > { %v13101_v17 = vsel %vm16979_vm10, %v7050_v28, %v16978_v50  ;;  %v4044_v45 = vpack.c.bf16 %v4038_v35, %v4037_v48  ;;  %v16030_v28 = vunpack.i.l.bf16 %v13108_v12  ;;  %v7060_v50 = vunpack.i.h.bf16 %v12312_v44  ;;  %vm16981_vm7 = vmmov %vm16976_vm5 }
 0x4b4   : > { %16980 = vst [vmem:[#allocation72_spill] sm:$0xff] %v13101_v17  ;;  %v4035_v43 = vsel %vm16981_vm7, %v7514_v38, %v7519_v54  ;;  %vm16982_vm8 = vmmov %vm16976_vm5  ;;  %7822 = vrot.lane.b32.xlu1 %v12026_v14, %s16987_s21  ;;  %v16073_v17 = vunpack.i.l.bf16 %v17036_v4 }
 0x4b5   : > { %v4036_v49 = vsel %vm16982_vm8, %v7515_v9, %v7520_v26  ;;  %4286 = vmatprep.subr.bf16.mxu0 %v4044_v45  ;;  %vm16983_vm6 = vmmov %vm16976_vm5  ;;  %v16040_v45 = vunpack.i.h.bf16 %v12314_v47  ;;  %v7533_v35 = vpop.permute.xlu1 %7532  ;;  %7827 = vrot.lane.b32.xlu0 %v12040_v22, %s16987_s21  ;;  %vm16996_vm8 = vcmp.lt.s32.totalorder %v8883_v16, 118 }
 0x4b6   : > { %v4039_v48 = vsel %vm16983_vm6, %v16030_v28, %v7509_v37  ;;  %vm16984_vm3 = vmmov %vm16976_vm5  ;;  %v16039_v37 = vunpack.i.l.bf16 %v12314_v47  ;;  %v7538_v28 = vpop.permute.xlu0 %7537  ;;  %v7535_v51 = vunpack.i.h.bf16 %v7533_v35  ;;  %v7534_v25 = vunpack.i.l.bf16 %v7533_v35 }
 0x4b7   : > { %v4040_v44 = vsel %vm16984_vm3, %v16031_v55, %v7510_v27  ;;  %vm16985_vm14 = vmmov %vm16984_vm3  ;;  %v7540_v32 = vunpack.i.h.bf16 %v7538_v28  ;;  %v7539_v39 = vunpack.i.l.bf16 %v7538_v28 }
 0x4b8   : > { %v4033_v9 = vsel %vm16985_vm14, %v7519_v54, %v16037_v8  ;;  %vm16986_vm5 = vmmov %vm16984_vm3  ;;  %v4043_v55 = vpack.c.bf16 %v4040_v44, %v4039_v48  ;;  %v4045_v54 = vpack.c.bf16 %v4036_v49, %v4035_v43  ;;  %v16988_v8 = vunpack.i.l.bf16 %v12304_v31  ;;  %7832 = vrot.lane.b32.xlu1 %v12042_v56, %s16987_s21 }
 0x4b9   : > { %v4034_v38 = vsel %vm16986_vm5, %v7520_v26, %v16038_v60  ;;  %v16991_v60 = vunpack.i.h.bf16 %v12304_v31  ;;  %vm16992_vm10 = vmmov %vm16989_vm13  ;;  %v4101_v49 = vsel %vm16996_vm8, %v7534_v25, %v7539_v39  ;;  %7837 = vrot.lane.b32.xlu0 %v12112_v19, %s16987_s21 }
 0x4ba   : > { %v4046_v27 = vpack.c.bf16 %v4034_v38, %v4033_v9  ;;  %v13148_v26 = vsel %vm16989_vm13, %v16988_v8, %v7144_v36  ;;  %vm16994_vm7 = vmmov %vm16992_vm10  ;;  %4287 = vmatpush1.bf16.msra.mxu0 %v4043_v55  ;;  %v13170_v44 = vpop.permute.xlu0 %7547 }
 0x4bb   : > { %16990 = vst [vmem:[#allocation79_spill] sm:$0xff] %v13148_v26  ;;  %v13154_v48 = vsel %vm16992_vm10, %v16991_v60, %v7145_v61  ;;  %v13158_v28 = vsel %vm16994_vm7, %v7145_v61, %v7060_v50  ;;  %vm16997_vm6 = vmmov %vm16996_vm8  ;;  %v7543_v60 = vpop.permute.xlu1 %7542  ;;  %v16044_v35 = vunpack.i.h.bf16 %v13170_v44 }
 0x4bc   : > { %4329 = vmatprep.subr.bf16.mxu1 %v4046_v27  ;;  %16993 = vst [vmem:[#allocation85_spill] sm:$0xff] %v13154_v48  ;;  %16995 = vst [vmem:[#allocation84_spill] sm:$0xff] %v13158_v28  ;;  %v4102_v8 = vsel %vm16997_vm6, %v7535_v51, %v7540_v32  ;;  %v7545_v38 = vunpack.i.h.bf16 %v7543_v60  ;;  %v16041_v27 = vunpack.i.l.bf16 %v13170_v44  ;;  %7842 = vrot.lane.b32.xlu1 %v12024_v40, %s16987_s21  ;;  %v17028_v48 = vld [vmem:[#allocation54_spill] sm:$0xff] }
 0x4bd   : > { %vm16998_vm3 = vmmov %vm16994_vm7  ;;  %4330 = vmatpush1.bf16.msra.mxu1 %v4045_v54  ;;  %v4108_v61 = vpack.c.bf16 %v4102_v8, %v4101_v49  ;;  %v7155_v8 = vunpack.i.h.bf16 %v12322_v46  ;;  %v17011_v49 = vunpack.i.h.bf16 %v12320_v20  ;;  %7847 = vrot.lane.b32.xlu0 %v12026_v14, %s17017_s18 }
 0x4be   : > { %v13168_v43 = vsel %vm16998_vm3, %v7144_v36, %v7059_v23  ;;  %vm17000_vm14 = vmmov %vm16998_vm3  ;;  %v7544_v36 = vunpack.i.l.bf16 %v7543_v60 }
 0x4bf   : > { %16999 = vst [vmem:[#allocation105_spill] sm:$0xff] %v13168_v43  ;;  %v13176_v55 = vsel %vm17000_vm14, %v7059_v23, %v16039_v37  ;;  %vm17002_vm5 = vmmov %vm16998_vm3  ;;  %v7154_v23 = vunpack.i.l.bf16 %v12322_v46  ;;  %4288 = vmatprep.subr.bf16.mxu0 %v4108_v61  ;;  %v13206_v61 = vpop.permute.xlu1 %7552  ;;  %v17019_v43 = vld [vmem:[#allocation127_spill] sm:$0xff] }
 0x4c0   : > { %17001 = vst [vmem:[#allocation18_spill] sm:$0xff] %v13176_v55  ;;  %v13182_v9 = vsel %vm17002_vm5, %v7060_v50, %v16040_v45  ;;  %vm17004_vm13 = vmmov %vm16997_vm6  ;;  %v7558_v45 = vpop.permute.xlu0 %7557  ;;  %v7380_v21 = vunpack.i.h.bf16 %v17019_v43  ;;  %7852 = vrot.lane.b32.xlu1 %v12040_v22, %s17017_s18 }
 0x4c1   : > { %17003 = vst [vmem:[#allocation120_spill] sm:$0xff] %v13182_v9  ;;  %v4100_v50 = vsel %vm17004_vm13, %v7540_v32, %v7545_v38  ;;  %vm17005_vm10 = vmmov %vm16997_vm6  ;;  %v7560_v9 = vunpack.i.h.bf16 %v7558_v45  ;;  %7857 = vrot.lane.b32.xlu0 %v12042_v56, %s17017_s18 }
 0x4c2   : > { %v4099_v60 = vsel %vm17005_vm10, %v7539_v39, %v7544_v36  ;;  %vm17006_vm7 = vmmov %vm16997_vm6 }
 0x4c3   : > { %v4097_v37 = vsel %vm17006_vm7, %v7544_v36, %v16041_v27  ;;  %vm17007_vm8 = vmmov %vm16997_vm6  ;;  %v16054_v36 = vunpack.i.h.bf16 %v13206_v61  ;;  %v16051_v27 = vunpack.i.l.bf16 %v13206_v61  ;;  %v4109_v47 = vpack.c.bf16 %v4100_v50, %v4099_v60  ;;  %v17014_v60 = vld [vmem:[#allocation50_spill] sm:$0xff]  ;;  %v7563_v28 = vpop.permute.xlu1 %7562 }
 0x4c4   : > { %v4098_v46 = vsel %vm17007_vm8, %v7545_v38, %v16044_v35  ;;  %vm17009_vm6 = vcmp.lt.s32.totalorder %v8883_v16, 90  ;;  %v7070_v38 = vunpack.i.h.bf16 %v17014_v60  ;;  %v7069_v39 = vunpack.i.l.bf16 %v17014_v60  ;;  %vm17015_vm14 = vmmov %vm17006_vm7  ;;  %7862 = vrot.lane.b32.xlu1 %v12112_v19, %s17017_s18 }
 0x4c5   : > { %v4110_v32 = vpack.c.bf16 %v4098_v46, %v4097_v37  ;;  %v17008_v37 = vunpack.i.l.bf16 %v12320_v20  ;;  %vm17012_vm3 = vmmov %vm17009_vm6  ;;  %v7379_v60 = vunpack.i.l.bf16 %v17019_v43  ;;  %v7568_v20 = vpop.permute.xlu0 %7567  ;;  %v7564_v34 = vunpack.i.l.bf16 %v7563_v28  ;;  %7867 = vrot.lane.b32.xlu0 %v12024_v40, %s17017_s18 }
 0x4c6   : > { %v13230_v54 = vsel %vm17012_vm3, %v17011_v49, %v7155_v8  ;;  %vm17016_vm5 = vmmov %vm17006_vm7  ;;  %v17018_v49 = vld [vmem:[#allocation51_spill] sm:$0xff]  ;;  %vm17022_vm7 = vcmp.lt.s32.totalorder %v8883_v16, 117 }
 0x4c7   : > { %4331 = vmatprep.subr.bf16.mxu1 %v4110_v32  ;;  %v13224_v46 = vsel %vm17009_vm6, %v17008_v37, %v7154_v23  ;;  %17013 = vst [vmem:[#allocation73_spill] sm:$0xff] %v13230_v54  ;;  %v4103_v32 = vsel %vm17015_vm14, %v16051_v27, %v7534_v25  ;;  %v4104_v37 = vsel %vm17016_vm5, %v16054_v36, %v7535_v51  ;;  %v16061_v35 = vunpack.i.l.bf16 %v17018_v49  ;;  %vm17020_vm13 = vmmov %vm17012_vm3  ;;  %v13268_v43 = vpop.permute.xlu1 %7572 }
 0x4c8   : > { %17010 = vst [vmem:[#allocation108_spill] sm:$0xff] %v13224_v46  ;;  %4332 = vmatpush1.bf16.msra.mxu1 %v4109_v47  ;;  %v4107_v55 = vpack.c.bf16 %v4104_v37, %v4103_v32  ;;  %v7559_v25 = vunpack.i.l.bf16 %v7558_v45  ;;  %v7565_v27 = vunpack.i.h.bf16 %v7563_v28  ;;  %v7570_v51 = vunpack.i.h.bf16 %v7568_v20  ;;  %vm17021_vm10 = vmmov %vm17012_vm3  ;;  %7872 = vrot.lane.b32.xlu1 %v12026_v14, %s17039_s19 }
 0x4c9   : > { %v7569_v36 = vunpack.i.l.bf16 %v7568_v20  ;;  %v13256_v50 = vsel %vm17020_vm13, %v7155_v8, %v7070_v38  ;;  %v13260_v45 = vsel %vm17021_vm10, %v7154_v23, %v7069_v39  ;;  %vm17023_vm8 = vmmov %vm17022_vm7  ;;  %v17024_v8 = vld [vmem:[#allocation126_spill] sm:$0xff]  ;;  %v17027_v46 = vunpack.i.h.bf16 %v17018_v49  ;;  %7877 = vrot.lane.b32.xlu0 %v12040_v22, %s17039_s19 }
 0x4ca   : > { %4289 = vmatpush1.bf16.msra.mxu0 %v4107_v55  ;;  %v4165_v20 = vsel %vm17022_vm7, %v7559_v25, %v7564_v34  ;;  %v4166_v28 = vsel %vm17023_vm8, %v7560_v9, %v7565_v27  ;;  %v13270_v55 = vpop.permute.xlu0 %7577  ;;  %v17025_v37 = vunpack.i.l.bf16 %v17024_v8  ;;  %vm17026_vm6 = vmmov %vm17012_vm3  ;;  %v16071_v26 = vunpack.i.h.bf16 %v13268_v43 }
 0x4cb   : > { %v4172_v32 = vpack.c.bf16 %v4166_v28, %v4165_v20  ;;  %v13280_v47 = vsel %vm17026_vm6, %v7069_v39, %v16061_v35  ;;  %v13286_v54 = vsel %vm17012_vm3, %v7070_v38, %v17027_v46  ;;  %v16069_v20 = vunpack.i.l.bf16 %v13268_v43  ;;  %vm17029_vm14 = vmmov %vm17022_vm7 }
 0x4cc   : > { %v3695_v23 = vsel %vm1071_vm1, %v17025_v37, %v7379_v60  ;;  %v16063_v28 = vunpack.i.h.bf16 %v13270_v55  ;;  %v16062_v37 = vunpack.i.l.bf16 %v13270_v55  ;;  %v4163_v39 = vsel %vm17029_vm14, %v7564_v34, %v7569_v36  ;;  %vm17030_vm5 = vmmov %vm17022_vm7  ;;  %7882 = vrot.lane.b32.xlu1 %v12042_v56, %s17039_s19 }
 0x4cd   : > { %v4164_v35 = vsel %vm17030_vm5, %v7565_v27, %v7570_v51  ;;  %4290 = vmatprep.subr.bf16.mxu0 %v4172_v32  ;;  %v17031_v38 = vunpack.i.h.bf16 %v17024_v8  ;;  %vm17032_vm13 = vmmov %vm17030_vm5  ;;  %v7419_v8 = vunpack.i.l.bf16 %v12656_v18  ;;  %v16072_v49 = vunpack.i.l.bf16 %v17028_v48  ;;  %7887 = vrot.lane.b32.xlu0 %v12112_v19, %s17039_s19 }
 0x4ce   : > { %v4167_v31 = vsel %vm17032_vm13, %v16062_v37, %v7559_v25  ;;  %vm17033_vm10 = vmmov %vm17030_vm5  ;;  %v7420_v25 = vunpack.i.h.bf16 %v12656_v18  ;;  %v7583_v37 = vpop.permute.xlu1 %7582  ;;  %v13332_v18 = vld [vmem:[#allocation6 + $0x10] ss:$8 sps:$4 sm:$0xff]  }
 0x4cf   : > { %v3696_v46 = vsel %vm1071_vm1, %v17031_v38, %v7380_v21  ;;  %v4168_v34 = vsel %vm17033_vm10, %v16063_v28, %v7560_v9  ;;  %vm17034_vm7 = vmmov %vm17030_vm5  ;;  %v7588_v9 = vpop.permute.xlu0 %7587  ;;  %v7585_v24 = vunpack.i.h.bf16 %v7583_v37  ;;  %v7584_v62 = vunpack.i.l.bf16 %v7583_v37 }
 0x4d0   : > { %v4161_v27 = vsel %vm17034_vm7, %v7569_v36, %v16069_v20  ;;  %vm17035_vm8 = vmmov %vm17030_vm5  ;;  %v4171_v38 = vpack.c.bf16 %v4168_v34, %v4167_v31  ;;  %v7165_v36 = vunpack.i.h.bf16 %v17036_v4  ;;  %v17037_v20 = vld [vmem:[#allocation60_spill] sm:$0xff]  ;;  %v3712_v31 = vpack.c.bf16 %v3696_v46, %v3695_v23  ;;  %7892 = vrot.lane.b32.xlu1 %v12024_v40, %s17039_s19 }
 0x4d1   : > { %v4162_v32 = vsel %vm17035_vm8, %v7570_v51, %v16071_v26  ;;  %v17038_v42 = vunpack.i.h.bf16 %v17037_v20  ;;  %v4173_v26 = vpack.c.bf16 %v4164_v35, %v4163_v39  ;;  %v17040_v34 = vunpack.i.l.bf16 %v17037_v20 }
 0x4d2   : > { %v4174_v28 = vpack.c.bf16 %v4162_v32, %v4161_v27  ;;  %v17041_v27 = vunpack.i.h.bf16 %v12776_v29  ;;  %4291 = vmatpush1.bf16.msra.mxu0 %v4171_v38  ;;  %v7593_v23 = vpop.permute.xlu1 %7592  ;;  %v17044_v39 = vunpack.i.h.bf16 %v12654_v52  ;;  %v17045_v38 = vld [vmem:[#allocation15_spill] sm:$0xff] }
 0x4d3   : > { %v3694_v51 = vsel %vm1071_vm1, %v7380_v21, %v17038_v42  ;;  %v3693_v37 = vsel %vm1071_vm1, %v7379_v60, %v17040_v34  ;;  %v17042_v42 = vunpack.i.l.bf16 %v12776_v29  ;;  %v7589_v21 = vunpack.i.l.bf16 %v7588_v9  ;;  %4360 = vmatprep.subr.bf16.mxu0 %v3712_v31  ;;  %v7598_v20 = vpop.permute.xlu0 %7597  ;;  %v17046_v34 = vld [vmem:[#allocation76_spill] sm:$0xff] }
 0x4d4   : > { %4333 = vmatprep.subr.bf16.mxu1 %v4174_v28  ;;  %v13342_v32 = vsel %vm1202_vm4, %v17041_v27, %v7585_v24  ;;  %v7590_v60 = vunpack.i.h.bf16 %v7588_v9  ;;  %v17043_v28 = vunpack.i.l.bf16 %v12654_v52  ;;  %v3760_v46 = vsel %vm1137_vm2, %v17044_v39, %v7420_v25  ;;  %v17049_v31 = vld [vmem:[#allocation36_spill] sm:$0xff] }
 0x4d5   : > { %v13348_v14 = vsel %vm1202_vm4, %v17042_v42, %v7584_v62  ;;  %4334 = vmatpush1.bf16.msra.mxu1 %v4173_v26  ;;  %v7594_v22 = vunpack.i.l.bf16 %v7593_v23  ;;  %v17047_v27 = vpack.c.bf16 %v17045_v38, %v17046_v34  ;;  %vm17048_vm1 = vcmp.lt.s32.totalorder %v8883_v16, 89  ;;  %4307 = vmatmul.mubr.bf16.vlgmr.msra.gmra.mrb[8].mxu0 %v13332_v18  ;;  %v17054_v26 = vld [vmem:[#allocation13_spill] sm:$0xff] }
 0x4d6   : > { %v3759_v29 = vsel %vm1137_vm2, %v17043_v28, %v7419_v8  ;;  %v13373_v9 = vsel %vm17048_vm1, %v16072_v49, %v16073_v17  ;;  %v7080_v42 = vunpack.i.h.bf16 %v17049_v31  ;;  %v7595_v28 = vunpack.i.h.bf16 %v7593_v23  ;;  %vm17051_vm6 = vmmov %vm17048_vm1  ;;  %v17055_v17 = vld [vmem:[#allocation63_spill] sm:$0xff] }
 0x4d7   : > { %4403 = vmatprep.subr.bf16.mxu1 %v17047_v27  ;;  %v3713_v39 = vpack.c.bf16 %v3694_v51, %v3693_v37  ;;  %v17050_v38 = vunpack.i.h.bf16 %v17028_v48  ;;  %v17052_v27 = vunpack.i.h.bf16 %v12712_v5  ;;  %v17053_v23 = vunpack.i.l.bf16 %v12712_v5  ;;  %v7608_v5 = vpop.permute.xlu0 %7607  ;;  %vm17078_vm8 = vmmov %vm17048_vm1 }
 0x4d8   : > { %v3776_v51 = vpack.c.bf16 %v3760_v46, %v3759_v29  ;;  %v3823_v37 = vsel %vm1202_vm4, %v7584_v62, %v7589_v21  ;;  %v7600_v49 = vunpack.i.h.bf16 %v7598_v20  ;;  %4350 = vmatmul.mubr.bf16.vlgmr.msra.gmra.mrb[8].mxu1 %v13332_v18  ;;  %v17056_v35 = vpack.c.bf16 %v17054_v26, %v17055_v17 }
 0x4d9   : > { %v13387_v34 = vsel %vm17051_vm6, %v17050_v38, %v7165_v36  ;;  %v3758_v52 = vsel %vm1137_vm2, %v7420_v25, %v17052_v27  ;;  %v3757_v56 = vsel %vm1137_vm2, %v7419_v8, %v17053_v23  ;;  %v7599_v38 = vunpack.i.l.bf16 %v7598_v20  ;;  %v7603_v25 = vpop.permute.xlu1 %7602  ;;  %4404 = vmatpush1.bf16.msra.mxu1 %v3713_v39  ;;  %vm17080_vm6 = vmmov %vm17048_vm1 }
 0x4da   : > { %4361 = vmatpush1.bf16.msra.mxu0 %v17056_v35  ;;  %v3824_v8 = vsel %vm1202_vm4, %v7585_v24, %v7590_v60  ;;  %v17057_v27 = vunpack.i.l.bf16 %v12811_v7  ;;  %v7605_v62 = vunpack.i.h.bf16 %v7603_v25  ;;  %v7604_v29 = vunpack.i.l.bf16 %v7603_v25 }
 0x4db   : > { %4362 = vmatprep.subr.bf16.mxu0 %v3776_v51  ;;  %v7610_v20 = vunpack.i.h.bf16 %v7608_v5  ;;  %v7609_v46 = vunpack.i.l.bf16 %v7608_v5  ;;  %v7079_v23 = vunpack.i.l.bf16 %v17049_v31  ;;  %v3822_v17 = vsel %vm1202_vm4, %v7590_v60, %v7595_v28  ;;  %v17060_v51 = vld [vmem:[#allocation39_spill] sm:$0xff] }
 0x4dc   : > { %v3819_v19 = vsel %vm1202_vm4, %v7594_v22, %v17057_v27  ;;  %v3821_v35 = vsel %vm1202_vm4, %v7589_v21, %v7594_v22  ;;  %v17058_v24 = vpack.c.bf16 %v12750_v41, %v12744_v0  ;;  %v17059_v26 = vunpack.i.h.bf16 %v12811_v7  ;;  %v17061_v5 = vld [vmem:[#allocation131_spill] sm:$0xff]  ;;  %v17062_v22 = vld [vmem:[#allocation102_spill] sm:$0xff] }
 0x4dd   : > { %v16074_v25 = vunpack.i.l.bf16 %v17060_v51  ;;  %7897 = vrot.lane.b32.xlu0 %v17061_v5, %s16877_s16  ;;  %v3777_v60 = vpack.c.bf16 %v3758_v52, %v3757_v56  ;;  %v3840_v27 = vpack.c.bf16 %v3824_v8, %v3823_v37  ;;  %v17063_v41 = vpack.c.bf16 %v12690_v11, %v17062_v22  ;;  %v7613_v0 = vpop.permute.xlu1 %7612 }
 0x4de   : > { %4405 = vmatprep.subr.bf16.mxu1 %v17058_v24  ;;  %v3820_v39 = vsel %vm1202_vm4, %v7595_v28, %v17059_v26  ;;  %v13431_v24 = vpop.permute.xlu0 %7617  ;;  %vm17064_vm2 = vcmp.lt.s32.totalorder %v8883_v16, 1  ;;  %v17066_v28 = vunpack.i.l.bf16 %v12896_v1  ;;  %v17068_v56 = vunpack.i.h.bf16 %v12896_v1 }
 0x4df   : > { %v3842_v21 = vpack.c.bf16 %v3820_v39, %v3819_v19  ;;  %4363 = vmatpush1.bf16.msra.mxu0 %v17063_v41  ;;  %v3887_v40 = vsel %vm17064_vm2, %v7599_v38, %v7604_v29  ;;  %vm17065_vm4 = vmmov %vm17064_vm2  ;;  %v16075_v37 = vunpack.i.h.bf16 %v17060_v51  ;;  %v3841_v8 = vpack.c.bf16 %v3822_v17, %v3821_v35  ;;  %4406 = vmatpush1.bf16.msra.mxu1 %v3777_v60  ;;  %v17075_v17 = vld [vmem:[#allocation35_spill] sm:$0xff] }
 0x4e0   : > { %v3888_v7 = vsel %vm17065_vm4, %v7600_v49, %v7605_v62  ;;  %vm17067_vm3 = vmmov %vm17064_vm2  ;;  %v17070_v19 = vunpack.i.l.bf16 %v12894_v3  ;;  %v17072_v39 = vunpack.i.h.bf16 %v12894_v3  ;;  %4364 = vmatprep.subr.bf16.mxu0 %v3840_v27  ;;  %v7615_v41 = vunpack.i.h.bf16 %v7613_v0  ;;  %7902 = vrot.lane.b32.xlu1 %v17075_v17, %s16877_s16  ;;  %v13475_v27 = vld [vmem:[#allocation6 + $0x14] ss:$8 sps:$4 sm:$0xff]  }
 0x4e1   : > { %v3883_v52 = vsel %vm17067_vm3, %v7609_v46, %v17066_v28  ;;  %vm17069_vm14 = vmmov %vm17064_vm2  ;;  %v7614_v28 = vunpack.i.l.bf16 %v7613_v0  ;;  %4407 = vmatprep.subr.bf16.mxu1 %v3842_v21  ;;  %v7620_v3 = vunpack.i.h.bf16 %v13431_v24  ;;  %v3904_v60 = vpack.c.bf16 %v3888_v7, %v3887_v40  ;;  %5749 = vmatprep.mubr.msk.bf16.mxu0 %vm1660_vm0, %v13475_v27 }
 0x4e2   : > { %v3884_v11 = vsel %vm17069_vm14, %v7610_v20, %v17068_v56  ;;  %vm17071_vm5 = vmmov %vm17064_vm2  ;;  %v7619_v56 = vunpack.i.l.bf16 %v13431_v24  ;;  %v13493_v24 = vsel %vm17080_vm6, %v7080_v42, %v16075_v37  ;;  %v17081_v7 = vunpack.i.h.bf16 %v12979_v13  ;;  %5750 = vmatprep.mubr.msk.bf16.mxu1 %vm1660_vm0, %v13475_v27 }
 0x4e3   : > { %v3889_v26 = vsel %vm17071_vm5, %v17070_v19, %v7599_v38  ;;  %vm17073_vm13 = vmmov %vm17064_vm2  ;;  %v3906_v35 = vpack.c.bf16 %v3884_v11, %v3883_v52  ;;  %4408 = vmatpush1.bf16.msra.mxu1 %v3841_v8  ;;  %v17083_v11 = vunpack.i.l.bf16 %v12979_v13  ;;  %v17124_v27 = vunpack.i.h.bf16 %v13170_v44 }
 0x4e4   : > { %v3890_v22 = vsel %vm17073_vm13, %v17072_v39, %v7600_v49  ;;  %vm17074_vm10 = vmmov %vm17064_vm2  ;;  %v17077_v49 = vld [vmem:[#allocation38_spill] sm:$0xff]  ;;  %7912 = vrot.lane.b32.xlu1 %v17061_v5, %s16892_s22 }
 0x4e5   : > { %v3885_v1 = vsel %vm17074_vm10, %v7604_v29, %v7609_v46  ;;  %vm17076_vm7 = vmmov %vm17064_vm2  ;;  %7907 = vrot.lane.b32.xlu0 %v17077_v49, %s16877_s16  ;;  %v13470_v29 = vsel %vm17078_vm8, %v7165_v36, %v7080_v42  ;;  %v17079_v46 = vpack.c.bf16 %v13342_v32, %v13348_v14  ;;  %v13485_v36 = vsel %vm17048_vm1, %v7079_v23, %v16074_v25  ;;  %s8239_s16 = smov [#allocation8]  }
 0x4e6   : > { %v3886_v38 = vsel %vm17076_vm7, %v7605_v62, %v7610_v20  ;;  %v7623_v62 = vpop.permute.xlu1 %7622  ;;  %v7628_v20 = vpop.permute.xlu0 %7627  ;;  %v3903_v0 = vpack.c.bf16 %v3890_v22, %v3889_v26  ;;  %vm17082_vm2 = vcmp.lt.s32.totalorder %v8883_v16, 127  ;;  %4409 = vmatprep.subr.bf16.mxu1 %v3906_v35  ;;  %vm13508_vm3 = vmpackc.low %vm2990_vm12, %vm2990_vm12  ;;  %v17093_v35 = vunpack.i.l.bf16 %v17036_v4  ;;  %v17166_v4 = vld [vmem:[#allocation116_spill] sm:$0xff] }
 0x4e7   : > { %4365 = vmatpush1.bf16.msra.mxu0 %v17079_v46  ;;  %v7625_v32 = vunpack.i.h.bf16 %v7623_v62  ;;  %v7624_v14 = vunpack.i.l.bf16 %v7623_v62  ;;  %v3905_v40 = vpack.c.bf16 %v3886_v38, %v3885_v1  ;;  %v3968_v52 = vsel %vm17082_vm2, %v17081_v7, %v7615_v41  ;;  %vm17084_vm4 = vmmov %vm17082_vm2 }
 0x4e8   : > { %4366 = vmatprep.subr.bf16.mxu0 %v3904_v60  ;;  %v3967_v8 = vsel %vm17084_vm4, %v17083_v11, %v7614_v28  ;;  %v7630_v19 = vunpack.i.h.bf16 %v7628_v20  ;;  %v7629_v26 = vunpack.i.l.bf16 %v7628_v20  ;;  %vm13517_vm14 = vmpackc.low %vm2992_vm11, %vm2992_vm11  ;;  %v17095_v62 = vunpack.i.l.bf16 %v13031_v33  ;;  %v17099_v11 = vld [vmem:[#allocation33_spill] sm:$0xff]  ;;  %7922 = vrot.lane.b32.xlu1 %v17077_v49, %s16892_s22 }
 0x4e9   : > { %7917 = vrot.lane.b32.xlu0 %v17075_v17, %s16892_s22  ;;  %vm17091_vm5 = vmmov %vm17082_vm2  ;;  %v17097_v7 = vunpack.i.h.bf16 %v13031_v33  ;;  %4410 = vmatpush1.bf16.msra.mxu1 %v3905_v40  ;;  %v3983_v33 = vpack.c.bf16 %v3968_v52, %v3967_v8  ;;  %v17105_v52 = vunpack.i.l.bf16 %v13106_v63  ;;  %v17167_v21 = vunpack.i.l.bf16 %v17166_v4  ;;  %s8138_s22 = sshll.u32 %s8239_s16, 4  ;;  %s8139_s22 = int_to_ptr.vmem [resolvable:$false] %s8138_s22 }
 0x4ea   : > { %v3965_v22 = vsel %vm17091_vm5, %v7614_v28, %v7619_v56  ;;  %vm17092_vm12 = vmmov %vm17082_vm2  ;;  %v7633_v60 = vpop.permute.xlu1 %7632  ;;  %v7638_v46 = vpop.permute.xlu0 %7637 }
 0x4eb   : > { %v3966_v1 = vsel %vm17092_vm12, %v7615_v41, %v7620_v3  ;;  %vm17094_vm13 = vmmov %vm17048_vm1  ;;  %4367 = vmatpush1.bf16.msra.mxu0 %v3903_v0  ;;  %v7635_v41 = vunpack.i.h.bf16 %v7633_v60  ;;  %v7640_v0 = vunpack.i.h.bf16 %v7638_v46  ;;  %v7639_v31 = vunpack.i.l.bf16 %v7638_v46  ;;  %v17109_v46 = vld [vmem:[#allocation32_spill] sm:$0xff] }
 0x4ec   : > { %v13529_v38 = vsel %vm17094_vm13, %v17093_v35, %v7079_v23  ;;  %vm17096_vm11 = vmmov %vm17082_vm2  ;;  %v7634_v23 = vunpack.i.l.bf16 %v7633_v60  ;;  %5785 = vmatprep.subr.msk.bf16.mxu0 %vm13508_vm3, %v17099_v11  ;;  %v3984_v42 = vpack.c.bf16 %v3966_v1, %v3965_v22  ;;  %v17114_v11 = vunpack.i.h.bf16 %v13108_v12  ;;  %7932 = vrot.lane.b32.xlu1 %v17075_v17, %s16913_s26 }
 0x4ed   : > { %v3977_v20 = vsel %vm17096_vm11, %v7624_v14, %v17095_v62  ;;  %vm17098_vm10 = vmmov %vm17082_vm2  ;;  %v17102_v62 = vld [vmem:[#allocation34_spill] sm:$0xff]  ;;  %7927 = vrot.lane.b32.xlu0 %v17061_v5, %s16913_s26  ;;  %vm17119_vm13 = vcmp.lt.s32.totalorder %v8883_v16, 118 }
 0x4ee   : > { %v3978_v28 = vsel %vm17098_vm10, %v7625_v32, %v17097_v7  ;;  %vm5786_vm7 = vmpackc.low %vm2989_vm9, %vm2989_vm9  ;;  %5791 = vmatprep.subr.msk.bf16.mxu1 %vm13517_vm14, %v17102_v62  ;;  %vm17106_vm9 = vcmp.lt.s32.totalorder %v8883_v16, 119  ;;  %v7643_v22 = vpop.permute.xlu1 %7642  ;;  %v7648_v1 = vpop.permute.xlu0 %7647  ;;  %v17112_v7 = vunpack.i.l.bf16 %v13108_v12 }
 0x4ef   : > { %vm17101_vm8 = vmmov %vm17082_vm2  ;;  %v3986_v39 = vpack.c.bf16 %v3978_v28, %v3977_v20  ;;  %5788 = vmatpush1.bf16.msk.msra.mxu0 %vm5786_vm7, %v17109_v46  ;;  %v17116_v28 = vld [vmem:[#allocation129_spill] sm:$0xff]  ;;  %v7645_v13 = vunpack.i.h.bf16 %v7643_v22  ;;  %v7644_v62 = vunpack.i.l.bf16 %v7643_v22  ;;  %v7650_v40 = vunpack.i.h.bf16 %v7648_v1 }
 0x4f0   : > { %v3964_v35 = vsel %vm17101_vm8, %v7620_v3, %v7625_v32  ;;  %vm5792_vm1 = vmpackc.low %vm2991_vm15, %vm2991_vm15  ;;  %v4031_v3 = vsel %vm17106_vm9, %v17105_v52, %v7629_v26  ;;  %v17107_v32 = vunpack.i.h.bf16 %v13106_v63  ;;  %4370 = vmatprep.subr.bf16.mxu0 %v3984_v42  ;;  %7942 = vrot.lane.b32.xlu1 %v17061_v5, %s16922_s20 }
 0x4f1   : > { %vm17104_vm6 = vmmov %vm17082_vm2  ;;  %5794 = vmatpush1.bf16.msk.msra.mxu1 %vm5792_vm1, %v17116_v28  ;;  %7937 = vrot.lane.b32.xlu0 %v17077_v49, %s16913_s26  ;;  %s8140_s26 = scalar_lea.vmem %s8139_s22, 4096 }
 0x4f2   : > { %v3963_v60 = vsel %vm17104_vm6, %v7619_v56, %v7624_v14  ;;  %vm17108_vm2 = vmmov %vm17106_vm9  ;;  %4413 = vmatprep.subr.bf16.mxu1 %v3986_v39  ;;  %v17122_v39 = vld [vmem:[#allocation44_spill] sm:$0xff] }
 0x4f3   : > { %v4032_v8 = vsel %vm17108_vm2, %v17107_v32, %v7630_v19  ;;  %vm17110_vm15 = vmmov %vm17108_vm2  ;;  %v3985_v52 = vpack.c.bf16 %v3964_v35, %v3963_v60  ;;  %v17121_v60 = vld [vmem:[#allocation45_spill] sm:$0xff]  ;;  %v16082_v22 = vunpack.i.l.bf16 %v17122_v39  ;;  %4371 = vmatpush1.bf16.msra.mxu0 %v3983_v33 }
 0x4f4   : > { %v4029_v56 = vsel %vm17110_vm15, %v7629_v26, %v7634_v23  ;;  %vm17111_vm4 = vmmov %vm17108_vm2  ;;  %v7649_v26 = vunpack.i.l.bf16 %v7648_v1  ;;  %v7653_v1 = vpop.permute.xlu1 %7652  ;;  %7952 = vrot.lane.b32.xlu1 %v17077_v49, %s16922_s20 }
 0x4f5   : > { %v4030_v14 = vsel %vm17111_vm4, %v7630_v19, %v7635_v41  ;;  %vm17113_vm3 = vmmov %vm17108_vm2  ;;  %4414 = vmatpush1.bf16.msra.mxu1 %v3985_v52  ;;  %7947 = vrot.lane.b32.xlu0 %v17075_v17, %s16922_s20 }
 0x4f6   : > { %v4041_v63 = vsel %vm17113_vm3, %v7639_v31, %v17112_v7  ;;  %vm17115_vm14 = vmmov %vm17108_vm2  ;;  %v4048_v46 = vpack.c.bf16 %v4030_v14, %v4029_v56  ;;  %v4093_v42 = vsel %vm17119_vm13, %v7644_v62, %v7649_v26  ;;  %v7658_v7 = vpop.permute.xlu0 %7657  ;;  %v7655_v14 = vunpack.i.h.bf16 %v7653_v1 }
 0x4f7   : > { %v4042_v20 = vsel %vm17115_vm14, %v7640_v0, %v17114_v11  ;;  %vm17117_vm5 = vmmov %vm17108_vm2  ;;  %v7660_v25 = vunpack.i.h.bf16 %v7658_v7  ;;  %v7659_v33 = vunpack.i.l.bf16 %v7658_v7 }
 0x4f8   : > { %v4027_v19 = vsel %vm17117_vm5, %v7634_v23, %v7639_v31  ;;  %v4050_v32 = vpack.c.bf16 %v4042_v20, %v4041_v63  ;;  %vm17118_vm12 = vmmov %vm17108_vm2  ;;  %v16081_v23 = vunpack.i.h.bf16 %v17121_v60  ;;  %v7174_v31 = vunpack.i.l.bf16 %v17121_v60  ;;  %4372 = vmatprep.subr.bf16.mxu0 %v4048_v46  ;;  %7962 = vrot.lane.b32.xlu1 %v17075_v17, %s16942_s11 }
 0x4f9   : > { %v4028_v12 = vsel %vm17118_vm12, %v7635_v41, %v7640_v0  ;;  %vm17120_vm11 = vmmov %vm17119_vm13  ;;  %v17123_v0 = vld [vmem:[#allocation82_spill] sm:$0xff]  ;;  %v7654_v63 = vunpack.i.l.bf16 %v7653_v1  ;;  %v4047_v20 = vpack.c.bf16 %v4032_v8, %v4031_v3  ;;  %v17126_v41 = vunpack.i.l.bf16 %v13170_v44  ;;  %7957 = vrot.lane.b32.xlu0 %v17061_v5, %s16942_s11 }
 0x4fa   : > { %v4094_v35 = vsel %vm17120_vm11, %v7645_v13, %v7650_v40  ;;  %v16077_v56 = vunpack.i.h.bf16 %v17123_v0  ;;  %v4049_v28 = vpack.c.bf16 %v4028_v12, %v4027_v19  ;;  %4415 = vmatprep.subr.bf16.mxu1 %v4050_v32  ;;  %vm17125_vm10 = vmmov %vm17120_vm11  ;;  %v16080_v19 = vunpack.i.l.bf16 %v17123_v0  ;;  %v7663_v12 = vpop.permute.xlu1 %7662 }
 0x4fb   : > { %v4112_v11 = vpack.c.bf16 %v4094_v35, %v4093_v42  ;;  %v4096_v37 = vsel %vm17125_vm10, %v17124_v27, %v7645_v13  ;;  %vm17127_vm7 = vmmov %vm17125_vm10  ;;  %4373 = vmatpush1.bf16.msra.mxu0 %v4047_v20  ;;  %v7668_v13 = vpop.permute.xlu0 %7667  ;;  %v17130_v44 = vunpack.i.l.bf16 %v13206_v61  ;;  %v17132_v46 = vunpack.i.h.bf16 %v13206_v61 }
 0x4fc   : > { %v4095_v52 = vsel %vm17127_vm7, %v17126_v41, %v7644_v62  ;;  %vm17128_vm8 = vmmov %vm17127_vm7  ;;  %4416 = vmatpush1.bf16.msra.mxu1 %v4049_v28  ;;  %v7664_v42 = vunpack.i.l.bf16 %v7663_v12  ;;  %v7670_v35 = vunpack.i.h.bf16 %v7668_v13  ;;  %v7669_v1 = vunpack.i.l.bf16 %v7668_v13  ;;  %v17142_v28 = vld [vmem:[#allocation40_spill] sm:$0xff]  ;;  %7972 = vrot.lane.b32.xlu1 %v17061_v5, %s16968_s13 }
 0x4fd   : > { %v4092_v3 = vsel %vm17128_vm8, %v7650_v40, %v7655_v14  ;;  %vm17129_vm1 = vmmov %vm17127_vm7  ;;  %4374 = vmatprep.subr.bf16.mxu0 %v4112_v11  ;;  %v4111_v7 = vpack.c.bf16 %v4096_v37, %v4095_v52  ;;  %v17134_v41 = vunpack.i.l.bf16 %v13268_v43  ;;  %vm17135_vm2 = vcmp.lt.s32.totalorder %v8883_v16, 117  ;;  %7967 = vrot.lane.b32.xlu0 %v17077_v49, %s16942_s11 }
 0x4fe   : > { %v4091_v8 = vsel %vm17129_vm1, %v7649_v26, %v7654_v63  ;;  %vm17131_vm6 = vmmov %vm17129_vm1  ;;  %v7665_v26 = vunpack.i.h.bf16 %v7663_v12  ;;  %v17136_v27 = vunpack.i.h.bf16 %v13268_v43  ;;  %v17143_v52 = vunpack.i.l.bf16 %v17142_v28  ;;  %v13655_v13 = vpop.permute.xlu1 %7672 }
 0x4ff   : > { %v4113_v32 = vpack.c.bf16 %v4092_v3, %v4091_v8  ;;  %v4105_v62 = vsel %vm17131_vm6, %v7654_v63, %v17130_v44  ;;  %vm17133_vm9 = vmmov %vm17129_vm1  ;;  %v4159_v20 = vsel %vm17135_vm2, %v17134_v41, %v7659_v33  ;;  %vm17144_vm12 = vcmp.lt.s32.totalorder %v8883_v16, 111  ;;  %v17145_v8 = vld [vmem:[#allocation77_spill] sm:$0xff]  ;;  %4375 = vmatpush1.bf16.msra.mxu0 %v4111_v7  ;;  %v7678_v44 = vpop.permute.xlu0 %7677 }
 0x500   : > { %v4106_v40 = vsel %vm17133_vm9, %v7655_v14, %v17132_v46  ;;  %vm17137_vm15 = vmmov %vm17135_vm2  ;;  %v3055_v3 = vsel %vm17144_vm12, %v16080_v19, %v17143_v52  ;;  %v16079_v12 = vunpack.i.h.bf16 %v17145_v8  ;;  %v16083_v46 = vunpack.i.h.bf16 %v13655_v13  ;;  %v17194_v19 = vld [vmem:[#allocation135_spill] sm:$0xff]  ;;  %7982 = vrot.lane.b32.xlu1 %v17077_v49, %s16968_s13 }
 0x501   : > { %v4160_v61 = vsel %vm17137_vm15, %v17136_v27, %v7660_v25  ;;  %v4114_v14 = vpack.c.bf16 %v4106_v40, %v4105_v62  ;;  %vm17138_vm4 = vmmov %vm17135_vm2  ;;  %v7674_v40 = vunpack.i.l.bf16 %v13655_v13  ;;  %v16076_v41 = vunpack.i.l.bf16 %v17145_v8  ;;  %7977 = vrot.lane.b32.xlu0 %v17075_v17, %s16968_s13  ;;  %s17732_s13 = sshll.u32 %s8426_s10, 7 }
 0x502   : > { %v4155_v63 = vsel %vm17138_vm4, %v7664_v42, %v7669_v1  ;;  %vm17139_vm3 = vmmov %vm17135_vm2  ;;  %v4175_v27 = vpack.c.bf16 %v4160_v61, %v4159_v20  ;;  %vm17152_vm7 = vcmp.lt.s32.totalorder %v8883_v16, 39  ;;  %v7683_v52 = vpop.permute.xlu1 %7682 }
 0x503   : > { %v4156_v37 = vsel %vm17139_vm3, %v7665_v26, %v7670_v35  ;;  %vm17140_vm14 = vmmov %vm17135_vm2  ;;  %4417 = vmatprep.subr.bf16.mxu1 %v4114_v14  ;;  %v17148_v14 = vunpack.i.h.bf16 %v13270_v55 }
 0x504   : > { %v4157_v11 = vsel %vm17140_vm14, %v7659_v33, %v7664_v42  ;;  %vm17141_vm5 = vmmov %vm17135_vm2  ;;  %v17146_v33 = vunpack.i.l.bf16 %v13270_v55  ;;  %4418 = vmatpush1.bf16.msra.mxu1 %v4113_v32  ;;  %v7679_v42 = vunpack.i.l.bf16 %v7678_v44  ;;  %v4177_v7 = vpack.c.bf16 %v4156_v37, %v4155_v63  ;;  %7992 = vrot.lane.b32.xlu1 %v17075_v17, %s16987_s21 }
 0x505   : > { %v4158_v43 = vsel %vm17141_vm5, %v7660_v25, %v7665_v26  ;;  %vm17147_vm13 = vmmov %vm17135_vm2  ;;  %v7680_v26 = vunpack.i.h.bf16 %v7678_v44  ;;  %v17150_v32 = vunpack.i.h.bf16 %v17142_v28  ;;  %v13704_v44 = vpop.permute.xlu0 %7687  ;;  %7987 = vrot.lane.b32.xlu0 %v17061_v5, %s16987_s21 }
 0x506   : > { %v4176_v62 = vpack.c.bf16 %v4158_v43, %v4157_v11  ;;  %v4169_v25 = vsel %vm17147_vm13, %v7669_v1, %v17146_v33  ;;  %vm17149_vm11 = vmmov %vm17135_vm2  ;;  %v13680_v61 = vsel %vm17152_vm7, %v7674_v40, %v7679_v42  ;;  %17161 = vst [vmem:[#allocation100_spill] sm:$0xff] %v13704_v44  ;;  %vm17168_vm2 = vcmp.lt.s32.totalorder %v8883_v16, 110 }
 0x507   : > { %v4170_v1 = vsel %vm17149_vm11, %v7670_v35, %v17148_v14  ;;  %vm17151_vm10 = vmmov %vm17144_vm12  ;;  %17153 = vst [vmem:[#allocation27_spill] sm:$0xff] %v13680_v61  ;;  %v17156_v35 = vld [vmem:[#allocation41_spill] sm:$0xff]  ;;  %v7684_v14 = vunpack.i.l.bf16 %v7683_v52  ;;  %vm17197_vm12 = vcmp.lt.s32.totalorder %v8883_v16, 109 }
 0x508   : > { %4376 = vmatprep.subr.bf16.mxu0 %v4176_v62  ;;  %v3056_v11 = vsel %vm17151_vm10, %v16077_v56, %v17150_v32  ;;  %v4178_v20 = vpack.c.bf16 %v4170_v1, %v4169_v25  ;;  %vm17154_vm8 = vmmov %vm17152_vm7  ;;  %v17157_v63 = vunpack.i.h.bf16 %v17156_v35  ;;  %v17159_v43 = vunpack.i.l.bf16 %v17156_v35  ;;  %v17163_v1 = vld [vmem:[#allocation16_spill] sm:$0xff]  ;;  %v17164_v32 = vld [vmem:[#allocation83_spill] sm:$0xff]  ;;  %8002 = vrot.lane.b32.xlu1 %v17061_v5, %s17017_s18 }
 0x509   : > { %v13686_v55 = vsel %vm17154_vm8, %v16083_v46, %v7680_v26  ;;  %vm17158_vm1 = vmmov %vm17151_vm10  ;;  %4377 = vmatpush1.bf16.msra.mxu0 %v4175_v27  ;;  %v7685_v25 = vunpack.i.h.bf16 %v7683_v52  ;;  %v17165_v27 = vpack.c.bf16 %v17163_v1, %v17164_v32  ;;  %v16086_v35 = vunpack.i.h.bf16 %v13704_v44  ;;  %v17171_v32 = vld [vmem:[#allocation103_spill] sm:$0xff]  ;;  %v17188_v46 = vld [vmem:[#allocation86_spill] sm:$0xff]  ;;  %7997 = vrot.lane.b32.xlu0 %v17077_v49, %s16987_s21  ;;  %s15497_s21 = scalar_lea.vmem [#allocation8], %s17732_s13 }
 0x50a   : > { %17155 = vst [vmem:[#allocation109_spill] sm:$0xff] %v13686_v55  ;;  %v13694_v37 = vsel %vm17158_vm1, %v17157_v63, %v16081_v23  ;;  %vm17160_vm6 = vmmov %vm17158_vm1  ;;  %4419 = vmatprep.subr.bf16.mxu1 %v4178_v20  ;;  %v16078_v63 = vunpack.i.l.bf16 %v13704_v44  ;;  %v17169_v20 = vunpack.i.h.bf16 %v17166_v4  ;;  %v3057_v1 = vpack.c.bf16 %v3056_v11, %v3055_v3  ;;  %v17176_v4 = vld [vmem:[#allocation65_spill] sm:$0xff] }
 0x50b   : > { %v13702_v28 = vsel %vm17160_vm6, %v17159_v43, %v7174_v31  ;;  %vm17162_vm9 = vmmov %vm17158_vm1  ;;  %4458 = vmatprep.subr.bf16.mxu0 %v17165_v27  ;;  %v7265_v43 = vunpack.i.h.bf16 %v17122_v39  ;;  %4420 = vmatpush1.bf16.msra.mxu1 %v4177_v7  ;;  %v17181_v7 = vld [vmem:[#allocation47_spill] sm:$0xff]  ;;  %v17189_v27 = vld [vmem:[#allocation80_spill] sm:$0xff]  ;;  %v17268_v55 = vunpack.i.l.bf16 %v17145_v8 }
 0x50c   : > { %v13712_v62 = vsel %vm17162_vm9, %v7174_v31, %v16082_v22  ;;  %v3119_v31 = vsel %vm17168_vm2, %v16076_v41, %v17167_v21  ;;  %vm17170_vm15 = vmmov %vm17168_vm2  ;;  %v17177_v41 = vld [vmem:[#allocation64_spill] sm:$0xff]  ;;  %4393 = vmatmul.mubr.bf16.vlgmr.msra.gmra.mrb[12].mxu0 %v13332_v18  ;;  %v17190_v44 = vpack.c.bf16 %v17188_v46, %v17189_v27  ;;  %v17206_v27 = vld [vmem:[#allocation26_spill] sm:$0xff]  ;;  %8012 = vrot.lane.b32.xlu1 %v17077_v49, %s17017_s18 }
 0x50d   : > { %v3120_v52 = vsel %vm17170_vm15, %v16079_v12, %v17169_v20  ;;  %vm17172_vm4 = vmmov %vm17152_vm7  ;;  %v17178_v56 = vpack.c.bf16 %v17176_v4, %v17177_v41  ;;  %v13761_v41 = vpop.permute.xlu1 %7692  ;;  %v13765_v20 = vld [vmem:[#allocation6 + $0x4] ss:$8 sps:$4 sm:$0xff]   ;;  %v7179_v4 = vunpack.i.l.bf16 %v17181_v7  ;;  %4459 = vmatpush1.bf16.msra.mxu0 %v3057_v1  ;;  %8007 = vrot.lane.b32.xlu0 %v17075_v17, %s17017_s18  ;;  %s5770_s18 = sshll.u32 %s8308_s9, 11 }
 0x50e   : > { %v13739_v33 = vsel %vm17172_vm4, %v7680_v26, %v7685_v25  ;;  %vm17174_vm3 = vmmov %vm17172_vm4  ;;  %v7180_v26 = vunpack.i.h.bf16 %v17181_v7  ;;  %17182 = vst [vmem:[#allocation71_spill] sm:$0xff] %v13761_v41  ;;  %4436 = vmatmul.mubr.bf16.vlgmr.msra.gmra.mrb[12].mxu1 %v13332_v18  ;;  %v17187_v22 = vld [vmem:[#allocation52_spill] sm:$0xff]  ;;  %4460 = vmatprep.subr.bf16.mxu0 %v17190_v44  ;;  %v17195_v18 = vunpack.i.l.bf16 %v17194_v19  ;;  %v17198_v46 = vunpack.i.l.bf16 %v13761_v41  ;;  %s15539_s14 = scalar_lea.hbm %s15598_s8, %s5770_s18 }
 0x50f   : > { %17173 = vst [vmem:[#allocation114_spill] sm:$0xff] %v13739_v33  ;;  %v13743_v21 = vsel %vm17174_vm3, %v7679_v42, %v7684_v14  ;;  %4501 = vmatprep.subr.bf16.mxu1 %v17178_v56  ;;  %vm17179_vm14 = vmmov %vm17174_vm3  ;;  %v13763_v56 = vpop.permute.xlu0 %7697  ;;  %v7274_v11 = vunpack.i.l.bf16 %v17187_v22  ;;  %v7275_v42 = vunpack.i.h.bf16 %v17187_v22  ;;  %5753 = vmatprep.mubr.msk.bf16.mxu0 %vm1660_vm0, %v13765_v20  ;;  %v17219_v1 = vld [vmem:[#allocation88_spill] sm:$0xff]  ;;  %vm17232_vm4 = vcmp.lt.s32.totalorder %v8883_v16, 101 }
 0x510   : > { %17175 = vst [vmem:[#allocation28_spill] sm:$0xff] %v13743_v21  ;;  %v13754_v3 = vsel %vm17179_vm14, %v7684_v14, %v16078_v63  ;;  %17183 = vst [vmem:[#allocation30_spill] sm:$0xff] %v13763_v56  ;;  %v17186_v63 = vld [vmem:[#allocation81_spill] sm:$0xff]  ;;  %v3121_v21 = vpack.c.bf16 %v3120_v52, %v3119_v31  ;;  %v17202_v31 = vunpack.i.h.bf16 %v13761_v41  ;;  %v17205_v52 = vld [vmem:[#allocation70_spill] sm:$0xff]  ;;  %5754 = vmatprep.mubr.msk.bf16.mxu1 %vm1660_vm0, %v13765_v20  ;;  %8022 = vrot.lane.b32.xlu1 %v17075_v17, %s17039_s19 }
 0x511   : > { %17180 = vst [vmem:[#allocation87_spill] sm:$0xff] %v13754_v3  ;;  %vm17184_vm5 = vmmov %vm17174_vm3  ;;  %v7185_v12 = vunpack.i.h.bf16 %v17186_v63  ;;  %v7184_v23 = vunpack.i.l.bf16 %v17186_v63  ;;  %v17196_v63 = vunpack.i.l.bf16 %v17171_v32  ;;  %8017 = vrot.lane.b32.xlu0 %v17061_v5, %s17039_s19  ;;  %v17330_v56 = vld [vmem:[#allocation96_spill] sm:$0xff] }
 0x512   : > { %v13771_v14 = vsel %vm17184_vm5, %v7685_v25, %v16086_v35  ;;  %v17191_v25 = vld [vmem:[#allocation68_spill] sm:$0xff]  ;;  %v17192_v35 = vld [vmem:[#allocation67_spill] sm:$0xff]  ;;  %vm17199_vm13 = vmmov %vm17174_vm3  ;;  %4461 = vmatpush1.bf16.msra.mxu0 %v3121_v21 }
 0x513   : > { %17185 = vst [vmem:[#allocation115_spill] sm:$0xff] %v13771_v14  ;;  %v17193_v7 = vpack.c.bf16 %v17191_v25, %v17192_v35  ;;  %v3183_v33 = vsel %vm17197_vm12, %v17196_v63, %v17195_v18  ;;  %v13799_v44 = vsel %vm17199_vm13, %v17198_v46, %v7674_v40  ;;  %v17201_v35 = vunpack.i.h.bf16 %v13655_v13  ;;  %vm17203_vm11 = vmmov %vm17174_vm3  ;;  %v17211_v18 = vld [vmem:[#allocation92_spill] sm:$0xff]  ;;  %v17266_v14 = vld [vmem:[#allocation17_spill] sm:$0xff] }
 0x514   : > { %17200 = vst [vmem:[#allocation99_spill] sm:$0xff] %v13799_v44  ;;  %v17207_v25 = vpack.c.bf16 %v17205_v52, %v17206_v27  ;;  %v17209_v40 = vunpack.i.h.bf16 %v17171_v32  ;;  %vm17210_vm10 = vmmov %vm17197_vm12  ;;  %v16091_v46 = vunpack.i.l.bf16 %v17211_v18  ;;  %v13828_v52 = vpop.permute.xlu0 %7707  ;;  %v17215_v27 = vunpack.i.l.bf16 %v17122_v39  ;;  %v17220_v39 = vld [vmem:[#allocation89_spill] sm:$0xff] }
 0x515   : > { %4502 = vmatpush1.bf16.msra.mxu1 %v17193_v7  ;;  %v13807_v22 = vsel %vm17203_vm11, %v17202_v31, %v17201_v35  ;;  %v17208_v7 = vunpack.i.h.bf16 %v17194_v19  ;;  %v13826_v31 = vpop.permute.xlu1 %7702  ;;  %17213 = vst [vmem:[#allocation50_spill] sm:$0xff] %v13828_v52  ;;  %vm17214_vm7 = vmmov %vm17158_vm1  ;;  %v17218_v35 = vpack.c.bf16 %v12796_v59, %v12756_v15  ;;  %v17221_v63 = vpack.c.bf16 %v17219_v1, %v17220_v39  ;;  %v17226_v59 = vld [vmem:[#allocation53_spill] sm:$0xff] }
 0x516   : > { %17204 = vst [vmem:[#allocation29_spill] sm:$0xff] %v13807_v22  ;;  %4503 = vmatprep.subr.bf16.mxu1 %v17207_v25  ;;  %17212 = vst [vmem:[#allocation97_spill] sm:$0xff] %v13826_v31  ;;  %v13834_v19 = vsel %vm17214_vm7, %v7265_v43, %v7180_v26  ;;  %v13870_v15 = vsel %vm17168_vm2, %v7184_v23, %v7274_v11  ;;  %v7189_v1 = vunpack.i.l.bf16 %v17226_v59  ;;  %v17246_v44 = vld [vmem:[#allocation25_spill] sm:$0xff]  ;;  %vm17255_vm11 = vcmp.lt.s32.totalorder %v8883_v16, 100 }
 0x517   : > { %v3184_v13 = vsel %vm17210_vm10, %v17209_v40, %v17208_v7  ;;  %vm17216_vm8 = vmmov %vm17158_vm1  ;;  %v17217_v7 = vunpack.i.h.bf16 %v17121_v60  ;;  %4462 = vmatprep.subr.bf16.mxu0 %v17218_v35  ;;  %v7190_v35 = vunpack.i.h.bf16 %v17226_v59  ;;  %v17267_v61 = vpack.c.bf16 %v12860_v2, %v17266_v14  ;;  %8027 = vrot.lane.b32.xlu0 %v17077_v49, %s17039_s19  ;;  %s5615_s19 = sshll.u32 %s15497_s21, 4  ;;  %s15541_s19 = int_to_ptr.vmem [resolvable:$true] %s5615_s19 }
 0x518   : > { %v13840_v25 = vsel %vm17216_vm8, %v17215_v27, %v7179_v4  ;;  %v17222_v27 = vunpack.i.l.bf16 %v17123_v0  ;;  %vm17223_vm6 = vmmov %vm17158_vm1  ;;  %v13901_v41 = vpop.permute.xlu0 %7717  ;;  %v17273_v2 = vunpack.i.h.bf16 %v17145_v8  ;;  %s8134_s25 = scalar_lea.vmem %s15541_s19, 2048  ;;  %p8141_p13 = scmp.lt.s32.totalorder %s15541_s19, %s8139_s22 }
 0x519   : > { %v13846_v40 = vsel %vm17158_vm1, %v17217_v7, %v7265_v43  ;;  %4504 = vmatpush1.bf16.msra.mxu1 %v17221_v63  ;;  %v17224_v43 = vunpack.i.h.bf16 %v17123_v0  ;;  %vm17225_vm9 = vmmov %vm17158_vm1  ;;  %v17227_v63 = vld [vmem:[#allocation95_spill] sm:$0xff]  ;;  %v3185_v0 = vpack.c.bf16 %v3184_v13, %v3183_v33  ;;  %17238 = vst [vmem:[#allocation126_spill] sm:$0xff] %v13901_v41  ;;  %vm17278_vm1 = vcmp.lt.s32.totalorder %v8883_v16, 99  ;;  %v17309_v41 = vld [vmem:[#allocation69_spill] sm:$0xff]  ;;  %p8135_p6 = scmp.ne.s32.totalorder %s15541_s19, %s8134_s25  ;;  %p8142_p3 = scmp.lt.s32.totalorder %s8140_s26, %s8134_s25 }
 0x51a   : > { %v13860_v60 = vsel %vm17223_vm6, %v7179_v4, %v17222_v27  ;;  %v17228_v7 = vpack.c.bf16 %v12823_v57, %v17227_v63  ;;  %vm17229_vm15 = vmmov %vm17168_vm2  ;;  %v17230_v4 = vld [vmem:[#allocation31_spill] sm:$0xff]  ;;  %v17234_v57 = vunpack.i.h.bf16 %v17211_v18  ;;  %v17236_v63 = vld [vmem:[#allocation112_spill] sm:$0xff] }
 0x51b   : > { %v13866_v21 = vsel %vm17225_vm9, %v7180_v26, %v17224_v43  ;;  %v13881_v26 = vsel %vm17229_vm15, %v7185_v12, %v7275_v42  ;;  %v17231_v39 = vunpack.i.l.bf16 %v17230_v4  ;;  %v17233_v43 = vunpack.i.h.bf16 %v17230_v4  ;;  %vm17235_vm3 = vmmov %vm17232_vm4  ;;  %4463 = vmatpush1.bf16.msra.mxu0 %v3185_v0  ;;  %p8136_p8 = pnand %p8135_p6, %p8378_p12  ;;  %p8143_p7 = por %p8142_p3, %p8141_p13 }
 0x51c   : > { %4505 = vmatprep.subr.bf16.mxu1 %v17228_v7  ;;  %v13899_v7 = vpop.permute.xlu1 %7712  ;;  %vm17241_vm14 = vmmov %vm17168_vm2  ;;  %vm17287_vm9 = vcmp.lt.s32.totalorder %v8883_v16, 109 }
 0x51d   : > { %v3247_v27 = vsel %vm17232_vm4, %v16091_v46, %v17231_v39  ;;  %v3248_v59 = vsel %vm17235_vm3, %v17234_v57, %v17233_v43  ;;  %17237 = vst [vmem:[#allocation127_spill] sm:$0xff] %v13899_v7  ;;  %v17239_v46 = vld [vmem:[#allocation119_spill] sm:$0xff]  ;;  %vm17243_vm5 = vmmov %vm17168_vm2  ;;  %v17244_v39 = vpack.c.bf16 %v12837_v6, %v12831_v58  ;;  %v17245_v43 = vld [vmem:[#allocation24_spill] sm:$0xff]  ;;  %v17253_v6 = vunpack.i.l.bf16 %v12272_v30  ;;  %p8137_p10 = pneg %p8136_p8 }
 0x51e   : > { %v17240_v33 = vunpack.i.h.bf16 %v17239_v46  ;;  %v17242_v0 = vunpack.i.l.bf16 %v17239_v46  ;;  %v17247_v22 = vpack.c.bf16 %v17245_v43, %v17246_v44  ;;  %vm17248_vm12 = vmmov %vm17168_vm2  ;;  %v3249_v58 = vpack.c.bf16 %v3248_v59, %v3247_v27  ;;  %v17259_v43 = vld [vmem:[#allocation111_spill] sm:$0xff]  ;;  %v13962_v59 = vpop.permute.xlu0 %7727 }
 0x51f   : > { %4464 = vmatprep.subr.bf16.mxu0 %v17244_v39  ;;  %vm17249_vm13 = vmmov %vm17168_vm2  ;;  %v17254_v44 = vunpack.i.l.bf16 %v17236_v63  ;;  %17261 = vst [vmem:[#allocation37_spill] sm:$0xff] %v13962_v59  ;;  %v17271_v59 = vld [vmem:[#allocation74_spill] sm:$0xff]  ;;  %p8144_p9 = pnand %p8143_p7, %p8137_p10 }
 0x520   : > { %v13915_v13 = vsel %vm17241_vm14, %v17240_v33, %v7185_v12  ;;  %v13921_v4 = vsel %vm17243_vm5, %v17242_v0, %v7184_v23  ;;  %4506 = vmatpush1.bf16.msra.mxu1 %v17247_v22  ;;  %v13933_v12 = vsel %vm17248_vm12, %v7275_v42, %v7190_v35  ;;  %v13937_v46 = vsel %vm17249_vm13, %v7274_v11, %v7189_v1  ;;  %v17250_v23 = vld [vmem:[#allocation19_spill] sm:$0xff]  ;;  %v17251_v33 = vld [vmem:[#allocation104_spill] sm:$0xff]  ;;  %vm17258_vm10 = vmmov %vm17255_vm11  ;;  %v13960_v27 = vpop.permute.xlu1 %7722 }
 0x521   : > { %v17252_v0 = vpack.c.bf16 %v17250_v23, %v17251_v33  ;;  %v3311_v42 = vsel %vm17255_vm11, %v17254_v44, %v17253_v6  ;;  %v17256_v22 = vunpack.i.h.bf16 %v12272_v30  ;;  %v17257_v11 = vunpack.i.h.bf16 %v17236_v63  ;;  %17260 = vst [vmem:[#allocation54_spill] sm:$0xff] %v13960_v27  ;;  %v17263_v44 = vld [vmem:[#allocation94_spill] sm:$0xff]  ;;  %4465 = vmatpush1.bf16.msra.mxu0 %v3249_v58  ;;  %vm17269_vm7 = vmmov %vm17168_vm2 }
 0x522   : > { %v7285_v57 = vunpack.i.h.bf16 %v17263_v44  ;;  %v7284_v3 = vunpack.i.l.bf16 %v17263_v44  ;;  %v17265_v33 = vpack.c.bf16 %v12940_v53, %v12934_v10  ;;  %v17270_v44 = vld [vmem:[#allocation22_spill] sm:$0xff]  ;;  %vm17274_vm8 = vmmov %vm17168_vm2  ;;  %vm17317_vm13 = vcmp.lt.s32.totalorder %v8883_v16, 91 }
 0x523   : > { %4507 = vmatprep.subr.bf16.mxu1 %v17252_v0  ;;  %v3312_v39 = vsel %vm17258_vm10, %v17257_v11, %v17256_v22  ;;  %v17262_v0 = vld [vmem:[#allocation78_spill] sm:$0xff]  ;;  %v17264_v22 = vld [vmem:[#allocation93_spill] sm:$0xff]  ;;  %v13993_v53 = vsel %vm17274_vm8, %v7190_v35, %v17273_v2  ;;  %vm17281_vm6 = vmmov %vm17278_vm1  ;;  %v14015_v2 = vpop.permute.xlu0 %7737  ;;  %vm17334_vm10 = vcmp.lt.s32.totalorder %v8883_v16, 101  ;;  %vm17343_vm8 = vcmp.lt.s32.totalorder %v8883_v16, 90 }
 0x524   : > { %v7195_v6 = vunpack.i.h.bf16 %v17262_v0  ;;  %v7194_v30 = vunpack.i.l.bf16 %v17262_v0  ;;  %v7200_v11 = vunpack.i.h.bf16 %v17264_v22  ;;  %v7199_v23 = vunpack.i.l.bf16 %v17264_v22  ;;  %4466 = vmatprep.subr.bf16.mxu0 %v17265_v33  ;;  %4508 = vmatpush1.bf16.msra.mxu1 %v17267_v61  ;;  %17284 = vst [vmem:[#allocation15_spill] sm:$0xff] %v14015_v2  ;;  %v17285_v61 = vld [vmem:[#allocation134_spill] sm:$0xff]  ;;  %vm17290_vm2 = vmmov %vm17287_vm9 }
 0x525   : > { %v13980_v0 = vsel %vm17269_vm7, %v7189_v1, %v17268_v55  ;;  %v17272_v22 = vpack.c.bf16 %v17270_v44, %v17271_v59  ;;  %v3313_v10 = vpack.c.bf16 %v3312_v39, %v3311_v42  ;;  %v17275_v55 = vld [vmem:[#allocation42_spill] sm:$0xff]  ;;  %v17277_v1 = vunpack.i.l.bf16 %v17259_v43  ;;  %vm17292_vm15 = vmmov %vm17290_vm2  ;;  %v17302_v44 = vld [vmem:[#allocation20_spill] sm:$0xff] }
 0x526   : > { %v17276_v14 = vunpack.i.l.bf16 %v17275_v55  ;;  %v17279_v59 = vunpack.i.h.bf16 %v17275_v55  ;;  %v17280_v42 = vunpack.i.h.bf16 %v17259_v43  ;;  %v17282_v39 = vld [vmem:[#allocation122_spill] sm:$0xff]  ;;  %v14031_v5 = vsel %vm17292_vm15, %v7194_v30, %v7284_v3  ;;  %vm17293_vm4 = vmmov %vm17290_vm2 }
 0x527   : > { %4509 = vmatprep.subr.bf16.mxu1 %v17272_v22  ;;  %v14013_v22 = vpop.permute.xlu1 %7732  ;;  %4467 = vmatpush1.bf16.msra.mxu0 %v3313_v10  ;;  %vm17294_vm3 = vmmov %vm17290_vm2  ;;  %v17301_v10 = vld [vmem:[#allocation21_spill] sm:$0xff]  ;;  %v17304_v2 = vunpack.i.l.bf16 %v17171_v32 }
 0x528   : > { %v3375_v33 = vsel %vm17278_vm1, %v17277_v1, %v17276_v14  ;;  %v3376_v8 = vsel %vm17281_vm6, %v17280_v42, %v17279_v59  ;;  %17283 = vst [vmem:[#allocation60_spill] sm:$0xff] %v14013_v22  ;;  %v17286_v14 = vunpack.i.h.bf16 %v17285_v61  ;;  %v17289_v1 = vunpack.i.l.bf16 %v17285_v61  ;;  %vm17296_vm14 = vmmov %vm17290_vm2 }
 0x529   : > { %v14035_v42 = vsel %vm17293_vm4, %v7195_v6, %v7285_v57  ;;  %v14039_v58 = vsel %vm17294_vm3, %v7285_v57, %v7200_v11  ;;  %v14043_v61 = vsel %vm17296_vm14, %v7284_v3, %v7199_v23  ;;  %vm17305_vm5 = vmmov %vm17290_vm2  ;;  %v17307_v57 = vld [vmem:[#allocation101_spill] sm:$0xff]  ;;  %v17308_v3 = vld [vmem:[#allocation72_spill] sm:$0xff]  ;;  %vm17366_vm4 = vcmp.lt.s32.totalorder %v8883_v16, 89 }
 0x52a   : > { %v14021_v55 = vsel %vm17287_vm9, %v17286_v14, %v7195_v6  ;;  %v14027_v59 = vsel %vm17290_vm2, %v17289_v1, %v7194_v30  ;;  %17295 = vst [vmem:[#allocation13_spill] sm:$0xff] %v14039_v58  ;;  %17297 = vst [vmem:[#allocation63_spill] sm:$0xff] %v14043_v61  ;;  %v17298_v14 = vld [vmem:[#allocation90_spill] sm:$0xff]  ;;  %v17303_v30 = vpack.c.bf16 %v17301_v10, %v17302_v44  ;;  %v7205_v22 = vunpack.i.h.bf16 %v17307_v57 }
 0x52b   : > { %17288 = vst [vmem:[#allocation76_spill] sm:$0xff] %v14021_v55  ;;  %17291 = vst [vmem:[#allocation36_spill] sm:$0xff] %v14027_v59  ;;  %v17299_v1 = vld [vmem:[#allocation66_spill] sm:$0xff]  ;;  %v14055_v6 = vsel %vm17305_vm5, %v7199_v23, %v17304_v2  ;;  %v7204_v27 = vunpack.i.l.bf16 %v17307_v57  ;;  %v17310_v7 = vpack.c.bf16 %v17308_v3, %v17309_v41  ;;  %v17311_v44 = vunpack.i.h.bf16 %v17171_v32  ;;  %v5481_v57 = vld [vmem:[%s15595_s5] sm:$0xff] }
 0x52c   : > { %v17300_v35 = vpack.c.bf16 %v17298_v14, %v17299_v1  ;;  %4510 = vmatpush1.bf16.msra.mxu1 %v17303_v30  ;;  %17306 = vst [vmem:[#allocation131_spill] sm:$0xff] %v14055_v6  ;;  %vm17312_vm12 = vmmov %vm17290_vm2  ;;  %v17314_v23 = vld [vmem:[#allocation46_spill] sm:$0xff]  ;;  %v17316_v1 = vunpack.i.l.bf16 %v17282_v39  ;;  %v14088_v30 = vpop.permute.xlu0 %7747  ;;  %v5482_v3 = vld [vmem:[%s15595_s5 + $0x8] sm:$0xff]  ;;  %5485 = vperm.xlu1 %6990, %v5481_v57  }
 0x52d   : > { %4511 = vmatprep.subr.bf16.mxu1 %v17310_v7  ;;  %v14068_v14 = vsel %vm17312_vm12, %v7200_v11, %v17311_v44  ;;  %v17315_v2 = vunpack.i.l.bf16 %v17314_v23  ;;  %v17318_v41 = vunpack.i.h.bf16 %v17314_v23  ;;  %v17319_v7 = vunpack.i.h.bf16 %v17282_v39  ;;  %vm17320_vm11 = vmmov %vm17317_vm13  ;;  %v14086_v11 = vpop.permute.xlu1 %7742  ;;  %17323 = vst [vmem:[#allocation38_spill] sm:$0xff] %v14088_v30  ;;  %v17327_v30 = vld [vmem:[#allocation79_spill] sm:$0xff]  ;;  %v17332_v23 = vld [vmem:[#allocation132_spill] sm:$0xff]  ;;  %5490 = vperm.xlu0 %6989, %v5482_v3  }
 0x52e   : > { %4468 = vmatprep.subr.bf16.mxu0 %v17300_v35  ;;  %v3377_v35 = vpack.c.bf16 %v3376_v8, %v3375_v33  ;;  %17313 = vst [vmem:[#allocation102_spill] sm:$0xff] %v14068_v14  ;;  %v17321_v33 = vld [vmem:[#allocation57_spill] sm:$0xff]  ;;  %17322 = vst [vmem:[#allocation35_spill] sm:$0xff] %v14086_v11  ;;  %v17329_v44 = vld [vmem:[#allocation23_spill] sm:$0xff]  ;;  %v17333_v52 = vunpack.i.h.bf16 %v17332_v23  ;;  %vm17377_vm12 = vcmp.lt.s32.totalorder %v8883_v16, 100 }
 0x52f   : > { %v3439_v10 = vsel %vm17317_vm13, %v17316_v1, %v17315_v2  ;;  %v3440_v17 = vsel %vm17320_vm11, %v17319_v7, %v17318_v41  ;;  %v17324_v1 = vld [vmem:[#allocation55_spill] sm:$0xff]  ;;  %v17326_v8 = vld [vmem:[#allocation85_spill] sm:$0xff]  ;;  %v17331_v51 = vpack.c.bf16 %v17329_v44, %v17330_v56  ;;  %vm17336_vm7 = vmmov %vm17334_vm10  ;;  %v17342_v61 = vunpack.i.l.bf16 %v17321_v33 }
 0x530   : > { %4469 = vmatpush1.bf16.msra.mxu0 %v3377_v35  ;;  %v7295_v41 = vunpack.i.h.bf16 %v17324_v1  ;;  %v7294_v35 = vunpack.i.l.bf16 %v17324_v1  ;;  %v17325_v7 = vld [vmem:[#allocation91_spill] sm:$0xff]  ;;  %v17328_v11 = vpack.c.bf16 %v17326_v8, %v17327_v30  ;;  %v14119_v2 = vsel %vm17334_vm10, %v17333_v52, %v7205_v22  ;;  %v17338_v56 = vld [vmem:[#allocation18_spill] sm:$0xff]  ;;  %v17340_v44 = vld [vmem:[#allocation49_spill] sm:$0xff] }
 0x531   : > { %v7210_v32 = vunpack.i.h.bf16 %v17325_v7  ;;  %4512 = vmatpush1.bf16.msra.mxu1 %v17331_v51  ;;  %v17335_v1 = vunpack.i.l.bf16 %v17332_v23  ;;  %v7209_v8 = vunpack.i.l.bf16 %v17325_v7  ;;  %v3441_v30 = vpack.c.bf16 %v3440_v17, %v3439_v10  ;;  %vm17346_vm1 = vmmov %vm17343_vm8  ;;  %v17347_v58 = vld [vmem:[#allocation58_spill] sm:$0xff]  ;;  %v14145_v10 = vpop.permute.xlu1 %7752  ;;  %v5509_v17 = vld [vmem:[%s15596_s6] sm:$0xff] }
 0x532   : > { %4470 = vmatprep.subr.bf16.mxu0 %v17328_v11  ;;  %v17337_v11 = vld [vmem:[#allocation120_spill] sm:$0xff]  ;;  %v17341_v49 = vunpack.i.l.bf16 %v17340_v44  ;;  %v17344_v23 = vunpack.i.h.bf16 %v17340_v44  ;;  %17348 = vst [vmem:[#allocation125_spill] sm:$0xff] %v14145_v10  ;;  %v17349_v57 = vld [vmem:[#allocation106_spill] sm:$0xff]  ;;  %vm17352_vm6 = vmmov %vm17336_vm7  ;;  %5513 = vperm.xlu1 %6990, %v5509_v17  }
 0x533   : > { %v14125_v31 = vsel %vm17336_vm7, %v17335_v1, %v7204_v27  ;;  %v17339_v51 = vpack.c.bf16 %v17337_v11, %v17338_v56  ;;  %v17345_v1 = vunpack.i.h.bf16 %v17321_v33  ;;  %v17350_v56 = vld [vmem:[#allocation107_spill] sm:$0xff]  ;;  %v5510_v3 = vld [vmem:[%s15596_s6 + $0x8] sm:$0xff]  ;;  %v17353_v59 = vld [vmem:[#allocation73_spill] sm:$0xff] }
 0x534   : > { %v3503_v52 = vsel %vm17343_vm8, %v17342_v61, %v17341_v49  ;;  %v7215_v61 = vunpack.i.h.bf16 %v17349_v57  ;;  %v7214_v49 = vunpack.i.l.bf16 %v17349_v57  ;;  %v7304_v44 = vunpack.i.l.bf16 %v17350_v56  ;;  %4471 = vmatpush1.bf16.msra.mxu0 %v3441_v30  ;;  %v17354_v11 = vld [vmem:[#allocation108_spill] sm:$0xff]  ;;  %v17357_v33 = vld [vmem:[#allocation105_spill] sm:$0xff]  ;;  %vm17359_vm9 = vmmov %vm17352_vm6  ;;  %5518 = vperm.xlu0 %6989, %v5510_v3  }
 0x535   : > { %4513 = vmatprep.subr.bf16.mxu1 %v17339_v51  ;;  %v3504_v7 = vsel %vm17346_vm1, %v17345_v1, %v17344_v23  ;;  %v7305_v51 = vunpack.i.h.bf16 %v17350_v56  ;;  %v14154_v23 = vpop.permute.xlu0 %7757  ;;  %v14161_v1 = vsel %vm17352_vm6, %v7295_v41, %v7210_v32  ;;  %v17355_v10 = vpack.c.bf16 %v17353_v59, %v17354_v11  ;;  %v17356_v57 = vld [vmem:[#allocation84_spill] sm:$0xff]  ;;  %vm17360_vm2 = vmmov %vm17352_vm6  ;;  %v17362_v6 = vld [vmem:[#allocation113_spill] sm:$0xff] }
 0x536   : > { %17351 = vst [vmem:[#allocation117_spill] sm:$0xff] %v14154_v23  ;;  %v17358_v55 = vpack.c.bf16 %v17356_v57, %v17357_v33  ;;  %v14171_v30 = vsel %vm17359_vm9, %v7204_v27, %v7294_v35  ;;  %v14175_v56 = vsel %vm17360_vm2, %v7205_v22, %v7295_v41  ;;  %vm17361_vm15 = vmmov %vm17360_vm2  ;;  %v7220_v14 = vunpack.i.h.bf16 %v17362_v6 }
 0x537   : > { %4472 = vmatprep.subr.bf16.mxu0 %v17355_v10  ;;  %v14179_v23 = vsel %vm17361_vm15, %v7294_v35, %v7209_v8  ;;  %v7219_v59 = vunpack.i.l.bf16 %v17362_v6  ;;  %v17363_v33 = vpack.c.bf16 %v13286_v54, %v13280_v47  ;;  %v17364_v27 = vunpack.i.l.bf16 %v17028_v48  ;;  %vm17369_vm3 = vmmov %vm17366_vm4  ;;  %v14198_v10 = vpop.permute.xlu1 %7762 }
 0x538   : > { %4514 = vmatpush1.bf16.msra.mxu1 %v17358_v55  ;;  %v3505_v55 = vpack.c.bf16 %v3504_v7, %v3503_v52  ;;  %v17365_v11 = vunpack.i.l.bf16 %v17347_v58  ;;  %v17367_v41 = vunpack.i.h.bf16 %v17028_v48  ;;  %v17368_v35 = vunpack.i.h.bf16 %v17347_v58  ;;  %17370 = vst [vmem:[#allocation33_spill] sm:$0xff] %v14198_v10  ;;  %vm17372_vm14 = vmmov %vm17360_vm2  ;;  %v17375_v48 = vld [vmem:[#allocation133_spill] sm:$0xff] }
 0x539   : > { %4515 = vmatprep.subr.bf16.mxu1 %v17363_v33  ;;  %v17371_v54 = vunpack.i.l.bf16 %v17211_v18  ;;  %v17373_v52 = vunpack.i.h.bf16 %v17211_v18  ;;  %vm17374_vm5 = vmmov %vm17360_vm2  ;;  %v17376_v17 = vunpack.i.h.bf16 %v17375_v48  ;;  %v17378_v3 = vunpack.i.l.bf16 %v17375_v48 }
 0x53a   : > { %v3567_v22 = vsel %vm17366_vm4, %v17365_v11, %v17364_v27  ;;  %v3568_v6 = vsel %vm17369_vm3, %v17368_v35, %v17367_v41  ;;  %vm17379_vm13 = vmmov %vm17377_vm12  ;;  %4473 = vmatpush1.bf16.msra.mxu0 %v3505_v55  ;;  %v17383_v27 = vld [vmem:[#allocation124_spill] sm:$0xff]  ;;  %v17384_v35 = vld [vmem:[#allocation123_spill] sm:$0xff]  ;;  %v17385_v55 = vpack.c.bf16 %v13387_v34, %v13373_v9  ;;  %vm17398_vm9 = vcmp.lt.s32.totalorder %v8883_v16, 99 }
 0x53b   : > { %v14204_v47 = vsel %vm17372_vm14, %v7209_v8, %v17371_v54  ;;  %v14210_v7 = vsel %vm17374_vm5, %v7210_v32, %v17373_v52  ;;  %v14216_v57 = vsel %vm17377_vm12, %v17376_v17, %v7215_v61  ;;  %v14222_v33 = vsel %vm17379_vm13, %v17378_v3, %v7214_v49  ;;  %v14224_v8 = vpop.permute.xlu0 %7767  ;;  %vm17381_vm11 = vmmov %vm17377_vm12  ;;  %v14257_v34 = vpop.permute.xlu1 %7772 }
 0x53c   : > { %17380 = vst [vmem:[#allocation98_spill] sm:$0xff] %v14224_v8  ;;  %v14228_v18 = vsel %vm17381_vm11, %v7214_v49, %v7304_v44  ;;  %vm17382_vm10 = vmmov %vm17381_vm11  ;;  %v7225_v11 = vunpack.i.h.bf16 %v17383_v27  ;;  %v7224_v41 = vunpack.i.l.bf16 %v17383_v27  ;;  %v7315_v54 = vunpack.i.h.bf16 %v17384_v35  ;;  %4474 = vmatprep.subr.bf16.mxu0 %v17385_v55  ;;  %v17414_v55 = vld [vmem:[#allocation128_spill] sm:$0xff] }
 0x53d   : > { %v14232_v32 = vsel %vm17382_vm10, %v7215_v61, %v7305_v51  ;;  %v7314_v52 = vunpack.i.l.bf16 %v17384_v35  ;;  %v17386_v49 = vpack.c.bf16 %v13256_v50, %v13260_v45  ;;  %vm17387_vm7 = vmmov %vm17382_vm10  ;;  %v17389_v17 = vpack.c.bf16 %v13493_v24, %v13485_v36  ;;  %v14259_v50 = vld [vmem:[#allocation6] ss:$8 sps:$4 sm:$0xff]  }
 0x53e   : > { %v14246_v61 = vsel %vm17387_vm7, %v7305_v51, %v7220_v14  ;;  %vm17388_vm8 = vmmov %vm17387_vm7  ;;  %v3569_v3 = vpack.c.bf16 %v3568_v6, %v3567_v22  ;;  %17390 = vst [vmem:[#allocation34_spill] sm:$0xff] %v14259_v50  ;;  %v17393_v24 = vunpack.i.h.bf16 %v17236_v63  ;;  %v17395_v6 = vld [vmem:[#allocation110_spill] sm:$0xff]  ;;  %v7335_v9 = vunpack.i.h.bf16 %v17414_v55 }
 0x53f   : > { %4516 = vmatpush1.bf16.msra.mxu1 %v17386_v49  ;;  %v14250_v48 = vsel %vm17388_vm8, %v7304_v44, %v7219_v59  ;;  %v17391_v44 = vunpack.i.l.bf16 %v17236_v63  ;;  %vm17392_vm1 = vmmov %vm17387_vm7  ;;  %v7230_v27 = vunpack.i.h.bf16 %v17395_v6  ;;  %v14278_v35 = vpop.permute.xlu0 %7777  ;;  %v17396_v63 = vpack.c.bf16 %v13470_v29, %v13529_v38 }
 0x540   : > { %4517 = vmatprep.subr.bf16.mxu1 %v17389_v17  ;;  %vm17394_vm6 = vmmov %vm17392_vm1  ;;  %4475 = vmatpush1.bf16.msra.mxu0 %v3569_v3  ;;  %v14294_v17 = vsel %vm17398_vm9, %v7224_v41, %v7314_v52  ;;  %vm17425_vm13 = vcmp.lt.s32.totalorder %v8883_v16, 91 }
 0x541   : > { %v14269_v36 = vsel %vm17392_vm1, %v7219_v59, %v17391_v44  ;;  %v14275_v22 = vsel %vm17394_vm6, %v7220_v14, %v17393_v24  ;;  %v17397_v14 = vpack.c.bf16 %v13846_v40, %v13712_v62  ;;  %vm17399_vm2 = vmmov %vm17398_vm9  ;;  %v17400_v24 = vld [vmem:[#allocation43_spill] sm:$0xff]  ;;  %v7229_v40 = vunpack.i.l.bf16 %v17395_v6 }
 0x542   : > { %v14298_v3 = vsel %vm17399_vm2, %v7225_v11, %v7315_v54  ;;  %v17401_v59 = vunpack.i.h.bf16 %v17400_v24  ;;  %vm17402_vm15 = vmmov %vm17399_vm2  ;;  %v17403_v38 = vunpack.i.l.bf16 %v17400_v24  ;;  %v17406_v44 = vld [vmem:[#allocation75_spill] sm:$0xff] }
 0x543   : > { %4518 = vmatpush1.bf16.msra.mxu1 %v17396_v63  ;;  %4544 = vmatprep.subr.bf16.mxu0 %v17397_v14  ;;  %vm17404_vm4 = vmmov %vm17399_vm2  ;;  %v17405_v63 = vpack.c.bf16 %v13866_v21, %v13860_v60  ;;  %v7235_v51 = vunpack.i.h.bf16 %v17406_v44  ;;  %v17410_v60 = vld [vmem:[#allocation121_spill] sm:$0xff]  ;;  %v17413_v14 = vld [vmem:[#allocation130_spill] sm:$0xff] }
 0x544   : > { %v14306_v29 = vsel %vm17402_vm15, %v17401_v59, %v7225_v11  ;;  %v14312_v62 = vsel %vm17404_vm4, %v17403_v38, %v7224_v41  ;;  %v7234_v11 = vunpack.i.l.bf16 %v17406_v44  ;;  %v17407_v59 = vld [vmem:[#allocation59_spill] sm:$0xff]  ;;  %4491 = vmatmul.mubr.bf16.vlgmr.msra.gmra.mrb[8].mxu0 %v14259_v50  ;;  %v14325_v41 = vpop.permute.xlu1 %7782  ;;  %vm17409_vm3 = vmmov %vm17399_vm2  ;;  %v7240_v21 = vunpack.i.h.bf16 %v17410_v60  ;;  %v14337_v44 = vpop.permute.xlu0 %7787 }
 0x545   : > { %4587 = vmatprep.subr.bf16.mxu1 %v17405_v63  ;;  %v7325_v49 = vunpack.i.h.bf16 %v17407_v59  ;;  %v7324_v24 = vunpack.i.l.bf16 %v17407_v59  ;;  %17408 = vst [vmem:[#allocation118_spill] sm:$0xff] %v14325_v41  ;;  %v14329_v6 = vsel %vm17409_vm3, %v7315_v54, %v7230_v27  ;;  %v7239_v38 = vunpack.i.l.bf16 %v17410_v60  ;;  %17412 = vst [vmem:[#allocation32_spill] sm:$0xff] %v14337_v44  ;;  %5755 = vmatprep.mubr.msk.bf16.mxu0 %vm1660_vm0, %v13765_v20 }
 0x546   : > { %v17411_v63 = vpack.c.bf16 %v13694_v37, %v13702_v28  ;;  %4534 = vmatmul.mubr.bf16.vlgmr.msra.gmra.mrb[8].mxu1 %v14259_v50  ;;  %v7245_v45 = vunpack.i.h.bf16 %v17413_v14  ;;  %v7244_v54 = vunpack.i.l.bf16 %v17413_v14  ;;  %v7334_v41 = vunpack.i.l.bf16 %v17414_v55  ;;  %vm17417_vm14 = vmmov %vm17399_vm2  ;;  %v17467_v50 = vld [vmem:[#allocation57_spill] sm:$0xff] }
 0x547   : > { %v17415_v60 = vpack.c.bf16 %v13881_v26, %v13870_v15  ;;  %v17416_v37 = vpack.c.bf16 %v13834_v19, %v13840_v25  ;;  %v14353_v28 = vsel %vm17417_vm14, %v7314_v52, %v7229_v40  ;;  %v17419_v14 = vunpack.i.l.bf16 %v17259_v43  ;;  %vm17420_vm5 = vmmov %vm17399_vm2  ;;  %v17423_v25 = vld [vmem:[#allocation48_spill] sm:$0xff]  ;;  %5756 = vmatprep.mubr.msk.bf16.mxu1 %vm1660_vm0, %v13765_v20 }
 0x548   : > { %4545 = vmatpush1.bf16.msra.mxu0 %v17411_v63  ;;  %v17418_v63 = vpack.c.bf16 %v13993_v53, %v13980_v0  ;;  %v17421_v15 = vunpack.i.h.bf16 %v17259_v43  ;;  %vm17422_vm12 = vmmov %vm17399_vm2  ;;  %v17424_v26 = vunpack.i.h.bf16 %v17423_v25  ;;  %v17426_v53 = vunpack.i.l.bf16 %v17423_v25  ;;  %v14384_v43 = vpop.permute.xlu1 %7792 }
 0x549   : > { %4546 = vmatprep.subr.bf16.mxu0 %v17415_v60  ;;  %4588 = vmatpush1.bf16.msra.mxu1 %v17416_v37  ;;  %v14362_v55 = vsel %vm17420_vm5, %v7229_v40, %v17419_v14  ;;  %vm17427_vm11 = vmmov %vm17425_vm13  ;;  %17428 = vst [vmem:[#allocation129_spill] sm:$0xff] %v14384_v43  ;;  %v17437_v20 = vunpack.i.h.bf16 %v17282_v39  ;;  %vm17442_vm2 = vcmp.lt.s32.totalorder %v8883_v16, 90  ;;  %v17482_v44 = vpack.c.bf16 %v14232_v32, %v14228_v18 }
 0x54a   : > { %4589 = vmatprep.subr.bf16.mxu1 %v17418_v63  ;;  %v14368_v19 = vsel %vm17422_vm12, %v7230_v27, %v17421_v15  ;;  %v14376_v0 = vsel %vm17425_vm13, %v17424_v26, %v7235_v51  ;;  %v14382_v52 = vsel %vm17427_vm11, %v17426_v53, %v7234_v11  ;;  %vm17429_vm10 = vmmov %vm17427_vm11  ;;  %v17433_v63 = vpack.c.bf16 %v13915_v13, %v13921_v4  ;;  %v17445_v26 = vld [vmem:[#allocation131_spill] sm:$0xff] }
 0x54b   : > { %v14388_v27 = vsel %vm17429_vm10, %v7234_v11, %v7324_v24  ;;  %vm17430_vm7 = vmmov %vm17429_vm10  ;;  %v14407_v11 = vpop.permute.xlu0 %7797  ;;  %v17440_v13 = vpack.c.bf16 %v14035_v42, %v14031_v5  ;;  %v17441_v4 = vpack.c.bf16 %v13933_v12, %v13937_v46  ;;  %vm17475_vm13 = vcmp.lt.s32.totalorder %v8883_v16, 89 }
 0x54c   : > { %v14392_v40 = vsel %vm17430_vm7, %v7235_v51, %v7325_v49  ;;  %vm17431_vm8 = vmmov %vm17430_vm7  ;;  %4547 = vmatpush1.bf16.msra.mxu0 %v17433_v63  ;;  %17434 = vst [vmem:[#allocation45_spill] sm:$0xff] %v14407_v11  ;;  %v17435_v51 = vunpack.i.l.bf16 %v17282_v39  ;;  %v17447_v63 = vld [vmem:[#allocation51_spill] sm:$0xff] }
 0x54d   : > { %v14398_v60 = vsel %vm17431_vm8, %v7325_v49, %v7240_v21  ;;  %vm17432_vm1 = vmmov %vm17430_vm7  ;;  %4548 = vmatprep.subr.bf16.mxu0 %v17440_v13  ;;  %4590 = vmatpush1.bf16.msra.mxu1 %v17441_v4  ;;  %v14460_v4 = vpop.permute.xlu1 %7802 }
 0x54e   : > { %v14402_v37 = vsel %vm17432_vm1, %v7324_v24, %v7239_v38  ;;  %vm17436_vm6 = vmmov %vm17432_vm1  ;;  %v17439_v24 = vld [vmem:[#allocation14_spill] sm:$0xff]  ;;  %17452 = vst [vmem:[#allocation44_spill] sm:$0xff] %v14460_v4 }
 0x54f   : > { %v14413_v14 = vsel %vm17436_vm6, %v7239_v38, %v17435_v51  ;;  %vm17438_vm9 = vmmov %vm17432_vm1  ;;  %v7250_v15 = vunpack.i.h.bf16 %v17439_v24  ;;  %v7249_v25 = vunpack.i.l.bf16 %v17439_v24  ;;  %v14431_v38 = vsel %vm17442_vm2, %v7244_v54, %v7334_v41 }
 0x550   : > { %v14419_v49 = vsel %vm17438_vm9, %v7240_v21, %v17437_v20  ;;  %vm17443_vm15 = vmmov %vm17442_vm2  ;;  %v17444_v21 = vld [vmem:[#allocation102_spill] sm:$0xff]  ;;  %v17448_v51 = vunpack.i.h.bf16 %v17447_v63  ;;  %v17450_v24 = vunpack.i.l.bf16 %v17447_v63  ;;  %v14471_v63 = vpop.permute.xlu0 %7807 }
 0x551   : > { %v14435_v39 = vsel %vm17443_vm15, %v7245_v45, %v7335_v9  ;;  %v17446_v53 = vpack.c.bf16 %v17444_v21, %v17445_v26  ;;  %vm17449_vm4 = vmmov %vm17442_vm2  ;;  %17457 = vst [vmem:[#allocation82_spill] sm:$0xff] %v14471_v63  ;;  %v17468_v63 = vunpack.i.l.bf16 %v17467_v50  ;;  %v14510_v4 = vpop.permute.xlu1 %7812  ;;  %vm17493_vm15 = vcmp.lt.s32.totalorder %v8883_v16, 38 }
 0x552   : > { %v14452_v20 = vsel %vm17449_vm4, %v17448_v51, %v7245_v45  ;;  %vm17451_vm3 = vmmov %vm17442_vm2  ;;  %v17454_v45 = vld [vmem:[#allocation76_spill] sm:$0xff]  ;;  %17472 = vst [vmem:[#allocation40_spill] sm:$0xff] %v14510_v4 }
 0x553   : > { %4591 = vmatprep.subr.bf16.mxu1 %v17446_v53  ;;  %v14458_v13 = vsel %vm17451_vm3, %v17450_v24, %v7244_v54  ;;  %v17453_v53 = vld [vmem:[#allocation62_spill] sm:$0xff]  ;;  %v17455_v51 = vld [vmem:[#allocation36_spill] sm:$0xff]  ;;  %vm17458_vm14 = vmmov %vm17442_vm2 }
 0x554   : > { %v7255_v46 = vunpack.i.h.bf16 %v17453_v53  ;;  %v7254_v12 = vunpack.i.l.bf16 %v17453_v53  ;;  %v17456_v42 = vpack.c.bf16 %v17454_v45, %v17455_v51  ;;  %v14479_v21 = vsel %vm17458_vm14, %v7335_v9, %v7250_v15  ;;  %vm17459_vm5 = vmmov %vm17442_vm2  ;;  %v17460_v53 = vld [vmem:[#allocation56_spill] sm:$0xff]  ;;  %v17462_v51 = vld [vmem:[#allocation13_spill] sm:$0xff] }
 0x555   : > { %v14483_v26 = vsel %vm17459_vm5, %v7334_v41, %v7249_v25  ;;  %v7345_v5 = vunpack.i.h.bf16 %v17460_v53  ;;  %v17461_v45 = vpack.c.bf16 %v14175_v56, %v14171_v30  ;;  %v17463_v54 = vld [vmem:[#allocation63_spill] sm:$0xff]  ;;  %v17465_v24 = vld [vmem:[#allocation61_spill] sm:$0xff]  ;;  %v17466_v41 = vpack.c.bf16 %v14210_v7, %v14204_v47  ;;  %vm17469_vm12 = vmmov %vm17442_vm2  ;;  %v14527_v30 = vpop.permute.xlu0 %7817 }
 0x556   : > { %4549 = vmatpush1.bf16.msra.mxu0 %v17456_v42  ;;  %v7344_v42 = vunpack.i.l.bf16 %v17460_v53  ;;  %v17464_v59 = vpack.c.bf16 %v17462_v51, %v17463_v54  ;;  %v7260_v11 = vunpack.i.h.bf16 %v17465_v24  ;;  %v7259_v9 = vunpack.i.l.bf16 %v17465_v24  ;;  %v17470_v56 = vld [vmem:[#allocation97_spill] sm:$0xff]  ;;  %v17473_v47 = vld [vmem:[#allocation39_spill] sm:$0xff]  ;;  %vm17477_vm11 = vmmov %vm17475_vm13 }
 0x557   : > { %4550 = vmatprep.subr.bf16.mxu0 %v17461_v45  ;;  %v14502_v53 = vsel %vm17469_vm12, %v7249_v25, %v17468_v63  ;;  %v7705_v54 = vunpack.i.h.bf16 %v17470_v56  ;;  %v17471_v45 = vld [vmem:[#allocation50_spill] sm:$0xff]  ;;  %v17474_v7 = vunpack.i.h.bf16 %v17473_v47  ;;  %v17476_v25 = vunpack.i.l.bf16 %v17473_v47  ;;  %vm17480_vm10 = vmmov %vm17442_vm2 }
 0x558   : > { %4592 = vmatpush1.bf16.msra.mxu1 %v17464_v59  ;;  %v7704_v59 = vunpack.i.l.bf16 %v17470_v56  ;;  %v7710_v51 = vunpack.i.h.bf16 %v17471_v45  ;;  %v7709_v24 = vunpack.i.l.bf16 %v17471_v45  ;;  %v17478_v56 = vpack.c.bf16 %v14119_v2, %v14125_v31  ;;  %v17481_v47 = vld [vmem:[#allocation30_spill] sm:$0xff]  ;;  %vm17484_vm7 = vmmov %vm17477_vm11 }
 0x559   : > { %4593 = vmatprep.subr.bf16.mxu1 %v17466_v41  ;;  %v14516_v41 = vsel %vm17475_vm13, %v17474_v7, %v7255_v46  ;;  %v14522_v63 = vsel %vm17477_vm11, %v17476_v25, %v7254_v12  ;;  %v17479_v45 = vunpack.i.h.bf16 %v17467_v50  ;;  %v7700_v43 = vunpack.i.h.bf16 %v17481_v47  ;;  %vm17485_vm8 = vmmov %vm17484_vm7 }
 0x55a   : > { %4551 = vmatpush1.bf16.msra.mxu0 %v17478_v56  ;;  %v7699_v25 = vunpack.i.l.bf16 %v17481_v47  ;;  %v17483_v31 = vpack.c.bf16 %v14161_v1, %v14179_v23  ;;  %v14547_v2 = vsel %vm17484_vm7, %v7254_v12, %v7344_v42  ;;  %v14551_v50 = vsel %vm17485_vm8, %v7255_v46, %v7345_v5  ;;  %vm17486_vm1 = vmmov %vm17484_vm7  ;;  %v17498_v56 = vld [vmem:[#allocation126_spill] sm:$0xff] }
 0x55b   : > { %v14533_v4 = vsel %vm17480_vm10, %v7250_v15, %v17479_v45  ;;  %4552 = vmatprep.subr.bf16.mxu0 %v17482_v44  ;;  %v14555_v15 = vsel %vm17486_vm1, %v7345_v5, %v7260_v11  ;;  %vm17487_vm6 = vmmov %vm17486_vm1  ;;  %v17488_v23 = vpack.c.bf16 %v14275_v22, %v14269_v36  ;;  %v17489_v1 = vunpack.i.l.bf16 %v17347_v58  ;;  %v14584_v22 = vpop.permute.xlu1 %7822 }
 0x55c   : > { %4594 = vmatpush1.bf16.msra.mxu1 %v17483_v31  ;;  %v14559_v18 = vsel %vm17487_vm6, %v7344_v42, %v7259_v9  ;;  %vm17490_vm9 = vmmov %vm17486_vm1  ;;  %v17491_v44 = vunpack.i.h.bf16 %v17347_v58  ;;  %v14578_v12 = vsel %vm17493_vm15, %v7704_v59, %v7709_v24  ;;  %v17499_v31 = vpack.c.bf16 %v14216_v57, %v14222_v33  ;;  %v17504_v57 = vld [vmem:[#allocation60_spill] sm:$0xff] }
 0x55d   : > { %4595 = vmatprep.subr.bf16.mxu1 %v17488_v23  ;;  %v14568_v32 = vsel %vm17490_vm9, %v7259_v9, %v17489_v1  ;;  %vm17492_vm2 = vmmov %vm17486_vm1  ;;  %v14601_v23 = vpop.permute.xlu0 %7827  ;;  %v17502_v9 = vpack.c.bf16 %v14298_v3, %v14294_v17  ;;  %v17503_v45 = vpack.c.bf16 %v14246_v61, %v14250_v48  ;;  %v7735_v33 = vunpack.i.h.bf16 %v17504_v57 }
 0x55e   : > { %v14574_v5 = vsel %vm17492_vm2, %v7260_v11, %v17491_v44  ;;  %vm17494_vm4 = vmmov %vm17493_vm15  ;;  %v17497_v11 = vld [vmem:[#allocation127_spill] sm:$0xff]  ;;  %4553 = vmatpush1.bf16.msra.mxu0 %v17499_v31  ;;  %v7734_v31 = vunpack.i.l.bf16 %v17504_v57  ;;  %v17505_v47 = vpack.c.bf16 %v14368_v19, %v14362_v55  ;;  %v17506_v19 = vunpack.i.l.bf16 %v17498_v56 }
 0x55f   : > { %v14582_v36 = vsel %vm17494_vm4, %v7705_v54, %v7710_v51  ;;  %vm17495_vm3 = vmmov %vm17494_vm4  ;;  %4554 = vmatprep.subr.bf16.mxu0 %v17502_v9  ;;  %v14624_v3 = vpop.permute.xlu1 %7832  ;;  %v3576_v61 = vpack.c.bf16 %v14574_v5, %v14568_v32  ;;  %v17511_v9 = vunpack.i.l.bf16 %v17497_v11  ;;  %vm17518_vm10 = vcmp.lt.s32.totalorder %v8883_v16, 37 }
 0x560   : > { %v14588_v46 = vsel %vm17495_vm3, %v7699_v25, %v7704_v59  ;;  %vm17496_vm14 = vmmov %vm17495_vm3  ;;  %v17500_v59 = vld [vmem:[#allocation54_spill] sm:$0xff]  ;;  %4596 = vmatpush1.bf16.msra.mxu1 %v17503_v45  ;;  %v17513_v45 = vld [vmem:[#allocation15_spill] sm:$0xff]  ;;  %v16130_v55 = vunpack.i.l.bf16 %v14198_v10  ;;  %vm17536_vm4 = vcmp.lt.s32.totalorder %v8883_v16, 29 }
 0x561   : > { %v14592_v58 = vsel %vm17496_vm14, %v7700_v43, %v7705_v54  ;;  %v7725_v1 = vunpack.i.h.bf16 %v17500_v59  ;;  %v7724_v44 = vunpack.i.l.bf16 %v17500_v59  ;;  %v17501_v54 = vld [vmem:[#allocation37_spill] sm:$0xff]  ;;  %4597 = vmatprep.subr.bf16.mxu1 %v17505_v47  ;;  %v3512_v59 = vpack.c.bf16 %v14533_v4, %v14502_v53  ;;  %vm17507_vm5 = vmmov %vm17495_vm3  ;;  %v14647_v32 = vpop.permute.xlu0 %7837 }
 0x562   : > { %v7730_v7 = vunpack.i.h.bf16 %v17501_v54  ;;  %v7729_v42 = vunpack.i.l.bf16 %v17501_v54  ;;  %v3574_v54 = vpack.c.bf16 %v14551_v50, %v14547_v2  ;;  %v14636_v4 = vsel %vm17507_vm5, %v17506_v19, %v7699_v25  ;;  %vm17509_vm12 = vmmov %vm17495_vm3 }
 0x563   : > { %v17508_v53 = vunpack.i.h.bf16 %v17498_v56  ;;  %v17510_v50 = vpack.c.bf16 %v14306_v29, %v14312_v62  ;;  %vm17512_vm13 = vmmov %vm17495_vm3  ;;  %v17515_v29 = vpack.c.bf16 %v14329_v6, %v14353_v28  ;;  %v17516_v62 = vunpack.i.h.bf16 %v17497_v11  ;;  %v14695_v17 = vpop.permute.xlu1 %7842  ;;  %v17578_v11 = vld [vmem:[#allocation28_spill] sm:$0xff] }
 0x564   : > { %v14655_v25 = vsel %vm17512_vm13, %v7709_v24, %v17511_v9  ;;  %vm17517_vm11 = vmmov %vm17495_vm3  ;;  %v14672_v24 = vsel %vm17518_vm10, %v7724_v44, %v7729_v42  ;;  %v16129_v28 = vunpack.i.l.bf16 %v17513_v45  ;;  %v17524_v9 = vld [vmem:[#allocation125_spill] sm:$0xff]  ;;  %v16131_v47 = vunpack.i.h.bf16 %v14198_v10 }
 0x565   : > { %v14642_v2 = vsel %vm17509_vm12, %v17508_v53, %v7700_v43  ;;  %4555 = vmatpush1.bf16.msra.mxu0 %v17510_v50  ;;  %v17514_v43 = vpack.c.bf16 %v14392_v40, %v14388_v27  ;;  %4598 = vmatpush1.bf16.msra.mxu1 %v17515_v29  ;;  %v14668_v57 = vsel %vm17517_vm11, %v7710_v51, %v17516_v62  ;;  %vm17519_vm7 = vmmov %vm17518_vm10  ;;  %v17522_v40 = vld [vmem:[#allocation35_spill] sm:$0xff]  ;;  %v7754_v29 = vunpack.i.l.bf16 %v17524_v9 }
 0x566   : > { %v14676_v19 = vsel %vm17519_vm7, %v7725_v1, %v7730_v7  ;;  %vm17520_vm8 = vmmov %vm17519_vm7  ;;  %v16128_v51 = vunpack.i.l.bf16 %v17522_v40  ;;  %v17523_v53 = vpack.c.bf16 %v14419_v49, %v14413_v14  ;;  %v17526_v14 = vpack.c.bf16 %v14376_v0, %v14382_v52  ;;  %v14704_v49 = vpop.permute.xlu0 %7847 }
 0x567   : > { %4556 = vmatprep.subr.bf16.mxu0 %v17514_v43  ;;  %v14680_v27 = vsel %vm17520_vm8, %v7730_v7, %v7735_v33  ;;  %vm17521_vm1 = vmmov %vm17519_vm7  ;;  %v7755_v43 = vunpack.i.h.bf16 %v17524_v9  ;;  %v17525_v7 = vld [vmem:[#allocation117_spill] sm:$0xff]  ;;  %v17527_v9 = vld [vmem:[#allocation38_spill] sm:$0xff]  ;;  %v17542_v52 = vpack.c.bf16 %v14479_v21, %v14483_v26  ;;  %vm17554_vm7 = vcmp.lt.s32.totalorder %v8883_v16, 28 }
 0x568   : > { %v14684_v6 = vsel %vm17521_vm1, %v7729_v42, %v7734_v31  ;;  %4599 = vmatprep.subr.bf16.mxu1 %v17523_v53  ;;  %v7759_v62 = vunpack.i.l.bf16 %v17525_v7  ;;  %v7760_v5 = vunpack.i.h.bf16 %v17525_v7  ;;  %v7750_v48 = vunpack.i.h.bf16 %v17527_v9  ;;  %vm17530_vm6 = vmmov %vm17521_vm1 }
 0x569   : > { %4557 = vmatpush1.bf16.msra.mxu0 %v17526_v14  ;;  %v7749_v50 = vunpack.i.l.bf16 %v17527_v9  ;;  %v17528_v7 = vpack.c.bf16 %v14435_v39, %v14431_v38  ;;  %v17529_v42 = vpack.c.bf16 %v14398_v60, %v14402_v37  ;;  %v14725_v14 = vsel %vm17530_vm6, %v16128_v51, %v7724_v44  ;;  %vm17531_vm9 = vmmov %vm17521_vm1 }
 0x56a   : > { %v14731_v38 = vsel %vm17531_vm9, %v7734_v31, %v16129_v28  ;;  %v17532_v60 = vunpack.i.h.bf16 %v17513_v45  ;;  %vm17533_vm2 = vmmov %vm17521_vm1  ;;  %v17534_v39 = vunpack.i.h.bf16 %v17522_v40  ;;  %v14747_v44 = vsel %vm17536_vm4, %v7754_v29, %v7759_v62  ;;  %v17572_v40 = vld [vmem:[#allocation99_spill] sm:$0xff] }
 0x56b   : > { %4558 = vmatprep.subr.bf16.mxu0 %v17528_v7  ;;  %4600 = vmatpush1.bf16.msra.mxu1 %v17529_v42  ;;  %vm17535_vm15 = vmmov %vm17521_vm1  ;;  %v16132_v7 = vunpack.i.l.bf16 %v14224_v8  ;;  %v7775_v51 = vunpack.i.h.bf16 %v14257_v34  ;;  %v7779_v28 = vunpack.i.l.bf16 %v14278_v35  ;;  %v17548_v53 = vpack.c.bf16 %v14516_v41, %v14522_v63 }
 0x56c   : > { %4601 = vmatprep.subr.bf16.mxu1 %v3512_v59  ;;  %v14737_v37 = vsel %vm17533_vm2, %v7735_v33, %v17532_v60  ;;  %v14743_v42 = vsel %vm17535_vm15, %v17534_v39, %v7725_v1  ;;  %v14749_v59 = vpop.permute.xlu1 %7852  ;;  %vm17537_vm3 = vmmov %vm17536_vm4  ;;  %v16133_v1 = vunpack.i.h.bf16 %v14224_v8  ;;  %v17540_v60 = vpack.c.bf16 %v14452_v20, %v14458_v13  ;;  %v14768_v39 = vpop.permute.xlu0 %7857 }
 0x56d   : > { %v14753_v31 = vsel %vm17537_vm3, %v7749_v50, %v7754_v29  ;;  %vm17538_vm14 = vmmov %vm17537_vm3  ;;  %v7780_v13 = vunpack.i.h.bf16 %v14278_v35  ;;  %v17552_v35 = vld [vmem:[#allocation27_spill] sm:$0xff] }
 0x56e   : > { %v14757_v33 = vsel %vm17538_vm14, %v7750_v48, %v7755_v43  ;;  %vm17539_vm5 = vmmov %vm17537_vm3  ;;  %4559 = vmatpush1.bf16.msra.mxu0 %v17540_v60 }
 0x56f   : > { %v14761_v9 = vsel %vm17539_vm5, %v7755_v43, %v7760_v5  ;;  %vm17541_vm12 = vmmov %vm17537_vm3  ;;  %v7774_v43 = vunpack.i.l.bf16 %v14257_v34  ;;  %4560 = vmatprep.subr.bf16.mxu0 %v3574_v54  ;;  %4602 = vmatpush1.bf16.msra.mxu1 %v17542_v52  ;;  %v17545_v34 = vld [vmem:[#allocation32_spill] sm:$0xff]  ;;  %v17563_v54 = vld [vmem:[#allocation82_spill] sm:$0xff] }
 0x570   : > { %v14774_v29 = vsel %vm17541_vm12, %v7759_v62, %v16130_v55  ;;  %vm17543_vm13 = vmmov %vm17537_vm3  ;;  %v17544_v62 = vld [vmem:[#allocation118_spill] sm:$0xff]  ;;  %v16134_v0 = vunpack.i.l.bf16 %v17545_v34  ;;  %4603 = vmatprep.subr.bf16.mxu1 %v3576_v61  ;;  %v14795_v26 = vpop.permute.xlu1 %7862  ;;  %v7809_v21 = vunpack.i.l.bf16 %v17563_v54 }
 0x571   : > { %v14786_v20 = vsel %vm17543_vm13, %v7760_v5, %v16131_v47  ;;  %v7785_v60 = vunpack.i.h.bf16 %v17544_v62  ;;  %v7784_v55 = vunpack.i.l.bf16 %v17544_v62  ;;  %vm17546_vm11 = vmmov %vm17537_vm3  ;;  %v17547_v62 = vld [vmem:[#allocation129_spill] sm:$0xff]  ;;  %v14814_v5 = vpop.permute.xlu0 %7867  ;;  %v14832_v63 = vsel %vm17554_vm7, %v7774_v43, %v7779_v28 }
 0x572   : > { %v14807_v61 = vsel %vm17546_vm11, %v16132_v7, %v7749_v50  ;;  %4561 = vmatpush1.bf16.msra.mxu0 %v17548_v53  ;;  %vm17549_vm10 = vmmov %vm17537_vm3  ;;  %v17550_v50 = vpack.c.bf16 %v14555_v15, %v14559_v18  ;;  %v17551_v7 = vld [vmem:[#allocation109_spill] sm:$0xff]  ;;  %v17557_v15 = vld [vmem:[#allocation115_spill] sm:$0xff]  ;;  %v17569_v8 = vunpack.i.h.bf16 %v17547_v62  ;;  %vm17581_vm3 = vcmp.lt.s32.totalorder %v8883_v16, 27 }
 0x573   : > { %v14820_v52 = vsel %vm17549_vm10, %v16133_v1, %v7750_v48  ;;  %v17553_v47 = vpack.c.bf16 %v17551_v7, %v17552_v35  ;;  %vm17555_vm8 = vmmov %vm17554_vm7  ;;  %v17558_v18 = vld [vmem:[#allocation87_spill] sm:$0xff]  ;;  %v17562_v1 = vld [vmem:[#allocation44_spill] sm:$0xff] }
 0x574   : > { %4604 = vmatpush1.bf16.msra.mxu1 %v17550_v50  ;;  %v14836_v53 = vsel %vm17555_vm8, %v7780_v13, %v7785_v60  ;;  %vm17556_vm1 = vmmov %vm17554_vm7  ;;  %v17559_v50 = vpack.c.bf16 %v17557_v15, %v17558_v18  ;;  %v14855_v35 = vld [vmem:[#allocation6 + $0x24] ss:$8 sps:$4 sm:$0xff]   ;;  %v7805_v41 = vunpack.i.h.bf16 %v17562_v1  ;;  %v17564_v15 = vld [vmem:[#allocation34_spill] sm:$0xff]  ;;  %v14861_v18 = vpop.permute.xlu1 %7872  ;;  %vm17595_vm8 = vcmp.lt.s32.totalorder %v8883_v16, 19 }
 0x575   : > { %5293 = vmatprep.subr.bf16.mxu0 %v17553_v47  ;;  %v14840_v48 = vsel %vm17556_vm1, %v7779_v28, %v7784_v55  ;;  %vm17560_vm6 = vmmov %vm17556_vm1  ;;  %v7804_v28 = vunpack.i.l.bf16 %v17562_v1  ;;  %4577 = vmatmul.mubr.bf16.vlgmr.msra.gmra.mrb[12].mxu0 %v17564_v15 }
 0x576   : > { %5336 = vmatprep.subr.bf16.mxu1 %v17559_v50  ;;  %v14847_v47 = vsel %vm17560_vm6, %v7775_v51, %v7780_v13  ;;  %vm17561_vm9 = vmmov %vm17556_vm1  ;;  %v17565_v13 = vunpack.i.h.bf16 %v17545_v34  ;;  %v17571_v34 = vld [vmem:[#allocation29_spill] sm:$0xff]  ;;  %5759 = vmatprep.mubr.msk.bf16.mxu0 %vm1660_vm0, %v14855_v35 }
 0x577   : > { %v14853_v7 = vsel %vm17561_vm9, %v7784_v55, %v16134_v0  ;;  %vm17566_vm2 = vmmov %vm17556_vm1  ;;  %v17567_v0 = vunpack.i.l.bf16 %v17547_v62  ;;  %v17573_v45 = vpack.c.bf16 %v17571_v34, %v17572_v40  ;;  %4620 = vmatmul.mubr.bf16.vlgmr.msra.gmra.mrb[12].mxu1 %v17564_v15  ;;  %v17580_v15 = vpack.c.bf16 %v14668_v57, %v14655_v25 }
 0x578   : > { %v14867_v50 = vsel %vm17566_vm2, %v7785_v60, %v17565_v13  ;;  %vm17568_vm15 = vmmov %vm17556_vm1  ;;  %v14887_v60 = vpop.permute.xlu0 %7877  ;;  %v17574_v13 = vld [vmem:[#allocation45_spill] sm:$0xff]  ;;  %5760 = vmatprep.mubr.msk.bf16.mxu1 %vm1660_vm0, %v14855_v35 }
 0x579   : > { %v14875_v1 = vsel %vm17568_vm15, %v17567_v0, %v7774_v43  ;;  %vm17570_vm4 = vmmov %vm17556_vm1  ;;  %5294 = vmatpush1.bf16.msra.mxu0 %v17573_v45  ;;  %v7800_v55 = vunpack.i.h.bf16 %v17574_v13  ;;  %v7799_v56 = vunpack.i.l.bf16 %v17574_v13  ;;  %v7810_v0 = vunpack.i.h.bf16 %v17563_v54  ;;  %v17575_v43 = vld [vmem:[#allocation40_spill] sm:$0xff]  ;;  %v14917_v13 = vpop.permute.xlu1 %7882 }
 0x57a   : > { %v14881_v10 = vsel %vm17570_vm4, %v17569_v8, %v7775_v51  ;;  %v7814_v62 = vunpack.i.l.bf16 %v17575_v43  ;;  %v17576_v8 = vpack.c.bf16 %v14592_v58, %v14588_v46  ;;  %v17577_v51 = vld [vmem:[#allocation114_spill] sm:$0xff]  ;;  %v16146_v34 = vunpack.i.h.bf16 %v17575_v43  ;;  %vm17582_vm14 = vmmov %vm17581_vm3 }
 0x57b   : > { %v17579_v40 = vpack.c.bf16 %v17577_v51, %v17578_v11  ;;  %v4935_v54 = vpack.c.bf16 %v14847_v47, %v14832_v63  ;;  %v14915_v11 = vsel %vm17581_vm3, %v7804_v28, %v7809_v21  ;;  %v14921_v25 = vsel %vm17582_vm14, %v7799_v56, %v7804_v28  ;;  %vm17583_vm5 = vmmov %vm17581_vm3 }
 0x57c   : > { %5295 = vmatprep.subr.bf16.mxu0 %v17576_v8  ;;  %v14925_v57 = vsel %vm17583_vm5, %v7800_v55, %v7805_v41  ;;  %v16145_v47 = vunpack.i.l.bf16 %v14527_v30  ;;  %v7824_v8 = vunpack.i.l.bf16 %v14584_v22  ;;  %v7829_v51 = vunpack.i.l.bf16 %v14601_v23  ;;  %v14936_v28 = vpop.permute.xlu0 %7887  ;;  %vm17585_vm12 = vmmov %vm17581_vm3 }
 0x57d   : > { %5337 = vmatpush1.bf16.msra.mxu1 %v17579_v40  ;;  %v17584_v40 = vpack.c.bf16 %v14642_v2, %v14636_v4  ;;  %v7825_v45 = vunpack.i.h.bf16 %v14584_v22  ;;  %v7830_v58 = vunpack.i.h.bf16 %v14601_v23  ;;  %v17586_v46 = vpack.c.bf16 %v14676_v19, %v14672_v24  ;;  %vm17588_vm13 = vmmov %vm17581_vm3 }
 0x57e   : > { %5338 = vmatprep.subr.bf16.mxu1 %v17580_v15  ;;  %v14940_v15 = vsel %vm17585_vm12, %v7805_v41, %v7810_v0  ;;  %v17587_v63 = vpack.c.bf16 %v14582_v36, %v14578_v12  ;;  %v14954_v4 = vsel %vm17588_vm13, %v7809_v21, %v7814_v62  ;;  %v7835_v2 = vunpack.i.h.bf16 %v14624_v3  ;;  %vm17590_vm11 = vmmov %vm17581_vm3  ;;  %v14972_v41 = vpop.permute.xlu1 %7892 }
 0x57f   : > { %5296 = vmatpush1.bf16.msra.mxu0 %v17584_v40  ;;  %v7834_v22 = vunpack.i.l.bf16 %v14624_v3  ;;  %v7839_v23 = vunpack.i.l.bf16 %v14647_v32  ;;  %v17589_v24 = vpack.c.bf16 %v14737_v37, %v14731_v38  ;;  %v14966_v12 = vsel %vm17590_vm11, %v7810_v0, %v16146_v34  ;;  %vm17591_vm10 = vmmov %vm17581_vm3 }
 0x580   : > { %5297 = vmatprep.subr.bf16.mxu0 %v17586_v46  ;;  %v7840_v36 = vunpack.i.h.bf16 %v14647_v32  ;;  %v7845_v19 = vunpack.i.h.bf16 %v14695_v17  ;;  %v7844_v21 = vunpack.i.l.bf16 %v14695_v17  ;;  %v7854_v3 = vunpack.i.l.bf16 %v14749_v59  ;;  %vm17593_vm7 = vmmov %vm17581_vm3  ;;  %v14990_v40 = vpop.permute.xlu0 %7897 }
 0x581   : > { %5339 = vmatpush1.bf16.msra.mxu1 %v17587_v63  ;;  %v14978_v38 = vsel %vm17591_vm10, %v16145_v47, %v7799_v56  ;;  %v17592_v37 = vunpack.i.h.bf16 %v14527_v30  ;;  %v7855_v46 = vunpack.i.h.bf16 %v14749_v59  ;;  %v17594_v63 = vpack.c.bf16 %v14743_v42, %v14725_v14  ;;  %vm17598_vm1 = vmmov %vm17595_vm8 }
 0x582   : > { %5340 = vmatprep.subr.bf16.mxu1 %v17589_v24  ;;  %v14994_v24 = vsel %vm17595_vm8, %v7824_v8, %v7829_v51  ;;  %v7849_v56 = vunpack.i.l.bf16 %v14704_v49  ;;  %v7860_v47 = vunpack.i.h.bf16 %v14768_v39  ;;  %v7859_v34 = vunpack.i.l.bf16 %v14768_v39  ;;  %vm17599_vm6 = vmmov %vm17598_vm1 }
 0x583   : > { %v14984_v0 = vsel %vm17593_vm7, %v17592_v37, %v7800_v55  ;;  %5298 = vmatpush1.bf16.msra.mxu0 %v17594_v63  ;;  %v17596_v55 = vpack.c.bf16 %v14757_v33, %v14753_v31  ;;  %v17597_v14 = vpack.c.bf16 %v14680_v27, %v14684_v6  ;;  %v15007_v42 = vsel %vm17598_vm1, %v7825_v45, %v7830_v58  ;;  %vm17600_vm9 = vmmov %vm17598_vm1  ;;  %v15039_v33 = vpop.permute.xlu1 %7902 }
 0x584   : > { %v15011_v59 = vsel %vm17599_vm6, %v7830_v58, %v7835_v2  ;;  %v15015_v37 = vsel %vm17600_vm9, %v7829_v51, %v7834_v22  ;;  %v7850_v39 = vunpack.i.h.bf16 %v14704_v49  ;;  %v17601_v31 = vpack.c.bf16 %v14786_v20, %v14774_v29  ;;  %vm17602_vm2 = vmmov %vm17598_vm1 }
 0x585   : > { %5299 = vmatprep.subr.bf16.mxu0 %v17596_v55  ;;  %5341 = vmatpush1.bf16.msra.mxu1 %v17597_v14  ;;  %v15025_v27 = vsel %vm17602_vm2, %v7834_v22, %v7839_v23  ;;  %vm17603_vm15 = vmmov %vm17598_vm1  ;;  %vm17606_vm14 = vcmp.lt.s32.totalorder %v8883_v16, 18  ;;  %v7865_v58 = vunpack.i.h.bf16 %v14795_v26  ;;  %v7869_v51 = vunpack.i.l.bf16 %v14814_v5  ;;  %v15055_v22 = vpop.permute.xlu0 %7907 }
 0x586   : > { %5342 = vmatprep.subr.bf16.mxu1 %v17601_v31  ;;  %v15031_v6 = vsel %vm17603_vm15, %v7844_v21, %v7824_v8  ;;  %vm17604_vm4 = vmmov %vm17598_vm1  ;;  %v15047_v20 = vsel %vm17606_vm14, %v7849_v56, %v7854_v3  ;;  %v7864_v8 = vunpack.i.l.bf16 %v14795_v26  ;;  %v7870_v14 = vunpack.i.h.bf16 %v14814_v5 }
 0x587   : > { %v15037_v49 = vsel %vm17604_vm4, %v7845_v19, %v7825_v45  ;;  %vm17605_vm3 = vmmov %vm17598_vm1  ;;  %v17607_v45 = vpack.c.bf16 %v14820_v52, %v14807_v61  ;;  %v17611_v52 = vpack.c.bf16 %v14761_v9, %v14747_v44  ;;  %v4999_v61 = vpack.c.bf16 %v14925_v57, %v14921_v25 }
 0x588   : > { %v5053_v29 = vsel %vm17605_vm3, %v7835_v2, %v7840_v36  ;;  %vm17608_vm5 = vmmov %vm17606_vm14  ;;  %v5000_v31 = vpack.c.bf16 %v14940_v15, %v14915_v11  ;;  %v5063_v44 = vpack.c.bf16 %v15007_v42, %v14994_v24  ;;  %v5064_v9 = vpack.c.bf16 %v15011_v59, %v15015_v37  ;;  %v15090_v11 = vpop.permute.xlu1 %7912 }
 0x589   : > { %5300 = vmatpush1.bf16.msra.mxu0 %v17607_v45  ;;  %v15059_v63 = vsel %vm17608_vm5, %v7850_v39, %v7855_v46  ;;  %vm17609_vm12 = vmmov %vm17608_vm5  ;;  %5343 = vmatpush1.bf16.msra.mxu1 %v17611_v52  ;;  %v5062_v25 = vpack.c.bf16 %v15037_v49, %v15031_v6  ;;  %v5065_v57 = vpack.c.bf16 %v5053_v29, %v15025_v27  ;;  %v7880_v42 = vunpack.i.h.bf16 %v14887_v60 }
 0x58a   : > { %v15063_v2 = vsel %vm17609_vm12, %v7854_v3, %v7859_v34  ;;  %vm17610_vm13 = vmmov %vm17608_vm5  ;;  %5301 = vmatprep.subr.bf16.mxu0 %v4935_v54  ;;  %v4998_v3 = vpack.c.bf16 %v14984_v0, %v14978_v38  ;;  %v5001_v54 = vpack.c.bf16 %v14966_v12, %v14954_v4  ;;  %v17614_v4 = vpack.c.bf16 %v14881_v10, %v14875_v1  ;;  %v15106_v12 = vpop.permute.xlu0 %7917 }
 0x58b   : > { %v15067_v55 = vsel %vm17610_vm13, %v7855_v46, %v7860_v47  ;;  %v17612_v46 = vpack.c.bf16 %v14867_v50, %v14853_v7  ;;  %v5127_v7 = vpack.c.bf16 %v15059_v63, %v15047_v20  ;;  %vm17613_vm11 = vmmov %vm17608_vm5  ;;  %v7875_v10 = vunpack.i.h.bf16 %v14861_v18 }
 0x58c   : > { %v5128_v50 = vpack.c.bf16 %v15067_v55, %v15063_v2  ;;  %v15101_v15 = vsel %vm17613_vm11, %v7869_v51, %v7849_v56  ;;  %vm17615_vm10 = vmmov %vm17608_vm5  ;;  %v7874_v1 = vunpack.i.l.bf16 %v14861_v18  ;;  %v7879_v56 = vunpack.i.l.bf16 %v14887_v60  ;;  %v15134_v49 = vpop.permute.xlu1 %7922 }
 0x58d   : > { %5344 = vmatprep.subr.bf16.mxu1 %v17612_v46  ;;  %5302 = vmatpush1.bf16.msra.mxu0 %v17614_v4  ;;  %v5116_v38 = vsel %vm17615_vm10, %v7859_v34, %v7864_v8  ;;  %vm17616_vm7 = vmmov %vm17608_vm5  ;;  %v17618_v34 = vpack.c.bf16 %v14836_v53, %v14840_v48  ;;  %v7884_v59 = vunpack.i.l.bf16 %v14917_v13  ;;  %v7889_v37 = vunpack.i.l.bf16 %v14936_v28  ;;  %v17626_v46 = vld [vmem:[#allocation100_spill] sm:$0xff] }
 0x58e   : > { %v5117_v0 = vsel %vm17616_vm7, %v7860_v47, %v7865_v58  ;;  %vm17617_vm8 = vmmov %vm17608_vm5  ;;  %5303 = vmatprep.subr.bf16.mxu0 %v4999_v61  ;;  %v7885_v47 = vunpack.i.h.bf16 %v14917_v13  ;;  %v7895_v18 = vunpack.i.h.bf16 %v14972_v41  ;;  %v7894_v27 = vunpack.i.l.bf16 %v14972_v41  ;;  %v15140_v29 = vpop.permute.xlu0 %7927 }
 0x58f   : > { %v5123_v24 = vsel %vm17617_vm8, %v7870_v14, %v7850_v39  ;;  %5345 = vmatpush1.bf16.msra.mxu1 %v17618_v34  ;;  %v7890_v39 = vunpack.i.h.bf16 %v14936_v28  ;;  %v7899_v6 = vunpack.i.l.bf16 %v14990_v40  ;;  %v7900_v53 = vunpack.i.h.bf16 %v14990_v40 }
 0x590   : > { %5346 = vmatprep.subr.bf16.mxu1 %v5001_v54  ;;  %v7905_v48 = vunpack.i.h.bf16 %v15039_v33  ;;  %v7904_v60 = vunpack.i.l.bf16 %v15039_v33  ;;  %v7909_v13 = vunpack.i.l.bf16 %v15055_v22  ;;  %v5126_v20 = vpack.c.bf16 %v5123_v24, %v15101_v15 }
 0x591   : > { %5304 = vmatpush1.bf16.msra.mxu0 %v4998_v3  ;;  %v7910_v45 = vunpack.i.h.bf16 %v15055_v22  ;;  %v5129_v63 = vpack.c.bf16 %v5117_v0, %v5116_v38  ;;  %vm17619_vm1 = vcmp.lt.s32.totalorder %v8883_v16, 17  ;;  %v17627_v54 = vunpack.i.l.bf16 %v17626_v46 }
 0x592   : > { %5305 = vmatprep.subr.bf16.mxu0 %v5063_v44  ;;  %v5184_v52 = vsel %vm17619_vm1, %v7874_v1, %v7879_v56  ;;  %vm17620_vm6 = vmmov %vm17619_vm1  ;;  %vm17628_vm14 = vcmp.lt.s32.totalorder %v8883_v16, 39  ;;  %v17630_v4 = vunpack.i.h.bf16 %v17626_v46  ;;  %v15190_v24 = vpop.permute.xlu0 %7937  ;;  %v7915_v34 = vunpack.i.h.bf16 %v15090_v11 }
 0x593   : > { %5347 = vmatpush1.bf16.msra.mxu1 %v5000_v31  ;;  %v15148_v40 = vsel %vm17620_vm6, %v7880_v42, %v7885_v47  ;;  %vm17621_vm9 = vmmov %vm17619_vm1  ;;  %v15172_v44 = vsel %vm17628_vm14, %v17627_v54, %v7899_v6  ;;  %vm17643_vm6 = vcmp.lt.s32.totalorder %v8883_v16, 38 }
 0x594   : > { %v15152_v33 = vsel %vm17621_vm9, %v7879_v56, %v7884_v59  ;;  %5348 = vmatprep.subr.bf16.mxu1 %v5065_v57  ;;  %vm17622_vm2 = vmmov %vm17619_vm1  ;;  %v15174_v57 = vpop.permute.xlu1 %7932 }
 0x595   : > { %v5185_v61 = vsel %vm17622_vm2, %v7875_v10, %v7880_v42  ;;  %vm17623_vm15 = vmmov %vm17619_vm1  ;;  %5306 = vmatpush1.bf16.msra.mxu0 %v5062_v25  ;;  %v7914_v42 = vunpack.i.l.bf16 %v15090_v11  ;;  %v7920_v25 = vunpack.i.h.bf16 %v15106_v12  ;;  %v7935_v2 = vunpack.i.h.bf16 %v15174_v57 }
 0x596   : > { %v5180_v22 = vsel %vm17623_vm15, %v7884_v59, %v7889_v37  ;;  %vm17624_vm4 = vmmov %vm17619_vm1  ;;  %5307 = vmatprep.subr.bf16.mxu0 %v5127_v7  ;;  %v7925_v59 = vunpack.i.h.bf16 %v15134_v49  ;;  %v15214_v7 = vpop.permute.xlu0 %7947  ;;  %v7934_v55 = vunpack.i.l.bf16 %v15174_v57  ;;  %v7939_v57 = vunpack.i.l.bf16 %v15190_v24 }
 0x597   : > { %v5186_v31 = vsel %vm17624_vm4, %v7894_v27, %v7874_v1  ;;  %vm17625_vm3 = vmmov %vm17619_vm1  ;;  %5349 = vmatpush1.bf16.msra.mxu1 %v5064_v9 }
 0x598   : > { %v5187_v3 = vsel %vm17625_vm3, %v7895_v18, %v7875_v10  ;;  %vm17629_vm5 = vmmov %vm17619_vm1  ;;  %5350 = vmatprep.subr.bf16.mxu1 %v5129_v63  ;;  %v15210_v11 = vpop.permute.xlu1 %7942 }
 0x599   : > { %v5181_v15 = vsel %vm17629_vm5, %v7885_v47, %v7890_v39  ;;  %vm17631_vm12 = vmmov %vm17628_vm14  ;;  %v7919_v47 = vunpack.i.l.bf16 %v15106_v12  ;;  %5308 = vmatpush1.bf16.msra.mxu0 %v5126_v20 }
 0x59a   : > { %v15184_v38 = vsel %vm17631_vm12, %v17630_v4, %v7900_v53  ;;  %vm17632_vm13 = vmmov %vm17631_vm12  ;;  %v5193_v54 = vpack.c.bf16 %v5181_v15, %v5180_v22  ;;  %v7930_v4 = vunpack.i.h.bf16 %v15140_v29 }
 0x59b   : > { %v15188_v0 = vsel %vm17632_vm13, %v7904_v60, %v7909_v13  ;;  %vm17633_vm11 = vmmov %vm17631_vm12  ;;  %v4682_v46 = vpack.c.bf16 %v15184_v38, %v15172_v44  ;;  %v7929_v44 = vunpack.i.l.bf16 %v15140_v29  ;;  %5351 = vmatpush1.bf16.msra.mxu1 %v5128_v50  ;;  %vm17657_vm12 = vcmp.lt.s32.totalorder %v8883_v16, 37 }
 0x59c   : > { %v4664_v10 = vsel %vm17633_vm11, %v7899_v6, %v7904_v60  ;;  %vm17634_vm10 = vmmov %vm17633_vm11  ;;  %v7924_v6 = vunpack.i.l.bf16 %v15134_v49  ;;  %v5190_v60 = vpack.c.bf16 %v5187_v3, %v5186_v31  ;;  %v17636_v49 = vld [vmem:[#allocation71_spill] sm:$0xff]  ;;  %5352 = vmatprep.subr.bf16.mxu1 %v5193_v54  ;;  %v15255_v50 = vpop.permute.xlu1 %7952 }
 0x59d   : > { %v4665_v1 = vsel %vm17634_vm10, %v7900_v53, %v7905_v48  ;;  %vm17635_vm7 = vmmov %vm17634_vm10  ;;  %v5191_v53 = vpack.c.bf16 %v5185_v61, %v5184_v52  ;;  %v17637_v63 = vunpack.i.l.bf16 %v17636_v49  ;;  %v17641_v61 = vld [vmem:[#allocation127_spill] sm:$0xff] }
 0x59e   : > { %v15198_v56 = vsel %vm17635_vm7, %v7905_v48, %v7910_v45  ;;  %v5192_v48 = vpack.c.bf16 %v15148_v40, %v15152_v33  ;;  %v4683_v12 = vpack.c.bf16 %v4665_v1, %v4664_v10  ;;  %vm17638_vm8 = vmmov %vm17635_vm7  ;;  %v17639_v40 = vunpack.i.h.bf16 %v17636_v49  ;;  %v17650_v10 = vld [vmem:[#allocation126_spill] sm:$0xff] }
 0x59f   : > { %v4684_v9 = vpack.c.bf16 %v15198_v56, %v15188_v0  ;;  %v4676_v52 = vsel %vm17638_vm8, %v7909_v13, %v17637_v63  ;;  %vm17640_vm1 = vmmov %vm17635_vm7  ;;  %v17642_v31 = vunpack.i.l.bf16 %v17641_v61  ;;  %v17644_v20 = vunpack.i.h.bf16 %v17641_v61  ;;  %5309 = vmatprep.subr.bf16.mxu0 %v5191_v53  ;;  %v15257_v0 = vld [vmem:[#allocation6 + $0x20] ss:$8 sps:$4 sm:$0xff]  }
 0x5a0   : > { %v4677_v33 = vsel %vm17640_vm1, %v7910_v45, %v17639_v40  ;;  %vm17645_vm9 = vmmov %vm17643_vm6  ;;  %v17651_v1 = vunpack.i.l.bf16 %v17650_v10  ;;  %5310 = vmatpush1.bf16.msra.mxu0 %v5190_v60  ;;  %5353 = vmatpush1.bf16.msra.mxu1 %v5192_v48  ;;  %v7945_v60 = vunpack.i.h.bf16 %v15210_v11  ;;  %v7950_v61 = vunpack.i.h.bf16 %v15214_v7  ;;  %v15288_v48 = vpop.permute.xlu1 %7962 }
 0x5a1   : > { %v15228_v22 = vsel %vm17643_vm6, %v17642_v31, %v7914_v42  ;;  %v15234_v3 = vsel %vm17645_vm9, %v17644_v20, %v7915_v34  ;;  %vm17646_vm2 = vmmov %vm17643_vm6  ;;  %v4685_v53 = vpack.c.bf16 %v4677_v33, %v4676_v52  ;;  %5379 = vmatprep.subr.bf16.mxu0 %v4683_v12  ;;  %v7944_v52 = vunpack.i.l.bf16 %v15210_v11 }
 0x5a2   : > { %v4728_v13 = vsel %vm17646_vm2, %v7914_v42, %v7919_v47  ;;  %vm17647_vm15 = vmmov %vm17646_vm2  ;;  %v17653_v42 = vunpack.i.h.bf16 %v17650_v10  ;;  %v7949_v31 = vunpack.i.l.bf16 %v15214_v7  ;;  %v7955_v20 = vunpack.i.h.bf16 %v15255_v50 }
 0x5a3   : > { %v15244_v45 = vsel %vm17647_vm15, %v7920_v25, %v7925_v59  ;;  %vm17648_vm4 = vmmov %vm17646_vm2  ;;  %5422 = vmatprep.subr.bf16.mxu1 %v4685_v53  ;;  %5326 = vmatmul.mubr.bf16.vlgmr.msra.gmra.mrb[8].mxu0 %v15257_v0  ;;  %v7954_v11 = vunpack.i.l.bf16 %v15255_v50  ;;  %vm17671_vm9 = vcmp.lt.s32.totalorder %v8883_v16, 29 }
 0x5a4   : > { %v15248_v15 = vsel %vm17648_vm4, %v7919_v47, %v7924_v6  ;;  %vm17649_vm3 = vmmov %vm17646_vm2  ;;  %v7940_v47 = vunpack.i.h.bf16 %v15190_v24  ;;  %5369 = vmatmul.mubr.bf16.vlgmr.msra.gmra.mrb[8].mxu1 %v15257_v0  ;;  %5380 = vmatpush1.bf16.msra.mxu0 %v4682_v46  ;;  %v17669_v46 = vld [vmem:[#allocation33_spill] sm:$0xff] }
 0x5a5   : > { %v4729_v38 = vsel %vm17649_vm3, %v7915_v34, %v7920_v25  ;;  %vm17652_vm14 = vmmov %vm17646_vm2  ;;  %v4746_v34 = vpack.c.bf16 %v15234_v3, %v15228_v22  ;;  %v15271_v25 = vpop.permute.xlu0 %7957  ;;  %v4748_v54 = vpack.c.bf16 %v15244_v45, %v15248_v15  ;;  %5423 = vmatpush1.bf16.msra.mxu1 %v4684_v9  ;;  %v17670_v10 = vunpack.i.l.bf16 %v17669_v46  ;;  %5761 = vmatprep.mubr.msk.bf16.mxu0 %vm1660_vm0, %v14855_v35  ;;  %v7973_v9 = vpop.permute.xlu1 %7972 }
 0x5a6   : > { %v4740_v56 = vsel %vm17652_vm14, %v7924_v6, %v17651_v1  ;;  %vm17654_vm5 = vmmov %vm17646_vm2  ;;  %v17655_v6 = vld [vmem:[#allocation15_spill] sm:$0xff]  ;;  %5762 = vmatprep.mubr.msk.bf16.mxu1 %vm1660_vm0, %v14855_v35 }
 0x5a7   : > { %v4741_v29 = vsel %vm17654_vm5, %v7925_v59, %v17653_v42  ;;  %v17656_v49 = vunpack.i.l.bf16 %v17655_v6  ;;  %v4747_v59 = vpack.c.bf16 %v4729_v38, %v4728_v13  ;;  %v17658_v40 = vunpack.i.h.bf16 %v17655_v6  ;;  %vm17659_vm13 = vmmov %vm17657_vm12  ;;  %v17662_v13 = vld [vmem:[#allocation35_spill] sm:$0xff] }
 0x5a8   : > { %v4749_v33 = vpack.c.bf16 %v4741_v29, %v4740_v56  ;;  %vm17660_vm11 = vmmov %vm17657_vm12  ;;  %v17663_v7 = vunpack.i.l.bf16 %v17662_v13  ;;  %v17665_v15 = vunpack.i.h.bf16 %v17662_v13  ;;  %v4858_v1 = vsel %vm17671_vm9, %v17670_v10, %v7944_v52 }
 0x5a9   : > { %v4794_v63 = vsel %vm17657_vm12, %v17656_v49, %v7929_v44  ;;  %v4795_v24 = vsel %vm17659_vm13, %v17658_v40, %v7930_v4  ;;  %v4792_v12 = vsel %vm17660_vm11, %v7929_v44, %v7934_v55  ;;  %vm17661_vm10 = vmmov %vm17660_vm11  ;;  %v7968_v3 = vpop.permute.xlu0 %7967  ;;  %5381 = vmatprep.subr.bf16.mxu0 %v4747_v59  ;;  %v17672_v56 = vunpack.i.h.bf16 %v17669_v46  ;;  %v17676_v59 = vld [vmem:[#allocation98_spill] sm:$0xff] }
 0x5aa   : > { %v4793_v22 = vsel %vm17661_vm10, %v7930_v4, %v7935_v2  ;;  %vm17664_vm7 = vmmov %vm17661_vm10  ;;  %v4810_v38 = vpack.c.bf16 %v4795_v24, %v4794_v63  ;;  %v7959_v29 = vunpack.i.l.bf16 %v15271_v25  ;;  %5424 = vmatprep.subr.bf16.mxu1 %v4749_v33  ;;  %v7965_v6 = vunpack.i.h.bf16 %v15288_v48  ;;  %5382 = vmatpush1.bf16.msra.mxu0 %v4746_v34 }
 0x5ab   : > { %v4804_v45 = vsel %vm17664_vm7, %v7939_v57, %v17663_v7  ;;  %vm17666_vm8 = vmmov %vm17664_vm7  ;;  %v4811_v53 = vpack.c.bf16 %v4793_v22, %v4792_v12  ;;  %v7964_v49 = vunpack.i.l.bf16 %v15288_v48  ;;  %v17677_v40 = vunpack.i.l.bf16 %v17676_v59  ;;  %5425 = vmatpush1.bf16.msra.mxu1 %v4748_v54  ;;  %v17683_v22 = vld [vmem:[#allocation32_spill] sm:$0xff] }
 0x5ac   : > { %v4805_v44 = vsel %vm17666_vm8, %v7940_v47, %v17665_v15  ;;  %vm17667_vm1 = vmmov %vm17664_vm7  ;;  %v17679_v24 = vunpack.i.h.bf16 %v17676_v59  ;;  %v7970_v12 = vunpack.i.h.bf16 %v7968_v3  ;;  %v7969_v35 = vunpack.i.l.bf16 %v7968_v3 }
 0x5ad   : > { %v4790_v4 = vsel %vm17667_vm1, %v7934_v55, %v7939_v57  ;;  %vm17668_vm6 = vmmov %vm17667_vm1  ;;  %v4813_v55 = vpack.c.bf16 %v4805_v44, %v4804_v45  ;;  %v7978_v63 = vpop.permute.xlu0 %7977  ;;  %5383 = vmatprep.subr.bf16.mxu0 %v4811_v53  ;;  %v17684_v13 = vunpack.i.l.bf16 %v17683_v22  ;;  %vm17685_vm12 = vcmp.lt.s32.totalorder %v8883_v16, 28 }
 0x5ae   : > { %v4791_v50 = vsel %vm17668_vm6, %v7935_v2, %v7940_v47  ;;  %vm17673_vm2 = vmmov %vm17671_vm9  ;;  %v7960_v2 = vunpack.i.h.bf16 %v15271_v25  ;;  %v17686_v15 = vunpack.i.h.bf16 %v17683_v22  ;;  %v7975_v44 = vunpack.i.h.bf16 %v7973_v9  ;;  %5384 = vmatpush1.bf16.msra.mxu0 %v4810_v38 }
 0x5af   : > { %v4859_v42 = vsel %vm17673_vm2, %v17672_v56, %v7945_v60  ;;  %vm17674_vm15 = vmmov %vm17673_vm2  ;;  %v4922_v7 = vsel %vm17685_vm12, %v17684_v13, %v7959_v29  ;;  %5426 = vmatprep.subr.bf16.mxu1 %v4813_v55  ;;  %v7974_v54 = vunpack.i.l.bf16 %v7973_v9  ;;  %v17690_v56 = vld [vmem:[#allocation129_spill] sm:$0xff]  ;;  %vm17697_vm9 = vcmp.lt.s32.totalorder %v8883_v16, 27 }
 0x5b0   : > { %v4856_v47 = vsel %vm17674_vm15, %v7944_v52, %v7949_v31  ;;  %vm17675_vm4 = vmmov %vm17673_vm2  ;;  %v4874_v33 = vpack.c.bf16 %v4859_v42, %v4858_v1  ;;  %v17691_v42 = vunpack.i.l.bf16 %v17690_v56  ;;  %v17693_v9 = vunpack.i.h.bf16 %v17690_v56 }
 0x5b1   : > { %v4857_v57 = vsel %vm17675_vm4, %v7945_v60, %v7950_v61  ;;  %vm17678_vm3 = vmmov %vm17673_vm2  ;;  %v4812_v60 = vpack.c.bf16 %v4791_v50, %v4790_v4  ;;  %v7980_v50 = vunpack.i.h.bf16 %v7978_v63  ;;  %v7988_v1 = vpop.permute.xlu0 %7987 }
 0x5b2   : > { %v4868_v25 = vsel %vm17678_vm3, %v7954_v11, %v17677_v40  ;;  %vm17680_vm14 = vmmov %vm17673_vm2  ;;  %v4875_v45 = vpack.c.bf16 %v4857_v57, %v4856_v47  ;;  %v4986_v57 = vsel %vm17697_vm9, %v7814_v62, %v7974_v54  ;;  %v7989_v40 = vunpack.i.l.bf16 %v7988_v1 }
 0x5b3   : > { %v4869_v52 = vsel %vm17680_vm14, %v7955_v20, %v17679_v24  ;;  %vm17681_vm0 = vmmov %vm17673_vm2  ;;  %5427 = vmatpush1.bf16.msra.mxu1 %v4812_v60  ;;  %v7990_v24 = vunpack.i.h.bf16 %v7988_v1 }
 0x5b4   : > { %v4855_v34 = vsel %vm17681_vm0, %v7950_v61, %v7955_v20  ;;  %vm17682_vm5 = vmmov %vm17681_vm0  ;;  %v4877_v4 = vpack.c.bf16 %v4869_v52, %v4868_v25  ;;  %v7979_v61 = vunpack.i.l.bf16 %v7978_v63  ;;  %v7983_v20 = vpop.permute.xlu1 %7982  ;;  %5385 = vmatprep.subr.bf16.mxu0 %v4875_v45  ;;  %v17698_v63 = vunpack.i.h.bf16 %v17575_v43 }
 0x5b5   : > { %v4854_v48 = vsel %vm17682_vm5, %v7949_v31, %v7954_v11  ;;  %vm17687_vm13 = vmmov %vm17685_vm12  ;;  %v7985_v46 = vunpack.i.h.bf16 %v7983_v20  ;;  %v7984_v10 = vunpack.i.l.bf16 %v7983_v20  ;;  %5386 = vmatpush1.bf16.msra.mxu0 %v4874_v33  ;;  %v7998_v62 = vpop.permute.xlu0 %7997  ;;  %v17702_v43 = vunpack.i.l.bf16 %v14527_v30 }
 0x5b6   : > { %v4923_v3 = vsel %vm17687_vm13, %v17686_v15, %v7960_v2  ;;  %vm17688_vm11 = vmmov %vm17685_vm12  ;;  %v4876_v55 = vpack.c.bf16 %v4855_v34, %v4854_v48  ;;  %5428 = vmatprep.subr.bf16.mxu1 %v4877_v4  ;;  %v17704_v33 = vunpack.i.h.bf16 %v14527_v30  ;;  %v7999_v45 = vunpack.i.l.bf16 %v7998_v62 }
 0x5b7   : > { %v4920_v31 = vsel %vm17688_vm11, %v7959_v29, %v7964_v49  ;;  %vm17689_vm10 = vmmov %vm17688_vm11  ;;  %v4938_v29 = vpack.c.bf16 %v4923_v3, %v4922_v7  ;;  %v8000_v7 = vunpack.i.h.bf16 %v7998_v62  ;;  %vm17708_vm12 = vcmp.lt.s32.totalorder %v8883_v16, 19 }
 0x5b8   : > { %v4921_v11 = vsel %vm17689_vm10, %v7960_v2, %v7965_v6  ;;  %vm17692_vm7 = vmmov %vm17689_vm10  ;;  %v7993_v52 = vpop.permute.xlu1 %7992  ;;  %5429 = vmatpush1.bf16.msra.mxu1 %v4876_v55 }
 0x5b9   : > { %v4932_v53 = vsel %vm17692_vm7, %v7969_v35, %v17691_v42  ;;  %vm17694_vm8 = vmmov %vm17692_vm7  ;;  %v4939_v25 = vpack.c.bf16 %v4921_v11, %v4920_v31 }
 0x5ba   : > { %v4933_v38 = vsel %vm17694_vm8, %v7970_v12, %v17693_v9  ;;  %vm17695_vm1 = vmmov %vm17692_vm7 }
 0x5bb   : > { %v4918_v2 = vsel %vm17695_vm1, %v7964_v49, %v7969_v35  ;;  %vm17696_vm6 = vmmov %vm17695_vm1  ;;  %v4941_v49 = vpack.c.bf16 %v4933_v38, %v4932_v53  ;;  %v7994_v35 = vunpack.i.l.bf16 %v7993_v52  ;;  %5387 = vmatprep.subr.bf16.mxu0 %v4939_v25 }
 0x5bc   : > { %v4919_v47 = vsel %vm17696_vm6, %v7965_v6, %v7970_v12  ;;  %vm17699_vm2 = vmmov %vm17697_vm9  ;;  %v7995_v12 = vunpack.i.h.bf16 %v7993_v52  ;;  %5388 = vmatpush1.bf16.msra.mxu0 %v4938_v29  ;;  %v8003_v4 = vpop.permute.xlu1 %8002  ;;  %vm17716_vm9 = vcmp.lt.s32.totalorder %v8883_v16, 18 }
 0x5bd   : > { %v4987_v59 = vsel %vm17699_vm2, %v17698_v63, %v7975_v44  ;;  %vm17700_vm15 = vmmov %vm17699_vm2  ;;  %v4940_v22 = vpack.c.bf16 %v4919_v47, %v4918_v2  ;;  %5430 = vmatprep.subr.bf16.mxu1 %v4941_v49  ;;  %v8005_v31 = vunpack.i.h.bf16 %v8003_v4  ;;  %v8004_v11 = vunpack.i.l.bf16 %v8003_v4 }
 0x5be   : > { %v4984_v6 = vsel %vm17700_vm15, %v7974_v54, %v7979_v61  ;;  %vm17701_vm4 = vmmov %vm17699_vm2  ;;  %v5002_v13 = vpack.c.bf16 %v4987_v59, %v4986_v57 }
 0x5bf   : > { %v4985_v60 = vsel %vm17701_vm4, %v7975_v44, %v7980_v50  ;;  %vm17703_vm3 = vmmov %vm17699_vm2  ;;  %v5050_v44 = vsel %vm17708_vm12, %v7839_v23, %v7989_v40  ;;  %5431 = vmatpush1.bf16.msra.mxu1 %v4940_v22  ;;  %v8008_v23 = vpop.permute.xlu0 %8007 }
 0x5c0   : > { %v4996_v34 = vsel %vm17703_vm3, %v7984_v10, %v17702_v43  ;;  %vm17705_vm14 = vmmov %vm17699_vm2  ;;  %v5003_v30 = vpack.c.bf16 %v4985_v60, %v4984_v6  ;;  %v8010_v1 = vunpack.i.h.bf16 %v8008_v23  ;;  %v8009_v56 = vunpack.i.l.bf16 %v8008_v23  ;;  %v8013_v38 = vpop.permute.xlu1 %8012 }
 0x5c1   : > { %v4997_v48 = vsel %vm17705_vm14, %v7985_v46, %v17704_v33  ;;  %vm17706_vm0 = vmmov %vm17699_vm2  ;;  %v8015_v29 = vunpack.i.h.bf16 %v8013_v38  ;;  %v8014_v2 = vunpack.i.l.bf16 %v8013_v38 }
 0x5c2   : > { %v4983_v15 = vsel %vm17706_vm0, %v7980_v50, %v7985_v46  ;;  %vm17707_vm5 = vmmov %vm17706_vm0  ;;  %v5005_v20 = vpack.c.bf16 %v4997_v48, %v4996_v34  ;;  %5389 = vmatprep.subr.bf16.mxu0 %v5003_v30  ;;  %v5112_v17 = vsel %vm17716_vm9, %v8004_v11, %v8009_v56  ;;  %v5537_v30 = vld [vmem:[%s8432_s15] sm:$0xff] }
 0x5c3   : > { %v4982_v3 = vsel %vm17707_vm5, %v7979_v61, %v7984_v10  ;;  %vm17709_vm13 = vmmov %vm17708_vm12  ;;  %5390 = vmatpush1.bf16.msra.mxu0 %v5002_v13  ;;  %v8018_v47 = vpop.permute.xlu0 %8017 }
 0x5c4   : > { %v5051_v54 = vsel %vm17709_vm13, %v7840_v36, %v7990_v24  ;;  %vm17710_vm11 = vmmov %vm17708_vm12  ;;  %5432 = vmatprep.subr.bf16.mxu1 %v5005_v20  ;;  %v5004_v42 = vpack.c.bf16 %v4983_v15, %v4982_v3  ;;  %v8019_v25 = vunpack.i.l.bf16 %v8018_v47  ;;  %vm17724_vm12 = vcmp.lt.s32.totalorder %v8883_v16, 17 }
 0x5c5   : > { %v5048_v50 = vsel %vm17710_vm11, %v7989_v40, %v7994_v35  ;;  %vm17711_vm10 = vmmov %vm17710_vm11  ;;  %v5066_v9 = vpack.c.bf16 %v5051_v54, %v5050_v44  ;;  %v8020_v40 = vunpack.i.h.bf16 %v8018_v47 }
 0x5c6   : > { %v5049_v61 = vsel %vm17711_vm10, %v7990_v24, %v7995_v12  ;;  %vm17712_vm7 = vmmov %vm17711_vm10  ;;  %5433 = vmatpush1.bf16.msra.mxu1 %v5004_v42  ;;  %v5178_v5 = vsel %vm17724_vm12, %v7889_v37, %v8019_v25  ;;  %v5540_v42 = vld [vmem:[%s8432_s15 + $0x18] sm:$0xff] }
 0x5c7   : > { %v5060_v32 = vsel %vm17712_vm7, %v7999_v45, %v7844_v21  ;;  %vm17713_vm8 = vmmov %vm17712_vm7  ;;  %v5067_v53 = vpack.c.bf16 %v5049_v61, %v5048_v50  ;;  %v5538_v61 = vld [vmem:[%s8432_s15 + $0x8] sm:$0xff] }
 0x5c8   : > { %v5061_v36 = vsel %vm17713_vm8, %v8000_v7, %v7845_v19  ;;  %vm17714_vm1 = vmmov %vm17712_vm7 }
 0x5c9   : > { %v5046_v46 = vsel %vm17714_vm1, %v7994_v35, %v7999_v45  ;;  %vm17715_vm6 = vmmov %vm17714_vm1  ;;  %v5069_v21 = vpack.c.bf16 %v5061_v36, %v5060_v32  ;;  %5391 = vmatprep.subr.bf16.mxu0 %v5067_v53 }
 0x5ca   : > { %v5047_v10 = vsel %vm17715_vm6, %v7995_v12, %v8000_v7  ;;  %vm17717_vm2 = vmmov %vm17716_vm9  ;;  %5392 = vmatpush1.bf16.msra.mxu0 %v5066_v9  ;;  %v8028_v12 = vpop.permute.xlu0 %8027 }
 0x5cb   : > { %v5113_v19 = vsel %vm17717_vm2, %v8005_v31, %v8010_v1  ;;  %v5068_v55 = vpack.c.bf16 %v5047_v10, %v5046_v46  ;;  %vm17718_vm15 = vmmov %vm17717_vm2  ;;  %5434 = vmatprep.subr.bf16.mxu1 %v5069_v21  ;;  %v8030_v43 = vunpack.i.h.bf16 %v8028_v12  ;;  %v8029_v34 = vunpack.i.l.bf16 %v8028_v12 }
 0x5cc   : > { %v5131_v57 = vpack.c.bf16 %v5113_v19, %v5112_v17  ;;  %v5114_v63 = vsel %vm17718_vm15, %v7864_v8, %v8004_v11  ;;  %vm17719_vm4 = vmmov %vm17717_vm2 }
 0x5cd   : > { %v5115_v59 = vsel %vm17719_vm4, %v7865_v58, %v8005_v31  ;;  %vm17720_vm3 = vmmov %vm17717_vm2  ;;  %v8023_v58 = vpop.permute.xlu1 %8022  ;;  %5435 = vmatpush1.bf16.msra.mxu1 %v5068_v55  ;;  %v5539_v31 = vld [vmem:[%s8432_s15 + $0x10] sm:$0xff]  ;;  %v5546_v55 = vld [vmem:[%s8432_s15 + $0x48] sm:$0xff] }
 0x5ce   : > { %v5111_v24 = vsel %vm17720_vm3, %v8010_v1, %v8015_v29  ;;  %vm17721_vm14 = vmmov %vm17717_vm2  ;;  %v8025_v6 = vunpack.i.h.bf16 %v8023_v58  ;;  %v8024_v60 = vunpack.i.l.bf16 %v8023_v58  ;;  %5393 = vmatprep.subr.bf16.mxu0 %v5131_v57  ;;  %v5130_v35 = vpack.c.bf16 %v5115_v59, %v5114_v63  ;;  %v15465_v15 = vpop.permute.xlu0 %5490 }
 0x5cf   : > { %v5110_v52 = vsel %vm17721_vm14, %v8009_v56, %v8014_v2  ;;  %vm17722_vm0 = vmmov %vm17717_vm2  ;;  %v5545_v56 = vld [vmem:[%s8432_s15 + $0x40] sm:$0xff] }
 0x5d0   : > { %v5124_v49 = vsel %vm17722_vm0, %v8014_v2, %v7869_v51  ;;  %vm17723_vm5 = vmmov %vm17722_vm0  ;;  %v5132_v62 = vpack.c.bf16 %v5111_v24, %v5110_v52  ;;  %5394 = vmatpush1.bf16.msra.mxu0 %v5130_v35 }
 0x5d1   : > { %v5125_v26 = vsel %vm17723_vm5, %v8015_v29, %v7870_v14  ;;  %vm17725_vm13 = vmmov %vm17724_vm12  ;;  %v5547_v29 = vld [vmem:[%s8432_s15 + $0x50] sm:$0xff] }
 0x5d2   : > { %v5133_v8 = vpack.c.bf16 %v5125_v26, %v5124_v49  ;;  %v5179_v51 = vsel %vm17725_vm13, %v7890_v39, %v8020_v40  ;;  %vm17726_vm11 = vmmov %vm17724_vm12  ;;  %v15478_v46 = vpop.permute.xlu0 %5518 }
 0x5d3   : > { %v5176_v14 = vsel %vm17726_vm11, %v8019_v25, %v8024_v60  ;;  %vm17727_vm10 = vmmov %vm17726_vm11  ;;  %v5194_v7 = vpack.c.bf16 %v5179_v51, %v5178_v5 }
 0x5d4   : > { %5436 = vmatprep.subr.bf16.mxu1 %v5133_v8  ;;  %v5177_v33 = vsel %vm17727_vm10, %v8020_v40, %v8025_v6  ;;  %vm17728_vm7 = vmmov %vm17727_vm10  ;;  %v5548_v40 = vld [vmem:[%s8432_s15 + $0x58] sm:$0xff] }
 0x5d5   : > { %v5174_v48 = vsel %vm17728_vm7, %v8024_v60, %v8029_v34  ;;  %vm17729_vm8 = vmmov %vm17728_vm7  ;;  %v5195_v13 = vpack.c.bf16 %v5177_v33, %v5176_v14  ;;  %5437 = vmatpush1.bf16.msra.mxu1 %v5132_v62 }
 0x5d6   : > { %v5175_v22 = vsel %vm17729_vm8, %v8025_v6, %v8030_v43  ;;  %vm17730_vm1 = vmmov %vm17728_vm7 }
 0x5d7   : > { %v5188_v28 = vsel %vm17730_vm1, %v8029_v34, %v7894_v27  ;;  %v5196_v37 = vpack.c.bf16 %v5175_v22, %v5174_v48  ;;  %vm17731_vm6 = vmmov %vm17730_vm1  ;;  %5395 = vmatprep.subr.bf16.mxu0 %v5195_v13  ;;  %v15463_v27 = vpop.permute.xlu1 %5485  ;;  %v5541_v48 = vld [vmem:[%s8432_s15 + $0x20] sm:$0xff] }
 0x5d8   : > { %v5189_v39 = vsel %vm17731_vm6, %v8030_v43, %v7895_v18  ;;  %5396 = vmatpush1.bf16.msra.mxu0 %v5194_v7  ;;  %v5542_v7 = vld [vmem:[%s8432_s15 + $0x28] sm:$0xff] }
 0x5d9   : > { %v5197_v45 = vpack.c.bf16 %v5189_v39, %v5188_v28 }
 0x5db   : > { %5438 = vmatprep.subr.bf16.mxu1 %v5197_v45  ;;  %5412 = vmatmul.mubr.bf16.vlgmr.msra.gmra.mrb[12].mxu0 %v15257_v0  ;;  %v15467_v41 = vpop.permute.xlu1 %5513  ;;  %v5543_v45 = vld [vmem:[%s8432_s15 + $0x30] sm:$0xff] }
 0x5dc   : > { %5439 = vmatpush1.bf16.msra.mxu1 %v5196_v37 }
 0x5df   : > { %5455 = vmatmul.mubr.bf16.vlgmr.msra.gmra.mrb[12].mxu1 %v15257_v0 }
 0x676   : > { %v5327_v16 = vpop.f32.mrb[8].mxu0 }
 0x677   : > { %v5493_v18 = vmul.f32 %v15463_v27, %v5327_v16  ;;  %v5329_v3 = vpop.f32.mrb[9].mxu0  ;;  %v5370_v44 = vpop.f32.mrb[8].mxu1 }
 0x678   : > { %v5494_v54 = vmul.f32 %v15463_v27, %v5329_v3  ;;  %v5495_v4 = vmul.f32 %v15463_v27, %v5370_v44  ;;  %v5331_v20 = vpop.f32.mrb[10].mxu0  ;;  %v5372_v0 = vpop.f32.mrb[9].mxu1 }
 0x679   : > { %v5521_v50 = vadd.f32 %v15467_v41, %v5493_v18  ;;  %v5501_v11 = vmul.f32 %v15465_v15, %v5331_v20  ;;  %v5496_v23 = vmul.f32 %v15463_v27, %v5372_v0  ;;  %v5333_v32 = vpop.f32.mrb[11].mxu0  ;;  %v5374_v36 = vpop.f32.mrb[10].mxu1  ;;  %v5544_v20 = vld [vmem:[%s8432_s15 + $0x38] sm:$0xff] }
 0x67a   : > { %v5522_v10 = vadd.f32 %v15467_v41, %v5494_v54  ;;  %v5523_v1 = vadd.f32 %v15467_v41, %v5495_v4  ;;  %v5502_v53 = vmul.f32 %v15465_v15, %v5333_v32  ;;  %v5503_v9 = vmul.f32 %v15465_v15, %v5374_v36  ;;  %v5376_v38 = vpop.f32.mrb[11].mxu1  ;;  %v5549_v4 = vld [vmem:[%s8432_s15 + $0x60] sm:$0xff]  ;;  %v5551_v32 = vld [vmem:[%s8432_s15 + $0x70] sm:$0xff] }
 0x67b   : > { %v5553_v21 = vadd.f32 %v5537_v30, %v5521_v50  ;;  %v5529_v17 = vadd.f32 %v15478_v46, %v5501_v11  ;;  %v5524_v19 = vadd.f32 %v15467_v41, %v5496_v23  ;;  %v5504_v2 = vmul.f32 %v15465_v15, %v5376_v38  ;;  %v5550_v23 = vld [vmem:[%s8432_s15 + $0x68] sm:$0xff] }
 0x67c   : > { %v5554_v47 = vadd.f32 %v5538_v61, %v5522_v10  ;;  %v5555_v57 = vadd.f32 %v5539_v31, %v5523_v1  ;;  %v5530_v63 = vadd.f32 %v15478_v46, %v5502_v53  ;;  %v5531_v59 = vadd.f32 %v15478_v46, %v5503_v9  ;;  %v5552_v53 = vld [vmem:[%s8432_s15 + $0x78] sm:$0xff] }
 0x67d   : > { %v5569_v25 = vmax.f32 %v5553_v21, 0.0  ;;  %v5561_v24 = vadd.f32 %v5545_v56, %v5529_v17  ;;  %v5556_v52 = vadd.f32 %v5540_v42, %v5524_v19  ;;  %v5532_v49 = vadd.f32 %v15478_v46, %v5504_v2 }
 0x67e   : > { %v5570_v26 = vmax.f32 %v5554_v47, 0.0  ;;  %v5571_v58 = vmax.f32 %v5555_v57, 0.0  ;;  %v5562_v8 = vadd.f32 %v5546_v55, %v5530_v63  ;;  %v5563_v6 = vadd.f32 %v5547_v29, %v5531_v59 }
 0x67f   : > { %5585 = vst [vmem:[%s15497_s21] sm:$0xff] %v5569_v25  ;;  %v5577_v60 = vmax.f32 %v5561_v24, 0.0  ;;  %v5572_v12 = vmax.f32 %v5556_v52, 0.0  ;;  %v5564_v35 = vadd.f32 %v5548_v40, %v5532_v49 }
 0x680   : > { %5586 = vst [vmem:[%s15497_s21 + $0x8] sm:$0xff] %v5570_v26  ;;  %5587 = vst [vmem:[%s15497_s21 + $0x10] sm:$0xff] %v5571_v58  ;;  %v5578_v62 = vmax.f32 %v5562_v8, 0.0  ;;  %v5579_v43 = vmax.f32 %v5563_v6, 0.0 }
 0x681   : > { %5593 = vst [vmem:[%s15497_s21 + $0x40] sm:$0xff] %v5577_v60  ;;  %5588 = vst [vmem:[%s15497_s21 + $0x18] sm:$0xff] %v5572_v12  ;;  %v5580_v34 = vmax.f32 %v5564_v35, 0.0 }
 0x682   : > { %5594 = vst [vmem:[%s15497_s21 + $0x48] sm:$0xff] %v5578_v62  ;;  %5595 = vst [vmem:[%s15497_s21 + $0x50] sm:$0xff] %v5579_v43 }
 0x683   : > { %5596 = vst [vmem:[%s15497_s21 + $0x58] sm:$0xff] %v5580_v34 }
 0x6ae   : > { %v5413_v5 = vpop.f32.mrb[12].mxu0 }
 0x6af   : > { %v5497_v51 = vmul.f32 %v15463_v27, %v5413_v5  ;;  %v5415_v14 = vpop.f32.mrb[13].mxu0 }
 0x6b0   : > { %v5498_v22 = vmul.f32 %v15463_v27, %v5415_v14  ;;  %v5417_v28 = vpop.f32.mrb[14].mxu0 }
 0x6b1   : > { %v5525_v39 = vadd.f32 %v15467_v41, %v5497_v51  ;;  %v5505_v16 = vmul.f32 %v15465_v15, %v5417_v28  ;;  %v5419_v3 = vpop.f32.mrb[15].mxu0 }
 0x6b2   : > { %v5456_v33 = vpop.f32.mrb[12].mxu1  ;;  %v5526_v30 = vadd.f32 %v15467_v41, %v5498_v22  ;;  %v5506_v0 = vmul.f32 %v15465_v15, %v5419_v3 }
 0x6b3   : > { %v5499_v13 = vmul.f32 %v15463_v27, %v5456_v33  ;;  %v5458_v37 = vpop.f32.mrb[13].mxu1  ;;  %v5557_v31 = vadd.f32 %v5541_v48, %v5525_v39  ;;  %v5533_v11 = vadd.f32 %v15478_v46, %v5505_v16 }
 0x6b4   : > { %v5500_v18 = vmul.f32 %v15463_v27, %v5458_v37  ;;  %v5460_v44 = vpop.f32.mrb[14].mxu1  ;;  %v5558_v10 = vadd.f32 %v5542_v7, %v5526_v30  ;;  %v5534_v56 = vadd.f32 %v15478_v46, %v5506_v0 }
 0x6b5   : > { %v5527_v54 = vadd.f32 %v15467_v41, %v5499_v13  ;;  %v5507_v50 = vmul.f32 %v15465_v15, %v5460_v44  ;;  %v5462_v61 = vpop.f32.mrb[15].mxu1  ;;  %v5573_v9 = vmax.f32 %v5557_v31, 0.0  ;;  %v5565_v38 = vadd.f32 %v5549_v4, %v5533_v11 }
 0x6b6   : > { %v5528_v27 = vadd.f32 %v15467_v41, %v5500_v18  ;;  %v5508_v36 = vmul.f32 %v15465_v15, %v5462_v61  ;;  %v5574_v15 = vmax.f32 %v5558_v10, 0.0  ;;  %v5566_v19 = vadd.f32 %v5550_v23, %v5534_v56 }
 0x6b7   : > { %v5559_v1 = vadd.f32 %v5543_v45, %v5527_v54  ;;  %v5535_v42 = vadd.f32 %v15478_v46, %v5507_v50  ;;  %5589 = vst [vmem:[%s15497_s21 + $0x20] sm:$0xff] %v5573_v9  ;;  %v5581_v29 = vmax.f32 %v5565_v38, 0.0 }
 0x6b8   : > { %v5560_v21 = vadd.f32 %v5544_v20, %v5528_v27  ;;  %v5536_v17 = vadd.f32 %v15478_v46, %v5508_v36  ;;  %5590 = vst [vmem:[%s15497_s21 + $0x28] sm:$0xff] %v5574_v15  ;;  %v5582_v46 = vmax.f32 %v5566_v19, 0.0 }
 0x6b9   : > { %v5575_v41 = vmax.f32 %v5559_v1, 0.0  ;;  %v5567_v55 = vadd.f32 %v5551_v32, %v5535_v42  ;;  %5597 = vst [vmem:[%s15497_s21 + $0x60] sm:$0xff] %v5581_v29 }
 0x6ba   : > { %v5576_v2 = vmax.f32 %v5560_v21, 0.0  ;;  %v5568_v47 = vadd.f32 %v5552_v53, %v5536_v17  ;;  %5598 = vst [vmem:[%s15497_s21 + $0x68] sm:$0xff] %v5582_v46 }
 0x6bb   : > { %5591 = vst [vmem:[%s15497_s21 + $0x30] sm:$0xff] %v5575_v41  ;;  %v5583_v57 = vmax.f32 %v5567_v55, 0.0 }
 0x6bc   : > { %5592 = vst [vmem:[%s15497_s21 + $0x38] sm:$0xff] %v5576_v2  ;;  %v5584_v63 = vmax.f32 %v5568_v47, 0.0 }
 0x6bd   : > { %5599 = vst [vmem:[%s15497_s21 + $0x70] sm:$0xff] %v5583_v57 }
 0x6be   : > { %5600 = vst [vmem:[%s15497_s21 + $0x78] sm:$0xff] %v5584_v63 }
 0x6bf   : > { %8147 = shalt.err (!%p8144_p9)
}
 0x6c0   : > { %s8148_s20 = scalar_lea.hbm %s15539_s14, 2048  ;;  %s8152_s21 = scalar_lea.hbm %s15598_s8, 4096 }
 0x6c1   : > { %p8149_p2 = scmp.ne.s32.totalorder %s15539_s14, %s8148_s20  ;;  %p8153_p11 = scmp.lt.u32.totalorder %s15539_s14, %s15598_s8 }
 0x6c2   : > { %p8154_p1 = scmp.lt.u32.totalorder %s8152_s21, %s8148_s20  ;;  %p8156_p6 = scmp.lt.u32.totalorder %s8148_s20, %s15539_s14 }
 0x6c3   : > { %p8150_p0 = pnand %p8149_p2, %p8378_p12 }
 0x6c4   : > { %p8155_p4 = por %p8154_p1, %p8153_p11 }
 0x6c5   : > { %p8151_p5 = pneg %p8150_p0 }
 0x6c6   : > { %p8157_p8 = por %p8156_p6, %p8155_p4 }
 0x6c8   : > { %p8158_p10 = pnand %p8157_p8, %p8151_p5 }
 0x6ca   : > { %8161 = shalt.err (!%p8158_p10)
}
 0x6cb   : > { %s8240_s15 = smov 1024   ;;  %s8241_s25 = smov 64  }
 0x6cc   : > { %5865 = dma.vmem_to_hbm [thread:$0]  (%p8378_p12), %s15541_s19, 2048, %s15539_s14, %s5602_s17, %s8240_s15, %s8240_s15, %s8241_s25  }
 0x6cd PF: > { %s5630_s16 = sand.u32 1, %s8192_s27   ;;  %p17733_p13 = scmp.ne.s32.totalorder %s16148_s12, 0 }
 0x6ce   : > { %p17734_p3 = scmp.ge.s32.totalorder %s8204_s30, 2  ;;  %s5631_s22 = scalar_lea.sflag [#allocation5], %s5630_s16 }
 0x6d0   : > { %p5876_p7 = pnand %p17734_p3, %p17733_p13 }
 0x6d2   : > { %8187 = dma.done.wait (!%p5876_p7), %s5631_s22, 2048  }
 0x6d3   : > { %8189 = vsyncadd (!%p5876_p7), %s5631_s22, 4294965248  ;;  %s17735_s30 = sld [smem:[#allocation12_spill]]  ;;  %s17736_s27 = smov %s8196_s28 }
 0x6d4   : > { %s17737_s28 = smov %s8200_s29  ;;  %s17738_s29 = smov %s8374_s23 }
 0x6d9   : > { %p22_p9 = scmp.ge.s32.totalorder %s17735_s30, 4  }
 0x6db   :  { %24 = sbr.rel (!%p22_p9) target bundleno = 6 (0x6), region = 109 }
 0x6e2   :  { %5636 = vsyncpa [#allocation4], 1 }
 0x6e3   :  { %5638 = vsyncpa [#allocation4 + $0x1], 1 }
 0x6e4   :  { %5639 = vsyncpa [#allocation7], 1 }
 0x6e5   :  { %5640 = vsyncpa [#allocation5], 1 }
 0x6e6   :  { %5642 = vsyncpa [#allocation5 + $0x1], 1 }

</bundles_post_ra>
